<compile_context>
chip_gen: v6e
topology: v6e:2x2x1
jax: 0.10.0
libtpu: 0.0.40
codegen_flags: <defaults>
</compile_context>

<pallas_src>
import jax
import jax.numpy as jnp
from jax.experimental import pallas as pl
from jax.experimental.pallas import tpu as pltpu

# ---- model hyperparameters (from GGNNEncoder.__init__) -----------------
EMBED_DIM = 32          # args['embedding_size']
N_STEPS = 8             # GatedGraphConv(..., 8, 4)
N_ETYPES = 4
N_NODES = 16            # small synthetic graph
N_GRAPHS = 8            # batch of graphs
GRAPHS_PER_BLOCK = 4    # graphs fused per grid step (grid = (N_GRAPHS // 4,))


def _ggnn_kernel(a_vert_ref, bias_gi_ref, h_ref,
                 wprime_ref, whh_ref, bhh_ref, out_ref):
    G, N, D = h_ref.shape            # graphs per block, nodes, feature dim
    T = wprime_ref.shape[0]          # number of edge types
    GN = G * N

    # ---- loop-invariant loads / broadcasts, hoisted out of the step loop --
    a_vert = a_vert_ref[...]                               # (G, T*N, N)
    bias_gi = bias_gi_ref[...].reshape(GN, 3 * D)          # (G*N, 3D) step-invariant
    wprime = wprime_ref[...]                               # (T, D, 3D)  W_t^T @ W_ih^T
    whh = whh_ref[...]                                     # (D, 3D)     W_hh^T
    bhh_b = jnp.broadcast_to(bhh_ref[...], (GN, 3 * D))    # (G*N, 3D) hoisted broadcast

    h = h_ref[...].reshape(GN, D)                          # (G*N, D)

    # ---- 8 propagation steps, fully unrolled -------------------------------
    for _ in range(N_STEPS):
        # GRU hidden path (independent of the aggregation path -> overlaps).
        gh = jnp.dot(h, whh, preferred_element_type=jnp.float32) + bhh_b   # (G*N, 3D)

        # Per-graph neighbour aggregation for ALL etypes in one batched matmul:
        #   P[g, t*N + v, :] = sum_s adj[g, t, v, s] * h[g, s, :]
        p = jnp.einsum('gmn,gnd->gmd', a_vert, h.reshape(G, N, D),
                       preferred_element_type=jnp.float32)                 # (G, T*N, D)
        p4 = p.reshape(G, T, N, D)                                         # sublane split

        # gi = bias_gi + sum_t (A_t @ h) @ (W_t^T W_ih^T)
        # T independent sublane-aligned slice matmuls; no concatenate, no
        # lane-unaligned slicing.
        gi = bias_gi
        for t in range(T):
            gi = gi + jnp.dot(p4[:, t].reshape(GN, D), wprime[t],
                              preferred_element_type=jnp.float32)          # (G*N, 3D)

        # ---- GRUCell(a, h): gates r, z, n (torch ordering) ----
        r = jax.nn.sigmoid(gi[:, 0:D] + gh[:, 0:D])
        z = jax.nn.sigmoid(gi[:, D:2 * D] + gh[:, D:2 * D])
        n = jnp.tanh(gi[:, 2 * D:3 * D] + r * gh[:, 2 * D:3 * D])
        h = n + z * (h - n)          # == (1 - z) * n + z * h

    out_ref[...] = h.reshape(G, N, D).astype(out_ref.dtype)


def ggnn_encoder_forward(adj, feats, params, graphs_per_block=GRAPHS_PER_BLOCK):
    """adj:   (B, T, N, N) f32 dense per-etype adjacency (adj[b, t, dst, src]).
       feats: (B, N, D)    f32 node features.
       Returns (B, N, D) f32 updated node states."""
    we_t, be, wih_t, whh_t, bih, bhh = params
    B, T, N, _ = adj.shape
    D = feats.shape[-1]
    G = graphs_per_block
    assert B % G == 0, "batch must be divisible by graphs_per_block"

    # ---- step-invariant precomputation (pure JAX, outside the kernel) -----
    # Folded message->GRU-input weights:  W'_t = W_t^T @ W_ih^T   (T, D, 3D)
    wprime = jnp.einsum('tde,ef->tdf', we_t, wih_t)
    # Etype-stacked adjacency with the etype axis on SUBLANES:  (B, T*N, N)
    a_vert = adj.reshape(B, T * N, N)
    # Step-invariant GRU-input bias:  (sum_in b_t) @ W_ih^T + b_ih  (B, N, 3D)
    deg = adj.sum(axis=-1)                                            # (B, T, N)
    bias_agg = jnp.einsum('btv,td->bvd', deg, be.reshape(T, D))       # (B, N, D)
    bias_gi = jnp.einsum('bvd,de->bve', bias_agg, wih_t) + bih        # (B, N, 3D)

    # TODO(synk): on v5e/v6e, casting a_vert / wprime / whh (and per-step h at
    # the MXU inputs) to bf16 halves MXU passes and adjacency bytes (A is
    # exactly 0/1); kept f32 here to preserve the strict 1e-4 reference check.
    return pl.pallas_call(
        _ggnn_kernel,
        out_shape=jax.ShapeDtypeStruct((B, N, D), jnp.float32),
        grid=(B // G,),
        in_specs=[
            pl.BlockSpec((G, T * N, N), lambda i: (i, 0, 0)),         # a_vert
            pl.BlockSpec((G, N, 3 * D), lambda i: (i, 0, 0)),         # bias_gi
            pl.BlockSpec((G, N, D), lambda i: (i, 0, 0)),             # feats
            pl.BlockSpec((T, D, 3 * D), lambda i: (0, 0, 0)),         # wprime
            pl.BlockSpec((D, 3 * D), lambda i: (0, 0)),               # whh_t
            pl.BlockSpec((1, 3 * D), lambda i: (0, 0)),               # bhh
        ],
        out_specs=pl.BlockSpec((G, N, D), lambda i: (i, 0, 0)),
        compiler_params=pltpu.CompilerParams(
            dimension_semantics=("parallel",)),
    )(a_vert, bias_gi, feats, wprime, whh_t, bhh)


def _reference_forward(adj, feats, params):
    """Pure-JAX reference with the original (un-fused) math."""
    we_t, be, wih_t, whh_t, bih, bhh = params
    D = EMBED_DIM

    def one_graph(adj_g, h):
        for _ in range(N_STEPS):
            a = jnp.zeros_like(h)
            for t in range(N_ETYPES):
                a = a + adj_g[t] @ (h @ we_t[t] + be[t])
            gi = a @ wih_t + bih
            gh = h @ whh_t + bhh
            r = jax.nn.sigmoid(gi[:, :D] + gh[:, :D])
            z = jax.nn.sigmoid(gi[:, D:2 * D] + gh[:, D:2 * D])
            n = jnp.tanh(gi[:, 2 * D:] + r * gh[:, 2 * D:])
            h = (1.0 - z) * n + z * h
        return h

    return jax.vmap(one_graph)(adj, feats)


def _init_params(key):
    """Deterministic synthetic parameters with the shapes GatedGraphConv uses."""
    D = EMBED_DIM
    ks = jax.random.split(key, 6)
    bound = 1.0 / jnp.sqrt(jnp.float32(D))
    # per-etype nn.Linear(D, D): weight (D, D), bias (D,) -> store W^T, b as (1, D)
    w_edge = jax.random.uniform(ks[0], (N_ETYPES, D, D), jnp.float32, -bound, bound)
    we_t = jnp.transpose(w_edge, (0, 2, 1))                       # (T, D, D)
    be = jax.random.uniform(ks[1], (N_ETYPES, 1, D), jnp.float32, -bound, bound)
    # nn.GRUCell(D, D): weight_ih/hh (3D, D), bias_ih/hh (3D,) -> store transposed
    wih_t = jax.random.uniform(ks[2], (3 * D, D), jnp.float32, -bound, bound).T
    whh_t = jax.random.uniform(ks[3], (3 * D, D), jnp.float32, -bound, bound).T
    bih = jax.random.uniform(ks[4], (1, 3 * D), jnp.float32, -bound, bound)
    bhh = jax.random.uniform(ks[5], (1, 3 * D), jnp.float32, -bound, bound)
    return (we_t, be, wih_t, whh_t, bih, bhh)


if __name__ == "__main__":
    key = jax.random.PRNGKey(0)
    k_adj, k_feat, k_param = jax.random.split(key, 3)

    # batch of synthetic directed multigraphs: dense per-etype adjacency (dst, src)
    adj = (jax.random.uniform(
        k_adj, (N_GRAPHS, N_ETYPES, N_NODES, N_NODES)) < 0.25).astype(jnp.float32)
    feats = jax.random.normal(k_feat, (N_GRAPHS, N_NODES, EMBED_DIM), jnp.float32)
    params = _init_params(k_param)

    out = jax.block_until_ready(ggnn_encoder_forward(adj, feats, params))

    ref = _reference_forward(adj, feats, params)
    assert out.shape == (N_GRAPHS, N_NODES, EMBED_DIM)
    assert jnp.allclose(out, ref, atol=2e-4, rtol=2e-4), "mismatch vs reference"

    print("KERNEL_OK")
</pallas_src>

<mosaic_0001>
module attributes {stable_mosaic.version = 11 : i64} {
  func.func @_ggnn_kernel(%arg0: i32, %arg1: memref<4x64x16xf32, #tpu.memory_space<vmem>>, %arg2: memref<4x16x96xf32, #tpu.memory_space<vmem>>, %arg3: memref<4x16x32xf32, #tpu.memory_space<vmem>>, %arg4: memref<4x32x96xf32, #tpu.memory_space<vmem>>, %arg5: memref<32x96xf32, #tpu.memory_space<vmem>>, %arg6: memref<1x96xf32, #tpu.memory_space<vmem>>, %arg7: memref<4x16x32xf32, #tpu.memory_space<vmem>>) attributes {dimension_semantics = [#tpu.dimension_semantics<parallel>], iteration_bounds = array<i64: 2>, scalar_prefetch = 0 : i64, scratch_operands = 0 : i64, tpu.core_type = #tpu.core_type<tc>, window_params = [{transform_indices = @transform_0, window_bounds = array<i64: 4, 64, 16>}, {transform_indices = @transform_1, window_bounds = array<i64: 4, 16, 96>}, {transform_indices = @transform_2, window_bounds = array<i64: 4, 16, 32>}, {pipeline_mode = #tpu.pipeline_mode<synchronous>, transform_indices = @transform_3, window_bounds = array<i64: 4, 32, 96>}, {pipeline_mode = #tpu.pipeline_mode<synchronous>, transform_indices = @transform_4, window_bounds = array<i64: 32, 96>}, {pipeline_mode = #tpu.pipeline_mode<synchronous>, transform_indices = @transform_5, window_bounds = array<i64: 1, 96>}, {transform_indices = @transform_6, window_bounds = array<i64: 4, 16, 32>}]} {
    %c0 = arith.constant 0 : index
    %c0_0 = arith.constant 0 : index
    %c0_1 = arith.constant 0 : index
    %0 = vector.load %arg1[%c0, %c0_0, %c0_1] : memref<4x64x16xf32, #tpu.memory_space<vmem>>, vector<4x64x16xf32>
    %c0_2 = arith.constant 0 : index
    %c0_3 = arith.constant 0 : index
    %c0_4 = arith.constant 0 : index
    %1 = vector.load %arg2[%c0_2, %c0_3, %c0_4] : memref<4x16x96xf32, #tpu.memory_space<vmem>>, vector<4x16x96xf32>
    %2 = vector.shape_cast %1 : vector<4x16x96xf32> to vector<64x96xf32>
    %c0_5 = arith.constant 0 : index
    %c0_6 = arith.constant 0 : index
    %c0_7 = arith.constant 0 : index
    %3 = vector.load %arg4[%c0_5, %c0_6, %c0_7] : memref<4x32x96xf32, #tpu.memory_space<vmem>>, vector<4x32x96xf32>
    %c0_8 = arith.constant 0 : index
    %c0_9 = arith.constant 0 : index
    %4 = vector.load %arg5[%c0_8, %c0_9] : memref<32x96xf32, #tpu.memory_space<vmem>>, vector<32x96xf32>
    %c0_10 = arith.constant 0 : index
    %c0_11 = arith.constant 0 : index
    %5 = vector.load %arg6[%c0_10, %c0_11] : memref<1x96xf32, #tpu.memory_space<vmem>>, vector<1x96xf32>
    %6 = vector.shape_cast %5 : vector<1x96xf32> to vector<1x96xf32>
    %7 = vector.broadcast %6 : vector<1x96xf32> to vector<64x96xf32>
    %c0_12 = arith.constant 0 : index
    %c0_13 = arith.constant 0 : index
    %c0_14 = arith.constant 0 : index
    %8 = vector.load %arg3[%c0_12, %c0_13, %c0_14] : memref<4x16x32xf32, #tpu.memory_space<vmem>>, vector<4x16x32xf32>
    %9 = vector.shape_cast %8 : vector<4x16x32xf32> to vector<64x32xf32>
    %cst = arith.constant dense<0.000000e+00> : vector<64x96xf32>
    %10 = tpu.matmul %9, %4, %cst {dimension_numbers = #tpu.dot_dimension_numbers<[1], [0], [0], [1], [0, 0, 1, 1], [], []>} : vector<64x32xf32>, vector<32x96xf32>, vector<64x96xf32> -> vector<64x96xf32>
    %11 = arith.addf %10, %7 : vector<64x96xf32>
    %12 = vector.shape_cast %9 : vector<64x32xf32> to vector<4x16x32xf32>
    "tpu.trace_start"() <{level = 10 : i32, message = "gmn,gnd->gmd"}> : () -> ()
    %cst_15 = arith.constant dense<0.000000e+00> : vector<4x64x32xf32>
    %13 = tpu.matmul %0, %12, %cst_15 {dimension_numbers = #tpu.dot_dimension_numbers<[2], [1], [1], [2], [0, 0, 0, 1, 1, 2], [0], [0]>} : vector<4x64x16xf32>, vector<4x16x32xf32>, vector<4x64x32xf32> -> vector<4x64x32xf32>
    "tpu.trace_stop"() : () -> ()
    %14 = vector.shape_cast %13 : vector<4x64x32xf32> to vector<4x4x16x32xf32>
    %15 = vector.extract_strided_slice %14 {offsets = [0, 0, 0, 0], sizes = [4, 1, 16, 32], strides = [1, 1, 1, 1]} : vector<4x4x16x32xf32> to vector<4x1x16x32xf32>
    %16 = vector.shape_cast %15 : vector<4x1x16x32xf32> to vector<4x16x32xf32>
    %17 = vector.shape_cast %16 : vector<4x16x32xf32> to vector<64x32xf32>
    %18 = vector.extract_strided_slice %3 {offsets = [0, 0, 0], sizes = [1, 32, 96], strides = [1, 1, 1]} : vector<4x32x96xf32> to vector<1x32x96xf32>
    %19 = vector.shape_cast %18 : vector<1x32x96xf32> to vector<32x96xf32>
    %cst_16 = arith.constant dense<0.000000e+00> : vector<64x96xf32>
    %20 = tpu.matmul %17, %19, %cst_16 {dimension_numbers = #tpu.dot_dimension_numbers<[1], [0], [0], [1], [0, 0, 1, 1], [], []>} : vector<64x32xf32>, vector<32x96xf32>, vector<64x96xf32> -> vector<64x96xf32>
    %21 = arith.addf %2, %20 : vector<64x96xf32>
    %22 = vector.extract_strided_slice %14 {offsets = [0, 1, 0, 0], sizes = [4, 1, 16, 32], strides = [1, 1, 1, 1]} : vector<4x4x16x32xf32> to vector<4x1x16x32xf32>
    %23 = vector.shape_cast %22 : vector<4x1x16x32xf32> to vector<4x16x32xf32>
    %24 = vector.shape_cast %23 : vector<4x16x32xf32> to vector<64x32xf32>
    %25 = vector.extract_strided_slice %3 {offsets = [1, 0, 0], sizes = [1, 32, 96], strides = [1, 1, 1]} : vector<4x32x96xf32> to vector<1x32x96xf32>
    %26 = vector.shape_cast %25 : vector<1x32x96xf32> to vector<32x96xf32>
    %cst_17 = arith.constant dense<0.000000e+00> : vector<64x96xf32>
    %27 = tpu.matmul %24, %26, %cst_17 {dimension_numbers = #tpu.dot_dimension_numbers<[1], [0], [0], [1], [0, 0, 1, 1], [], []>} : vector<64x32xf32>, vector<32x96xf32>, vector<64x96xf32> -> vector<64x96xf32>
    %28 = arith.addf %21, %27 : vector<64x96xf32>
    %29 = vector.extract_strided_slice %14 {offsets = [0, 2, 0, 0], sizes = [4, 1, 16, 32], strides = [1, 1, 1, 1]} : vector<4x4x16x32xf32> to vector<4x1x16x32xf32>
    %30 = vector.shape_cast %29 : vector<4x1x16x32xf32> to vector<4x16x32xf32>
    %31 = vector.shape_cast %30 : vector<4x16x32xf32> to vector<64x32xf32>
    %32 = vector.extract_strided_slice %3 {offsets = [2, 0, 0], sizes = [1, 32, 96], strides = [1, 1, 1]} : vector<4x32x96xf32> to vector<1x32x96xf32>
    %33 = vector.shape_cast %32 : vector<1x32x96xf32> to vector<32x96xf32>
    %cst_18 = arith.constant dense<0.000000e+00> : vector<64x96xf32>
    %34 = tpu.matmul %31, %33, %cst_18 {dimension_numbers = #tpu.dot_dimension_numbers<[1], [0], [0], [1], [0, 0, 1, 1], [], []>} : vector<64x32xf32>, vector<32x96xf32>, vector<64x96xf32> -> vector<64x96xf32>
    %35 = arith.addf %28, %34 : vector<64x96xf32>
    %36 = vector.extract_strided_slice %14 {offsets = [0, 3, 0, 0], sizes = [4, 1, 16, 32], strides = [1, 1, 1, 1]} : vector<4x4x16x32xf32> to vector<4x1x16x32xf32>
    %37 = vector.shape_cast %36 : vector<4x1x16x32xf32> to vector<4x16x32xf32>
    %38 = vector.shape_cast %37 : vector<4x16x32xf32> to vector<64x32xf32>
    %39 = vector.extract_strided_slice %3 {offsets = [3, 0, 0], sizes = [1, 32, 96], strides = [1, 1, 1]} : vector<4x32x96xf32> to vector<1x32x96xf32>
    %40 = vector.shape_cast %39 : vector<1x32x96xf32> to vector<32x96xf32>
    %cst_19 = arith.constant dense<0.000000e+00> : vector<64x96xf32>
    %41 = tpu.matmul %38, %40, %cst_19 {dimension_numbers = #tpu.dot_dimension_numbers<[1], [0], [0], [1], [0, 0, 1, 1], [], []>} : vector<64x32xf32>, vector<32x96xf32>, vector<64x96xf32> -> vector<64x96xf32>
    %42 = arith.addf %35, %41 : vector<64x96xf32>
    %43 = vector.extract_strided_slice %42 {offsets = [0, 0], sizes = [64, 32], strides = [1, 1]} : vector<64x96xf32> to vector<64x32xf32>
    %44 = vector.extract_strided_slice %11 {offsets = [0, 0], sizes = [64, 32], strides = [1, 1]} : vector<64x96xf32> to vector<64x32xf32>
    %45 = arith.addf %43, %44 : vector<64x32xf32>
    %46 = arith.negf %45 : vector<64x32xf32>
    %47 = math.exp %46 : vector<64x32xf32>
    %cst_20 = arith.constant 1.000000e+00 : f32
    %48 = vector.broadcast %cst_20 : f32 to vector<64x32xf32>
    %49 = arith.addf %48, %47 : vector<64x32xf32>
    %50 = arith.divf %48, %49 : vector<64x32xf32>
    %51 = vector.extract_strided_slice %42 {offsets = [0, 32], sizes = [64, 32], strides = [1, 1]} : vector<64x96xf32> to vector<64x32xf32>
    %52 = vector.extract_strided_slice %11 {offsets = [0, 32], sizes = [64, 32], strides = [1, 1]} : vector<64x96xf32> to vector<64x32xf32>
    %53 = arith.addf %51, %52 : vector<64x32xf32>
    %54 = arith.negf %53 : vector<64x32xf32>
    %55 = math.exp %54 : vector<64x32xf32>
    %cst_21 = arith.constant 1.000000e+00 : f32
    %56 = vector.broadcast %cst_21 : f32 to vector<64x32xf32>
    %57 = arith.addf %56, %55 : vector<64x32xf32>
    %58 = arith.divf %56, %57 : vector<64x32xf32>
    %59 = vector.extract_strided_slice %42 {offsets = [0, 64], sizes = [64, 32], strides = [1, 1]} : vector<64x96xf32> to vector<64x32xf32>
    %60 = vector.extract_strided_slice %11 {offsets = [0, 64], sizes = [64, 32], strides = [1, 1]} : vector<64x96xf32> to vector<64x32xf32>
    %61 = arith.mulf %50, %60 : vector<64x32xf32>
    %62 = arith.addf %59, %61 : vector<64x32xf32>
    %63 = math.tanh %62 : vector<64x32xf32>
    %64 = arith.subf %9, %63 : vector<64x32xf32>
    %65 = arith.mulf %58, %64 : vector<64x32xf32>
    %66 = arith.addf %63, %65 : vector<64x32xf32>
    %cst_22 = arith.constant dense<0.000000e+00> : vector<64x96xf32>
    %67 = tpu.matmul %66, %4, %cst_22 {dimension_numbers = #tpu.dot_dimension_numbers<[1], [0], [0], [1], [0, 0, 1, 1], [], []>} : vector<64x32xf32>, vector<32x96xf32>, vector<64x96xf32> -> vector<64x96xf32>
    %68 = arith.addf %67, %7 : vector<64x96xf32>
    %69 = vector.shape_cast %66 : vector<64x32xf32> to vector<4x16x32xf32>
    "tpu.trace_start"() <{level = 10 : i32, message = "gmn,gnd->gmd"}> : () -> ()
    %cst_23 = arith.constant dense<0.000000e+00> : vector<4x64x32xf32>
    %70 = tpu.matmul %0, %69, %cst_23 {dimension_numbers = #tpu.dot_dimension_numbers<[2], [1], [1], [2], [0, 0, 0, 1, 1, 2], [0], [0]>} : vector<4x64x16xf32>, vector<4x16x32xf32>, vector<4x64x32xf32> -> vector<4x64x32xf32>
    "tpu.trace_stop"() : () -> ()
    %71 = vector.shape_cast %70 : vector<4x64x32xf32> to vector<4x4x16x32xf32>
    %72 = vector.extract_strided_slice %71 {offsets = [0, 0, 0, 0], sizes = [4, 1, 16, 32], strides = [1, 1, 1, 1]} : vector<4x4x16x32xf32> to vector<4x1x16x32xf32>
    %73 = vector.shape_cast %72 : vector<4x1x16x32xf32> to vector<4x16x32xf32>
    %74 = vector.shape_cast %73 : vector<4x16x32xf32> to vector<64x32xf32>
    %75 = vector.extract_strided_slice %3 {offsets = [0, 0, 0], sizes = [1, 32, 96], strides = [1, 1, 1]} : vector<4x32x96xf32> to vector<1x32x96xf32>
    %76 = vector.shape_cast %75 : vector<1x32x96xf32> to vector<32x96xf32>
    %cst_24 = arith.constant dense<0.000000e+00> : vector<64x96xf32>
    %77 = tpu.matmul %74, %76, %cst_24 {dimension_numbers = #tpu.dot_dimension_numbers<[1], [0], [0], [1], [0, 0, 1, 1], [], []>} : vector<64x32xf32>, vector<32x96xf32>, vector<64x96xf32> -> vector<64x96xf32>
    %78 = arith.addf %2, %77 : vector<64x96xf32>
    %79 = vector.extract_strided_slice %71 {offsets = [0, 1, 0, 0], sizes = [4, 1, 16, 32], strides = [1, 1, 1, 1]} : vector<4x4x16x32xf32> to vector<4x1x16x32xf32>
    %80 = vector.shape_cast %79 : vector<4x1x16x32xf32> to vector<4x16x32xf32>
    %81 = vector.shape_cast %80 : vector<4x16x32xf32> to vector<64x32xf32>
    %82 = vector.extract_strided_slice %3 {offsets = [1, 0, 0], sizes = [1, 32, 96], strides = [1, 1, 1]} : vector<4x32x96xf32> to vector<1x32x96xf32>
    %83 = vector.shape_cast %82 : vector<1x32x96xf32> to vector<32x96xf32>
    %cst_25 = arith.constant dense<0.000000e+00> : vector<64x96xf32>
    %84 = tpu.matmul %81, %83, %cst_25 {dimension_numbers = #tpu.dot_dimension_numbers<[1], [0], [0], [1], [0, 0, 1, 1], [], []>} : vector<64x32xf32>, vector<32x96xf32>, vector<64x96xf32> -> vector<64x96xf32>
    %85 = arith.addf %78, %84 : vector<64x96xf32>
    %86 = vector.extract_strided_slice %71 {offsets = [0, 2, 0, 0], sizes = [4, 1, 16, 32], strides = [1, 1, 1, 1]} : vector<4x4x16x32xf32> to vector<4x1x16x32xf32>
    %87 = vector.shape_cast %86 : vector<4x1x16x32xf32> to vector<4x16x32xf32>
    %88 = vector.shape_cast %87 : vector<4x16x32xf32> to vector<64x32xf32>
    %89 = vector.extract_strided_slice %3 {offsets = [2, 0, 0], sizes = [1, 32, 96], strides = [1, 1, 1]} : vector<4x32x96xf32> to vector<1x32x96xf32>
    %90 = vector.shape_cast %89 : vector<1x32x96xf32> to vector<32x96xf32>
    %cst_26 = arith.constant dense<0.000000e+00> : vector<64x96xf32>
    %91 = tpu.matmul %88, %90, %cst_26 {dimension_numbers = #tpu.dot_dimension_numbers<[1], [0], [0], [1], [0, 0, 1, 1], [], []>} : vector<64x32xf32>, vector<32x96xf32>, vector<64x96xf32> -> vector<64x96xf32>
    %92 = arith.addf %85, %91 : vector<64x96xf32>
    %93 = vector.extract_strided_slice %71 {offsets = [0, 3, 0, 0], sizes = [4, 1, 16, 32], strides = [1, 1, 1, 1]} : vector<4x4x16x32xf32> to vector<4x1x16x32xf32>
    %94 = vector.shape_cast %93 : vector<4x1x16x32xf32> to vector<4x16x32xf32>
    %95 = vector.shape_cast %94 : vector<4x16x32xf32> to vector<64x32xf32>
    %96 = vector.extract_strided_slice %3 {offsets = [3, 0, 0], sizes = [1, 32, 96], strides = [1, 1, 1]} : vector<4x32x96xf32> to vector<1x32x96xf32>
    %97 = vector.shape_cast %96 : vector<1x32x96xf32> to vector<32x96xf32>
    %cst_27 = arith.constant dense<0.000000e+00> : vector<64x96xf32>
    %98 = tpu.matmul %95, %97, %cst_27 {dimension_numbers = #tpu.dot_dimension_numbers<[1], [0], [0], [1], [0, 0, 1, 1], [], []>} : vector<64x32xf32>, vector<32x96xf32>, vector<64x96xf32> -> vector<64x96xf32>
    %99 = arith.addf %92, %98 : vector<64x96xf32>
    %100 = vector.extract_strided_slice %99 {offsets = [0, 0], sizes = [64, 32], strides = [1, 1]} : vector<64x96xf32> to vector<64x32xf32>
    %101 = vector.extract_strided_slice %68 {offsets = [0, 0], sizes = [64, 32], strides = [1, 1]} : vector<64x96xf32> to vector<64x32xf32>
    %102 = arith.addf %100, %101 : vector<64x32xf32>
    %103 = arith.negf %102 : vector<64x32xf32>
    %104 = math.exp %103 : vector<64x32xf32>
    %cst_28 = arith.constant 1.000000e+00 : f32
    %105 = vector.broadcast %cst_28 : f32 to vector<64x32xf32>
    %106 = arith.addf %105, %104 : vector<64x32xf32>
    %107 = arith.divf %105, %106 : vector<64x32xf32>
    %108 = vector.extract_strided_slice %99 {offsets = [0, 32], sizes = [64, 32], strides = [1, 1]} : vector<64x96xf32> to vector<64x32xf32>
    %109 = vector.extract_strided_slice %68 {offsets = [0, 32], sizes = [64, 32], strides = [1, 1]} : vector<64x96xf32> to vector<64x32xf32>
    %110 = arith.addf %108, %109 : vector<64x32xf32>
    %111 = arith.negf %110 : vector<64x32xf32>
    %112 = math.exp %111 : vector<64x32xf32>
    %cst_29 = arith.constant 1.000000e+00 : f32
    %113 = vector.broadcast %cst_29 : f32 to vector<64x32xf32>
    %114 = arith.addf %113, %112 : vector<64x32xf32>
    %115 = arith.divf %113, %114 : vector<64x32xf32>
    %116 = vector.extract_strided_slice %99 {offsets = [0, 64], sizes = [64, 32], strides = [1, 1]} : vector<64x96xf32> to vector<64x32xf32>
    %117 = vector.extract_strided_slice %68 {offsets = [0, 64], sizes = [64, 32], strides = [1, 1]} : vector<64x96xf32> to vector<64x32xf32>
    %118 = arith.mulf %107, %117 : vector<64x32xf32>
    %119 = arith.addf %116, %118 : vector<64x32xf32>
    %120 = math.tanh %119 : vector<64x32xf32>
    %121 = arith.subf %66, %120 : vector<64x32xf32>
    %122 = arith.mulf %115, %121 : vector<64x32xf32>
    %123 = arith.addf %120, %122 : vector<64x32xf32>
    %cst_30 = arith.constant dense<0.000000e+00> : vector<64x96xf32>
    %124 = tpu.matmul %123, %4, %cst_30 {dimension_numbers = #tpu.dot_dimension_numbers<[1], [0], [0], [1], [0, 0, 1, 1], [], []>} : vector<64x32xf32>, vector<32x96xf32>, vector<64x96xf32> -> vector<64x96xf32>
    %125 = arith.addf %124, %7 : vector<64x96xf32>
    %126 = vector.shape_cast %123 : vector<64x32xf32> to vector<4x16x32xf32>
    "tpu.trace_start"() <{level = 10 : i32, message = "gmn,gnd->gmd"}> : () -> ()
    %cst_31 = arith.constant dense<0.000000e+00> : vector<4x64x32xf32>
    %127 = tpu.matmul %0, %126, %cst_31 {dimension_numbers = #tpu.dot_dimension_numbers<[2], [1], [1], [2], [0, 0, 0, 1, 1, 2], [0], [0]>} : vector<4x64x16xf32>, vector<4x16x32xf32>, vector<4x64x32xf32> -> vector<4x64x32xf32>
    "tpu.trace_stop"() : () -> ()
    %128 = vector.shape_cast %127 : vector<4x64x32xf32> to vector<4x4x16x32xf32>
    %129 = vector.extract_strided_slice %128 {offsets = [0, 0, 0, 0], sizes = [4, 1, 16, 32], strides = [1, 1, 1, 1]} : vector<4x4x16x32xf32> to vector<4x1x16x32xf32>
    %130 = vector.shape_cast %129 : vector<4x1x16x32xf32> to vector<4x16x32xf32>
    %131 = vector.shape_cast %130 : vector<4x16x32xf32> to vector<64x32xf32>
    %132 = vector.extract_strided_slice %3 {offsets = [0, 0, 0], sizes = [1, 32, 96], strides = [1, 1, 1]} : vector<4x32x96xf32> to vector<1x32x96xf32>
    %133 = vector.shape_cast %132 : vector<1x32x96xf32> to vector<32x96xf32>
    %cst_32 = arith.constant dense<0.000000e+00> : vector<64x96xf32>
    %134 = tpu.matmul %131, %133, %cst_32 {dimension_numbers = #tpu.dot_dimension_numbers<[1], [0], [0], [1], [0, 0, 1, 1], [], []>} : vector<64x32xf32>, vector<32x96xf32>, vector<64x96xf32> -> vector<64x96xf32>
    %135 = arith.addf %2, %134 : vector<64x96xf32>
    %136 = vector.extract_strided_slice %128 {offsets = [0, 1, 0, 0], sizes = [4, 1, 16, 32], strides = [1, 1, 1, 1]} : vector<4x4x16x32xf32> to vector<4x1x16x32xf32>
    %137 = vector.shape_cast %136 : vector<4x1x16x32xf32> to vector<4x16x32xf32>
    %138 = vector.shape_cast %137 : vector<4x16x32xf32> to vector<64x32xf32>
    %139 = vector.extract_strided_slice %3 {offsets = [1, 0, 0], sizes = [1, 32, 96], strides = [1, 1, 1]} : vector<4x32x96xf32> to vector<1x32x96xf32>
    %140 = vector.shape_cast %139 : vector<1x32x96xf32> to vector<32x96xf32>
    %cst_33 = arith.constant dense<0.000000e+00> : vector<64x96xf32>
    %141 = tpu.matmul %138, %140, %cst_33 {dimension_numbers = #tpu.dot_dimension_numbers<[1], [0], [0], [1], [0, 0, 1, 1], [], []>} : vector<64x32xf32>, vector<32x96xf32>, vector<64x96xf32> -> vector<64x96xf32>
    %142 = arith.addf %135, %141 : vector<64x96xf32>
    %143 = vector.extract_strided_slice %128 {offsets = [0, 2, 0, 0], sizes = [4, 1, 16, 32], strides = [1, 1, 1, 1]} : vector<4x4x16x32xf32> to vector<4x1x16x32xf32>
    %144 = vector.shape_cast %143 : vector<4x1x16x32xf32> to vector<4x16x32xf32>
    %145 = vector.shape_cast %144 : vector<4x16x32xf32> to vector<64x32xf32>
    %146 = vector.extract_strided_slice %3 {offsets = [2, 0, 0], sizes = [1, 32, 96], strides = [1, 1, 1]} : vector<4x32x96xf32> to vector<1x32x96xf32>
    %147 = vector.shape_cast %146 : vector<1x32x96xf32> to vector<32x96xf32>
    %cst_34 = arith.constant dense<0.000000e+00> : vector<64x96xf32>
    %148 = tpu.matmul %145, %147, %cst_34 {dimension_numbers = #tpu.dot_dimension_numbers<[1], [0], [0], [1], [0, 0, 1, 1], [], []>} : vector<64x32xf32>, vector<32x96xf32>, vector<64x96xf32> -> vector<64x96xf32>
    %149 = arith.addf %142, %148 : vector<64x96xf32>
    %150 = vector.extract_strided_slice %128 {offsets = [0, 3, 0, 0], sizes = [4, 1, 16, 32], strides = [1, 1, 1, 1]} : vector<4x4x16x32xf32> to vector<4x1x16x32xf32>
    %151 = vector.shape_cast %150 : vector<4x1x16x32xf32> to vector<4x16x32xf32>
    %152 = vector.shape_cast %151 : vector<4x16x32xf32> to vector<64x32xf32>
    %153 = vector.extract_strided_slice %3 {offsets = [3, 0, 0], sizes = [1, 32, 96], strides = [1, 1, 1]} : vector<4x32x96xf32> to vector<1x32x96xf32>
    %154 = vector.shape_cast %153 : vector<1x32x96xf32> to vector<32x96xf32>
    %cst_35 = arith.constant dense<0.000000e+00> : vector<64x96xf32>
    %155 = tpu.matmul %152, %154, %cst_35 {dimension_numbers = #tpu.dot_dimension_numbers<[1], [0], [0], [1], [0, 0, 1, 1], [], []>} : vector<64x32xf32>, vector<32x96xf32>, vector<64x96xf32> -> vector<64x96xf32>
    %156 = arith.addf %149, %155 : vector<64x96xf32>
    %157 = vector.extract_strided_slice %156 {offsets = [0, 0], sizes = [64, 32], strides = [1, 1]} : vector<64x96xf32> to vector<64x32xf32>
    %158 = vector.extract_strided_slice %125 {offsets = [0, 0], sizes = [64, 32], strides = [1, 1]} : vector<64x96xf32> to vector<64x32xf32>
    %159 = arith.addf %157, %158 : vector<64x32xf32>
    %160 = arith.negf %159 : vector<64x32xf32>
    %161 = math.exp %160 : vector<64x32xf32>
    %cst_36 = arith.constant 1.000000e+00 : f32
    %162 = vector.broadcast %cst_36 : f32 to vector<64x32xf32>
    %163 = arith.addf %162, %161 : vector<64x32xf32>
    %164 = arith.divf %162, %163 : vector<64x32xf32>
    %165 = vector.extract_strided_slice %156 {offsets = [0, 32], sizes = [64, 32], strides = [1, 1]} : vector<64x96xf32> to vector<64x32xf32>
    %166 = vector.extract_strided_slice %125 {offsets = [0, 32], sizes = [64, 32], strides = [1, 1]} : vector<64x96xf32> to vector<64x32xf32>
    %167 = arith.addf %165, %166 : vector<64x32xf32>
    %168 = arith.negf %167 : vector<64x32xf32>
    %169 = math.exp %168 : vector<64x32xf32>
    %cst_37 = arith.constant 1.000000e+00 : f32
    %170 = vector.broadcast %cst_37 : f32 to vector<64x32xf32>
    %171 = arith.addf %170, %169 : vector<64x32xf32>
    %172 = arith.divf %170, %171 : vector<64x32xf32>
    %173 = vector.extract_strided_slice %156 {offsets = [0, 64], sizes = [64, 32], strides = [1, 1]} : vector<64x96xf32> to vector<64x32xf32>
    %174 = vector.extract_strided_slice %125 {offsets = [0, 64], sizes = [64, 32], strides = [1, 1]} : vector<64x96xf32> to vector<64x32xf32>
    %175 = arith.mulf %164, %174 : vector<64x32xf32>
    %176 = arith.addf %173, %175 : vector<64x32xf32>
    %177 = math.tanh %176 : vector<64x32xf32>
    %178 = arith.subf %123, %177 : vector<64x32xf32>
    %179 = arith.mulf %172, %178 : vector<64x32xf32>
    %180 = arith.addf %177, %179 : vector<64x32xf32>
    %cst_38 = arith.constant dense<0.000000e+00> : vector<64x96xf32>
    %181 = tpu.matmul %180, %4, %cst_38 {dimension_numbers = #tpu.dot_dimension_numbers<[1], [0], [0], [1], [0, 0, 1, 1], [], []>} : vector<64x32xf32>, vector<32x96xf32>, vector<64x96xf32> -> vector<64x96xf32>
    %182 = arith.addf %181, %7 : vector<64x96xf32>
    %183 = vector.shape_cast %180 : vector<64x32xf32> to vector<4x16x32xf32>
    "tpu.trace_start"() <{level = 10 : i32, message = "gmn,gnd->gmd"}> : () -> ()
    %cst_39 = arith.constant dense<0.000000e+00> : vector<4x64x32xf32>
    %184 = tpu.matmul %0, %183, %cst_39 {dimension_numbers = #tpu.dot_dimension_numbers<[2], [1], [1], [2], [0, 0, 0, 1, 1, 2], [0], [0]>} : vector<4x64x16xf32>, vector<4x16x32xf32>, vector<4x64x32xf32> -> vector<4x64x32xf32>
    "tpu.trace_stop"() : () -> ()
    %185 = vector.shape_cast %184 : vector<4x64x32xf32> to vector<4x4x16x32xf32>
    %186 = vector.extract_strided_slice %185 {offsets = [0, 0, 0, 0], sizes = [4, 1, 16, 32], strides = [1, 1, 1, 1]} : vector<4x4x16x32xf32> to vector<4x1x16x32xf32>
    %187 = vector.shape_cast %186 : vector<4x1x16x32xf32> to vector<4x16x32xf32>
    %188 = vector.shape_cast %187 : vector<4x16x32xf32> to vector<64x32xf32>
    %189 = vector.extract_strided_slice %3 {offsets = [0, 0, 0], sizes = [1, 32, 96], strides = [1, 1, 1]} : vector<4x32x96xf32> to vector<1x32x96xf32>
    %190 = vector.shape_cast %189 : vector<1x32x96xf32> to vector<32x96xf32>
    %cst_40 = arith.constant dense<0.000000e+00> : vector<64x96xf32>
    %191 = tpu.matmul %188, %190, %cst_40 {dimension_numbers = #tpu.dot_dimension_numbers<[1], [0], [0], [1], [0, 0, 1, 1], [], []>} : vector<64x32xf32>, vector<32x96xf32>, vector<64x96xf32> -> vector<64x96xf32>
    %192 = arith.addf %2, %191 : vector<64x96xf32>
    %193 = vector.extract_strided_slice %185 {offsets = [0, 1, 0, 0], sizes = [4, 1, 16, 32], strides = [1, 1, 1, 1]} : vector<4x4x16x32xf32> to vector<4x1x16x32xf32>
    %194 = vector.shape_cast %193 : vector<4x1x16x32xf32> to vector<4x16x32xf32>
    %195 = vector.shape_cast %194 : vector<4x16x32xf32> to vector<64x32xf32>
    %196 = vector.extract_strided_slice %3 {offsets = [1, 0, 0], sizes = [1, 32, 96], strides = [1, 1, 1]} : vector<4x32x96xf32> to vector<1x32x96xf32>
    %197 = vector.shape_cast %196 : vector<1x32x96xf32> to vector<32x96xf32>
    %cst_41 = arith.constant dense<0.000000e+00> : vector<64x96xf32>
    %198 = tpu.matmul %195, %197, %cst_41 {dimension_numbers = #tpu.dot_dimension_numbers<[1], [0], [0], [1], [0, 0, 1, 1], [], []>} : vector<64x32xf32>, vector<32x96xf32>, vector<64x96xf32> -> vector<64x96xf32>
    %199 = arith.addf %192, %198 : vector<64x96xf32>
    %200 = vector.extract_strided_slice %185 {offsets = [0, 2, 0, 0], sizes = [4, 1, 16, 32], strides = [1, 1, 1, 1]} : vector<4x4x16x32xf32> to vector<4x1x16x32xf32>
    %201 = vector.shape_cast %200 : vector<4x1x16x32xf32> to vector<4x16x32xf32>
    %202 = vector.shape_cast %201 : vector<4x16x32xf32> to vector<64x32xf32>
    %203 = vector.extract_strided_slice %3 {offsets = [2, 0, 0], sizes = [1, 32, 96], strides = [1, 1, 1]} : vector<4x32x96xf32> to vector<1x32x96xf32>
    %204 = vector.shape_cast %203 : vector<1x32x96xf32> to vector<32x96xf32>
    %cst_42 = arith.constant dense<0.000000e+00> : vector<64x96xf32>
    %205 = tpu.matmul %202, %204, %cst_42 {dimension_numbers = #tpu.dot_dimension_numbers<[1], [0], [0], [1], [0, 0, 1, 1], [], []>} : vector<64x32xf32>, vector<32x96xf32>, vector<64x96xf32> -> vector<64x96xf32>
    %206 = arith.addf %199, %205 : vector<64x96xf32>
    %207 = vector.extract_strided_slice %185 {offsets = [0, 3, 0, 0], sizes = [4, 1, 16, 32], strides = [1, 1, 1, 1]} : vector<4x4x16x32xf32> to vector<4x1x16x32xf32>
    %208 = vector.shape_cast %207 : vector<4x1x16x32xf32> to vector<4x16x32xf32>
    %209 = vector.shape_cast %208 : vector<4x16x32xf32> to vector<64x32xf32>
    %210 = vector.extract_strided_slice %3 {offsets = [3, 0, 0], sizes = [1, 32, 96], strides = [1, 1, 1]} : vector<4x32x96xf32> to vector<1x32x96xf32>
    %211 = vector.shape_cast %210 : vector<1x32x96xf32> to vector<32x96xf32>
    %cst_43 = arith.constant dense<0.000000e+00> : vector<64x96xf32>
    %212 = tpu.matmul %209, %211, %cst_43 {dimension_numbers = #tpu.dot_dimension_numbers<[1], [0], [0], [1], [0, 0, 1, 1], [], []>} : vector<64x32xf32>, vector<32x96xf32>, vector<64x96xf32> -> vector<64x96xf32>
    %213 = arith.addf %206, %212 : vector<64x96xf32>
    %214 = vector.extract_strided_slice %213 {offsets = [0, 0], sizes = [64, 32], strides = [1, 1]} : vector<64x96xf32> to vector<64x32xf32>
    %215 = vector.extract_strided_slice %182 {offsets = [0, 0], sizes = [64, 32], strides = [1, 1]} : vector<64x96xf32> to vector<64x32xf32>
    %216 = arith.addf %214, %215 : vector<64x32xf32>
    %217 = arith.negf %216 : vector<64x32xf32>
    %218 = math.exp %217 : vector<64x32xf32>
    %cst_44 = arith.constant 1.000000e+00 : f32
    %219 = vector.broadcast %cst_44 : f32 to vector<64x32xf32>
    %220 = arith.addf %219, %218 : vector<64x32xf32>
    %221 = arith.divf %219, %220 : vector<64x32xf32>
    %222 = vector.extract_strided_slice %213 {offsets = [0, 32], sizes = [64, 32], strides = [1, 1]} : vector<64x96xf32> to vector<64x32xf32>
    %223 = vector.extract_strided_slice %182 {offsets = [0, 32], sizes = [64, 32], strides = [1, 1]} : vector<64x96xf32> to vector<64x32xf32>
    %224 = arith.addf %222, %223 : vector<64x32xf32>
    %225 = arith.negf %224 : vector<64x32xf32>
    %226 = math.exp %225 : vector<64x32xf32>
    %cst_45 = arith.constant 1.000000e+00 : f32
    %227 = vector.broadcast %cst_45 : f32 to vector<64x32xf32>
    %228 = arith.addf %227, %226 : vector<64x32xf32>
    %229 = arith.divf %227, %228 : vector<64x32xf32>
    %230 = vector.extract_strided_slice %213 {offsets = [0, 64], sizes = [64, 32], strides = [1, 1]} : vector<64x96xf32> to vector<64x32xf32>
    %231 = vector.extract_strided_slice %182 {offsets = [0, 64], sizes = [64, 32], strides = [1, 1]} : vector<64x96xf32> to vector<64x32xf32>
    %232 = arith.mulf %221, %231 : vector<64x32xf32>
    %233 = arith.addf %230, %232 : vector<64x32xf32>
    %234 = math.tanh %233 : vector<64x32xf32>
    %235 = arith.subf %180, %234 : vector<64x32xf32>
    %236 = arith.mulf %229, %235 : vector<64x32xf32>
    %237 = arith.addf %234, %236 : vector<64x32xf32>
    %cst_46 = arith.constant dense<0.000000e+00> : vector<64x96xf32>
    %238 = tpu.matmul %237, %4, %cst_46 {dimension_numbers = #tpu.dot_dimension_numbers<[1], [0], [0], [1], [0, 0, 1, 1], [], []>} : vector<64x32xf32>, vector<32x96xf32>, vector<64x96xf32> -> vector<64x96xf32>
    %239 = arith.addf %238, %7 : vector<64x96xf32>
    %240 = vector.shape_cast %237 : vector<64x32xf32> to vector<4x16x32xf32>
    "tpu.trace_start"() <{level = 10 : i32, message = "gmn,gnd->gmd"}> : () -> ()
    %cst_47 = arith.constant dense<0.000000e+00> : vector<4x64x32xf32>
    %241 = tpu.matmul %0, %240, %cst_47 {dimension_numbers = #tpu.dot_dimension_numbers<[2], [1], [1], [2], [0, 0, 0, 1, 1, 2], [0], [0]>} : vector<4x64x16xf32>, vector<4x16x32xf32>, vector<4x64x32xf32> -> vector<4x64x32xf32>
    "tpu.trace_stop"() : () -> ()
    %242 = vector.shape_cast %241 : vector<4x64x32xf32> to vector<4x4x16x32xf32>
    %243 = vector.extract_strided_slice %242 {offsets = [0, 0, 0, 0], sizes = [4, 1, 16, 32], strides = [1, 1, 1, 1]} : vector<4x4x16x32xf32> to vector<4x1x16x32xf32>
    %244 = vector.shape_cast %243 : vector<4x1x16x32xf32> to vector<4x16x32xf32>
    %245 = vector.shape_cast %244 : vector<4x16x32xf32> to vector<64x32xf32>
    %246 = vector.extract_strided_slice %3 {offsets = [0, 0, 0], sizes = [1, 32, 96], strides = [1, 1, 1]} : vector<4x32x96xf32> to vector<1x32x96xf32>
    %247 = vector.shape_cast %246 : vector<1x32x96xf32> to vector<32x96xf32>
    %cst_48 = arith.constant dense<0.000000e+00> : vector<64x96xf32>
    %248 = tpu.matmul %245, %247, %cst_48 {dimension_numbers = #tpu.dot_dimension_numbers<[1], [0], [0], [1], [0, 0, 1, 1], [], []>} : vector<64x32xf32>, vector<32x96xf32>, vector<64x96xf32> -> vector<64x96xf32>
    %249 = arith.addf %2, %248 : vector<64x96xf32>
    %250 = vector.extract_strided_slice %242 {offsets = [0, 1, 0, 0], sizes = [4, 1, 16, 32], strides = [1, 1, 1, 1]} : vector<4x4x16x32xf32> to vector<4x1x16x32xf32>
    %251 = vector.shape_cast %250 : vector<4x1x16x32xf32> to vector<4x16x32xf32>
    %252 = vector.shape_cast %251 : vector<4x16x32xf32> to vector<64x32xf32>
    %253 = vector.extract_strided_slice %3 {offsets = [1, 0, 0], sizes = [1, 32, 96], strides = [1, 1, 1]} : vector<4x32x96xf32> to vector<1x32x96xf32>
    %254 = vector.shape_cast %253 : vector<1x32x96xf32> to vector<32x96xf32>
    %cst_49 = arith.constant dense<0.000000e+00> : vector<64x96xf32>
    %255 = tpu.matmul %252, %254, %cst_49 {dimension_numbers = #tpu.dot_dimension_numbers<[1], [0], [0], [1], [0, 0, 1, 1], [], []>} : vector<64x32xf32>, vector<32x96xf32>, vector<64x96xf32> -> vector<64x96xf32>
    %256 = arith.addf %249, %255 : vector<64x96xf32>
    %257 = vector.extract_strided_slice %242 {offsets = [0, 2, 0, 0], sizes = [4, 1, 16, 32], strides = [1, 1, 1, 1]} : vector<4x4x16x32xf32> to vector<4x1x16x32xf32>
    %258 = vector.shape_cast %257 : vector<4x1x16x32xf32> to vector<4x16x32xf32>
    %259 = vector.shape_cast %258 : vector<4x16x32xf32> to vector<64x32xf32>
    %260 = vector.extract_strided_slice %3 {offsets = [2, 0, 0], sizes = [1, 32, 96], strides = [1, 1, 1]} : vector<4x32x96xf32> to vector<1x32x96xf32>
    %261 = vector.shape_cast %260 : vector<1x32x96xf32> to vector<32x96xf32>
    %cst_50 = arith.constant dense<0.000000e+00> : vector<64x96xf32>
    %262 = tpu.matmul %259, %261, %cst_50 {dimension_numbers = #tpu.dot_dimension_numbers<[1], [0], [0], [1], [0, 0, 1, 1], [], []>} : vector<64x32xf32>, vector<32x96xf32>, vector<64x96xf32> -> vector<64x96xf32>
    %263 = arith.addf %256, %262 : vector<64x96xf32>
    %264 = vector.extract_strided_slice %242 {offsets = [0, 3, 0, 0], sizes = [4, 1, 16, 32], strides = [1, 1, 1, 1]} : vector<4x4x16x32xf32> to vector<4x1x16x32xf32>
    %265 = vector.shape_cast %264 : vector<4x1x16x32xf32> to vector<4x16x32xf32>
    %266 = vector.shape_cast %265 : vector<4x16x32xf32> to vector<64x32xf32>
    %267 = vector.extract_strided_slice %3 {offsets = [3, 0, 0], sizes = [1, 32, 96], strides = [1, 1, 1]} : vector<4x32x96xf32> to vector<1x32x96xf32>
    %268 = vector.shape_cast %267 : vector<1x32x96xf32> to vector<32x96xf32>
    %cst_51 = arith.constant dense<0.000000e+00> : vector<64x96xf32>
    %269 = tpu.matmul %266, %268, %cst_51 {dimension_numbers = #tpu.dot_dimension_numbers<[1], [0], [0], [1], [0, 0, 1, 1], [], []>} : vector<64x32xf32>, vector<32x96xf32>, vector<64x96xf32> -> vector<64x96xf32>
    %270 = arith.addf %263, %269 : vector<64x96xf32>
    %271 = vector.extract_strided_slice %270 {offsets = [0, 0], sizes = [64, 32], strides = [1, 1]} : vector<64x96xf32> to vector<64x32xf32>
    %272 = vector.extract_strided_slice %239 {offsets = [0, 0], sizes = [64, 32], strides = [1, 1]} : vector<64x96xf32> to vector<64x32xf32>
    %273 = arith.addf %271, %272 : vector<64x32xf32>
    %274 = arith.negf %273 : vector<64x32xf32>
    %275 = math.exp %274 : vector<64x32xf32>
    %cst_52 = arith.constant 1.000000e+00 : f32
    %276 = vector.broadcast %cst_52 : f32 to vector<64x32xf32>
    %277 = arith.addf %276, %275 : vector<64x32xf32>
    %278 = arith.divf %276, %277 : vector<64x32xf32>
    %279 = vector.extract_strided_slice %270 {offsets = [0, 32], sizes = [64, 32], strides = [1, 1]} : vector<64x96xf32> to vector<64x32xf32>
    %280 = vector.extract_strided_slice %239 {offsets = [0, 32], sizes = [64, 32], strides = [1, 1]} : vector<64x96xf32> to vector<64x32xf32>
    %281 = arith.addf %279, %280 : vector<64x32xf32>
    %282 = arith.negf %281 : vector<64x32xf32>
    %283 = math.exp %282 : vector<64x32xf32>
    %cst_53 = arith.constant 1.000000e+00 : f32
    %284 = vector.broadcast %cst_53 : f32 to vector<64x32xf32>
    %285 = arith.addf %284, %283 : vector<64x32xf32>
    %286 = arith.divf %284, %285 : vector<64x32xf32>
    %287 = vector.extract_strided_slice %270 {offsets = [0, 64], sizes = [64, 32], strides = [1, 1]} : vector<64x96xf32> to vector<64x32xf32>
    %288 = vector.extract_strided_slice %239 {offsets = [0, 64], sizes = [64, 32], strides = [1, 1]} : vector<64x96xf32> to vector<64x32xf32>
    %289 = arith.mulf %278, %288 : vector<64x32xf32>
    %290 = arith.addf %287, %289 : vector<64x32xf32>
    %291 = math.tanh %290 : vector<64x32xf32>
    %292 = arith.subf %237, %291 : vector<64x32xf32>
    %293 = arith.mulf %286, %292 : vector<64x32xf32>
    %294 = arith.addf %291, %293 : vector<64x32xf32>
    %cst_54 = arith.constant dense<0.000000e+00> : vector<64x96xf32>
    %295 = tpu.matmul %294, %4, %cst_54 {dimension_numbers = #tpu.dot_dimension_numbers<[1], [0], [0], [1], [0, 0, 1, 1], [], []>} : vector<64x32xf32>, vector<32x96xf32>, vector<64x96xf32> -> vector<64x96xf32>
    %296 = arith.addf %295, %7 : vector<64x96xf32>
    %297 = vector.shape_cast %294 : vector<64x32xf32> to vector<4x16x32xf32>
    "tpu.trace_start"() <{level = 10 : i32, message = "gmn,gnd->gmd"}> : () -> ()
    %cst_55 = arith.constant dense<0.000000e+00> : vector<4x64x32xf32>
    %298 = tpu.matmul %0, %297, %cst_55 {dimension_numbers = #tpu.dot_dimension_numbers<[2], [1], [1], [2], [0, 0, 0, 1, 1, 2], [0], [0]>} : vector<4x64x16xf32>, vector<4x16x32xf32>, vector<4x64x32xf32> -> vector<4x64x32xf32>
    "tpu.trace_stop"() : () -> ()
    %299 = vector.shape_cast %298 : vector<4x64x32xf32> to vector<4x4x16x32xf32>
    %300 = vector.extract_strided_slice %299 {offsets = [0, 0, 0, 0], sizes = [4, 1, 16, 32], strides = [1, 1, 1, 1]} : vector<4x4x16x32xf32> to vector<4x1x16x32xf32>
    %301 = vector.shape_cast %300 : vector<4x1x16x32xf32> to vector<4x16x32xf32>
    %302 = vector.shape_cast %301 : vector<4x16x32xf32> to vector<64x32xf32>
    %303 = vector.extract_strided_slice %3 {offsets = [0, 0, 0], sizes = [1, 32, 96], strides = [1, 1, 1]} : vector<4x32x96xf32> to vector<1x32x96xf32>
    %304 = vector.shape_cast %303 : vector<1x32x96xf32> to vector<32x96xf32>
    %cst_56 = arith.constant dense<0.000000e+00> : vector<64x96xf32>
    %305 = tpu.matmul %302, %304, %cst_56 {dimension_numbers = #tpu.dot_dimension_numbers<[1], [0], [0], [1], [0, 0, 1, 1], [], []>} : vector<64x32xf32>, vector<32x96xf32>, vector<64x96xf32> -> vector<64x96xf32>
    %306 = arith.addf %2, %305 : vector<64x96xf32>
    %307 = vector.extract_strided_slice %299 {offsets = [0, 1, 0, 0], sizes = [4, 1, 16, 32], strides = [1, 1, 1, 1]} : vector<4x4x16x32xf32> to vector<4x1x16x32xf32>
    %308 = vector.shape_cast %307 : vector<4x1x16x32xf32> to vector<4x16x32xf32>
    %309 = vector.shape_cast %308 : vector<4x16x32xf32> to vector<64x32xf32>
    %310 = vector.extract_strided_slice %3 {offsets = [1, 0, 0], sizes = [1, 32, 96], strides = [1, 1, 1]} : vector<4x32x96xf32> to vector<1x32x96xf32>
    %311 = vector.shape_cast %310 : vector<1x32x96xf32> to vector<32x96xf32>
    %cst_57 = arith.constant dense<0.000000e+00> : vector<64x96xf32>
    %312 = tpu.matmul %309, %311, %cst_57 {dimension_numbers = #tpu.dot_dimension_numbers<[1], [0], [0], [1], [0, 0, 1, 1], [], []>} : vector<64x32xf32>, vector<32x96xf32>, vector<64x96xf32> -> vector<64x96xf32>
    %313 = arith.addf %306, %312 : vector<64x96xf32>
    %314 = vector.extract_strided_slice %299 {offsets = [0, 2, 0, 0], sizes = [4, 1, 16, 32], strides = [1, 1, 1, 1]} : vector<4x4x16x32xf32> to vector<4x1x16x32xf32>
    %315 = vector.shape_cast %314 : vector<4x1x16x32xf32> to vector<4x16x32xf32>
    %316 = vector.shape_cast %315 : vector<4x16x32xf32> to vector<64x32xf32>
    %317 = vector.extract_strided_slice %3 {offsets = [2, 0, 0], sizes = [1, 32, 96], strides = [1, 1, 1]} : vector<4x32x96xf32> to vector<1x32x96xf32>
    %318 = vector.shape_cast %317 : vector<1x32x96xf32> to vector<32x96xf32>
    %cst_58 = arith.constant dense<0.000000e+00> : vector<64x96xf32>
    %319 = tpu.matmul %316, %318, %cst_58 {dimension_numbers = #tpu.dot_dimension_numbers<[1], [0], [0], [1], [0, 0, 1, 1], [], []>} : vector<64x32xf32>, vector<32x96xf32>, vector<64x96xf32> -> vector<64x96xf32>
    %320 = arith.addf %313, %319 : vector<64x96xf32>
    %321 = vector.extract_strided_slice %299 {offsets = [0, 3, 0, 0], sizes = [4, 1, 16, 32], strides = [1, 1, 1, 1]} : vector<4x4x16x32xf32> to vector<4x1x16x32xf32>
    %322 = vector.shape_cast %321 : vector<4x1x16x32xf32> to vector<4x16x32xf32>
    %323 = vector.shape_cast %322 : vector<4x16x32xf32> to vector<64x32xf32>
    %324 = vector.extract_strided_slice %3 {offsets = [3, 0, 0], sizes = [1, 32, 96], strides = [1, 1, 1]} : vector<4x32x96xf32> to vector<1x32x96xf32>
    %325 = vector.shape_cast %324 : vector<1x32x96xf32> to vector<32x96xf32>
    %cst_59 = arith.constant dense<0.000000e+00> : vector<64x96xf32>
    %326 = tpu.matmul %323, %325, %cst_59 {dimension_numbers = #tpu.dot_dimension_numbers<[1], [0], [0], [1], [0, 0, 1, 1], [], []>} : vector<64x32xf32>, vector<32x96xf32>, vector<64x96xf32> -> vector<64x96xf32>
    %327 = arith.addf %320, %326 : vector<64x96xf32>
    %328 = vector.extract_strided_slice %327 {offsets = [0, 0], sizes = [64, 32], strides = [1, 1]} : vector<64x96xf32> to vector<64x32xf32>
    %329 = vector.extract_strided_slice %296 {offsets = [0, 0], sizes = [64, 32], strides = [1, 1]} : vector<64x96xf32> to vector<64x32xf32>
    %330 = arith.addf %328, %329 : vector<64x32xf32>
    %331 = arith.negf %330 : vector<64x32xf32>
    %332 = math.exp %331 : vector<64x32xf32>
    %cst_60 = arith.constant 1.000000e+00 : f32
    %333 = vector.broadcast %cst_60 : f32 to vector<64x32xf32>
    %334 = arith.addf %333, %332 : vector<64x32xf32>
    %335 = arith.divf %333, %334 : vector<64x32xf32>
    %336 = vector.extract_strided_slice %327 {offsets = [0, 32], sizes = [64, 32], strides = [1, 1]} : vector<64x96xf32> to vector<64x32xf32>
    %337 = vector.extract_strided_slice %296 {offsets = [0, 32], sizes = [64, 32], strides = [1, 1]} : vector<64x96xf32> to vector<64x32xf32>
    %338 = arith.addf %336, %337 : vector<64x32xf32>
    %339 = arith.negf %338 : vector<64x32xf32>
    %340 = math.exp %339 : vector<64x32xf32>
    %cst_61 = arith.constant 1.000000e+00 : f32
    %341 = vector.broadcast %cst_61 : f32 to vector<64x32xf32>
    %342 = arith.addf %341, %340 : vector<64x32xf32>
    %343 = arith.divf %341, %342 : vector<64x32xf32>
    %344 = vector.extract_strided_slice %327 {offsets = [0, 64], sizes = [64, 32], strides = [1, 1]} : vector<64x96xf32> to vector<64x32xf32>
    %345 = vector.extract_strided_slice %296 {offsets = [0, 64], sizes = [64, 32], strides = [1, 1]} : vector<64x96xf32> to vector<64x32xf32>
    %346 = arith.mulf %335, %345 : vector<64x32xf32>
    %347 = arith.addf %344, %346 : vector<64x32xf32>
    %348 = math.tanh %347 : vector<64x32xf32>
    %349 = arith.subf %294, %348 : vector<64x32xf32>
    %350 = arith.mulf %343, %349 : vector<64x32xf32>
    %351 = arith.addf %348, %350 : vector<64x32xf32>
    %cst_62 = arith.constant dense<0.000000e+00> : vector<64x96xf32>
    %352 = tpu.matmul %351, %4, %cst_62 {dimension_numbers = #tpu.dot_dimension_numbers<[1], [0], [0], [1], [0, 0, 1, 1], [], []>} : vector<64x32xf32>, vector<32x96xf32>, vector<64x96xf32> -> vector<64x96xf32>
    %353 = arith.addf %352, %7 : vector<64x96xf32>
    %354 = vector.shape_cast %351 : vector<64x32xf32> to vector<4x16x32xf32>
    "tpu.trace_start"() <{level = 10 : i32, message = "gmn,gnd->gmd"}> : () -> ()
    %cst_63 = arith.constant dense<0.000000e+00> : vector<4x64x32xf32>
    %355 = tpu.matmul %0, %354, %cst_63 {dimension_numbers = #tpu.dot_dimension_numbers<[2], [1], [1], [2], [0, 0, 0, 1, 1, 2], [0], [0]>} : vector<4x64x16xf32>, vector<4x16x32xf32>, vector<4x64x32xf32> -> vector<4x64x32xf32>
    "tpu.trace_stop"() : () -> ()
    %356 = vector.shape_cast %355 : vector<4x64x32xf32> to vector<4x4x16x32xf32>
    %357 = vector.extract_strided_slice %356 {offsets = [0, 0, 0, 0], sizes = [4, 1, 16, 32], strides = [1, 1, 1, 1]} : vector<4x4x16x32xf32> to vector<4x1x16x32xf32>
    %358 = vector.shape_cast %357 : vector<4x1x16x32xf32> to vector<4x16x32xf32>
    %359 = vector.shape_cast %358 : vector<4x16x32xf32> to vector<64x32xf32>
    %360 = vector.extract_strided_slice %3 {offsets = [0, 0, 0], sizes = [1, 32, 96], strides = [1, 1, 1]} : vector<4x32x96xf32> to vector<1x32x96xf32>
    %361 = vector.shape_cast %360 : vector<1x32x96xf32> to vector<32x96xf32>
    %cst_64 = arith.constant dense<0.000000e+00> : vector<64x96xf32>
    %362 = tpu.matmul %359, %361, %cst_64 {dimension_numbers = #tpu.dot_dimension_numbers<[1], [0], [0], [1], [0, 0, 1, 1], [], []>} : vector<64x32xf32>, vector<32x96xf32>, vector<64x96xf32> -> vector<64x96xf32>
    %363 = arith.addf %2, %362 : vector<64x96xf32>
    %364 = vector.extract_strided_slice %356 {offsets = [0, 1, 0, 0], sizes = [4, 1, 16, 32], strides = [1, 1, 1, 1]} : vector<4x4x16x32xf32> to vector<4x1x16x32xf32>
    %365 = vector.shape_cast %364 : vector<4x1x16x32xf32> to vector<4x16x32xf32>
    %366 = vector.shape_cast %365 : vector<4x16x32xf32> to vector<64x32xf32>
    %367 = vector.extract_strided_slice %3 {offsets = [1, 0, 0], sizes = [1, 32, 96], strides = [1, 1, 1]} : vector<4x32x96xf32> to vector<1x32x96xf32>
    %368 = vector.shape_cast %367 : vector<1x32x96xf32> to vector<32x96xf32>
    %cst_65 = arith.constant dense<0.000000e+00> : vector<64x96xf32>
    %369 = tpu.matmul %366, %368, %cst_65 {dimension_numbers = #tpu.dot_dimension_numbers<[1], [0], [0], [1], [0, 0, 1, 1], [], []>} : vector<64x32xf32>, vector<32x96xf32>, vector<64x96xf32> -> vector<64x96xf32>
    %370 = arith.addf %363, %369 : vector<64x96xf32>
    %371 = vector.extract_strided_slice %356 {offsets = [0, 2, 0, 0], sizes = [4, 1, 16, 32], strides = [1, 1, 1, 1]} : vector<4x4x16x32xf32> to vector<4x1x16x32xf32>
    %372 = vector.shape_cast %371 : vector<4x1x16x32xf32> to vector<4x16x32xf32>
    %373 = vector.shape_cast %372 : vector<4x16x32xf32> to vector<64x32xf32>
    %374 = vector.extract_strided_slice %3 {offsets = [2, 0, 0], sizes = [1, 32, 96], strides = [1, 1, 1]} : vector<4x32x96xf32> to vector<1x32x96xf32>
    %375 = vector.shape_cast %374 : vector<1x32x96xf32> to vector<32x96xf32>
    %cst_66 = arith.constant dense<0.000000e+00> : vector<64x96xf32>
    %376 = tpu.matmul %373, %375, %cst_66 {dimension_numbers = #tpu.dot_dimension_numbers<[1], [0], [0], [1], [0, 0, 1, 1], [], []>} : vector<64x32xf32>, vector<32x96xf32>, vector<64x96xf32> -> vector<64x96xf32>
    %377 = arith.addf %370, %376 : vector<64x96xf32>
    %378 = vector.extract_strided_slice %356 {offsets = [0, 3, 0, 0], sizes = [4, 1, 16, 32], strides = [1, 1, 1, 1]} : vector<4x4x16x32xf32> to vector<4x1x16x32xf32>
    %379 = vector.shape_cast %378 : vector<4x1x16x32xf32> to vector<4x16x32xf32>
    %380 = vector.shape_cast %379 : vector<4x16x32xf32> to vector<64x32xf32>
    %381 = vector.extract_strided_slice %3 {offsets = [3, 0, 0], sizes = [1, 32, 96], strides = [1, 1, 1]} : vector<4x32x96xf32> to vector<1x32x96xf32>
    %382 = vector.shape_cast %381 : vector<1x32x96xf32> to vector<32x96xf32>
    %cst_67 = arith.constant dense<0.000000e+00> : vector<64x96xf32>
    %383 = tpu.matmul %380, %382, %cst_67 {dimension_numbers = #tpu.dot_dimension_numbers<[1], [0], [0], [1], [0, 0, 1, 1], [], []>} : vector<64x32xf32>, vector<32x96xf32>, vector<64x96xf32> -> vector<64x96xf32>
    %384 = arith.addf %377, %383 : vector<64x96xf32>
    %385 = vector.extract_strided_slice %384 {offsets = [0, 0], sizes = [64, 32], strides = [1, 1]} : vector<64x96xf32> to vector<64x32xf32>
    %386 = vector.extract_strided_slice %353 {offsets = [0, 0], sizes = [64, 32], strides = [1, 1]} : vector<64x96xf32> to vector<64x32xf32>
    %387 = arith.addf %385, %386 : vector<64x32xf32>
    %388 = arith.negf %387 : vector<64x32xf32>
    %389 = math.exp %388 : vector<64x32xf32>
    %cst_68 = arith.constant 1.000000e+00 : f32
    %390 = vector.broadcast %cst_68 : f32 to vector<64x32xf32>
    %391 = arith.addf %390, %389 : vector<64x32xf32>
    %392 = arith.divf %390, %391 : vector<64x32xf32>
    %393 = vector.extract_strided_slice %384 {offsets = [0, 32], sizes = [64, 32], strides = [1, 1]} : vector<64x96xf32> to vector<64x32xf32>
    %394 = vector.extract_strided_slice %353 {offsets = [0, 32], sizes = [64, 32], strides = [1, 1]} : vector<64x96xf32> to vector<64x32xf32>
    %395 = arith.addf %393, %394 : vector<64x32xf32>
    %396 = arith.negf %395 : vector<64x32xf32>
    %397 = math.exp %396 : vector<64x32xf32>
    %cst_69 = arith.constant 1.000000e+00 : f32
    %398 = vector.broadcast %cst_69 : f32 to vector<64x32xf32>
    %399 = arith.addf %398, %397 : vector<64x32xf32>
    %400 = arith.divf %398, %399 : vector<64x32xf32>
    %401 = vector.extract_strided_slice %384 {offsets = [0, 64], sizes = [64, 32], strides = [1, 1]} : vector<64x96xf32> to vector<64x32xf32>
    %402 = vector.extract_strided_slice %353 {offsets = [0, 64], sizes = [64, 32], strides = [1, 1]} : vector<64x96xf32> to vector<64x32xf32>
    %403 = arith.mulf %392, %402 : vector<64x32xf32>
    %404 = arith.addf %401, %403 : vector<64x32xf32>
    %405 = math.tanh %404 : vector<64x32xf32>
    %406 = arith.subf %351, %405 : vector<64x32xf32>
    %407 = arith.mulf %400, %406 : vector<64x32xf32>
    %408 = arith.addf %405, %407 : vector<64x32xf32>
    %cst_70 = arith.constant dense<0.000000e+00> : vector<64x96xf32>
    %409 = tpu.matmul %408, %4, %cst_70 {dimension_numbers = #tpu.dot_dimension_numbers<[1], [0], [0], [1], [0, 0, 1, 1], [], []>} : vector<64x32xf32>, vector<32x96xf32>, vector<64x96xf32> -> vector<64x96xf32>
    %410 = arith.addf %409, %7 : vector<64x96xf32>
    %411 = vector.shape_cast %408 : vector<64x32xf32> to vector<4x16x32xf32>
    "tpu.trace_start"() <{level = 10 : i32, message = "gmn,gnd->gmd"}> : () -> ()
    %cst_71 = arith.constant dense<0.000000e+00> : vector<4x64x32xf32>
    %412 = tpu.matmul %0, %411, %cst_71 {dimension_numbers = #tpu.dot_dimension_numbers<[2], [1], [1], [2], [0, 0, 0, 1, 1, 2], [0], [0]>} : vector<4x64x16xf32>, vector<4x16x32xf32>, vector<4x64x32xf32> -> vector<4x64x32xf32>
    "tpu.trace_stop"() : () -> ()
    %413 = vector.shape_cast %412 : vector<4x64x32xf32> to vector<4x4x16x32xf32>
    %414 = vector.extract_strided_slice %413 {offsets = [0, 0, 0, 0], sizes = [4, 1, 16, 32], strides = [1, 1, 1, 1]} : vector<4x4x16x32xf32> to vector<4x1x16x32xf32>
    %415 = vector.shape_cast %414 : vector<4x1x16x32xf32> to vector<4x16x32xf32>
    %416 = vector.shape_cast %415 : vector<4x16x32xf32> to vector<64x32xf32>
    %417 = vector.extract_strided_slice %3 {offsets = [0, 0, 0], sizes = [1, 32, 96], strides = [1, 1, 1]} : vector<4x32x96xf32> to vector<1x32x96xf32>
    %418 = vector.shape_cast %417 : vector<1x32x96xf32> to vector<32x96xf32>
    %cst_72 = arith.constant dense<0.000000e+00> : vector<64x96xf32>
    %419 = tpu.matmul %416, %418, %cst_72 {dimension_numbers = #tpu.dot_dimension_numbers<[1], [0], [0], [1], [0, 0, 1, 1], [], []>} : vector<64x32xf32>, vector<32x96xf32>, vector<64x96xf32> -> vector<64x96xf32>
    %420 = arith.addf %2, %419 : vector<64x96xf32>
    %421 = vector.extract_strided_slice %413 {offsets = [0, 1, 0, 0], sizes = [4, 1, 16, 32], strides = [1, 1, 1, 1]} : vector<4x4x16x32xf32> to vector<4x1x16x32xf32>
    %422 = vector.shape_cast %421 : vector<4x1x16x32xf32> to vector<4x16x32xf32>
    %423 = vector.shape_cast %422 : vector<4x16x32xf32> to vector<64x32xf32>
    %424 = vector.extract_strided_slice %3 {offsets = [1, 0, 0], sizes = [1, 32, 96], strides = [1, 1, 1]} : vector<4x32x96xf32> to vector<1x32x96xf32>
    %425 = vector.shape_cast %424 : vector<1x32x96xf32> to vector<32x96xf32>
    %cst_73 = arith.constant dense<0.000000e+00> : vector<64x96xf32>
    %426 = tpu.matmul %423, %425, %cst_73 {dimension_numbers = #tpu.dot_dimension_numbers<[1], [0], [0], [1], [0, 0, 1, 1], [], []>} : vector<64x32xf32>, vector<32x96xf32>, vector<64x96xf32> -> vector<64x96xf32>
    %427 = arith.addf %420, %426 : vector<64x96xf32>
    %428 = vector.extract_strided_slice %413 {offsets = [0, 2, 0, 0], sizes = [4, 1, 16, 32], strides = [1, 1, 1, 1]} : vector<4x4x16x32xf32> to vector<4x1x16x32xf32>
    %429 = vector.shape_cast %428 : vector<4x1x16x32xf32> to vector<4x16x32xf32>
    %430 = vector.shape_cast %429 : vector<4x16x32xf32> to vector<64x32xf32>
    %431 = vector.extract_strided_slice %3 {offsets = [2, 0, 0], sizes = [1, 32, 96], strides = [1, 1, 1]} : vector<4x32x96xf32> to vector<1x32x96xf32>
    %432 = vector.shape_cast %431 : vector<1x32x96xf32> to vector<32x96xf32>
    %cst_74 = arith.constant dense<0.000000e+00> : vector<64x96xf32>
    %433 = tpu.matmul %430, %432, %cst_74 {dimension_numbers = #tpu.dot_dimension_numbers<[1], [0], [0], [1], [0, 0, 1, 1], [], []>} : vector<64x32xf32>, vector<32x96xf32>, vector<64x96xf32> -> vector<64x96xf32>
    %434 = arith.addf %427, %433 : vector<64x96xf32>
    %435 = vector.extract_strided_slice %413 {offsets = [0, 3, 0, 0], sizes = [4, 1, 16, 32], strides = [1, 1, 1, 1]} : vector<4x4x16x32xf32> to vector<4x1x16x32xf32>
    %436 = vector.shape_cast %435 : vector<4x1x16x32xf32> to vector<4x16x32xf32>
    %437 = vector.shape_cast %436 : vector<4x16x32xf32> to vector<64x32xf32>
    %438 = vector.extract_strided_slice %3 {offsets = [3, 0, 0], sizes = [1, 32, 96], strides = [1, 1, 1]} : vector<4x32x96xf32> to vector<1x32x96xf32>
    %439 = vector.shape_cast %438 : vector<1x32x96xf32> to vector<32x96xf32>
    %cst_75 = arith.constant dense<0.000000e+00> : vector<64x96xf32>
    %440 = tpu.matmul %437, %439, %cst_75 {dimension_numbers = #tpu.dot_dimension_numbers<[1], [0], [0], [1], [0, 0, 1, 1], [], []>} : vector<64x32xf32>, vector<32x96xf32>, vector<64x96xf32> -> vector<64x96xf32>
    %441 = arith.addf %434, %440 : vector<64x96xf32>
    %442 = vector.extract_strided_slice %441 {offsets = [0, 0], sizes = [64, 32], strides = [1, 1]} : vector<64x96xf32> to vector<64x32xf32>
    %443 = vector.extract_strided_slice %410 {offsets = [0, 0], sizes = [64, 32], strides = [1, 1]} : vector<64x96xf32> to vector<64x32xf32>
    %444 = arith.addf %442, %443 : vector<64x32xf32>
    %445 = arith.negf %444 : vector<64x32xf32>
    %446 = math.exp %445 : vector<64x32xf32>
    %cst_76 = arith.constant 1.000000e+00 : f32
    %447 = vector.broadcast %cst_76 : f32 to vector<64x32xf32>
    %448 = arith.addf %447, %446 : vector<64x32xf32>
    %449 = arith.divf %447, %448 : vector<64x32xf32>
    %450 = vector.extract_strided_slice %441 {offsets = [0, 32], sizes = [64, 32], strides = [1, 1]} : vector<64x96xf32> to vector<64x32xf32>
    %451 = vector.extract_strided_slice %410 {offsets = [0, 32], sizes = [64, 32], strides = [1, 1]} : vector<64x96xf32> to vector<64x32xf32>
    %452 = arith.addf %450, %451 : vector<64x32xf32>
    %453 = arith.negf %452 : vector<64x32xf32>
    %454 = math.exp %453 : vector<64x32xf32>
    %cst_77 = arith.constant 1.000000e+00 : f32
    %455 = vector.broadcast %cst_77 : f32 to vector<64x32xf32>
    %456 = arith.addf %455, %454 : vector<64x32xf32>
    %457 = arith.divf %455, %456 : vector<64x32xf32>
    %458 = vector.extract_strided_slice %441 {offsets = [0, 64], sizes = [64, 32], strides = [1, 1]} : vector<64x96xf32> to vector<64x32xf32>
    %459 = vector.extract_strided_slice %410 {offsets = [0, 64], sizes = [64, 32], strides = [1, 1]} : vector<64x96xf32> to vector<64x32xf32>
    %460 = arith.mulf %449, %459 : vector<64x32xf32>
    %461 = arith.addf %458, %460 : vector<64x32xf32>
    %462 = math.tanh %461 : vector<64x32xf32>
    %463 = arith.subf %408, %462 : vector<64x32xf32>
    %464 = arith.mulf %457, %463 : vector<64x32xf32>
    %465 = arith.addf %462, %464 : vector<64x32xf32>
    %466 = vector.shape_cast %465 : vector<64x32xf32> to vector<4x16x32xf32>
    %c0_78 = arith.constant 0 : index
    %c0_79 = arith.constant 0 : index
    %c0_80 = arith.constant 0 : index
    %467 = vector.load %arg7[%c0_78, %c0_79, %c0_80] : memref<4x16x32xf32, #tpu.memory_space<vmem>>, vector<4x16x32xf32>
    tpu.vector_store %arg7[%c0_78, %c0_79, %c0_80], %466 {strides = array<i32>} : memref<4x16x32xf32, #tpu.memory_space<vmem>>, vector<4x16x32xf32>,
    return
  }
  func.func @transform_0(%arg0: i32) -> (i32, i32, i32) {
    %c0_i32 = arith.constant 0 : i32
    %c0_i32_0 = arith.constant 0 : i32
    %c0_i32_1 = arith.constant 0 : i32
    return %arg0, %c0_i32, %c0_i32_0 : i32, i32, i32
  }
  func.func @transform_1(%arg0: i32) -> (i32, i32, i32) {
    %c0_i32 = arith.constant 0 : i32
    %c0_i32_0 = arith.constant 0 : i32
    %c0_i32_1 = arith.constant 0 : i32
    return %arg0, %c0_i32, %c0_i32_0 : i32, i32, i32
  }
  func.func @transform_2(%arg0: i32) -> (i32, i32, i32) {
    %c0_i32 = arith.constant 0 : i32
    %c0_i32_0 = arith.constant 0 : i32
    %c0_i32_1 = arith.constant 0 : i32
    return %arg0, %c0_i32, %c0_i32_0 : i32, i32, i32
  }
  func.func @transform_3(%arg0: i32) -> (i32, i32, i32) {
    %c0_i32 = arith.constant 0 : i32
    %c0_i32_0 = arith.constant 0 : i32
    %c0_i32_1 = arith.constant 0 : i32
    %c0_i32_2 = arith.constant 0 : i32
    return %c0_i32, %c0_i32_0, %c0_i32_1 : i32, i32, i32
  }
  func.func @transform_4(%arg0: i32) -> (i32, i32) {
    %c0_i32 = arith.constant 0 : i32
    %c0_i32_0 = arith.constant 0 : i32
    %c0_i32_1 = arith.constant 0 : i32
    return %c0_i32, %c0_i32_0 : i32, i32
  }
  func.func @transform_5(%arg0: i32) -> (i32, i32) {
    %c0_i32 = arith.constant 0 : i32
    %c0_i32_0 = arith.constant 0 : i32
    %c0_i32_1 = arith.constant 0 : i32
    return %c0_i32, %c0_i32_0 : i32, i32
  }
  func.func @transform_6(%arg0: i32) -> (i32, i32, i32) {
    %c0_i32 = arith.constant 0 : i32
    %c0_i32_0 = arith.constant 0 : i32
    %c0_i32_1 = arith.constant 0 : i32
    return %arg0, %c0_i32, %c0_i32_0 : i32, i32, i32
  }
}

</mosaic_0001>

<bundles_post_ra>
// kernel: tpu_custom_call.1
= control target key start
LH: loop header
LB: loop body
LE: loop exit
PB: predicated region body
PF: predicated region fallthrough
CT: control target
= control target key end

     0   :  { %11 = vsyncpa [#allocation3], 0  ;;  %s18664_s0 = inlined_call_operand.vmem [shape: f32[8,64,16], index: 0, kind: input, shape index: {}]   ;;  %s18665_s1 = inlined_call_operand.vmem [shape: f32[8,16,96], index: 1, kind: input, shape index: {}]   ;;  %s18666_s2 = inlined_call_operand.vmem [shape: f32[8,16,32], index: 2, kind: input, shape index: {}]   ;;  %s18667_s3 = inlined_call_operand.vmem [shape: f32[4,32,96], index: 3, kind: input, shape index: {}]   ;;  %s18668_s4 = inlined_call_operand.vmem [shape: f32[32,96], index: 4, kind: input, shape index: {}]   ;;  %s18669_s5 = inlined_call_operand.vmem [shape: f32[1,96], index: 5, kind: input, shape index: {}]   ;;  %s18670_s6 = inlined_call_operand.hbm [shape: f32[8,16,32], index: 6, kind: output, shape index: {}]  }
   0x1   :  { %13 = vsyncpa [#allocation3 + $0x1], 0  ;;  %s14946_s21 = smov 0   ;;  %s14948_s22 = smov 0  }
   0x2   :  { %s14950_s23 = smov 0   ;;  %s14952_s24 = smov 0  }
   0x3 LB: > { %s14967_s25 = sadd.s32 4294967295, %s14903_s24   ;;  %s11452_s26 = sadd.s32 4294967294, %s14903_s24   ;;  %s14903_s24 = sphi %s14952_s24, %s19126_s24   ;;  %s14899_s23 = sphi %s14950_s23, %s19125_s23   ;;  %s14895_s22 = sphi %s14948_s22, %s19124_s22   ;;  %s14891_s21 = sphi %s14946_s21, %s19123_s21  }
   0x4   : > { %s14971_s27 = sadd.s32 1, %s14903_s24   ;;  %s167_s28 = sadd.s32 1, %s14899_s23 }
   0x5   : > { %s164_s29 = ssub.s32 %s14903_s24, %s14971_s27  ;;  %p177_p0 = scmp.ne.s32.totalorder %s14899_s23, %s14895_s22 }
   0x6   : > { %p165_p1 = scmp.eq.s32.totalorder %s164_s29, 0  ;;  %p178_p2 = scmp.eq.s32.totalorder %s14967_s25, 1 }
   0x7   : > { %p183_p3 = scmp.ne.s32.totalorder %s14895_s22, %s14891_s21  ;;  %p184_p4 = scmp.eq.s32.totalorder %s11452_s26, 1 }
   0x8   : > { %s14982_s30 = scalar_select %p165_p1, %s14899_s23, %s167_s28  }
   0x9   : > { %p14984_p5 = por %p178_p2, %p177_p0  ;;  %p14988_p6 = por %p184_p4, %p183_p3 }
   0xa   : > { %p11455_p7 = scmp.ge.s32.totalorder %s14903_s24, 1  ;;  %p241_p8 = scmp.lt.s32.totalorder %s14903_s24, 3 }
   0xc   : > { %p242_p9 = pnand %p11455_p7, %p241_p8 }
   0xe   : > { %245 = sbr.rel (%p242_p9) target bundleno = 7795 (0x1e73), region = 44 }
  0x13   : > { %s11457_s9 = sshll.u32 %s14967_s25, 2  ;;  %v14998_v0 = vld [vmem:[%s18668_s4 + $0x18] sm:$0xff]  ;;  %v15003_v1 = vld [vmem:[%s18668_s4 + $0x10] sm:$0xff]  ;;  %v15010_v2 = vld [vmem:[%s18668_s4 + $0x8] sm:$0xff]  ;;  %vm511_vm0 = vcmask 130048   ;;  %vm381_vm1 = vcmask 261120  }
  0x14   : > { %p285_p10 = scmp.lt.s32.totalorder %s11457_s9, 7  ;;  %12918 = vmatprep.subr.mxu0 %v14998_v0  ;;  %v15019_v3 = vld [vmem:[%s18668_s4] sm:$0xff]  ;;  %v15112_v18 = vld [vmem:[%s18667_s3 + $0x18] sm:$0xff]  ;;  %v15157_v26 = vld [vmem:[%s18667_s3 + $0x10] sm:$0xff]  ;;  %s14905_s10 = smov 64  }
  0x15   : > { %12919 = vmatpush3.msra.mxu0 %v14998_v0  ;;  %v15269_v46 = vld [vmem:[%s18667_s3 + $0x8] sm:$0xff]  ;;  %v15274_v47 = vld [vmem:[%s18667_s3 + $0x38] sm:$0xff]  ;;  %v15283_v48 = vld [vmem:[%s18667_s3] sm:$0xff]  ;;  %s14907_s13 = smov 96   ;;  %s14908_s16 = smov [#allocation2]  }
  0x16   : > { %s19128_s9 = smov (!%p285_p10, %s11457_s9), 7  ;;  %12920 = vmatprep.subr.mxu0 %v15003_v1  ;;  %18877 = vst [vmem:[#allocation21_spill] sm:$0xff] %v15269_v46  ;;  %18878 = vst [vmem:[#allocation22_spill] sm:$0xff] %v15274_v47  ;;  %v15288_v49 = vld [vmem:[%s18667_s3 + $0x30] sm:$0xff]  ;;  %v15297_v50 = vld [vmem:[%s18667_s3 + $0x28] sm:$0xff]  ;;  %s14847_s17 = sshll.u32 %s14908_s16, 4  ;;  %s14848_s17 = int_to_ptr.vmem [resolvable:$false] %s14847_s17 }
  0x17   : > { %12921 = vmatpush3.msra.mxu0 %v15003_v1  ;;  %s12113_s18 = sshll.u32 %s19128_s9, 6  ;;  %s12114_s19 = sshll.u32 %s19128_s9, 4  ;;  %18879 = vst [vmem:[#allocation23_spill] sm:$0xff] %v15283_v48  ;;  %18880 = vst [vmem:[#allocation24_spill] sm:$0xff] %v15288_v49  ;;  %v15304_v51 = vld [vmem:[%s18667_s3 + $0x20] sm:$0xff]  ;;  %v15311_v52 = vld [vmem:[%s18667_s3 + $0x58] sm:$0xff] }
  0x18   : > { %12922 = vmatprep.subr.mxu0 %v15010_v2  ;;  %s15027_s28 = scalar_lea.vmem %s18664_s0, %s12113_s18  ;;  %s15035_s11 = scalar_lea.vmem %s18666_s2, %s12114_s19  ;;  %18881 = vst [vmem:[#allocation25_spill] sm:$0xff] %v15297_v50  ;;  %18882 = vst [vmem:[#allocation26_spill] sm:$0xff] %v15304_v51  ;;  %v15317_v53 = vld [vmem:[%s18667_s3 + $0x78] sm:$0xff]  ;;  %v15323_v55 = vld [vmem:[%s18669_s5] ss:$0 sm:$0xff] }
  0x19   : > { %12923 = vmatpush3.msra.mxu0 %v15010_v2  ;;  %v15038_v4 = vld [vmem:[%s15027_s28] sm:$0xff]  ;;  %v15042_v5 = vld [vmem:[%s15035_s11 + $0x8] sm:$0xff]  ;;  %v15054_v7 = vld [vmem:[%s15035_s11 + $0x10] sm:$0xff]  ;;  %18883 = vst [vmem:[#allocation27_spill] sm:$0xff] %v15311_v52  ;;  %s15459_s14 = scalar_lea.vmem %s18665_s1, %s12114_s19  ;;  %s14906_s9 = smov 32  }
  0x1a   : > { %12924 = vmatprep.subr.mxu0 %v15019_v3  ;;  %v15045_v6 = vld [vmem:[%s15035_s11] sm:$0xff]  ;;  %12942 = vmatprep.mubr.msk.f32.mxu1 %vm511_vm0, %v15038_v4  ;;  %v15058_v8 = vld [vmem:[%s15027_s28 + $0x8] sm:$0xff]  ;;  %v15064_v9 = vld [vmem:[%s15027_s28 + $0x10] sm:$0xff]  ;;  %18884 = vst [vmem:[#allocation28_spill] sm:$0xff] %v15317_v53  ;;  %s14849_s18 = scalar_lea.vmem %s14848_s17, 2048 }
  0x1b   : > { %12925 = vmatpush3.msra.mxu0 %v15019_v3  ;;  %12938 = vmatprep.subr.mxu1 %v15042_v5  ;;  %v15069_v10 = vld [vmem:[%s15035_s11 + $0x28] sm:$0xff]  ;;  %v15073_v11 = vld [vmem:[%s15035_s11 + $0x18] sm:$0xff]  ;;  %v15080_v12 = vld [vmem:[%s15035_s11 + $0x20] sm:$0xff]  ;;  %18885 = vst [vmem:[#allocation29_spill] sm:$0xff] %v15323_v55 }
  0x1c   : > { %12926 = vmatprep.mubr.msk.f32.mxu0 %vm381_vm1, %v15045_v6  ;;  %12939 = vmatpush3.msra.mxu1 %v15042_v5  ;;  %v15086_v13 = vld [vmem:[%s15027_s28 + $0x18] sm:$0xff]  ;;  %v310_v14 = vld [vmem:[%s15027_s28 + $0x20] sm:$0xff]  ;;  %v15099_v15 = vld [vmem:[%s15035_s11 + $0x30] sm:$0xff] }
  0x1d   : > { %12927 = vmatmul.mubr.msk.f32.vlgmr.msra.gmra.mxu0 %vm381_vm1, %v15042_v5  ;;  %12940 = vmatprep.subr.mxu1 %v15045_v6  ;;  %v15102_v16 = vld [vmem:[%s15035_s11 + $0x38] sm:$0xff]  ;;  %v15106_v17 = vld [vmem:[%s15027_s28 + $0x28] sm:$0xff]  ;;  %v15115_v19 = vld [vmem:[%s15027_s28 + $0x30] sm:$0xff] }
  0x1e   : > { %12929 = vmatprep.mubr.msk.f32.mxu0 %vm381_vm1, %v15054_v7  ;;  %12941 = vmatpush3.msra.mxu1 %v15045_v6  ;;  %v15126_v20 = vld [vmem:[%s15027_s28 + $0x80] sm:$0xff]  ;;  %v15132_v21 = vld [vmem:[%s15027_s28 + $0x38] sm:$0xff]  ;;  %v15142_v23 = vld [vmem:[%s15027_s28 + $0x88] sm:$0xff] }
  0x1f   : > { %12970 = vmatprep.subr.mxu0 %v15069_v10  ;;  %12943 = vmatmul.mubr.msk.f32.vlgmr.msra.gmra.mxu1 %vm511_vm0, %v15058_v8  ;;  %v15135_v22 = vld [vmem:[%s15027_s28 + $0x40] sm:$0xff]  ;;  %v15147_v24 = vld [vmem:[%s15027_s28 + $0x90] sm:$0xff]  ;;  %v15152_v25 = vld [vmem:[%s15027_s28 + $0x48] sm:$0xff] }
  0x20   : > { %12954 = vmatprep.subr.mxu1 %v15073_v11  ;;  %12945 = vmatprep.mubr.msk.f32.mxu1 %vm511_vm0, %v15064_v9  ;;  %v15160_v27 = vld [vmem:[%s15027_s28 + $0x50] sm:$0xff]  ;;  %v15167_v28 = vld [vmem:[%s15027_s28 + $0x98] sm:$0xff]  ;;  %v15173_v29 = vld [vmem:[%s15027_s28 + $0xa0] sm:$0xff] }
  0x21   : > { %12955 = vmatpush3.msra.mxu1 %v15073_v11  ;;  %12930 = vmatmul.mubr.msk.f32.gmra.mxu0 %vm381_vm1, %v15073_v11  ;;  %18861 = vst [vmem:[#allocation5_spill] sm:$0xff] %v15167_v28  ;;  %18862 = vst [vmem:[#allocation6_spill] sm:$0xff] %v15173_v29  ;;  %v15180_v30 = vld [vmem:[%s15027_s28 + $0x58] sm:$0xff]  ;;  %v15183_v31 = vld [vmem:[%s15027_s28 + $0x60] sm:$0xff] }
  0x22   : > { %12956 = vmatprep.subr.mxu1 %v15054_v7  ;;  %12932 = vmatprep.mubr.msk.f32.mxu0 %vm381_vm1, %v15080_v12  ;;  %v15192_v32 = vld [vmem:[%s15027_s28 + $0xa8] sm:$0xff]  ;;  %v15197_v33 = vld [vmem:[%s15027_s28 + $0xb0] sm:$0xff]  ;;  %v15213_v36 = vld [vmem:[%s15027_s28 + $0xb8] sm:$0xff] }
  0x23   : > { %12957 = vmatpush3.msra.mxu1 %v15054_v7  ;;  %12971 = vmatpush3.msra.mxu0 %v15069_v10  ;;  %18863 = vst [vmem:[#allocation7_spill] sm:$0xff] %v15192_v32  ;;  %18864 = vst [vmem:[#allocation8_spill] sm:$0xff] %v15197_v33  ;;  %v15203_v34 = vld [vmem:[%s15027_s28 + $0x68] sm:$0xff]  ;;  %v15206_v35 = vld [vmem:[%s15027_s28 + $0x70] sm:$0xff] }
  0x24   : > { %12946 = vmatmul.mubr.msk.f32.gmra.mxu1 %vm511_vm0, %v15086_v13  ;;  %12986 = vmatprep.subr.mxu1 %v15102_v16  ;;  %18865 = vst [vmem:[#allocation9_spill] sm:$0xff] %v15203_v34  ;;  %18866 = vst [vmem:[#allocation10_spill] sm:$0xff] %v15206_v35  ;;  %v15220_v37 = vld [vmem:[%s15027_s28 + $0x78] sm:$0xff]  ;;  %v15223_v38 = vld [vmem:[%s15027_s28 + $0xc0] sm:$0xff] }
  0x25   : > { %12948 = vmatprep.mubr.msk.f32.mxu1 %vm511_vm0, %v310_v14  ;;  %12933 = vmatmul.mubr.msk.f32.gmra.mxu0 %vm381_vm1, %v15069_v10  ;;  %18867 = vst [vmem:[#allocation11_spill] sm:$0xff] %v15213_v36  ;;  %18868 = vst [vmem:[#allocation12_spill] sm:$0xff] %v15220_v37  ;;  %v15232_v39 = vld [vmem:[%s15027_s28 + $0xc8] sm:$0xff]  ;;  %v15235_v40 = vld [vmem:[%s15027_s28 + $0xd0] sm:$0xff] }
  0x26   : > { %12972 = vmatprep.subr.mxu0 %v15080_v12  ;;  %12935 = vmatprep.mubr.msk.f32.mxu0 %vm381_vm1, %v15099_v15  ;;  %18869 = vst [vmem:[#allocation13_spill] sm:$0xff] %v15223_v38  ;;  %18870 = vst [vmem:[#allocation14_spill] sm:$0xff] %v15232_v39  ;;  %v15242_v41 = vld [vmem:[%s15027_s28 + $0xd8] sm:$0xff]  ;;  %v15245_v42 = vld [vmem:[%s15027_s28 + $0xe0] sm:$0xff] }
  0x27   : > { %12973 = vmatpush3.msra.mxu0 %v15080_v12  ;;  %18871 = vst [vmem:[#allocation15_spill] sm:$0xff] %v15235_v40  ;;  %18872 = vst [vmem:[#allocation16_spill] sm:$0xff] %v15242_v41  ;;  %v15252_v43 = vld [vmem:[%s15027_s28 + $0xe8] sm:$0xff]  ;;  %v15255_v44 = vld [vmem:[%s15027_s28 + $0xf0] sm:$0xff] }
  0x28   : > { %12949 = vmatmul.mubr.msk.f32.gmra.mxu1 %vm511_vm0, %v15106_v17  ;;  %13002 = vmatprep.subr.mxu0 %v15112_v18  ;;  %18873 = vst [vmem:[#allocation17_spill] sm:$0xff] %v15245_v42  ;;  %18874 = vst [vmem:[#allocation18_spill] sm:$0xff] %v15252_v43  ;;  %v15262_v45 = vld [vmem:[%s15027_s28 + $0xf8] sm:$0xff]  ;;  %v15337_v62 = vld [vmem:[%s18667_s3 + $0x50] sm:$0xff] }
  0x29   : > { %12951 = vmatprep.mubr.msk.f32.mxu1 %vm511_vm0, %v15115_v19  ;;  %12936 = vmatmul.mubr.msk.f32.gmra.mxu0 %vm381_vm1, %v15102_v16  ;;  %18875 = vst [vmem:[#allocation19_spill] sm:$0xff] %v15255_v44  ;;  %18876 = vst [vmem:[#allocation20_spill] sm:$0xff] %v15262_v45 }
  0x2a   : > { %12974 = vmatprep.mubr.msk.f32.mxu0 %vm511_vm0, %v15126_v20  ;;  %18886 = vst [vmem:[#allocation30_spill] sm:$0xff] %v15337_v62 }
  0x2c   : > { %12952 = vmatmul.mubr.msk.f32.gmra.mxu1 %vm511_vm0, %v15132_v21 }
  0x2d   : > { %12958 = vmatprep.mubr.msk.f32.mxu1 %vm511_vm0, %v15135_v22  ;;  %12975 = vmatmul.mubr.msk.f32.vlgmr.msra.gmra.mxu0 %vm511_vm0, %v15142_v23 }
  0x2e   : > { %12977 = vmatprep.mubr.msk.f32.mxu0 %vm511_vm0, %v15147_v24  ;;  %13003 = vmatpush3.msra.mxu0 %v15112_v18 }
  0x2f   : > { %13004 = vmatprep.subr.mxu0 %v15157_v26 }
  0x30   : > { %12959 = vmatmul.mubr.msk.f32.vlgmr.msra.gmra.mxu1 %vm511_vm0, %v15152_v25  ;;  %13005 = vmatpush3.msra.mxu0 %v15157_v26 }
  0x31   : > { %12987 = vmatpush3.msra.mxu1 %v15102_v16  ;;  %12961 = vmatprep.mubr.msk.f32.mxu1 %vm511_vm0, %v15160_v27 }
  0x32   : > { %12978 = vmatmul.mubr.msk.f32.gmra.mxu0 %vm511_vm0, %v15167_v28  ;;  %12988 = vmatprep.subr.mxu1 %v15099_v15 }
  0x33   : > { %12989 = vmatpush3.msra.mxu1 %v15099_v15  ;;  %12980 = vmatprep.mubr.msk.f32.mxu0 %vm511_vm0, %v15173_v29 }
  0x34   : > { %12962 = vmatmul.mubr.msk.f32.gmra.mxu1 %vm511_vm0, %v15180_v30  ;;  %13006 = vmatprep.subr.mxu0 %v15269_v46 }
  0x35   : > { %12964 = vmatprep.mubr.msk.f32.mxu1 %vm511_vm0, %v15183_v31  ;;  %13022 = vmatprep.subr.mxu1 %v15274_v47 }
  0x36   : > { %12981 = vmatmul.mubr.msk.f32.gmra.mxu0 %vm511_vm0, %v15192_v32 }
  0x37   : > { %12983 = vmatprep.mubr.msk.f32.mxu0 %vm511_vm0, %v15197_v33  ;;  %13007 = vmatpush3.msra.mxu0 %v15269_v46  ;;  %v15477_v46 = vld [vmem:[%s15459_s14 + $0x10] sm:$0xff] }
  0x38   : > { %12965 = vmatmul.mubr.msk.f32.gmra.mxu1 %vm511_vm0, %v15203_v34  ;;  %13008 = vmatprep.subr.mxu0 %v15283_v48  ;;  %v15480_v34 = vld [vmem:[%s15459_s14 + $0x20] sm:$0xff] }
  0x39   : > { %12967 = vmatprep.mubr.msk.f32.mxu1 %vm511_vm0, %v15206_v35  ;;  %13009 = vmatpush3.msra.mxu0 %v15283_v48  ;;  %18895 = vst [vmem:[#allocation39_spill] sm:$0xff] %v15480_v34 }
  0x3a   : > { %12984 = vmatmul.mubr.msk.f32.gmra.mxu0 %vm511_vm0, %v15213_v36  ;;  %13042 = vmatprep.subr.mxu0 %v15311_v52 }
  0x3c   : > { %12968 = vmatmul.mubr.msk.f32.gmra.mxu1 %vm511_vm0, %v15220_v37  ;;  %v15473_v37 = vld [vmem:[%s15459_s14 + $0x28] sm:$0xff] }
  0x3d   : > { %12990 = vmatprep.mubr.msk.f32.mxu1 %vm511_vm0, %v15223_v38 }
  0x40   : > { %12991 = vmatmul.mubr.msk.f32.vlgmr.msra.gmra.mxu1 %vm511_vm0, %v15232_v39 }
  0x41   : > { %12993 = vmatprep.mubr.msk.f32.mxu1 %vm511_vm0, %v15235_v40  ;;  %13023 = vmatpush3.msra.mxu1 %v15274_v47 }
  0x42   : > { %13024 = vmatprep.subr.mxu1 %v15288_v49 }
  0x43   : > { %13025 = vmatpush3.msra.mxu1 %v15288_v49 }
  0x44   : > { %12994 = vmatmul.mubr.msk.f32.gmra.mxu1 %vm511_vm0, %v15242_v41  ;;  %13026 = vmatprep.subr.mxu1 %v15297_v50 }
  0x45   : > { %12996 = vmatprep.mubr.msk.f32.mxu1 %vm511_vm0, %v15245_v42  ;;  %13027 = vmatpush3.msra.mxu1 %v15297_v50 }
  0x46   : > { %13028 = vmatprep.subr.mxu1 %v15304_v51 }
  0x47   : > { %13029 = vmatpush3.msra.mxu1 %v15304_v51 }
  0x48   : > { %12997 = vmatmul.mubr.msk.f32.gmra.mxu1 %vm511_vm0, %v15252_v43  ;;  %13062 = vmatprep.subr.mxu1 %v15317_v53 }
  0x49   : > { %12999 = vmatprep.mubr.msk.f32.mxu1 %vm511_vm0, %v15255_v44 }
  0x4c   : > { %13000 = vmatmul.mubr.msk.f32.gmra.mxu1 %vm511_vm0, %v15262_v45 }
  0xdd   : > { %v12928_v54 = vpop.f32.mrf.mxu0 }
  0xde   : > { %v15329_v60 = vadd.f32 %v12928_v54, %v15323_v55 }
  0xdf   : > { %v472_v56 = vpop.f32.mrf.mxu0  ;;  %v12944_v57 = vpop.f32.mrf.mxu1 }
  0xe0   : > { %v15326_v58 = vadd.f32 %v15323_v55, %v472_v56 }
  0xe1   : > { %v602_v59 = vpop.f32.mrf.mxu1  ;;  %v12931_v61 = vpop.f32.mrf.mxu0 }
  0xe2   : > { %1640 = vrot.lane.b32.xlu0 %v15326_v58, %s14905_s10  ;;  %13010 = vmatprep.mubr.msk.f32.mxu0 %vm381_vm1, %v602_v59  ;;  %v15350_v59 = vld [vmem:[%s18667_s3 + $0x48] sm:$0xff] }
  0xe3   : > { %13011 = vmatmul.mubr.msk.f32.vlgmr.msra.gmra.mxu0 %vm381_vm1, %v12944_v57  ;;  %v482_v14 = vpop.f32.mrf.mxu0  ;;  %18887 = vst [vmem:[#allocation31_spill] sm:$0xff] %v15350_v59  ;;  %v15354_v57 = vadd.f32 %v12931_v61, %v15323_v55  ;;  %v15375_v61 = vld [vmem:[%s18667_s3 + $0x40] sm:$0xff] }
  0xe4   : > { %v12947_v63 = vpop.f32.mrf.mxu1  ;;  %v15341_v56 = vadd.f32 %v15323_v55, %v482_v14  ;;  %13043 = vmatpush3.msra.mxu0 %v15311_v52  ;;  %v15361_v14 = vld [vmem:[%s18667_s3 + $0x70] sm:$0xff]  ;;  %18889 = vst [vmem:[#allocation33_spill] sm:$0xff] %v15375_v61 }
  0xe5   : > { %v12934_v45 = vpop.f32.mrf.mxu0  ;;  %13044 = vmatprep.subr.mxu0 %v15337_v62  ;;  %18888 = vst [vmem:[#allocation32_spill] sm:$0xff] %v15361_v14 }
  0xe6   : > { %v612_v54 = vpop.f32.mrf.mxu1  ;;  %1642 = vrot.lane.b32.xlu0 %v15329_v60, %s14905_s10  ;;  %1644 = vrot.lane.b32.xlu1 %v15341_v56, %s14905_s10 }
  0xe7   : > { %13030 = vmatprep.mubr.msk.f32.mxu1 %vm381_vm1, %v612_v54  ;;  %v492_v43 = vpop.f32.mrf.mxu0  ;;  %13045 = vmatpush3.msra.mxu0 %v15337_v62 }
  0xe8   : > { %v15363_v44 = vpop.f32.mrf.mxu1  ;;  %13031 = vmatmul.mubr.msk.f32.vlgmr.msra.gmra.mxu1 %vm381_vm1, %v12947_v63  ;;  %v15368_v54 = vadd.f32 %v15323_v55, %v492_v43  ;;  %13046 = vmatprep.subr.mxu0 %v15350_v59  ;;  %v15382_v43 = vld [vmem:[%s18667_s3 + $0x68] sm:$0xff]  ;;  %v15385_v63 = vadd.f32 %v12934_v45, %v15323_v55  ;;  %v15401_v45 = vld [vmem:[%s18667_s3 + $0x60] sm:$0xff] }
  0xe9   : > { %13063 = vmatpush3.msra.mxu1 %v15317_v53  ;;  %v12937_v42 = vpop.f32.mrf.mxu0  ;;  %13047 = vmatpush3.msra.mxu0 %v15350_v59  ;;  %18890 = vst [vmem:[#allocation34_spill] sm:$0xff] %v15382_v43  ;;  %18891 = vst [vmem:[#allocation35_spill] sm:$0xff] %v15401_v45 }
  0xea   : > { %v622_v51 = vpop.f32.mrf.mxu1  ;;  %13064 = vmatprep.subr.mxu1 %v15361_v14  ;;  %1646 = vrot.lane.b32.xlu1 %v15354_v57, %s14905_s10 }
  0xeb   : > { %1648 = vrot.lane.b32.xlu0 %v15368_v54, %s14905_s10  ;;  %v502_v53 = vpop.f32.mrf.mxu0  ;;  %13065 = vmatpush3.msra.mxu1 %v15361_v14  ;;  %v15406_v14 = vadd.f32 %v12937_v42, %v15323_v55 }
  0xec   : > { %v12953_v62 = vpop.f32.mrf.mxu1  ;;  %13048 = vmatprep.subr.mxu0 %v15375_v61  ;;  %v15394_v59 = vadd.f32 %v15323_v55, %v502_v53  ;;  %13066 = vmatprep.subr.mxu1 %v15382_v43 }
  0xed   : > { %13049 = vmatpush3.msra.mxu0 %v15375_v61  ;;  %v12976_v41 = vpop.f32.mrf.mxu0  ;;  %13067 = vmatpush3.msra.mxu1 %v15382_v43 }
  0xee   : > { %v632_v50 = vpop.f32.mrf.mxu1  ;;  %13082 = vmatprep.subr.mxu0 %v14998_v0  ;;  %1650 = vrot.lane.b32.xlu1 %v15385_v63, %s14905_s10 }
  0xef   : > { %1652 = vrot.lane.b32.xlu0 %v15394_v59, %s14905_s10  ;;  %v860_v61 = vpop.f32.mrf.mxu0  ;;  %13068 = vmatprep.subr.mxu1 %v15401_v45 }
  0xf0   : > { %v12960_v53 = vpop.f32.mrf.mxu1  ;;  %13069 = vmatpush3.msra.mxu1 %v15401_v45 }
  0xf2   : > { %v731_v49 = vpop.f32.mrf.mxu1  ;;  %v12979_v40 = vpop.f32.mrf.mxu0  ;;  %1654 = vrot.lane.b32.xlu1 %v15406_v14, %s14905_s10 }
  0xf3   : > { %13013 = vmatprep.mubr.msk.f32.mxu0 %vm381_vm1, %v731_v49 }
  0xf4   : > { %v12963_v42 = vpop.f32.mrf.mxu1  ;;  %13014 = vmatmul.mubr.msk.f32.gmra.mxu0 %vm381_vm1, %v12960_v53  ;;  %v870_v55 = vpop.f32.mrf.mxu0 }
  0xf5   : > { %13016 = vmatprep.mubr.msk.f32.mxu0 %vm381_vm1, %v860_v61 }
  0xf6   : > { %v741_v43 = vpop.f32.mrf.mxu1  ;;  %v12982_v52 = vpop.f32.mrf.mxu0 }
  0xf7   : > { %13033 = vmatprep.mubr.msk.f32.mxu1 %vm381_vm1, %v741_v43 }
  0xf8   : > { %v12966_v39 = vpop.f32.mrf.mxu1  ;;  %13034 = vmatmul.mubr.msk.f32.gmra.mxu1 %vm381_vm1, %v12963_v42  ;;  %13017 = vmatmul.mubr.msk.f32.gmra.mxu0 %vm381_vm1, %v12976_v41  ;;  %v880_v42 = vpop.f32.mrf.mxu0 }
  0xf9   : > { %13036 = vmatprep.mubr.msk.f32.mxu1 %vm381_vm1, %v870_v55 }
  0xfa   : > { %v751_v49 = vpop.f32.mrf.mxu1  ;;  %v12985_v41 = vpop.f32.mrf.mxu0 }
  0xfc   : > { %v12969_v45 = vpop.f32.mrf.mxu1  ;;  %13037 = vmatmul.mubr.msk.f32.gmra.mxu1 %vm381_vm1, %v12979_v40 }
  0xfe   : > { %v761_v36 = vpop.f32.mrf.mxu1 }
 0x100   : > { %v12992_v38 = vpop.f32.mrf.mxu1 }
 0x102   : > { %v989_v53 = vpop.f32.mrf.mxu1 }
 0x103   : > { %13019 = vmatprep.mubr.msk.f32.mxu0 %vm381_vm1, %v989_v53 }
 0x104   : > { %v12995_v61 = vpop.f32.mrf.mxu1  ;;  %13020 = vmatmul.mubr.msk.f32.gmra.mxu0 %vm381_vm1, %v12992_v38  ;;  %v890_v38 = vpop.f32.mrf.mxu0 }
 0x105   : > { %13050 = vmatprep.mubr.msk.f32.mxu0 %vm381_vm1, %v622_v51 }
 0x106   : > { %v999_v43 = vpop.f32.mrf.mxu1 }
 0x107   : > { %13039 = vmatprep.mubr.msk.f32.mxu1 %vm381_vm1, %v999_v43 }
 0x108   : > { %13040 = vmatmul.mubr.msk.f32.gmra.mxu1 %vm381_vm1, %v12995_v61  ;;  %13051 = vmatmul.mubr.msk.f32.vlgmr.msra.gmra.mxu0 %vm381_vm1, %v15363_v44  ;;  %v12998_v40 = vpop.f32.mrf.mxu1  ;;  %v15465_v61 = vld [vmem:[%s15459_s14] sm:$0xff] }
 0x109   : > { %13053 = vmatprep.mubr.msk.f32.mxu0 %vm381_vm1, %v751_v49  ;;  %13070 = vmatprep.mubr.msk.f32.mxu1 %vm381_vm1, %v632_v50  ;;  %v15462_v49 = vld [vmem:[%s15459_s14 + $0x8] sm:$0xff]  ;;  %18893 = vst [vmem:[#allocation37_spill] sm:$0xff] %v15465_v61 }
 0x10a   : > { %v1009_v55 = vpop.f32.mrf.mxu1  ;;  %13083 = vmatpush3.msra.mxu0 %v14998_v0  ;;  %18892 = vst [vmem:[#allocation36_spill] sm:$0xff] %v15462_v49 }
 0x10b   : > { %13084 = vmatprep.subr.mxu0 %v15003_v1 }
 0x10c   : > { %13054 = vmatmul.mubr.msk.f32.gmra.mxu0 %vm381_vm1, %v12966_v39  ;;  %13071 = vmatmul.mubr.msk.f32.vlgmr.msra.gmra.mxu1 %vm381_vm1, %v12953_v62  ;;  %v13001_v44 = vpop.f32.mrf.mxu1 }
 0x10d   : > { %13056 = vmatprep.mubr.msk.f32.mxu0 %vm381_vm1, %v880_v42  ;;  %13073 = vmatprep.mubr.msk.f32.mxu1 %vm381_vm1, %v761_v36 }
 0x10e   : > { %13085 = vmatpush3.msra.mxu0 %v15003_v1  ;;  %v1019_v0 = vpop.f32.mrf.mxu1 }
 0x10f   : > { %13086 = vmatprep.subr.mxu0 %v15010_v2 }
 0x110   : > { %13057 = vmatmul.mubr.msk.f32.gmra.mxu0 %vm381_vm1, %v12982_v52  ;;  %13074 = vmatmul.mubr.msk.f32.gmra.mxu1 %vm381_vm1, %v12969_v45 }
 0x111   : > { %13059 = vmatprep.mubr.msk.f32.mxu0 %vm381_vm1, %v1009_v55  ;;  %13076 = vmatprep.mubr.msk.f32.mxu1 %vm381_vm1, %v890_v38 }
 0x112   : > { %13087 = vmatpush3.msra.mxu0 %v15010_v2 }
 0x113   : > { %13088 = vmatprep.subr.mxu0 %v15019_v3 }
 0x114   : > { %13060 = vmatmul.mubr.msk.f32.gmra.mxu0 %vm381_vm1, %v12998_v40  ;;  %13077 = vmatmul.mubr.msk.f32.gmra.mxu1 %vm381_vm1, %v12985_v41  ;;  %v15469_v41 = vld [vmem:[%s15459_s14 + $0x18] sm:$0xff] }
 0x115   : > { %13079 = vmatprep.mubr.msk.f32.mxu1 %vm381_vm1, %v1019_v0  ;;  %13089 = vmatpush3.msra.mxu0 %v15019_v3  ;;  %18894 = vst [vmem:[#allocation38_spill] sm:$0xff] %v15469_v41 }
 0x118   : > { %13080 = vmatmul.mubr.msk.f32.gmra.mxu1 %vm381_vm1, %v13001_v44 }
 0x119   : > { %13106 = vmatprep.mubr.msk.f32.mxu1 %vm511_vm0, %v15038_v4 }
 0x1a3   : > { %v13012_v1 = vpop.f32.mrf.mxu0 }
 0x1a4   : > { %v1158_v40 = vadd.f32 %v13012_v1, %v15462_v49 }
 0x1a5   : > { %v1118_v39 = vpop.f32.mrf.mxu0 }
 0x1a6   : > { %v1157_v44 = vadd.f32 %v1118_v39, %v15465_v61 }
 0x1a8   : > { %v13032_v36 = vpop.f32.mrf.mxu1 }
 0x1a9   : > { %v1295_v0 = vadd.f32 %v13032_v36, %v1158_v40 }
 0x1aa   : > { %v1255_v2 = vpop.f32.mrf.mxu1 }
 0x1ab   : > { %v1294_v32 = vadd.f32 %v1255_v2, %v1157_v44 }
 0x1b4   : > { %v13015_v50 = vpop.f32.mrf.mxu0 }
 0x1b5   : > { %v1160_v35 = vadd.f32 %v13015_v50, %v15469_v41  ;;  %v15488_v41 = vld [vmem:[%s15459_s14 + $0x38] sm:$0xff] }
 0x1b6   : > { %v1128_v52 = vpop.f32.mrf.mxu0 }
 0x1b7   : > { %v1159_v61 = vadd.f32 %v1128_v52, %v15477_v46 }
 0x1b8   : > { %v13035_v51 = vpop.f32.mrf.mxu1  ;;  %v13018_v45 = vpop.f32.mrf.mxu0 }
 0x1b9   : > { %v1297_v47 = vadd.f32 %v13035_v51, %v1160_v35  ;;  %v1162_v39 = vadd.f32 %v13018_v45, %v15473_v37 }
 0x1ba   : > { %v1265_v62 = vpop.f32.mrf.mxu1  ;;  %v1138_v3 = vpop.f32.mrf.mxu0 }
 0x1bb   : > { %v1161_v2 = vadd.f32 %v1138_v3, %v15480_v34  ;;  %v1296_v35 = vadd.f32 %v1265_v62, %v1159_v61 }
 0x1bc   : > { %v13038_v4 = vpop.f32.mrf.mxu1 }
 0x1be   : > { %v1275_v43 = vpop.f32.mrf.mxu1 }
 0x1c4   : > { %v13021_v53 = vpop.f32.mrf.mxu0 }
 0x1c6   : > { %v1148_v42 = vpop.f32.mrf.mxu0 }
 0x1c8   : > { %v13041_v55 = vpop.f32.mrf.mxu1  ;;  %v13052_v38 = vpop.f32.mrf.mxu0 }
 0x1c9   : > { %v1432_v1 = vadd.f32 %v13052_v38, %v1295_v0 }
 0x1ca   : > { %v1285_v33 = vpop.f32.mrf.mxu1  ;;  %v1392_v48 = vpop.f32.mrf.mxu0 }
 0x1cb   : > { %v1431_v36 = vadd.f32 %v1392_v48, %v1294_v32  ;;  %v1299_v32 = vadd.f32 %v13038_v4, %v1162_v39 }
 0x1cc   : > { %v13055_v49 = vpop.f32.mrf.mxu0  ;;  %v13072_v29 = vpop.f32.mrf.mxu1 }
 0x1cd   : > { %v15483_v40 = vadd.f32 %v13072_v29, %v1432_v1  ;;  %v1434_v28 = vadd.f32 %v13055_v49, %v1297_v47  ;;  %v15495_v29 = vld [vmem:[%s15459_s14 + $0x30] sm:$0xff]  ;;  %v1298_v1 = vadd.f32 %v1275_v43, %v1161_v2  ;;  %v1164_v47 = vadd.f32 %v13021_v53, %v15488_v41 }
 0x1ce   : > { %v1402_v44 = vpop.f32.mrf.mxu0  ;;  %v1529_v50 = vpop.f32.mrf.mxu1  ;;  %v1163_v61 = vadd.f32 %v1148_v42, %v15495_v29 }
 0x1cf   : > { %v1577_v38 = vadd.f32 %v15483_v40, %v15329_v60  ;;  %v15492_v0 = vadd.f32 %v1529_v50, %v1431_v36  ;;  %v1433_v49 = vadd.f32 %v1402_v44, %v1296_v35  ;;  %v1301_v39 = vadd.f32 %v13041_v55, %v1164_v47 }
 0x1d0   : > { %v13058_v51 = vpop.f32.mrf.mxu0  ;;  %v13075_v45 = vpop.f32.mrf.mxu1  ;;  %v1300_v44 = vadd.f32 %v1285_v33, %v1163_v61 }
 0x1d1   : > { %v11540_v48 = vmul.f32 -1.442695, %v1577_v38  ;;  %v1576_v52 = vadd.f32 %v15492_v0, %v15326_v58  ;;  %v15499_v3 = vadd.f32 %v13075_v45, %v1434_v28  ;;  %v1436_v62 = vadd.f32 %v13058_v51, %v1299_v32 }
 0x1d2   : > { %v1412_v34 = vpop.f32.mrf.mxu0  ;;  %v1539_v60 = vpop.f32.mrf.mxu1 }
 0x1d3   : > { %14274 = vpow2.f32 %v11540_v48  ;;  %v11539_v36 = vmul.f32 -1.442695, %v1576_v52  ;;  %v1579_v4 = vadd.f32 %v15499_v3, %v15354_v57  ;;  %v15505_v50 = vadd.f32 %v1539_v60, %v1433_v49 }
 0x1d4   : > { %v13061_v58 = vpop.f32.mrf.mxu0  ;;  %v13078_v28 = vpop.f32.mrf.mxu1  ;;  %v1435_v2 = vadd.f32 %v1412_v34, %v1298_v1 }
 0x1d5   : > { %14276 = vpow2.f32 %v11539_v36  ;;  %v11542_v43 = vmul.f32 -1.442695, %v1579_v4  ;;  %v15507_v53 = vadd.f32 %v13078_v28, %v1436_v62  ;;  %v1578_v38 = vadd.f32 %v15505_v50, %v15341_v56 }
 0x1d6   : > { %v1422_v35 = vpop.f32.mrf.mxu0  ;;  %v1549_v51 = vpop.f32.mrf.mxu1  ;;  %v1438_v57 = vadd.f32 %v13061_v58, %v1301_v39 }
 0x1d7   : > { %14278 = vpow2.f32 %v11542_v43  ;;  %v1581_v42 = vadd.f32 %v15507_v53, %v15385_v63  ;;  %v15513_v55 = vadd.f32 %v1549_v51, %v1435_v2  ;;  %v11541_v45 = vmul.f32 -1.442695, %v1578_v38  ;;  %v1641_v38 = vpop.permute.xlu0 %1640 }
 0x1d8   : > { %v13081_v32 = vpop.f32.mrf.mxu1  ;;  %v1437_v52 = vadd.f32 %v1422_v35, %v1300_v44  ;;  %v1645_v35 = vpop.permute.xlu1 %1644 }
 0x1d9   : > { %v11544_v48 = vmul.f32 -1.442695, %v1581_v42  ;;  %v1580_v34 = vadd.f32 %v15513_v55, %v15368_v54  ;;  %v15517_v33 = vadd.f32 %v13081_v32, %v1438_v57  ;;  %14280 = vpow2.f32 %v11541_v45 }
 0x1da   : > { %v1559_v56 = vpop.f32.mrf.mxu1 }
 0x1db   : > { %14282 = vpow2.f32 %v11544_v48  ;;  %v11543_v1 = vmul.f32 -1.442695, %v1580_v34  ;;  %v1583_v47 = vadd.f32 %v15517_v33, %v15406_v14  ;;  %v15521_v49 = vadd.f32 %v1559_v56, %v1437_v52  ;;  %v1643_v48 = vpop.permute.xlu0 %1642 }
 0x1dc   : > { %v1647_v52 = vpop.permute.xlu1 %1646 }
 0x1dd   : > { %14284 = vpow2.f32 %v11543_v1  ;;  %v11546_v63 = vmul.f32 -1.442695, %v1583_v47  ;;  %v1582_v60 = vadd.f32 %v15521_v49, %v15394_v59 }
 0x1df   : > { %14286 = vpow2.f32 %v11546_v63  ;;  %v11545_v36 = vmul.f32 -1.442695, %v1582_v60 }
 0x1e0   : > { %v14275_v62 = vpop.eup %14274  ;;  %v1651_v60 = vpop.permute.xlu1 %1650 }
 0x1e1   : > { %v1609_v54 = vadd.f32 1.0, %v14275_v62  ;;  %14288 = vpow2.f32 %v11545_v36 }
 0x1e2   : > { %v14277_v4 = vpop.eup %14276 }
 0x1e3   : > { %14290 = vrcp.f32 %v1609_v54  ;;  %v1608_v61 = vadd.f32 1.0, %v14277_v4  ;;  %v1649_v54 = vpop.permute.xlu0 %1648 }
 0x1e4   : > { %v14279_v39 = vpop.eup %14278 }
 0x1e5   : > { %14292 = vrcp.f32 %v1608_v61  ;;  %v1611_v58 = vadd.f32 1.0, %v14279_v39 }
 0x1e6   : > { %v14281_v28 = vpop.eup %14280 }
 0x1e7   : > { %14294 = vrcp.f32 %v1611_v58  ;;  %v1610_v43 = vadd.f32 1.0, %v14281_v28 }
 0x1e8   : > { %v14283_v14 = vpop.eup %14282 }
 0x1e9   : > { %v1613_v2 = vadd.f32 1.0, %v14283_v14  ;;  %14296 = vrcp.f32 %v1610_v43  ;;  %v1655_v14 = vpop.permute.xlu1 %1654 }
 0x1ea   : > { %v14285_v44 = vpop.eup %14284 }
 0x1eb   : > { %14298 = vrcp.f32 %v1613_v2  ;;  %v1612_v59 = vadd.f32 1.0, %v14285_v44  ;;  %v1653_v44 = vpop.permute.xlu0 %1652 }
 0x1ec   : > { %v14287_v51 = vpop.eup %14286 }
 0x1ed   : > { %14300 = vrcp.f32 %v1612_v59  ;;  %v1615_v57 = vadd.f32 1.0, %v14287_v51 }
 0x1ee   : > { %v14289_v42 = vpop.eup %14288 }
 0x1ef   : > { %14302 = vrcp.f32 %v1615_v57  ;;  %v1614_v45 = vadd.f32 1.0, %v14289_v42 }
 0x1f0   : > { %v15525_v32 = vpop.eup %14290 }
 0x1f1   : > { %14304 = vrcp.f32 %v1614_v45  ;;  %v1665_v34 = vmul.f32 %v15525_v32, %v1643_v48 }
 0x1f2   : > { %v15528_v56 = vpop.eup %14292 }
 0x1f3   : > { %1682 = vrot.lane.b32.xlu1 %v1665_v34, %s14905_s10  ;;  %v1664_v1 = vmul.f32 %v15528_v56, %v1641_v38 }
 0x1f4   : > { %v15532_v47 = vpop.eup %14294 }
 0x1f5   : > { %1680 = vrot.lane.b32.xlu0 %v1664_v1, %s14905_s10  ;;  %v1667_v63 = vmul.f32 %v15532_v47, %v1647_v52 }
 0x1f6   : > { %v15536_v36 = vpop.eup %14296 }
 0x1f7   : > { %1686 = vrot.lane.b32.xlu1 %v1667_v63, %s14905_s10  ;;  %v1666_v4 = vmul.f32 %v15536_v36, %v1645_v35 }
 0x1f8   : > { %v15539_v62 = vpop.eup %14298 }
 0x1f9   : > { %v1669_v61 = vmul.f32 %v15539_v62, %v1651_v60  ;;  %1684 = vrot.lane.b32.xlu0 %v1666_v4, %s14905_s10 }
 0x1fa   : > { %v15543_v39 = vpop.eup %14300 }
 0x1fb   : > { %1690 = vrot.lane.b32.xlu1 %v1669_v61, %s14905_s10  ;;  %v1668_v58 = vmul.f32 %v15543_v39, %v1649_v54 }
 0x1fc   : > { %v15548_v28 = vpop.eup %14302 }
 0x1fd   : > { %v1671_v43 = vmul.f32 %v15548_v28, %v1655_v14  ;;  %1688 = vrot.lane.b32.xlu0 %v1668_v58, %s14905_s10 }
 0x1fe   : > { %v15551_v2 = vpop.eup %14304 }
 0x1ff   : > { %1694 = vrot.lane.b32.xlu1 %v1671_v43, %s14905_s10  ;;  %v1670_v38 = vmul.f32 %v15551_v2, %v1653_v44 }
 0x201   : > { %1692 = vrot.lane.b32.xlu0 %v1670_v38, %s14905_s10 }
 0x265   : > { %v1683_v35 = vpop.permute.xlu1 %1682 }
 0x266   : > { %v1705_v59 = vadd.f32 %v1683_v35, %v15483_v40 }
 0x267   : > { %v1681_v51 = vpop.permute.xlu0 %1680 }
 0x268   : > { %14306 = vtanh.f32 %v1705_v59  ;;  %v1704_v57 = vadd.f32 %v1681_v51, %v15492_v0 }
 0x269   : > { %v1687_v42 = vpop.permute.xlu1 %1686 }
 0x26a   : > { %14308 = vtanh.f32 %v1704_v57  ;;  %v1707_v45 = vadd.f32 %v1687_v42, %v15499_v3 }
 0x26b   : > { %v1685_v48 = vpop.permute.xlu0 %1684 }
 0x26c   : > { %14310 = vtanh.f32 %v1707_v45  ;;  %v1706_v52 = vadd.f32 %v1685_v48, %v15505_v50 }
 0x26d   : > { %v1691_v34 = vpop.permute.xlu1 %1690 }
 0x26e   : > { %v1709_v1 = vadd.f32 %v1691_v34, %v15507_v53  ;;  %14312 = vtanh.f32 %v1706_v52 }
 0x26f   : > { %v1689_v63 = vpop.permute.xlu0 %1688 }
 0x270   : > { %14314 = vtanh.f32 %v1709_v1  ;;  %v1708_v40 = vadd.f32 %v1689_v63, %v15513_v55 }
 0x271   : > { %v1695_v60 = vpop.permute.xlu1 %1694 }
 0x272   : > { %v1711_v54 = vadd.f32 %v1695_v60, %v15517_v33  ;;  %14316 = vtanh.f32 %v1708_v40 }
 0x273   : > { %v1693_v0 = vpop.permute.xlu0 %1692 }
 0x274   : > { %14318 = vtanh.f32 %v1711_v54  ;;  %v1710_v3 = vadd.f32 %v1693_v0, %v15521_v49 }
 0x275   : > { %v15564_v4 = vpop.eup %14306 }
 0x276   : > { %1730 = vrot.lane.b32.xlu1 %v15564_v4, %s14905_s10  ;;  %14320 = vtanh.f32 %v1710_v3 }
 0x277   : > { %v15569_v50 = vpop.eup %14308 }
 0x278   : > { %1728 = vrot.lane.b32.xlu0 %v15569_v50, %s14905_s10 }
 0x279   : > { %v15573_v53 = vpop.eup %14310 }
 0x27a   : > { %1734 = vrot.lane.b32.xlu1 %v15573_v53, %s14905_s10 }
 0x27b   : > { %v15577_v55 = vpop.eup %14312 }
 0x27c   : > { %1732 = vrot.lane.b32.xlu0 %v15577_v55, %s14905_s10 }
 0x27d   : > { %v15579_v33 = vpop.eup %14314 }
 0x27e   : > { %1738 = vrot.lane.b32.xlu1 %v15579_v33, %s14905_s10 }
 0x27f   : > { %v15585_v49 = vpop.eup %14316 }
 0x280   : > { %1736 = vrot.lane.b32.xlu0 %v15585_v49, %s14905_s10 }
 0x281   : > { %v15587_v61 = vpop.eup %14318 }
 0x282   : > { %1742 = vrot.lane.b32.xlu1 %v15587_v61, %s14905_s10 }
 0x283   : > { %v15593_v58 = vpop.eup %14320 }
 0x284   : > { %1740 = vrot.lane.b32.xlu0 %v15593_v58, %s14905_s10 }
 0x2e8   : > { %v1731_v14 = vpop.permute.xlu1 %1730 }
 0x2e9   : > { %v1753_v43 = vsub.f32 %v15042_v5, %v1731_v14 }
 0x2ea   : > { %v1729_v44 = vpop.permute.xlu0 %1728 }
 0x2eb   : > { %v1752_v38 = vsub.f32 %v15045_v6, %v1729_v44  ;;  %1770 = vrot.lane.b32.xlu1 %v1753_v43, %s14906_s9 }
 0x2ec   : > { %v1735_v35 = vpop.permute.xlu1 %1734 }
 0x2ed   : > { %v1755_v59 = vsub.f32 %v15073_v11, %v1735_v35  ;;  %1768 = vrot.lane.b32.xlu0 %v1752_v38, %s14906_s9 }
 0x2ee   : > { %v1733_v51 = vpop.permute.xlu0 %1732 }
 0x2ef   : > { %1774 = vrot.lane.b32.xlu1 %v1755_v59, %s14906_s9  ;;  %v1754_v57 = vsub.f32 %v15054_v7, %v1733_v51 }
 0x2f0   : > { %v1739_v42 = vpop.permute.xlu1 %1738 }
 0x2f1   : > { %v1757_v45 = vsub.f32 %v15069_v10, %v1739_v42  ;;  %1772 = vrot.lane.b32.xlu0 %v1754_v57, %s14906_s9 }
 0x2f2   : > { %v1737_v5 = vpop.permute.xlu0 %1736 }
 0x2f3   : > { %1778 = vrot.lane.b32.xlu1 %v1757_v45, %s14906_s9  ;;  %v1756_v6 = vsub.f32 %v15080_v12, %v1737_v5 }
 0x2f4   : > { %v1743_v48 = vpop.permute.xlu1 %1742 }
 0x2f5   : > { %v1759_v11 = vsub.f32 %v15102_v16, %v1743_v48  ;;  %1776 = vrot.lane.b32.xlu0 %v1756_v6, %s14906_s9  ;;  %v18909_v6 = vld [vmem:[#allocation14_spill] sm:$0xff]  ;;  %v18910_v48 = vld [vmem:[#allocation15_spill] sm:$0xff] }
 0x2f6   : > { %v1741_v52 = vpop.permute.xlu0 %1740 }
 0x2f7   : > { %1782 = vrot.lane.b32.xlu1 %v1759_v11, %s14906_s9  ;;  %v1758_v7 = vsub.f32 %v15099_v15, %v1741_v52  ;;  %v18911_v11 = vld [vmem:[#allocation24_spill] sm:$0xff] }
 0x2f8   : > { %v18912_v52 = vld [vmem:[#allocation16_spill] sm:$0xff] }
 0x2f9   : > { %1780 = vrot.lane.b32.xlu0 %v1758_v7, %s14906_s9  ;;  %v18913_v7 = vld [vmem:[#allocation25_spill] sm:$0xff] }
 0x35d   : > { %v1771_v10 = vpop.permute.xlu1 %1770 }
 0x35e   : > { %v1793_v34 = vmul.f32 %v15525_v32, %v1771_v10  ;;  %v18914_v10 = vld [vmem:[#allocation17_spill] sm:$0xff] }
 0x35f   : > { %v1769_v1 = vpop.permute.xlu0 %1768 }
 0x360   : > { %v1792_v63 = vmul.f32 %v15528_v56, %v1769_v1  ;;  %1810 = vrot.lane.b32.xlu1 %v1793_v34, %s14906_s9  ;;  %v18915_v34 = vld [vmem:[#allocation26_spill] sm:$0xff] }
 0x361   : > { %v1775_v12 = vpop.permute.xlu1 %1774  ;;  %v18916_v1 = vld [vmem:[#allocation18_spill] sm:$0xff] }
 0x362   : > { %v1795_v16 = vmul.f32 %v15532_v47, %v1775_v12  ;;  %1808 = vrot.lane.b32.xlu0 %v1792_v63, %s14906_s9  ;;  %v18917_v63 = vld [vmem:[#allocation28_spill] sm:$0xff]  ;;  %v18918_v12 = vld [vmem:[#allocation19_spill] sm:$0xff] }
 0x363   : > { %v1773_v40 = vpop.permute.xlu0 %1772 }
 0x364   : > { %1814 = vrot.lane.b32.xlu1 %v1795_v16, %s14906_s9  ;;  %v1794_v15 = vmul.f32 %v15536_v36, %v1773_v40  ;;  %v18919_v16 = vld [vmem:[#allocation20_spill] sm:$0xff] }
 0x365   : > { %v1779_v60 = vpop.permute.xlu1 %1778 }
 0x366   : > { %v1797_v54 = vmul.f32 %v15539_v62, %v1779_v60  ;;  %1812 = vrot.lane.b32.xlu0 %v1794_v15, %s14906_s9  ;;  %v18920_v15 = vld [vmem:[#allocation29_spill] sm:$0xff] }
 0x367   : > { %v1777_v32 = vpop.permute.xlu0 %1776 }
 0x368   : > { %1818 = vrot.lane.b32.xlu1 %v1797_v54, %s14906_s9  ;;  %v1796_v56 = vmul.f32 %v15543_v39, %v1777_v32 }
 0x369   : > { %v1783_v0 = vpop.permute.xlu1 %1782 }
 0x36a   : > { %v1799_v47 = vmul.f32 %v15548_v28, %v1783_v0  ;;  %1816 = vrot.lane.b32.xlu0 %v1796_v56, %s14906_s9 }
 0x36b   : > { %v1781_v3 = vpop.permute.xlu0 %1780 }
 0x36c   : > { %1822 = vrot.lane.b32.xlu1 %v1799_v47, %s14906_s9  ;;  %v1798_v36 = vmul.f32 %v15551_v2, %v1781_v3 }
 0x36e   : > { %1820 = vrot.lane.b32.xlu0 %v1798_v36, %s14906_s9 }
 0x3d2   : > { %v1811_v62 = vpop.permute.xlu1 %1810 }
 0x3d3   : > { %v15630_v14 = vadd.f32 %v15564_v4, %v1811_v62 }
 0x3d4   : > { %v1809_v43 = vpop.permute.xlu0 %1808 }
 0x3d5   : > { %v15633_v44 = vadd.f32 %v15569_v50, %v1809_v43  ;;  %1850 = vrot.lane.b32.xlu1 %v15630_v14, %s14905_s10  ;;  %v18921_v43 = vld [vmem:[#allocation30_spill] sm:$0xff] }
 0x3d6   : > { %v1815_v39 = vpop.permute.xlu1 %1814 }
 0x3d7   : > { %v15638_v28 = vadd.f32 %v15573_v53, %v1815_v39  ;;  %1848 = vrot.lane.b32.xlu0 %v15633_v44, %s14905_s10 }
 0x3d8   : > { %v1813_v2 = vpop.permute.xlu0 %1812 }
 0x3d9   : > { %1854 = vrot.lane.b32.xlu1 %v15638_v28, %s14905_s10  ;;  %v15645_v4 = vadd.f32 %v15577_v55, %v1813_v2 }
 0x3da   : > { %v1819_v38 = vpop.permute.xlu1 %1818 }
 0x3db   : > { %v15648_v50 = vadd.f32 %v15579_v33, %v1819_v38  ;;  %1852 = vrot.lane.b32.xlu0 %v15645_v4, %s14905_s10 }
 0x3dc   : > { %v1817_v35 = vpop.permute.xlu0 %1816 }
 0x3dd   : > { %1858 = vrot.lane.b32.xlu1 %v15648_v50, %s14905_s10  ;;  %v15655_v53 = vadd.f32 %v15585_v49, %v1817_v35  ;;  %v18922_v35 = vld [vmem:[#allocation31_spill] sm:$0xff] }
 0x3de   : > { %v1823_v59 = vpop.permute.xlu1 %1822 }
 0x3df   : > { %v15658_v51 = vadd.f32 %v15587_v61, %v1823_v59  ;;  %1856 = vrot.lane.b32.xlu0 %v15655_v53, %s14905_s10 }
 0x3e0   : > { %v1821_v55 = vpop.permute.xlu0 %1820 }
 0x3e1   : > { %1862 = vrot.lane.b32.xlu1 %v15658_v51, %s14905_s10  ;;  %v15665_v33 = vadd.f32 %v15593_v58, %v1821_v55 }
 0x3e3   : > { %1860 = vrot.lane.b32.xlu0 %v15665_v33, %s14905_s10 }
 0x447   : > { %v1851_v57 = vpop.permute.xlu1 %1850 }
 0x448   : > { %13102 = vmatprep.subr.mxu1 %v1851_v57 }
 0x449   : > { %13103 = vmatpush3.msra.mxu1 %v1851_v57  ;;  %v1849_v49 = vpop.permute.xlu0 %1848 }
 0x44a   : > { %13090 = vmatprep.mubr.msk.f32.mxu0 %vm381_vm1, %v1849_v49  ;;  %13104 = vmatprep.subr.mxu1 %v1849_v49 }
 0x44b   : > { %v1855_v61 = vpop.permute.xlu1 %1854  ;;  %13091 = vmatmul.mubr.msk.f32.vlgmr.msra.gmra.mxu0 %vm381_vm1, %v1851_v57  ;;  %13105 = vmatpush3.msra.mxu1 %v1849_v49 }
 0x44c   : > { %13118 = vmatprep.subr.mxu0 %v1855_v61  ;;  %13107 = vmatmul.mubr.msk.f32.vlgmr.msra.gmra.mxu1 %vm511_vm0, %v15058_v8 }
 0x44d   : > { %13119 = vmatpush3.msra.mxu0 %v1855_v61  ;;  %13109 = vmatprep.mubr.msk.f32.mxu1 %vm511_vm0, %v15064_v9  ;;  %v1853_v58 = vpop.permute.xlu0 %1852  ;;  %v15682_v9 = vld [vmem:[%s15027_s28 + $0x20] sm:$0xff] }
 0x44e   : > { %13093 = vmatprep.mubr.msk.f32.mxu0 %vm381_vm1, %v1853_v58  ;;  %13120 = vmatprep.subr.mxu0 %v1853_v58 }
 0x44f   : > { %v1859_v42 = vpop.permute.xlu1 %1858  ;;  %13094 = vmatmul.mubr.msk.f32.gmra.mxu0 %vm381_vm1, %v1855_v61 }
 0x450   : > { %13134 = vmatprep.subr.mxu1 %v1859_v42  ;;  %13121 = vmatpush3.msra.mxu0 %v1853_v58 }
 0x451   : > { %13135 = vmatpush3.msra.mxu1 %v1859_v42  ;;  %v1857_v45 = vpop.permute.xlu0 %1856 }
 0x452   : > { %13110 = vmatmul.mubr.msk.f32.gmra.mxu1 %vm511_vm0, %v15086_v13  ;;  %13096 = vmatprep.mubr.msk.f32.mxu0 %vm381_vm1, %v1857_v45  ;;  %v15712_v13 = vld [vmem:[%s18667_s3 + $0x18] sm:$0xff] }
 0x453   : > { %13136 = vmatprep.subr.mxu1 %v1857_v45  ;;  %v1863_v8 = vpop.permute.xlu1 %1862  ;;  %13097 = vmatmul.mubr.msk.f32.gmra.mxu0 %vm381_vm1, %v1859_v42  ;;  %v18923_v42 = vld [vmem:[#allocation32_spill] sm:$0xff] }
 0x454   : > { %13137 = vmatpush3.msra.mxu1 %v1857_v45  ;;  %13150 = vmatprep.subr.mxu0 %v1863_v8  ;;  %v18924_v45 = vld [vmem:[#allocation33_spill] sm:$0xff] }
 0x455   : > { %13112 = vmatprep.mubr.msk.f32.mxu1 %vm511_vm0, %v15682_v9  ;;  %v1861_v5 = vpop.permute.xlu0 %1860  ;;  %13166 = vmatprep.subr.mxu1 %v15112_v18  ;;  %v18897_v18 = vld [vmem:[#allocation22_spill] sm:$0xff] }
 0x456   : > { %13113 = vmatmul.mubr.msk.f32.gmra.mxu1 %vm511_vm0, %v15106_v17  ;;  %13099 = vmatprep.mubr.msk.f32.mxu0 %vm381_vm1, %v1861_v5  ;;  %v18896_v17 = vld [vmem:[#allocation5_spill] sm:$0xff] }
 0x457   : > { %13115 = vmatprep.mubr.msk.f32.mxu1 %vm511_vm0, %v15115_v19  ;;  %13100 = vmatmul.mubr.msk.f32.gmra.mxu0 %vm381_vm1, %v1863_v8  ;;  %v18898_v19 = vld [vmem:[#allocation6_spill] sm:$0xff] }
 0x458   : > { %13122 = vmatprep.mubr.msk.f32.mxu0 %vm511_vm0, %v15135_v22  ;;  %v18901_v22 = vld [vmem:[#allocation10_spill] sm:$0xff] }
 0x45a   : > { %13116 = vmatmul.mubr.msk.f32.gmra.mxu1 %vm511_vm0, %v15132_v21  ;;  %v18900_v21 = vld [vmem:[#allocation21_spill] sm:$0xff] }
 0x45b   : > { %13138 = vmatprep.mubr.msk.f32.mxu1 %vm511_vm0, %v15126_v20  ;;  %13123 = vmatmul.mubr.msk.f32.vlgmr.msra.gmra.mxu0 %vm511_vm0, %v15152_v25  ;;  %v18899_v20 = vld [vmem:[#allocation9_spill] sm:$0xff]  ;;  %v18904_v25 = vld [vmem:[#allocation8_spill] sm:$0xff] }
 0x45c   : > { %13151 = vmatpush3.msra.mxu0 %v1863_v8  ;;  %13125 = vmatprep.mubr.msk.f32.mxu0 %vm511_vm0, %v15160_v27  ;;  %v18906_v27 = vld [vmem:[#allocation27_spill] sm:$0xff] }
 0x45d   : > { %13152 = vmatprep.subr.mxu0 %v1861_v5 }
 0x45e   : > { %13139 = vmatmul.mubr.msk.f32.vlgmr.msra.gmra.mxu1 %vm511_vm0, %v15142_v23  ;;  %13153 = vmatpush3.msra.mxu0 %v1861_v5  ;;  %v18902_v23 = vld [vmem:[#allocation7_spill] sm:$0xff] }
 0x45f   : > { %13141 = vmatprep.mubr.msk.f32.mxu1 %vm511_vm0, %v15147_v24  ;;  %13126 = vmatmul.mubr.msk.f32.gmra.mxu0 %vm511_vm0, %v15180_v30  ;;  %v18903_v24 = vld [vmem:[#allocation23_spill] sm:$0xff]  ;;  %v18907_v30 = vld [vmem:[#allocation13_spill] sm:$0xff] }
 0x460   : > { %13167 = vmatpush3.msra.mxu1 %v15712_v13  ;;  %13128 = vmatprep.mubr.msk.f32.mxu0 %vm511_vm0, %v15183_v31  ;;  %v18908_v31 = vld [vmem:[#allocation11_spill] sm:$0xff] }
 0x461   : > { %13168 = vmatprep.subr.mxu1 %v15157_v26  ;;  %13186 = vmatprep.subr.mxu0 %v18897_v18 }
 0x462   : > { %13142 = vmatmul.mubr.msk.f32.gmra.mxu1 %vm511_vm0, %v18896_v17 }
 0x463   : > { %13144 = vmatprep.mubr.msk.f32.mxu1 %vm511_vm0, %v18898_v19  ;;  %13169 = vmatpush3.msra.mxu1 %v15157_v26  ;;  %v18905_v26 = vld [vmem:[#allocation12_spill] sm:$0xff] }
 0x464   : > { %13129 = vmatmul.mubr.msk.f32.gmra.mxu0 %vm511_vm0, %v18899_v20  ;;  %13170 = vmatprep.subr.mxu1 %v18900_v21 }
 0x465   : > { %13131 = vmatprep.mubr.msk.f32.mxu0 %vm511_vm0, %v18901_v22  ;;  %13171 = vmatpush3.msra.mxu1 %v18900_v21  ;;  %v18926_v22 = vld [vmem:[#allocation35_spill] sm:$0xff] }
 0x466   : > { %13145 = vmatmul.mubr.msk.f32.gmra.mxu1 %vm511_vm0, %v18902_v23  ;;  %13172 = vmatprep.subr.mxu1 %v18903_v24  ;;  %v15823_v23 = vld [vmem:[%s18668_s4 + $0x18] sm:$0xff] }
 0x467   : > { %13147 = vmatprep.mubr.msk.f32.mxu1 %vm511_vm0, %v18904_v25  ;;  %13173 = vmatpush3.msra.mxu1 %v18903_v24 }
 0x468   : > { %13132 = vmatmul.mubr.msk.f32.gmra.mxu0 %vm511_vm0, %v18905_v26  ;;  %13206 = vmatprep.subr.mxu1 %v18906_v27 }
 0x469   : > { %13154 = vmatprep.mubr.msk.f32.mxu0 %vm511_vm0, %v18907_v30 }
 0x46a   : > { %13148 = vmatmul.mubr.msk.f32.gmra.mxu1 %vm511_vm0, %v18908_v31 }
 0x46c   : > { %13155 = vmatmul.mubr.msk.f32.vlgmr.msra.gmra.mxu0 %vm511_vm0, %v18909_v6 }
 0x46d   : > { %13157 = vmatprep.mubr.msk.f32.mxu0 %vm511_vm0, %v18910_v48  ;;  %13187 = vmatpush3.msra.mxu0 %v18897_v18  ;;  %v18925_v18 = vld [vmem:[#allocation34_spill] sm:$0xff] }
 0x46e   : > { %13188 = vmatprep.subr.mxu0 %v18911_v11 }
 0x46f   : > { %13189 = vmatpush3.msra.mxu0 %v18911_v11 }
 0x470   : > { %13158 = vmatmul.mubr.msk.f32.gmra.mxu0 %vm511_vm0, %v18912_v52  ;;  %13190 = vmatprep.subr.mxu0 %v18913_v7 }
 0x471   : > { %13160 = vmatprep.mubr.msk.f32.mxu0 %vm511_vm0, %v18914_v10  ;;  %13191 = vmatpush3.msra.mxu0 %v18913_v7 }
 0x472   : > { %13192 = vmatprep.subr.mxu0 %v18915_v34 }
 0x473   : > { %13193 = vmatpush3.msra.mxu0 %v18915_v34 }
 0x474   : > { %13161 = vmatmul.mubr.msk.f32.gmra.mxu0 %vm511_vm0, %v18916_v1  ;;  %13226 = vmatprep.subr.mxu0 %v18917_v63 }
 0x475   : > { %13163 = vmatprep.mubr.msk.f32.mxu0 %vm511_vm0, %v18918_v12 }
 0x478   : > { %13164 = vmatmul.mubr.msk.f32.gmra.mxu0 %vm511_vm0, %v18919_v16 }
 0x50b   : > { %v13092_v40 = vpop.f32.mrf.mxu0 }
 0x50c   : > { %v15766_v60 = vadd.f32 %v13092_v40, %v18920_v15  ;;  %v13108_v54 = vpop.f32.mrf.mxu1 }
 0x50d   : > { %v1946_v32 = vpop.f32.mrf.mxu0 }
 0x50e   : > { %v15769_v56 = vadd.f32 %v18920_v15, %v1946_v32  ;;  %3027 = vrot.lane.b32.xlu1 %v15766_v60, %s14905_s10  ;;  %v2053_v0 = vpop.f32.mrf.mxu1  ;;  %v15849_v32 = vld [vmem:[%s18668_s4 + $0x10] sm:$0xff] }
 0x50f   : > { %13174 = vmatprep.mubr.msk.f32.mxu1 %vm381_vm1, %v2053_v0  ;;  %v13095_v47 = vpop.f32.mrf.mxu0 }
 0x510   : > { %3025 = vrot.lane.b32.xlu0 %v15769_v56, %s14905_s10  ;;  %13175 = vmatmul.mubr.msk.f32.vlgmr.msra.gmra.mxu1 %vm381_vm1, %v13108_v54  ;;  %v15778_v3 = vadd.f32 %v13095_v47, %v18920_v15 }
 0x511   : > { %13207 = vmatpush3.msra.mxu1 %v18906_v27  ;;  %v1956_v36 = vpop.f32.mrf.mxu0 }
 0x512   : > { %v13111_v62 = vpop.f32.mrf.mxu1  ;;  %13208 = vmatprep.subr.mxu1 %v18921_v43  ;;  %v15783_v39 = vadd.f32 %v18920_v15, %v1956_v36  ;;  %3031 = vrot.lane.b32.xlu1 %v15778_v3, %s14905_s10  ;;  %v15860_v36 = vld [vmem:[%s18668_s4 + $0x8] sm:$0xff] }
 0x513   : > { %13209 = vmatpush3.msra.mxu1 %v18921_v43  ;;  %v13098_v2 = vpop.f32.mrf.mxu0  ;;  %v15871_v43 = vld [vmem:[%s18668_s4] sm:$0xff] }
 0x514   : > { %v2063_v38 = vpop.f32.mrf.mxu1  ;;  %13210 = vmatprep.subr.mxu1 %v18922_v35  ;;  %v15790_v59 = vadd.f32 %v13098_v2, %v18920_v15  ;;  %3029 = vrot.lane.b32.xlu0 %v15783_v39, %s14905_s10  ;;  %v15880_v2 = vld [vmem:[%s15027_s28] sm:$0xff] }
 0x515   : > { %13194 = vmatprep.mubr.msk.f32.mxu0 %vm381_vm1, %v2063_v38  ;;  %v1966_v55 = vpop.f32.mrf.mxu0  ;;  %13211 = vmatpush3.msra.mxu1 %v18922_v35 }
 0x516   : > { %v13114_v57 = vpop.f32.mrf.mxu1  ;;  %13195 = vmatmul.mubr.msk.f32.vlgmr.msra.gmra.mxu0 %vm381_vm1, %v13111_v62  ;;  %v15798_v49 = vadd.f32 %v18920_v15, %v1966_v55  ;;  %3035 = vrot.lane.b32.xlu1 %v15790_v59, %s14905_s10 }
 0x517   : > { %13227 = vmatpush3.msra.mxu0 %v18917_v63  ;;  %v13101_v61 = vpop.f32.mrf.mxu0  ;;  %13212 = vmatprep.subr.mxu1 %v18924_v45 }
 0x518   : > { %v2073_v58 = vpop.f32.mrf.mxu1  ;;  %13228 = vmatprep.subr.mxu0 %v18923_v42  ;;  %v15806_v8 = vadd.f32 %v13101_v61, %v18920_v15  ;;  %3033 = vrot.lane.b32.xlu0 %v15798_v49, %s14905_s10 }
 0x519   : > { %13229 = vmatpush3.msra.mxu0 %v18923_v42  ;;  %v1976_v5 = vpop.f32.mrf.mxu0  ;;  %13213 = vmatpush3.msra.mxu1 %v18924_v45 }
 0x51a   : > { %v13117_v17 = vpop.f32.mrf.mxu1  ;;  %13230 = vmatprep.subr.mxu0 %v18925_v18  ;;  %v15814_v19 = vadd.f32 %v18920_v15, %v1976_v5  ;;  %3039 = vrot.lane.b32.xlu1 %v15806_v8, %s14905_s10 }
 0x51b   : > { %13231 = vmatpush3.msra.mxu0 %v18925_v18  ;;  %v13124_v20 = vpop.f32.mrf.mxu0  ;;  %13246 = vmatprep.subr.mxu1 %v15823_v23 }
 0x51c   : > { %v2083_v21 = vpop.f32.mrf.mxu1  ;;  %13232 = vmatprep.subr.mxu0 %v18926_v22  ;;  %3037 = vrot.lane.b32.xlu0 %v15814_v19, %s14905_s10 }
 0x51d   : > { %13233 = vmatpush3.msra.mxu0 %v18926_v22  ;;  %v2160_v24 = vpop.f32.mrf.mxu0 }
 0x51e   : > { %v13140_v25 = vpop.f32.mrf.mxu1  ;;  %13177 = vmatprep.mubr.msk.f32.mxu1 %vm381_vm1, %v2160_v24 }
 0x51f   : > { %v13127_v26 = vpop.f32.mrf.mxu0  ;;  %13178 = vmatmul.mubr.msk.f32.gmra.mxu1 %vm381_vm1, %v13124_v20 }
 0x520   : > { %v2267_v27 = vpop.f32.mrf.mxu1 }
 0x521   : > { %13180 = vmatprep.mubr.msk.f32.mxu1 %vm381_vm1, %v2267_v27  ;;  %v2170_v30 = vpop.f32.mrf.mxu0 }
 0x522   : > { %v13143_v31 = vpop.f32.mrf.mxu1  ;;  %13197 = vmatprep.mubr.msk.f32.mxu0 %vm381_vm1, %v2170_v30 }
 0x523   : > { %13198 = vmatmul.mubr.msk.f32.gmra.mxu0 %vm381_vm1, %v13127_v26  ;;  %13181 = vmatmul.mubr.msk.f32.gmra.mxu1 %vm381_vm1, %v13140_v25  ;;  %v18928_v26 = vld [vmem:[#allocation37_spill] sm:$0xff] }
 0x524   : > { %v13130_v6 = vpop.f32.mrf.mxu0  ;;  %v2277_v48 = vpop.f32.mrf.mxu1 }
 0x525   : > { %13200 = vmatprep.mubr.msk.f32.mxu0 %vm381_vm1, %v2277_v48 }
 0x526   : > { %v2180_v11 = vpop.f32.mrf.mxu0  ;;  %v13146_v1 = vpop.f32.mrf.mxu1 }
 0x527   : > { %13201 = vmatmul.mubr.msk.f32.gmra.mxu0 %vm381_vm1, %v13143_v31 }
 0x528   : > { %v13133_v52 = vpop.f32.mrf.mxu0  ;;  %v2287_v16 = vpop.f32.mrf.mxu1 }
 0x52a   : > { %v2190_v7 = vpop.f32.mrf.mxu0  ;;  %v13149_v15 = vpop.f32.mrf.mxu1 }
 0x52c   : > { %v13156_v10 = vpop.f32.mrf.mxu0  ;;  %v2297_v0 = vpop.f32.mrf.mxu1 }
 0x52e   : > { %v2374_v34 = vpop.f32.mrf.mxu0 }
 0x52f   : > { %13183 = vmatprep.mubr.msk.f32.mxu1 %vm381_vm1, %v2374_v34 }
 0x530   : > { %v13159_v63 = vpop.f32.mrf.mxu0  ;;  %13184 = vmatmul.mubr.msk.f32.gmra.mxu1 %vm381_vm1, %v13156_v10 }
 0x531   : > { %13214 = vmatprep.mubr.msk.f32.mxu1 %vm381_vm1, %v2073_v58 }
 0x532   : > { %v2384_v12 = vpop.f32.mrf.mxu0 }
 0x533   : > { %13203 = vmatprep.mubr.msk.f32.mxu0 %vm381_vm1, %v2384_v12 }
 0x534   : > { %13204 = vmatmul.mubr.msk.f32.gmra.mxu0 %vm381_vm1, %v13159_v63  ;;  %13215 = vmatmul.mubr.msk.f32.vlgmr.msra.gmra.mxu1 %vm381_vm1, %v13114_v57  ;;  %v13162_v40 = vpop.f32.mrf.mxu0 }
 0x535   : > { %13217 = vmatprep.mubr.msk.f32.mxu1 %vm381_vm1, %v2180_v11  ;;  %13234 = vmatprep.mubr.msk.f32.mxu0 %vm381_vm1, %v2083_v21  ;;  %v18927_v21 = vld [vmem:[#allocation36_spill] sm:$0xff] }
 0x536   : > { %v2394_v54 = vpop.f32.mrf.mxu0  ;;  %13247 = vmatpush3.msra.mxu1 %v15823_v23 }
 0x537   : > { %13248 = vmatprep.subr.mxu1 %v15849_v32 }
 0x538   : > { %13218 = vmatmul.mubr.msk.f32.gmra.mxu1 %vm381_vm1, %v13130_v6  ;;  %13235 = vmatmul.mubr.msk.f32.vlgmr.msra.gmra.mxu0 %vm381_vm1, %v13117_v17  ;;  %v13165_v47 = vpop.f32.mrf.mxu0 }
 0x539   : > { %13220 = vmatprep.mubr.msk.f32.mxu1 %vm381_vm1, %v2287_v16  ;;  %13237 = vmatprep.mubr.msk.f32.mxu0 %vm381_vm1, %v2190_v7  ;;  %v18929_v7 = vld [vmem:[#allocation38_spill] sm:$0xff] }
 0x53a   : > { %13249 = vmatpush3.msra.mxu1 %v15849_v32  ;;  %v2404_v62 = vpop.f32.mrf.mxu0 }
 0x53b   : > { %13250 = vmatprep.subr.mxu1 %v15860_v36 }
 0x53c   : > { %13221 = vmatmul.mubr.msk.f32.gmra.mxu1 %vm381_vm1, %v13146_v1  ;;  %13238 = vmatmul.mubr.msk.f32.gmra.mxu0 %vm381_vm1, %v13133_v52 }
 0x53d   : > { %13223 = vmatprep.mubr.msk.f32.mxu1 %vm381_vm1, %v2394_v54  ;;  %13240 = vmatprep.mubr.msk.f32.mxu0 %vm381_vm1, %v2297_v0  ;;  %v18930_v0 = vld [vmem:[#allocation39_spill] sm:$0xff] }
 0x53e   : > { %13251 = vmatpush3.msra.mxu1 %v15860_v36 }
 0x53f   : > { %13252 = vmatprep.subr.mxu1 %v15871_v43 }
 0x540   : > { %13224 = vmatmul.mubr.msk.f32.gmra.mxu1 %vm381_vm1, %v13162_v40  ;;  %13241 = vmatmul.mubr.msk.f32.gmra.mxu0 %vm381_vm1, %v13149_v15 }
 0x541   : > { %13243 = vmatprep.mubr.msk.f32.mxu0 %vm381_vm1, %v2404_v62  ;;  %13253 = vmatpush3.msra.mxu1 %v15871_v43 }
 0x544   : > { %13244 = vmatmul.mubr.msk.f32.gmra.mxu0 %vm381_vm1, %v13165_v47 }
 0x545   : > { %13270 = vmatprep.mubr.msk.f32.mxu0 %vm511_vm0, %v15880_v2 }
 0x5d0   : > { %v13176_v38 = vpop.f32.mrf.mxu1 }
 0x5d1   : > { %v2543_v22 = vadd.f32 %v13176_v38, %v18927_v21 }
 0x5d2   : > { %v2503_v55 = vpop.f32.mrf.mxu1 }
 0x5d3   : > { %v2542_v27 = vadd.f32 %v2503_v55, %v18928_v26 }
 0x5d6   : > { %v13196_v35 = vpop.f32.mrf.mxu0 }
 0x5d7   : > { %v2680_v6 = vadd.f32 %v13196_v35, %v2543_v22 }
 0x5d8   : > { %v2640_v57 = vpop.f32.mrf.mxu0 }
 0x5d9   : > { %v2679_v52 = vadd.f32 %v2640_v57, %v2542_v27 }
 0x5df   : > { %v13179_v61 = vpop.f32.mrf.mxu1 }
 0x5e0   : > { %v2545_v10 = vadd.f32 %v13179_v61, %v18929_v7 }
 0x5e1   : > { %v2513_v42 = vpop.f32.mrf.mxu1 }
 0x5e2   : > { %v2544_v54 = vadd.f32 %v2513_v42, %v15477_v46 }
 0x5e3   : > { %v13199_v58 = vpop.f32.mrf.mxu0  ;;  %v13182_v5 = vpop.f32.mrf.mxu1 }
 0x5e4   : > { %v2682_v12 = vadd.f32 %v13199_v58, %v2545_v10  ;;  %v2547_v16 = vadd.f32 %v13182_v5, %v15473_v37 }
 0x5e5   : > { %v2650_v45 = vpop.f32.mrf.mxu0  ;;  %v2523_v17 = vpop.f32.mrf.mxu1 }
 0x5e6   : > { %v2546_v47 = vadd.f32 %v2523_v17, %v18930_v0  ;;  %v2681_v61 = vadd.f32 %v2650_v45, %v2544_v54 }
 0x5e7   : > { %v13202_v18 = vpop.f32.mrf.mxu0 }
 0x5e8   : > { %v2684_v22 = vadd.f32 %v13202_v18, %v2547_v16 }
 0x5e9   : > { %v2660_v24 = vpop.f32.mrf.mxu0 }
 0x5ea   : > { %v2683_v46 = vadd.f32 %v2660_v24, %v2546_v47 }
 0x5f0   : > { %v13185_v20 = vpop.f32.mrf.mxu1 }
 0x5f1   : > { %v2549_v42 = vadd.f32 %v13185_v20, %v15488_v41 }
 0x5f2   : > { %v2533_v25 = vpop.f32.mrf.mxu1 }
 0x5f3   : > { %v2548_v18 = vadd.f32 %v2533_v25, %v15495_v29 }
 0x5f4   : > { %v13205_v30 = vpop.f32.mrf.mxu0  ;;  %v13216_v31 = vpop.f32.mrf.mxu1 }
 0x5f5   : > { %v2817_v34 = vadd.f32 %v13216_v31, %v2680_v6 }
 0x5f6   : > { %v2670_v48 = vpop.f32.mrf.mxu0  ;;  %v2777_v11 = vpop.f32.mrf.mxu1 }
 0x5f7   : > { %v2816_v40 = vadd.f32 %v2777_v11, %v2679_v52  ;;  %v2686_v11 = vadd.f32 %v13205_v30, %v2549_v42  ;;  %v2685_v20 = vadd.f32 %v2670_v48, %v2548_v18 }
 0x5f8   : > { %v13219_v1 = vpop.f32.mrf.mxu1  ;;  %v13236_v63 = vpop.f32.mrf.mxu0 }
 0x5f9   : > { %v15888_v15 = vadd.f32 %v13236_v63, %v2817_v34  ;;  %v2819_v35 = vadd.f32 %v13219_v1, %v2682_v12 }
 0x5fa   : > { %v2787_v62 = vpop.f32.mrf.mxu1  ;;  %v2914_v38 = vpop.f32.mrf.mxu0 }
 0x5fb   : > { %v2962_v55 = vadd.f32 %v15888_v15, %v15766_v60  ;;  %v15894_v57 = vadd.f32 %v2914_v38, %v2816_v40  ;;  %v2818_v17 = vadd.f32 %v2787_v62, %v2681_v61 }
 0x5fc   : > { %v13222_v21 = vpop.f32.mrf.mxu1  ;;  %v13239_v58 = vpop.f32.mrf.mxu0 }
 0x5fd   : > { %v11620_v37 = vmul.f32 -1.442695, %v2962_v55  ;;  %v2961_v5 = vadd.f32 %v15894_v57, %v15769_v56  ;;  %v15898_v26 = vadd.f32 %v13239_v58, %v2819_v35  ;;  %v2821_v6 = vadd.f32 %v13222_v21, %v2684_v22 }
 0x5fe   : > { %v2797_v27 = vpop.f32.mrf.mxu1  ;;  %v2924_v31 = vpop.f32.mrf.mxu0 }
 0x5ff   : > { %14322 = vpow2.f32 %v11620_v37  ;;  %v11619_v60 = vmul.f32 -1.442695, %v2961_v5  ;;  %v2964_v45 = vadd.f32 %v15898_v26, %v15778_v3  ;;  %v15904_v52 = vadd.f32 %v2924_v31, %v2818_v17  ;;  %v3028_v17 = vpop.permute.xlu1 %3027  ;;  %v3026_v31 = vpop.permute.xlu0 %3025 }
 0x600   : > { %v13225_v56 = vpop.f32.mrf.mxu1  ;;  %v13242_v7 = vpop.f32.mrf.mxu0  ;;  %v2820_v10 = vadd.f32 %v2797_v27, %v2683_v46 }
 0x601   : > { %14324 = vpow2.f32 %v11619_v60  ;;  %v11622_v24 = vmul.f32 -1.442695, %v2964_v45  ;;  %v15906_v41 = vadd.f32 %v13242_v7, %v2821_v6  ;;  %v2963_v34 = vadd.f32 %v15904_v52, %v15783_v39 }
 0x602   : > { %v2807_v1 = vpop.f32.mrf.mxu1  ;;  %v2934_v63 = vpop.f32.mrf.mxu0  ;;  %v2823_v3 = vadd.f32 %v13225_v56, %v2686_v11 }
 0x603   : > { %14326 = vpow2.f32 %v11622_v24  ;;  %v2966_v29 = vadd.f32 %v15906_v41, %v15790_v59  ;;  %v15912_v25 = vadd.f32 %v2934_v63, %v2820_v10  ;;  %v11621_v30 = vmul.f32 -1.442695, %v2963_v34  ;;  %v3032_v11 = vpop.permute.xlu1 %3031  ;;  %v3030_v24 = vpop.permute.xlu0 %3029 }
 0x604   : > { %v13245_v12 = vpop.f32.mrf.mxu0  ;;  %v2822_v40 = vadd.f32 %v2807_v1, %v2685_v20 }
 0x605   : > { %v11624_v16 = vmul.f32 -1.442695, %v2966_v29  ;;  %v2965_v54 = vadd.f32 %v15912_v25, %v15798_v49  ;;  %v15916_v48 = vadd.f32 %v13245_v12, %v2823_v3  ;;  %14328 = vpow2.f32 %v11621_v30 }
 0x606   : > { %v2944_v39 = vpop.f32.mrf.mxu0 }
 0x607   : > { %14330 = vpow2.f32 %v11624_v16  ;;  %v11623_v0 = vmul.f32 -1.442695, %v2965_v54  ;;  %v2968_v47 = vadd.f32 %v15916_v48, %v15806_v8  ;;  %v15920_v62 = vadd.f32 %v2944_v39, %v2822_v40  ;;  %v3036_v1 = vpop.permute.xlu1 %3035  ;;  %v3034_v29 = vpop.permute.xlu0 %3033 }
 0x609   : > { %14332 = vpow2.f32 %v11623_v0  ;;  %v11626_v59 = vmul.f32 -1.442695, %v2968_v47  ;;  %v2967_v38 = vadd.f32 %v15920_v62, %v15814_v19 }
 0x60b   : > { %14334 = vpow2.f32 %v11626_v59  ;;  %v11625_v35 = vmul.f32 -1.442695, %v2967_v38  ;;  %v3040_v39 = vpop.permute.xlu1 %3039  ;;  %v3038_v59 = vpop.permute.xlu0 %3037 }
 0x60c   : > { %v14323_v55 = vpop.eup %14322 }
 0x60d   : > { %v2994_v49 = vadd.f32 1.0, %v14323_v55  ;;  %14336 = vpow2.f32 %v11625_v35 }
 0x60e   : > { %v14325_v61 = vpop.eup %14324 }
 0x60f   : > { %14338 = vrcp.f32 %v2994_v49  ;;  %v2993_v21 = vadd.f32 1.0, %v14325_v61 }
 0x610   : > { %v14327_v58 = vpop.eup %14326 }
 0x611   : > { %14340 = vrcp.f32 %v2993_v21  ;;  %v2996_v22 = vadd.f32 1.0, %v14327_v58 }
 0x612   : > { %v14329_v37 = vpop.eup %14328 }
 0x613   : > { %14342 = vrcp.f32 %v2996_v22  ;;  %v2995_v5 = vadd.f32 1.0, %v14329_v37 }
 0x614   : > { %v14331_v8 = vpop.eup %14330 }
 0x615   : > { %v2998_v46 = vadd.f32 1.0, %v14331_v8  ;;  %14344 = vrcp.f32 %v2995_v5 }
 0x616   : > { %v14333_v42 = vpop.eup %14332 }
 0x617   : > { %14346 = vrcp.f32 %v2998_v46  ;;  %v2997_v19 = vadd.f32 1.0, %v14333_v42 }
 0x618   : > { %v14335_v27 = vpop.eup %14334 }
 0x619   : > { %14348 = vrcp.f32 %v2997_v19  ;;  %v3000_v60 = vadd.f32 1.0, %v14335_v27 }
 0x61a   : > { %v14337_v6 = vpop.eup %14336 }
 0x61b   : > { %14350 = vrcp.f32 %v3000_v60  ;;  %v2999_v45 = vadd.f32 1.0, %v14337_v6 }
 0x61c   : > { %v15924_v18 = vpop.eup %14338 }
 0x61d   : > { %14352 = vrcp.f32 %v2999_v45  ;;  %v3050_v56 = vmul.f32 %v15924_v18, %v3028_v17 }
 0x61e   : > { %v15927_v7 = vpop.eup %14340 }
 0x61f   : > { %3067 = vrot.lane.b32.xlu1 %v3050_v56, %s14905_s10  ;;  %v3049_v10 = vmul.f32 %v15927_v7, %v3026_v31 }
 0x620   : > { %v15931_v20 = vpop.eup %14342 }
 0x621   : > { %3065 = vrot.lane.b32.xlu0 %v3049_v10, %s14905_s10  ;;  %v3052_v34 = vmul.f32 %v15931_v20, %v3032_v11 }
 0x622   : > { %v15935_v63 = vpop.eup %14344 }
 0x623   : > { %3071 = vrot.lane.b32.xlu1 %v3052_v34, %s14905_s10  ;;  %v3051_v30 = vmul.f32 %v15935_v63, %v3030_v24 }
 0x624   : > { %v15938_v3 = vpop.eup %14346 }
 0x625   : > { %v3054_v12 = vmul.f32 %v15938_v3, %v3036_v1  ;;  %3069 = vrot.lane.b32.xlu0 %v3051_v30, %s14905_s10 }
 0x626   : > { %v15942_v16 = vpop.eup %14348 }
 0x627   : > { %3075 = vrot.lane.b32.xlu1 %v3054_v12, %s14905_s10  ;;  %v3053_v40 = vmul.f32 %v15942_v16, %v3034_v29 }
 0x628   : > { %v15947_v54 = vpop.eup %14350 }
 0x629   : > { %v3056_v0 = vmul.f32 %v15947_v54, %v3040_v39  ;;  %3073 = vrot.lane.b32.xlu0 %v3053_v40, %s14905_s10 }
 0x62a   : > { %v15950_v47 = vpop.eup %14352 }
 0x62b   : > { %3079 = vrot.lane.b32.xlu1 %v3056_v0, %s14905_s10  ;;  %v3055_v38 = vmul.f32 %v15950_v47, %v3038_v59 }
 0x62d   : > { %3077 = vrot.lane.b32.xlu0 %v3055_v38, %s14905_s10 }
 0x691   : > { %v3068_v35 = vpop.permute.xlu1 %3067 }
 0x692   : > { %v3090_v55 = vadd.f32 %v3068_v35, %v15888_v15 }
 0x693   : > { %v3066_v49 = vpop.permute.xlu0 %3065 }
 0x694   : > { %14354 = vtanh.f32 %v3090_v55  ;;  %v3089_v61 = vadd.f32 %v3066_v49, %v15894_v57 }
 0x695   : > { %v3072_v21 = vpop.permute.xlu1 %3071 }
 0x696   : > { %14356 = vtanh.f32 %v3089_v61  ;;  %v3092_v58 = vadd.f32 %v3072_v21, %v15898_v26 }
 0x697   : > { %v3070_v22 = vpop.permute.xlu0 %3069 }
 0x698   : > { %14358 = vtanh.f32 %v3092_v58  ;;  %v3091_v37 = vadd.f32 %v3070_v22, %v15904_v52 }
 0x699   : > { %v3076_v8 = vpop.permute.xlu1 %3075 }
 0x69a   : > { %v3094_v5 = vadd.f32 %v3076_v8, %v15906_v41  ;;  %14360 = vtanh.f32 %v3091_v37 }
 0x69b   : > { %v3074_v46 = vpop.permute.xlu0 %3073 }
 0x69c   : > { %14362 = vtanh.f32 %v3094_v5  ;;  %v3093_v15 = vadd.f32 %v3074_v46, %v15912_v25  ;;  %v16031_v46 = vld [vmem:[%s15027_s28 + $0x8] sm:$0xff] }
 0x69d   : > { %v3080_v42 = vpop.permute.xlu1 %3079 }
 0x69e   : > { %v3096_v17 = vadd.f32 %v3080_v42, %v15916_v48  ;;  %14364 = vtanh.f32 %v3093_v15  ;;  %v16036_v15 = vld [vmem:[%s15027_s28 + $0x10] sm:$0xff] }
 0x69f   : > { %v3078_v57 = vpop.permute.xlu0 %3077 }
 0x6a0   : > { %14366 = vtanh.f32 %v3096_v17  ;;  %v3095_v26 = vadd.f32 %v3078_v57, %v15920_v62 }
 0x6a1   : > { %v14355_v19 = vpop.eup %14354 }
 0x6a2   : > { %v3106_v27 = vsub.f32 %v15630_v14, %v14355_v19  ;;  %14368 = vtanh.f32 %v3095_v26 }
 0x6a3   : > { %v14357_v52 = vpop.eup %14356 }
 0x6a4   : > { %3123 = vrot.lane.b32.xlu1 %v3106_v27, %s14907_s13  ;;  %v3105_v41 = vsub.f32 %v15633_v44, %v14357_v52 }
 0x6a5   : > { %v14359_v31 = vpop.eup %14358 }
 0x6a6   : > { %3121 = vrot.lane.b32.xlu0 %v3105_v41, %s14907_s13  ;;  %v3108_v25 = vsub.f32 %v15638_v28, %v14359_v31  ;;  %v16059_v41 = vld [vmem:[%s15027_s28 + $0x30] sm:$0xff] }
 0x6a7   : > { %v14361_v48 = vpop.eup %14360 }
 0x6a8   : > { %3127 = vrot.lane.b32.xlu1 %v3108_v25, %s14907_s13  ;;  %v3107_v62 = vsub.f32 %v15645_v4, %v14361_v48  ;;  %v16075_v25 = vld [vmem:[%s15027_s28 + $0x80] sm:$0xff] }
 0x6a9   : > { %v14363_v60 = vpop.eup %14362 }
 0x6aa   : > { %v3110_v14 = vsub.f32 %v15648_v50, %v14363_v60  ;;  %3125 = vrot.lane.b32.xlu0 %v3107_v62, %s14907_s13  ;;  %v16090_v62 = vld [vmem:[%s15027_s28 + $0x88] sm:$0xff] }
 0x6ab   : > { %v14365_v6 = vpop.eup %14364 }
 0x6ac   : > { %3131 = vrot.lane.b32.xlu1 %v3110_v14, %s14907_s13  ;;  %v3109_v44 = vsub.f32 %v15655_v53, %v14365_v6  ;;  %v16095_v14 = vld [vmem:[%s15027_s28 + $0x90] sm:$0xff] }
 0x6ad   : > { %v14367_v45 = vpop.eup %14366 }
 0x6ae   : > { %v3112_v11 = vsub.f32 %v15658_v51, %v14367_v45  ;;  %3129 = vrot.lane.b32.xlu0 %v3109_v44, %s14907_s13  ;;  %v16113_v44 = vld [vmem:[%s18667_s3 + $0x10] sm:$0xff] }
 0x6af   : > { %v14369_v28 = vpop.eup %14368 }
 0x6b0   : > { %3135 = vrot.lane.b32.xlu1 %v3112_v11, %s14907_s13  ;;  %v3111_v56 = vsub.f32 %v15665_v33, %v14369_v28  ;;  %v16117_v11 = vld [vmem:[%s15027_s28 + $0x98] sm:$0xff] }
 0x6b2   : > { %3133 = vrot.lane.b32.xlu0 %v3111_v56, %s14907_s13  ;;  %v16134_v56 = vld [vmem:[%s15027_s28 + $0x68] sm:$0xff] }
 0x6b3   : > { %18931 = vst [vmem:[#allocation5_spill] sm:$0xff] %v16134_v56 }
 0x716   : > { %v3124_v4 = vpop.permute.xlu1 %3123 }
 0x717   : > { %v3146_v50 = vmul.f32 %v15924_v18, %v3124_v4  ;;  %v16141_v4 = vld [vmem:[%s18667_s3 + $0x8] sm:$0xff] }
 0x718   : > { %v3122_v24 = vpop.permute.xlu0 %3121  ;;  %18932 = vst [vmem:[#allocation22_spill] sm:$0xff] %v16141_v4 }
 0x719   : > { %v3145_v10 = vmul.f32 %v15927_v7, %v3122_v24  ;;  %3163 = vrot.lane.b32.xlu1 %v3146_v50, %s14906_s9  ;;  %v16145_v50 = vld [vmem:[%s15027_s28 + $0x70] sm:$0xff]  ;;  %v16151_v24 = vld [vmem:[%s15027_s28 + $0xa8] sm:$0xff] }
 0x71a   : > { %v3128_v53 = vpop.permute.xlu1 %3127  ;;  %18933 = vst [vmem:[#allocation6_spill] sm:$0xff] %v16145_v50  ;;  %18934 = vst [vmem:[#allocation9_spill] sm:$0xff] %v16151_v24 }
 0x71b   : > { %v3148_v51 = vmul.f32 %v15931_v20, %v3128_v53  ;;  %3161 = vrot.lane.b32.xlu0 %v3145_v10, %s14906_s9  ;;  %v16158_v10 = vld [vmem:[%s18667_s3] sm:$0xff]  ;;  %v16162_v53 = vld [vmem:[%s15027_s28 + $0xb0] sm:$0xff] }
 0x71c   : > { %v3126_v34 = vpop.permute.xlu0 %3125  ;;  %18935 = vst [vmem:[#allocation21_spill] sm:$0xff] %v16158_v10  ;;  %18936 = vst [vmem:[#allocation10_spill] sm:$0xff] %v16162_v53 }
 0x71d   : > { %3167 = vrot.lane.b32.xlu1 %v3148_v51, %s14906_s9  ;;  %v3147_v33 = vmul.f32 %v15935_v63, %v3126_v34  ;;  %v16168_v51 = vld [vmem:[%s15027_s28 + $0x78] sm:$0xff] }
 0x71e   : > { %v3132_v1 = vpop.permute.xlu1 %3131  ;;  %18937 = vst [vmem:[#allocation7_spill] sm:$0xff] %v16168_v51  ;;  %v16175_v34 = vld [vmem:[%s18667_s3 + $0x58] sm:$0xff] }
 0x71f   : > { %v3150_v29 = vmul.f32 %v15938_v3, %v3132_v1  ;;  %3165 = vrot.lane.b32.xlu0 %v3147_v33, %s14906_s9  ;;  %18938 = vst [vmem:[#allocation23_spill] sm:$0xff] %v16175_v34  ;;  %v16179_v33 = vld [vmem:[%s15027_s28 + $0xc0] sm:$0xff]  ;;  %v16184_v1 = vld [vmem:[%s15027_s28 + $0xb8] sm:$0xff] }
 0x720   : > { %v3130_v18 = vpop.permute.xlu0 %3129  ;;  %18939 = vst [vmem:[#allocation8_spill] sm:$0xff] %v16179_v33  ;;  %18940 = vst [vmem:[#allocation12_spill] sm:$0xff] %v16184_v1 }
 0x721   : > { %3171 = vrot.lane.b32.xlu1 %v3150_v29, %s14906_s9  ;;  %v3149_v7 = vmul.f32 %v15942_v16, %v3130_v18  ;;  %v16189_v29 = vld [vmem:[%s15027_s28 + $0xc8] sm:$0xff]  ;;  %v16194_v18 = vld [vmem:[%s15027_s28 + $0xd0] sm:$0xff] }
 0x722   : > { %v3136_v30 = vpop.permute.xlu1 %3135  ;;  %18941 = vst [vmem:[#allocation27_spill] sm:$0xff] %v16189_v29  ;;  %18942 = vst [vmem:[#allocation13_spill] sm:$0xff] %v16194_v18 }
 0x723   : > { %v3152_v20 = vmul.f32 %v15947_v54, %v3136_v30  ;;  %3169 = vrot.lane.b32.xlu0 %v3149_v7, %s14906_s9  ;;  %v16202_v7 = vld [vmem:[%s18667_s3 + $0x30] sm:$0xff]  ;;  %v16207_v30 = vld [vmem:[%s15027_s28 + $0xd8] sm:$0xff] }
 0x724   : > { %v3134_v12 = vpop.permute.xlu0 %3133  ;;  %18943 = vst [vmem:[#allocation11_spill] sm:$0xff] %v16202_v7  ;;  %18944 = vst [vmem:[#allocation14_spill] sm:$0xff] %v16207_v30 }
 0x725   : > { %3175 = vrot.lane.b32.xlu1 %v3152_v20, %s14906_s9  ;;  %v3151_v63 = vmul.f32 %v15950_v47, %v3134_v12  ;;  %v16214_v20 = vld [vmem:[%s18667_s3 + $0x28] sm:$0xff]  ;;  %v16218_v12 = vld [vmem:[%s15027_s28 + $0xe0] sm:$0xff] }
 0x726   : > { %18945 = vst [vmem:[#allocation15_spill] sm:$0xff] %v16214_v20  ;;  %18946 = vst [vmem:[#allocation24_spill] sm:$0xff] %v16218_v12 }
 0x727   : > { %3173 = vrot.lane.b32.xlu0 %v3151_v63, %s14906_s9  ;;  %v16226_v63 = vld [vmem:[%s18667_s3 + $0x20] sm:$0xff] }
 0x728   : > { %18947 = vst [vmem:[#allocation16_spill] sm:$0xff] %v16226_v63 }
 0x78b   : > { %v3164_v3 = vpop.permute.xlu1 %3163 }
 0x78c   : > { %v15996_v40 = vadd.f32 %v14355_v19, %v3164_v3  ;;  %v16043_v19 = vld [vmem:[%s15027_s28 + $0x18] sm:$0xff]  ;;  %v16231_v3 = vld [vmem:[%s15027_s28 + $0xe8] sm:$0xff] }
 0x78d   : > { %v3162_v39 = vpop.permute.xlu0 %3161  ;;  %18948 = vst [vmem:[#allocation25_spill] sm:$0xff] %v16231_v3 }
 0x78e   : > { %v15998_v0 = vadd.f32 %v14357_v52, %v3162_v39  ;;  %3203 = vrot.lane.b32.xlu1 %v15996_v40, %s14905_s10  ;;  %v16052_v52 = vld [vmem:[%s15027_s28 + $0x28] sm:$0xff]  ;;  %v16238_v39 = vld [vmem:[%s18667_s3 + $0x78] sm:$0xff] }
 0x78f   : > { %v3168_v16 = vpop.permute.xlu1 %3167  ;;  %18949 = vst [vmem:[#allocation17_spill] sm:$0xff] %v16238_v39 }
 0x790   : > { %v16002_v54 = vadd.f32 %v14359_v31, %v3168_v16  ;;  %3201 = vrot.lane.b32.xlu0 %v15998_v0, %s14905_s10  ;;  %v16070_v31 = vld [vmem:[%s15027_s28 + $0x38] sm:$0xff]  ;;  %v16242_v16 = vld [vmem:[%s15027_s28 + $0xf0] sm:$0xff] }
 0x791   : > { %v3166_v59 = vpop.permute.xlu0 %3165  ;;  %18950 = vst [vmem:[#allocation26_spill] sm:$0xff] %v16242_v16 }
 0x792   : > { %3207 = vrot.lane.b32.xlu1 %v16002_v54, %s14905_s10  ;;  %v16008_v47 = vadd.f32 %v14361_v48, %v3166_v59  ;;  %v16080_v48 = vld [vmem:[%s15027_s28 + $0x48] sm:$0xff]  ;;  %v16247_v59 = vld [vmem:[%s15027_s28 + $0xf8] sm:$0xff] }
 0x793   : > { %v3172_v38 = vpop.permute.xlu1 %3171  ;;  %18951 = vst [vmem:[#allocation18_spill] sm:$0xff] %v16247_v59 }
 0x794   : > { %v16010_v35 = vadd.f32 %v14363_v60, %v3172_v38  ;;  %3205 = vrot.lane.b32.xlu0 %v16008_v47, %s14905_s10  ;;  %v16085_v60 = vld [vmem:[%s15027_s28 + $0x50] sm:$0xff] }
 0x795   : > { %v3170_v55 = vpop.permute.xlu0 %3169 }
 0x796   : > { %3211 = vrot.lane.b32.xlu1 %v16010_v35, %s14905_s10  ;;  %v16016_v49 = vadd.f32 %v14365_v6, %v3170_v55  ;;  %v16100_v6 = vld [vmem:[%s15027_s28 + $0x58] sm:$0xff]  ;;  %v16254_v55 = vld [vmem:[%s18669_s5] ss:$0 sm:$0xff] }
 0x797   : > { %v3176_v61 = vpop.permute.xlu1 %3175  ;;  %18952 = vst [vmem:[#allocation28_spill] sm:$0xff] %v16254_v55 }
 0x798   : > { %v16018_v21 = vadd.f32 %v14367_v45, %v3176_v61  ;;  %3209 = vrot.lane.b32.xlu0 %v16016_v49, %s14905_s10  ;;  %v16106_v45 = vld [vmem:[%s15027_s28 + $0x60] sm:$0xff] }
 0x799   : > { %v3174_v58 = vpop.permute.xlu0 %3173 }
 0x79a   : > { %3215 = vrot.lane.b32.xlu1 %v16018_v21, %s14905_s10  ;;  %v16024_v22 = vadd.f32 %v14369_v28, %v3174_v58  ;;  %v16128_v28 = vld [vmem:[%s15027_s28 + $0xa0] sm:$0xff] }
 0x79c   : > { %3213 = vrot.lane.b32.xlu0 %v16024_v22, %s14905_s10 }
 0x800   : > { %v3204_v37 = vpop.permute.xlu1 %3203 }
 0x801   : > { %13266 = vmatprep.subr.mxu0 %v3204_v37 }
 0x802   : > { %13267 = vmatpush3.msra.mxu0 %v3204_v37  ;;  %v3202_v8 = vpop.permute.xlu0 %3201 }
 0x803   : > { %13254 = vmatprep.mubr.msk.f32.mxu1 %vm381_vm1, %v3202_v8  ;;  %13268 = vmatprep.subr.mxu0 %v3202_v8 }
 0x804   : > { %v3208_v5 = vpop.permute.xlu1 %3207  ;;  %13255 = vmatmul.mubr.msk.f32.vlgmr.msra.gmra.mxu1 %vm381_vm1, %v3204_v37  ;;  %13269 = vmatpush3.msra.mxu0 %v3202_v8 }
 0x805   : > { %13282 = vmatprep.subr.mxu1 %v3208_v5  ;;  %13271 = vmatmul.mubr.msk.f32.vlgmr.msra.gmra.mxu0 %vm511_vm0, %v16031_v46 }
 0x806   : > { %13283 = vmatpush3.msra.mxu1 %v3208_v5  ;;  %13273 = vmatprep.mubr.msk.f32.mxu0 %vm511_vm0, %v16036_v15  ;;  %v3206_v42 = vpop.permute.xlu0 %3205 }
 0x807   : > { %13257 = vmatprep.mubr.msk.f32.mxu1 %vm381_vm1, %v3206_v42  ;;  %13284 = vmatprep.subr.mxu1 %v3206_v42 }
 0x808   : > { %v3212_v17 = vpop.permute.xlu1 %3211  ;;  %13258 = vmatmul.mubr.msk.f32.gmra.mxu1 %vm381_vm1, %v3208_v5 }
 0x809   : > { %13298 = vmatprep.subr.mxu0 %v3212_v17  ;;  %13285 = vmatpush3.msra.mxu1 %v3206_v42 }
 0x80a   : > { %13299 = vmatpush3.msra.mxu0 %v3212_v17  ;;  %v3210_v57 = vpop.permute.xlu0 %3209 }
 0x80b   : > { %13274 = vmatmul.mubr.msk.f32.gmra.mxu0 %vm511_vm0, %v16043_v19  ;;  %13260 = vmatprep.mubr.msk.f32.mxu1 %vm381_vm1, %v3210_v57 }
 0x80c   : > { %13300 = vmatprep.subr.mxu0 %v3210_v57  ;;  %v3216_v26 = vpop.permute.xlu1 %3215  ;;  %13261 = vmatmul.mubr.msk.f32.gmra.mxu1 %vm381_vm1, %v3212_v17 }
 0x80d   : > { %13301 = vmatpush3.msra.mxu0 %v3210_v57  ;;  %13314 = vmatprep.subr.mxu1 %v3216_v26 }
 0x80e   : > { %13276 = vmatprep.mubr.msk.f32.mxu0 %vm511_vm0, %v15682_v9  ;;  %v3214_v27 = vpop.permute.xlu0 %3213  ;;  %13330 = vmatprep.subr.mxu0 %v15712_v13  ;;  %v16065_v9 = vld [vmem:[%s15027_s28 + $0x40] sm:$0xff] }
 0x80f   : > { %13277 = vmatmul.mubr.msk.f32.gmra.mxu0 %vm511_vm0, %v16052_v52  ;;  %13263 = vmatprep.mubr.msk.f32.mxu1 %vm381_vm1, %v3214_v27 }
 0x810   : > { %13279 = vmatprep.mubr.msk.f32.mxu0 %vm511_vm0, %v16059_v41  ;;  %13264 = vmatmul.mubr.msk.f32.gmra.mxu1 %vm381_vm1, %v3216_v26 }
 0x811   : > { %13286 = vmatprep.mubr.msk.f32.mxu1 %vm511_vm0, %v16065_v9 }
 0x813   : > { %13280 = vmatmul.mubr.msk.f32.gmra.mxu0 %vm511_vm0, %v16070_v31 }
 0x814   : > { %13302 = vmatprep.mubr.msk.f32.mxu0 %vm511_vm0, %v16075_v25  ;;  %13287 = vmatmul.mubr.msk.f32.vlgmr.msra.gmra.mxu1 %vm511_vm0, %v16080_v48 }
 0x815   : > { %13315 = vmatpush3.msra.mxu1 %v3216_v26  ;;  %13289 = vmatprep.mubr.msk.f32.mxu1 %vm511_vm0, %v16085_v60 }
 0x816   : > { %13316 = vmatprep.subr.mxu1 %v3214_v27 }
 0x817   : > { %13303 = vmatmul.mubr.msk.f32.vlgmr.msra.gmra.mxu0 %vm511_vm0, %v16090_v62  ;;  %13317 = vmatpush3.msra.mxu1 %v3214_v27  ;;  %v16275_v27 = vld [vmem:[%s18667_s3 + $0x50] sm:$0xff] }
 0x818   : > { %13305 = vmatprep.mubr.msk.f32.mxu0 %vm511_vm0, %v16095_v14  ;;  %13290 = vmatmul.mubr.msk.f32.gmra.mxu1 %vm511_vm0, %v16100_v6  ;;  %18953 = vst [vmem:[#allocation19_spill] sm:$0xff] %v16275_v27 }
 0x819   : > { %13331 = vmatpush3.msra.mxu0 %v15712_v13  ;;  %13292 = vmatprep.mubr.msk.f32.mxu1 %vm511_vm0, %v16106_v45  ;;  %v16124_v13 = vld [vmem:[%s18667_s3 + $0x38] sm:$0xff] }
 0x81a   : > { %13332 = vmatprep.subr.mxu0 %v16113_v44  ;;  %13350 = vmatprep.subr.mxu1 %v16124_v13 }
 0x81b   : > { %13306 = vmatmul.mubr.msk.f32.gmra.mxu0 %vm511_vm0, %v16117_v11 }
 0x81c   : > { %13308 = vmatprep.mubr.msk.f32.mxu0 %vm511_vm0, %v16128_v28  ;;  %13333 = vmatpush3.msra.mxu0 %v16113_v44 }
 0x81d   : > { %13293 = vmatmul.mubr.msk.f32.gmra.mxu1 %vm511_vm0, %v16134_v56  ;;  %13334 = vmatprep.subr.mxu0 %v16141_v4 }
 0x81e   : > { %13295 = vmatprep.mubr.msk.f32.mxu1 %vm511_vm0, %v16145_v50  ;;  %13335 = vmatpush3.msra.mxu0 %v16141_v4  ;;  %v16395_v4 = vld [vmem:[%s15459_s14 + $0x28] sm:$0xff] }
 0x81f   : > { %13309 = vmatmul.mubr.msk.f32.gmra.mxu0 %vm511_vm0, %v16151_v24  ;;  %13336 = vmatprep.subr.mxu0 %v16158_v10 }
 0x820   : > { %13311 = vmatprep.mubr.msk.f32.mxu0 %vm511_vm0, %v16162_v53  ;;  %13337 = vmatpush3.msra.mxu0 %v16158_v10  ;;  %v16391_v53 = vld [vmem:[%s15459_s14 + $0x18] sm:$0xff] }
 0x821   : > { %13296 = vmatmul.mubr.msk.f32.gmra.mxu1 %vm511_vm0, %v16168_v51  ;;  %13370 = vmatprep.subr.mxu0 %v16175_v34 }
 0x822   : > { %13318 = vmatprep.mubr.msk.f32.mxu1 %vm511_vm0, %v16179_v33 }
 0x823   : > { %13312 = vmatmul.mubr.msk.f32.gmra.mxu0 %vm511_vm0, %v16184_v1 }
 0x825   : > { %13319 = vmatmul.mubr.msk.f32.vlgmr.msra.gmra.mxu1 %vm511_vm0, %v16189_v29 }
 0x826   : > { %13321 = vmatprep.mubr.msk.f32.mxu1 %vm511_vm0, %v16194_v18  ;;  %13351 = vmatpush3.msra.mxu1 %v16124_v13 }
 0x827   : > { %13352 = vmatprep.subr.mxu1 %v16202_v7 }
 0x828   : > { %13353 = vmatpush3.msra.mxu1 %v16202_v7 }
 0x829   : > { %13322 = vmatmul.mubr.msk.f32.gmra.mxu1 %vm511_vm0, %v16207_v30  ;;  %13354 = vmatprep.subr.mxu1 %v16214_v20 }
 0x82a   : > { %13324 = vmatprep.mubr.msk.f32.mxu1 %vm511_vm0, %v16218_v12  ;;  %13355 = vmatpush3.msra.mxu1 %v16214_v20  ;;  %v16338_v12 = vld [vmem:[%s18667_s3 + $0x60] sm:$0xff] }
 0x82b   : > { %13356 = vmatprep.subr.mxu1 %v16226_v63  ;;  %18958 = vst [vmem:[#allocation32_spill] sm:$0xff] %v16338_v12 }
 0x82c   : > { %13357 = vmatpush3.msra.mxu1 %v16226_v63 }
 0x82d   : > { %13325 = vmatmul.mubr.msk.f32.gmra.mxu1 %vm511_vm0, %v16231_v3  ;;  %13390 = vmatprep.subr.mxu1 %v16238_v39  ;;  %v16325_v3 = vld [vmem:[%s18667_s3 + $0x68] sm:$0xff] }
 0x82e   : > { %13327 = vmatprep.mubr.msk.f32.mxu1 %vm511_vm0, %v16242_v16  ;;  %18957 = vst [vmem:[#allocation31_spill] sm:$0xff] %v16325_v3 }
 0x831   : > { %13328 = vmatmul.mubr.msk.f32.gmra.mxu1 %vm511_vm0, %v16247_v59 }
 0x8c4   : > { %v13256_v38 = vpop.f32.mrf.mxu1 }
 0x8c5   : > { %v16257_v61 = vadd.f32 %v16254_v55, %v13256_v38  ;;  %v13272_v58 = vpop.f32.mrf.mxu0 }
 0x8c6   : > { %v3299_v37 = vpop.f32.mrf.mxu1 }
 0x8c7   : > { %v16260_v8 = vadd.f32 %v16254_v55, %v3299_v37  ;;  %4380 = vrot.lane.b32.xlu1 %v16257_v61, %s14905_s10  ;;  %v3406_v5 = vpop.f32.mrf.mxu0 }
 0x8c8   : > { %13338 = vmatprep.mubr.msk.f32.mxu0 %vm381_vm1, %v3406_v5  ;;  %v13259_v42 = vpop.f32.mrf.mxu1  ;;  %v16287_v5 = vld [vmem:[%s18667_s3 + $0x48] sm:$0xff] }
 0x8c9   : > { %4378 = vrot.lane.b32.xlu0 %v16260_v8, %s14905_s10  ;;  %13339 = vmatmul.mubr.msk.f32.vlgmr.msra.gmra.mxu0 %vm381_vm1, %v13272_v58  ;;  %v16269_v17 = vadd.f32 %v16254_v55, %v13259_v42  ;;  %18954 = vst [vmem:[#allocation20_spill] sm:$0xff] %v16287_v5 }
 0x8ca   : > { %13371 = vmatpush3.msra.mxu0 %v16175_v34  ;;  %v3309_v57 = vpop.f32.mrf.mxu1 }
 0x8cb   : > { %v13275_v26 = vpop.f32.mrf.mxu0  ;;  %13372 = vmatprep.subr.mxu0 %v16275_v27  ;;  %v16279_v38 = vadd.f32 %v16254_v55, %v3309_v57  ;;  %4384 = vrot.lane.b32.xlu1 %v16269_v17, %s14905_s10 }
 0x8cc   : > { %13373 = vmatpush3.msra.mxu0 %v16275_v27  ;;  %v13262_v58 = vpop.f32.mrf.mxu1 }
 0x8cd   : > { %v3416_v37 = vpop.f32.mrf.mxu0  ;;  %13374 = vmatprep.subr.mxu0 %v16287_v5  ;;  %v16291_v42 = vadd.f32 %v16254_v55, %v13262_v58  ;;  %4382 = vrot.lane.b32.xlu0 %v16279_v38, %s14905_s10 }
 0x8ce   : > { %13358 = vmatprep.mubr.msk.f32.mxu1 %vm381_vm1, %v3416_v37  ;;  %v3319_v57 = vpop.f32.mrf.mxu1  ;;  %13375 = vmatpush3.msra.mxu0 %v16287_v5  ;;  %v16307_v37 = vld [vmem:[%s18667_s3 + $0x70] sm:$0xff] }
 0x8cf   : > { %v13278_v59 = vpop.f32.mrf.mxu0  ;;  %13359 = vmatmul.mubr.msk.f32.vlgmr.msra.gmra.mxu1 %vm381_vm1, %v13275_v26  ;;  %v16299_v27 = vadd.f32 %v16254_v55, %v3319_v57  ;;  %4388 = vrot.lane.b32.xlu1 %v16291_v42, %s14905_s10  ;;  %18955 = vst [vmem:[#allocation29_spill] sm:$0xff] %v16307_v37  ;;  %v16313_v26 = vld [vmem:[%s18667_s3 + $0x40] sm:$0xff] }
 0x8d0   : > { %13391 = vmatpush3.msra.mxu1 %v16238_v39  ;;  %v13265_v58 = vpop.f32.mrf.mxu1  ;;  %18956 = vst [vmem:[#allocation30_spill] sm:$0xff] %v16313_v26  ;;  %13376 = vmatprep.subr.mxu0 %v16313_v26 }
 0x8d1   : > { %v3426_v16 = vpop.f32.mrf.mxu0  ;;  %13392 = vmatprep.subr.mxu1 %v16307_v37  ;;  %v16317_v57 = vadd.f32 %v16254_v55, %v13265_v58  ;;  %4386 = vrot.lane.b32.xlu0 %v16299_v27, %s14905_s10 }
 0x8d2   : > { %13393 = vmatpush3.msra.mxu1 %v16307_v37  ;;  %v3329_v5 = vpop.f32.mrf.mxu1  ;;  %13377 = vmatpush3.msra.mxu0 %v16313_v26 }
 0x8d3   : > { %v13281_v39 = vpop.f32.mrf.mxu0  ;;  %13394 = vmatprep.subr.mxu1 %v16325_v3  ;;  %v16330_v63 = vadd.f32 %v16254_v55, %v3329_v5  ;;  %4392 = vrot.lane.b32.xlu1 %v16317_v57, %s14905_s10 }
 0x8d4   : > { %13395 = vmatpush3.msra.mxu1 %v16325_v3  ;;  %v13288_v58 = vpop.f32.mrf.mxu1  ;;  %13410 = vmatprep.subr.mxu0 %v15823_v23 }
 0x8d5   : > { %v3436_v37 = vpop.f32.mrf.mxu0  ;;  %13396 = vmatprep.subr.mxu1 %v16338_v12  ;;  %4390 = vrot.lane.b32.xlu0 %v16330_v63, %s14905_s10 }
 0x8d6   : > { %13397 = vmatpush3.msra.mxu1 %v16338_v12  ;;  %v3513_v5 = vpop.f32.mrf.mxu1 }
 0x8d7   : > { %v13304_v26 = vpop.f32.mrf.mxu0  ;;  %13341 = vmatprep.mubr.msk.f32.mxu0 %vm381_vm1, %v3513_v5 }
 0x8d8   : > { %v13291_v3 = vpop.f32.mrf.mxu1  ;;  %13342 = vmatmul.mubr.msk.f32.gmra.mxu0 %vm381_vm1, %v13288_v58 }
 0x8d9   : > { %v3620_v55 = vpop.f32.mrf.mxu0 }
 0x8da   : > { %13344 = vmatprep.mubr.msk.f32.mxu0 %vm381_vm1, %v3620_v55  ;;  %v3523_v20 = vpop.f32.mrf.mxu1 }
 0x8db   : > { %v13307_v30 = vpop.f32.mrf.mxu0  ;;  %13361 = vmatprep.mubr.msk.f32.mxu1 %vm381_vm1, %v3523_v20 }
 0x8dc   : > { %13362 = vmatmul.mubr.msk.f32.gmra.mxu1 %vm381_vm1, %v13291_v3  ;;  %13345 = vmatmul.mubr.msk.f32.gmra.mxu0 %vm381_vm1, %v13304_v26 }
 0x8dd   : > { %v13294_v7 = vpop.f32.mrf.mxu1  ;;  %v3630_v18 = vpop.f32.mrf.mxu0 }
 0x8de   : > { %13364 = vmatprep.mubr.msk.f32.mxu1 %vm381_vm1, %v3630_v18 }
 0x8df   : > { %v3533_v12 = vpop.f32.mrf.mxu1  ;;  %v13310_v55 = vpop.f32.mrf.mxu0 }
 0x8e0   : > { %13365 = vmatmul.mubr.msk.f32.gmra.mxu1 %vm381_vm1, %v13307_v30 }
 0x8e1   : > { %v13297_v5 = vpop.f32.mrf.mxu1  ;;  %v3640_v3 = vpop.f32.mrf.mxu0 }
 0x8e3   : > { %v3543_v58 = vpop.f32.mrf.mxu1  ;;  %v13313_v30 = vpop.f32.mrf.mxu0 }
 0x8e5   : > { %v13320_v29 = vpop.f32.mrf.mxu1 }
 0x8e7   : > { %v3727_v1 = vpop.f32.mrf.mxu1 }
 0x8e8   : > { %13347 = vmatprep.mubr.msk.f32.mxu0 %vm381_vm1, %v3727_v1 }
 0x8e9   : > { %v13323_v33 = vpop.f32.mrf.mxu1  ;;  %13348 = vmatmul.mubr.msk.f32.gmra.mxu0 %vm381_vm1, %v13320_v29 }
 0x8ea   : > { %13378 = vmatprep.mubr.msk.f32.mxu0 %vm381_vm1, %v3426_v16 }
 0x8eb   : > { %v3737_v20 = vpop.f32.mrf.mxu1 }
 0x8ec   : > { %13367 = vmatprep.mubr.msk.f32.mxu1 %vm381_vm1, %v3737_v20 }
 0x8ed   : > { %13368 = vmatmul.mubr.msk.f32.gmra.mxu1 %vm381_vm1, %v13323_v33  ;;  %13379 = vmatmul.mubr.msk.f32.vlgmr.msra.gmra.mxu0 %vm381_vm1, %v13278_v59  ;;  %v13326_v18 = vpop.f32.mrf.mxu1  ;;  %v3650_v33 = vpop.f32.mrf.mxu0 }
 0x8ee   : > { %13381 = vmatprep.mubr.msk.f32.mxu0 %vm381_vm1, %v3533_v12  ;;  %13398 = vmatprep.mubr.msk.f32.mxu1 %vm381_vm1, %v3436_v37 }
 0x8ef   : > { %v3747_v1 = vpop.f32.mrf.mxu1  ;;  %13411 = vmatpush3.msra.mxu0 %v15823_v23 }
 0x8f0   : > { %13412 = vmatprep.subr.mxu0 %v15849_v32 }
 0x8f1   : > { %13382 = vmatmul.mubr.msk.f32.gmra.mxu0 %vm381_vm1, %v13294_v7  ;;  %13399 = vmatmul.mubr.msk.f32.vlgmr.msra.gmra.mxu1 %vm381_vm1, %v13281_v39  ;;  %v13329_v29 = vpop.f32.mrf.mxu1 }
 0x8f2   : > { %13384 = vmatprep.mubr.msk.f32.mxu0 %vm381_vm1, %v3640_v3  ;;  %13401 = vmatprep.mubr.msk.f32.mxu1 %vm381_vm1, %v3543_v58 }
 0x8f3   : > { %13413 = vmatpush3.msra.mxu0 %v15849_v32  ;;  %v3757_v23 = vpop.f32.mrf.mxu1 }
 0x8f4   : > { %13414 = vmatprep.subr.mxu0 %v15860_v36 }
 0x8f5   : > { %13385 = vmatmul.mubr.msk.f32.gmra.mxu0 %vm381_vm1, %v13310_v55  ;;  %13402 = vmatmul.mubr.msk.f32.gmra.mxu1 %vm381_vm1, %v13297_v5 }
 0x8f6   : > { %13387 = vmatprep.mubr.msk.f32.mxu0 %vm381_vm1, %v3747_v1  ;;  %13404 = vmatprep.mubr.msk.f32.mxu1 %vm381_vm1, %v3650_v33 }
 0x8f7   : > { %13415 = vmatpush3.msra.mxu0 %v15860_v36 }
 0x8f8   : > { %13416 = vmatprep.subr.mxu0 %v15871_v43 }
 0x8f9   : > { %13388 = vmatmul.mubr.msk.f32.gmra.mxu0 %vm381_vm1, %v13326_v18  ;;  %13405 = vmatmul.mubr.msk.f32.gmra.mxu1 %vm381_vm1, %v13313_v30  ;;  %v16387_v18 = vld [vmem:[%s15459_s14] sm:$0xff] }
 0x8fa   : > { %13407 = vmatprep.mubr.msk.f32.mxu1 %vm381_vm1, %v3757_v23  ;;  %13417 = vmatpush3.msra.mxu0 %v15871_v43  ;;  %v16383_v43 = vld [vmem:[%s15459_s14 + $0x8] sm:$0xff]  ;;  %18960 = vst [vmem:[#allocation34_spill] sm:$0xff] %v16387_v18 }
 0x8fb   : > { %18959 = vst [vmem:[#allocation33_spill] sm:$0xff] %v16383_v43 }
 0x8fd   : > { %13408 = vmatmul.mubr.msk.f32.gmra.mxu1 %vm381_vm1, %v13329_v29 }
 0x8fe   : > { %13434 = vmatprep.mubr.msk.f32.mxu1 %vm511_vm0, %v15880_v2 }
 0x989   : > { %v13340_v32 = vpop.f32.mrf.mxu0 }
 0x98a   : > { %v3896_v20 = vadd.f32 %v16383_v43, %v13340_v32 }
 0x98b   : > { %v3856_v36 = vpop.f32.mrf.mxu0 }
 0x98c   : > { %v3895_v30 = vadd.f32 %v16387_v18, %v3856_v36 }
 0x98f   : > { %v13360_v7 = vpop.f32.mrf.mxu1 }
 0x990   : > { %v4033_v29 = vadd.f32 %v13360_v7, %v3896_v20  ;;  %v16401_v7 = vld [vmem:[%s15459_s14 + $0x10] sm:$0xff] }
 0x991   : > { %v3993_v12 = vpop.f32.mrf.mxu1  ;;  %18961 = vst [vmem:[#allocation35_spill] sm:$0xff] %v16401_v7 }
 0x992   : > { %v4032_v51 = vadd.f32 %v3993_v12, %v3895_v30  ;;  %v16405_v12 = vld [vmem:[%s15459_s14 + $0x20] sm:$0xff] }
 0x993   : > { %18962 = vst [vmem:[#allocation36_spill] sm:$0xff] %v16405_v12 }
 0x998   : > { %v13343_v39 = vpop.f32.mrf.mxu0 }
 0x999   : > { %v3898_v10 = vadd.f32 %v16391_v53, %v13343_v39 }
 0x99a   : > { %v3866_v59 = vpop.f32.mrf.mxu0 }
 0x99b   : > { %v3897_v20 = vadd.f32 %v16401_v7, %v3866_v59 }
 0x99c   : > { %v13363_v16 = vpop.f32.mrf.mxu1  ;;  %v13346_v26 = vpop.f32.mrf.mxu0 }
 0x99d   : > { %v4035_v50 = vadd.f32 %v13363_v16, %v3898_v10  ;;  %v3900_v36 = vadd.f32 %v16395_v4, %v13346_v26 }
 0x99e   : > { %v4003_v37 = vpop.f32.mrf.mxu1  ;;  %v3876_v5 = vpop.f32.mrf.mxu0 }
 0x99f   : > { %v3899_v39 = vadd.f32 %v16405_v12, %v3876_v5  ;;  %v16417_v12 = vld [vmem:[%s15459_s14 + $0x38] sm:$0xff] }
 0x9a0   : > { %v13366_v58 = vpop.f32.mrf.mxu1 }
 0x9a1   : > { %v4037_v26 = vadd.f32 %v13366_v58, %v3900_v36  ;;  %v16423_v36 = vld [vmem:[%s15459_s14 + $0x30] sm:$0xff] }
 0x9a2   : > { %v4013_v3 = vpop.f32.mrf.mxu1 }
 0x9a3   : > { %v4036_v5 = vadd.f32 %v4013_v3, %v3899_v39 }
 0x9a9   : > { %v13349_v55 = vpop.f32.mrf.mxu0 }
 0x9ab   : > { %v3886_v2 = vpop.f32.mrf.mxu0 }
 0x9ad   : > { %v13369_v1 = vpop.f32.mrf.mxu1  ;;  %v13380_v33 = vpop.f32.mrf.mxu0 }
 0x9ae   : > { %v4170_v32 = vadd.f32 %v13380_v33, %v4033_v29 }
 0x9af   : > { %v4023_v23 = vpop.f32.mrf.mxu1  ;;  %v4130_v34 = vpop.f32.mrf.mxu0 }
 0x9b0   : > { %v4169_v18 = vadd.f32 %v4130_v34, %v4032_v51  ;;  %v4034_v51 = vadd.f32 %v4003_v37, %v3897_v20 }
 0x9b1   : > { %v13383_v43 = vpop.f32.mrf.mxu0  ;;  %v13400_v24 = vpop.f32.mrf.mxu1 }
 0x9b2   : > { %v16398_v56 = vadd.f32 %v13400_v24, %v4170_v32  ;;  %v4172_v29 = vadd.f32 %v13383_v43, %v4035_v50  ;;  %v3902_v50 = vadd.f32 %v16417_v12, %v13349_v55 }
 0x9b3   : > { %v4140_v30 = vpop.f32.mrf.mxu0  ;;  %v4267_v33 = vpop.f32.mrf.mxu1 }
 0x9b4   : > { %v4315_v10 = vadd.f32 %v16398_v56, %v16257_v61  ;;  %v16410_v16 = vadd.f32 %v4267_v33, %v4169_v18  ;;  %v4171_v43 = vadd.f32 %v4140_v30, %v4034_v51  ;;  %v4039_v33 = vadd.f32 %v13369_v1, %v3902_v50 }
 0x9b5   : > { %v13386_v24 = vpop.f32.mrf.mxu0  ;;  %v13403_v34 = vpop.f32.mrf.mxu1 }
 0x9b6   : > { %v11700_v32 = vmul.f32 -1.442695, %v4315_v10  ;;  %v4314_v59 = vadd.f32 %v16410_v16, %v16260_v8  ;;  %v16414_v7 = vadd.f32 %v13403_v34, %v4172_v29  ;;  %v4174_v20 = vadd.f32 %v13386_v24, %v4037_v26 }
 0x9b7   : > { %v4150_v61 = vpop.f32.mrf.mxu0  ;;  %v4277_v18 = vpop.f32.mrf.mxu1  ;;  %v3901_v8 = vadd.f32 %v16423_v36, %v3886_v2 }
 0x9b8   : > { %14370 = vpow2.f32 %v11700_v32  ;;  %v11699_v37 = vmul.f32 -1.442695, %v4314_v59  ;;  %v4317_v58 = vadd.f32 %v16414_v7, %v16269_v17  ;;  %v16426_v29 = vadd.f32 %v4277_v18, %v4171_v43 }
 0x9b9   : > { %v13389_v3 = vpop.f32.mrf.mxu0  ;;  %v13406_v39 = vpop.f32.mrf.mxu1  ;;  %v4173_v30 = vadd.f32 %v4150_v61, %v4036_v5  ;;  %v4038_v51 = vadd.f32 %v4023_v23, %v3901_v8 }
 0x9ba   : > { %14372 = vpow2.f32 %v11699_v37  ;;  %v11702_v55 = vmul.f32 -1.442695, %v4317_v58  ;;  %v16428_v10 = vadd.f32 %v13406_v39, %v4174_v20  ;;  %v4316_v24 = vadd.f32 %v16426_v29, %v16279_v38 }
 0x9bb   : > { %v4160_v34 = vpop.f32.mrf.mxu0  ;;  %v4287_v17 = vpop.f32.mrf.mxu1  ;;  %v4176_v26 = vadd.f32 %v13389_v3, %v4039_v33 }
 0x9bc   : > { %14374 = vpow2.f32 %v11702_v55  ;;  %v4319_v2 = vadd.f32 %v16428_v10, %v16291_v42  ;;  %v16434_v1 = vadd.f32 %v4287_v17, %v4173_v30  ;;  %v11701_v32 = vmul.f32 -1.442695, %v4316_v24  ;;  %v4381_v17 = vpop.permute.xlu1 %4380 }
 0x9bd   : > { %v13409_v59 = vpop.f32.mrf.mxu1  ;;  %v4175_v43 = vadd.f32 %v4160_v34, %v4038_v51 }
 0x9be   : > { %v11704_v50 = vmul.f32 -1.442695, %v4319_v2  ;;  %v4318_v5 = vadd.f32 %v16434_v1, %v16299_v27  ;;  %v16438_v23 = vadd.f32 %v13409_v59, %v4176_v26  ;;  %14376 = vpow2.f32 %v11701_v32  ;;  %v4379_v2 = vpop.permute.xlu0 %4378 }
 0x9bf   : > { %v4297_v38 = vpop.f32.mrf.mxu1 }
 0x9c0   : > { %14378 = vpow2.f32 %v11704_v50  ;;  %v11703_v61 = vmul.f32 -1.442695, %v4318_v5  ;;  %v4321_v18 = vadd.f32 %v16438_v23, %v16317_v57  ;;  %v16442_v37 = vadd.f32 %v4297_v38, %v4175_v43  ;;  %v4385_v5 = vpop.permute.xlu1 %4384 }
 0x9c2   : > { %14380 = vpow2.f32 %v11703_v61  ;;  %v11706_v42 = vmul.f32 -1.442695, %v4321_v18  ;;  %v4320_v20 = vadd.f32 %v16442_v37, %v16330_v63  ;;  %v4383_v18 = vpop.permute.xlu0 %4382 }
 0x9c4   : > { %14382 = vpow2.f32 %v11706_v42  ;;  %v11705_v58 = vmul.f32 -1.442695, %v4320_v20 }
 0x9c5   : > { %v14371_v8 = vpop.eup %14370 }
 0x9c6   : > { %v4347_v27 = vadd.f32 1.0, %v14371_v8  ;;  %14384 = vpow2.f32 %v11705_v58  ;;  %v4389_v8 = vpop.permute.xlu1 %4388 }
 0x9c7   : > { %v14373_v33 = vpop.eup %14372 }
 0x9c8   : > { %14386 = vrcp.f32 %v4347_v27  ;;  %v4346_v3 = vadd.f32 1.0, %v14373_v33 }
 0x9c9   : > { %v14375_v39 = vpop.eup %14374 }
 0x9ca   : > { %14388 = vrcp.f32 %v4346_v3  ;;  %v4349_v55 = vadd.f32 1.0, %v14375_v39  ;;  %v4387_v3 = vpop.permute.xlu0 %4386 }
 0x9cb   : > { %v14377_v30 = vpop.eup %14376 }
 0x9cc   : > { %14390 = vrcp.f32 %v4349_v55  ;;  %v4348_v51 = vadd.f32 1.0, %v14377_v30 }
 0x9cd   : > { %v14379_v57 = vpop.eup %14378 }
 0x9ce   : > { %v4351_v24 = vadd.f32 1.0, %v14379_v57  ;;  %14392 = vrcp.f32 %v4348_v51 }
 0x9cf   : > { %v14381_v34 = vpop.eup %14380 }
 0x9d0   : > { %14394 = vrcp.f32 %v4351_v24  ;;  %v4350_v63 = vadd.f32 1.0, %v14381_v34  ;;  %v4393_v24 = vpop.permute.xlu1 %4392 }
 0x9d1   : > { %v14383_v26 = vpop.eup %14382 }
 0x9d2   : > { %14396 = vrcp.f32 %v4350_v63  ;;  %v4353_v32 = vadd.f32 1.0, %v14383_v26  ;;  %v4391_v63 = vpop.permute.xlu0 %4390 }
 0x9d3   : > { %v14385_v59 = vpop.eup %14384 }
 0x9d4   : > { %14398 = vrcp.f32 %v4353_v32  ;;  %v4352_v50 = vadd.f32 1.0, %v14385_v59 }
 0x9d5   : > { %v16446_v43 = vpop.eup %14386 }
 0x9d6   : > { %14400 = vrcp.f32 %v4352_v50  ;;  %v4403_v38 = vmul.f32 %v16446_v43, %v4381_v17 }
 0x9d7   : > { %v16449_v61 = vpop.eup %14388 }
 0x9d8   : > { %4420 = vrot.lane.b32.xlu1 %v4403_v38, %s14905_s10  ;;  %v4402_v42 = vmul.f32 %v16449_v61, %v4379_v2 }
 0x9d9   : > { %v16453_v20 = vpop.eup %14390 }
 0x9da   : > { %4418 = vrot.lane.b32.xlu0 %v4402_v42, %s14905_s10  ;;  %v4405_v58 = vmul.f32 %v16453_v20, %v4385_v5 }
 0x9db   : > { %v16457_v27 = vpop.eup %14392 }
 0x9dc   : > { %4424 = vrot.lane.b32.xlu1 %v4405_v58, %s14905_s10  ;;  %v4404_v39 = vmul.f32 %v16457_v27, %v4383_v18 }
 0x9dd   : > { %v16460_v33 = vpop.eup %14394 }
 0x9de   : > { %v4407_v55 = vmul.f32 %v16460_v33, %v4389_v8  ;;  %4422 = vrot.lane.b32.xlu0 %v4404_v39, %s14905_s10 }
 0x9df   : > { %v16464_v30 = vpop.eup %14396 }
 0x9e0   : > { %4428 = vrot.lane.b32.xlu1 %v4407_v55, %s14905_s10  ;;  %v4406_v57 = vmul.f32 %v16464_v30, %v4387_v3 }
 0x9e1   : > { %v16469_v51 = vpop.eup %14398 }
 0x9e2   : > { %v4409_v34 = vmul.f32 %v16469_v51, %v4393_v24  ;;  %4426 = vrot.lane.b32.xlu0 %v4406_v57, %s14905_s10 }
 0x9e3   : > { %v16472_v17 = vpop.eup %14400 }
 0x9e4   : > { %4432 = vrot.lane.b32.xlu1 %v4409_v34, %s14905_s10  ;;  %v4408_v26 = vmul.f32 %v16472_v17, %v4391_v63 }
 0x9e6   : > { %4430 = vrot.lane.b32.xlu0 %v4408_v26, %s14905_s10 }
 0xa4a   : > { %v4421_v2 = vpop.permute.xlu1 %4420 }
 0xa4b   : > { %v4443_v32 = vadd.f32 %v4421_v2, %v16398_v56 }
 0xa4c   : > { %v4419_v59 = vpop.permute.xlu0 %4418 }
 0xa4d   : > { %14402 = vtanh.f32 %v4443_v32  ;;  %v4442_v50 = vadd.f32 %v4419_v59, %v16410_v16 }
 0xa4e   : > { %v4425_v5 = vpop.permute.xlu1 %4424 }
 0xa4f   : > { %14404 = vtanh.f32 %v4442_v50  ;;  %v4445_v38 = vadd.f32 %v4425_v5, %v16414_v7 }
 0xa50   : > { %v4423_v18 = vpop.permute.xlu0 %4422 }
 0xa51   : > { %14406 = vtanh.f32 %v4445_v38  ;;  %v4444_v42 = vadd.f32 %v4423_v18, %v16426_v29 }
 0xa52   : > { %v4429_v58 = vpop.permute.xlu1 %4428 }
 0xa53   : > { %v4447_v8 = vadd.f32 %v4429_v58, %v16428_v10  ;;  %14408 = vtanh.f32 %v4444_v42 }
 0xa54   : > { %v4427_v3 = vpop.permute.xlu0 %4426 }
 0xa55   : > { %14410 = vtanh.f32 %v4447_v8  ;;  %v4446_v56 = vadd.f32 %v4427_v3, %v16434_v1 }
 0xa56   : > { %v4433_v39 = vpop.permute.xlu1 %4432 }
 0xa57   : > { %v4449_v55 = vadd.f32 %v4433_v39, %v16438_v23  ;;  %14412 = vtanh.f32 %v4446_v56 }
 0xa58   : > { %v4431_v16 = vpop.permute.xlu0 %4430 }
 0xa59   : > { %14414 = vtanh.f32 %v4449_v55  ;;  %v4448_v7 = vadd.f32 %v4431_v16, %v16442_v37 }
 0xa5a   : > { %v14403_v57 = vpop.eup %14402 }
 0xa5b   : > { %v4459_v24 = vsub.f32 %v15996_v40, %v14403_v57  ;;  %14416 = vtanh.f32 %v4448_v7 }
 0xa5c   : > { %v14405_v29 = vpop.eup %14404 }
 0xa5d   : > { %4476 = vrot.lane.b32.xlu1 %v4459_v24, %s14907_s13  ;;  %v4458_v10 = vsub.f32 %v15998_v0, %v14405_v29 }
 0xa5e   : > { %v14407_v34 = vpop.eup %14406 }
 0xa5f   : > { %4474 = vrot.lane.b32.xlu0 %v4458_v10, %s14907_s13  ;;  %v4461_v1 = vsub.f32 %v16002_v54, %v14407_v34 }
 0xa60   : > { %v14409_v23 = vpop.eup %14408 }
 0xa61   : > { %4480 = vrot.lane.b32.xlu1 %v4461_v1, %s14907_s13  ;;  %v4460_v26 = vsub.f32 %v16008_v47, %v14409_v23 }
 0xa62   : > { %v14411_v63 = vpop.eup %14410 }
 0xa63   : > { %v4463_v37 = vsub.f32 %v16010_v35, %v14411_v63  ;;  %4478 = vrot.lane.b32.xlu0 %v4460_v26, %s14907_s13 }
 0xa64   : > { %v14413_v40 = vpop.eup %14412 }
 0xa65   : > { %4484 = vrot.lane.b32.xlu1 %v4463_v37, %s14907_s13  ;;  %v4462_v0 = vsub.f32 %v16016_v49, %v14413_v40 }
 0xa66   : > { %v14415_v2 = vpop.eup %14414 }
 0xa67   : > { %v4465_v32 = vsub.f32 %v16018_v21, %v14415_v2  ;;  %4482 = vrot.lane.b32.xlu0 %v4462_v0, %s14907_s13 }
 0xa68   : > { %v14417_v54 = vpop.eup %14416 }
 0xa69   : > { %4488 = vrot.lane.b32.xlu1 %v4465_v32, %s14907_s13  ;;  %v4464_v59 = vsub.f32 %v16024_v22, %v14417_v54  ;;  %v18977_v32 = vld [vmem:[#allocation15_spill] sm:$0xff] }
 0xa6b   : > { %4486 = vrot.lane.b32.xlu0 %v4464_v59, %s14907_s13  ;;  %v18979_v59 = vld [vmem:[#allocation16_spill] sm:$0xff] }
 0xacf   : > { %v4477_v47 = vpop.permute.xlu1 %4476 }
 0xad0   : > { %v4499_v35 = vmul.f32 %v16446_v43, %v4477_v47  ;;  %v18980_v47 = vld [vmem:[#allocation25_spill] sm:$0xff] }
 0xad1   : > { %v4475_v50 = vpop.permute.xlu0 %4474 }
 0xad2   : > { %v4498_v5 = vmul.f32 %v16449_v61, %v4475_v50  ;;  %4516 = vrot.lane.b32.xlu1 %v4499_v35, %s14906_s9  ;;  %v18982_v35 = vld [vmem:[#allocation26_spill] sm:$0xff] }
 0xad3   : > { %v4481_v49 = vpop.permute.xlu1 %4480  ;;  %v18983_v50 = vld [vmem:[#allocation18_spill] sm:$0xff] }
 0xad4   : > { %v4501_v21 = vmul.f32 %v16453_v20, %v4481_v49  ;;  %4514 = vrot.lane.b32.xlu0 %v4498_v5, %s14906_s9  ;;  %v18984_v49 = vld [vmem:[#allocation28_spill] sm:$0xff] }
 0xad5   : > { %v4479_v38 = vpop.permute.xlu0 %4478 }
 0xad6   : > { %4520 = vrot.lane.b32.xlu1 %v4501_v21, %s14906_s9  ;;  %v4500_v22 = vmul.f32 %v16457_v27, %v4479_v38 }
 0xad7   : > { %v4485_v18 = vpop.permute.xlu1 %4484 }
 0xad8   : > { %v4503_v42 = vmul.f32 %v16460_v33, %v4485_v18  ;;  %4518 = vrot.lane.b32.xlu0 %v4500_v22, %s14906_s9 }
 0xad9   : > { %v4483_v43 = vpop.permute.xlu0 %4482 }
 0xada   : > { %4524 = vrot.lane.b32.xlu1 %v4503_v42, %s14906_s9  ;;  %v4502_v61 = vmul.f32 %v16464_v30, %v4483_v43 }
 0xadb   : > { %v4489_v58 = vpop.permute.xlu1 %4488 }
 0xadc   : > { %v4505_v20 = vmul.f32 %v16469_v51, %v4489_v58  ;;  %4522 = vrot.lane.b32.xlu0 %v4502_v61, %s14906_s9 }
 0xadd   : > { %v4487_v8 = vpop.permute.xlu0 %4486 }
 0xade   : > { %4528 = vrot.lane.b32.xlu1 %v4505_v20, %s14906_s9  ;;  %v4504_v27 = vmul.f32 %v16472_v17, %v4487_v8  ;;  %v18985_v8 = vld [vmem:[#allocation19_spill] sm:$0xff] }
 0xae0   : > { %4526 = vrot.lane.b32.xlu0 %v4504_v27, %s14906_s9 }
 0xb44   : > { %v4517_v33 = vpop.permute.xlu1 %4516 }
 0xb45   : > { %v16518_v3 = vadd.f32 %v14403_v57, %v4517_v33 }
 0xb46   : > { %v4515_v56 = vpop.permute.xlu0 %4514 }
 0xb47   : > { %v16520_v39 = vadd.f32 %v14405_v29, %v4515_v56  ;;  %4556 = vrot.lane.b32.xlu1 %v16518_v3, %s14905_s10 }
 0xb48   : > { %v4521_v30 = vpop.permute.xlu1 %4520 }
 0xb49   : > { %v16524_v51 = vadd.f32 %v14407_v34, %v4521_v30  ;;  %4554 = vrot.lane.b32.xlu0 %v16520_v39, %s14905_s10  ;;  %v18986_v30 = vld [vmem:[#allocation20_spill] sm:$0xff] }
 0xb4a   : > { %v4519_v55 = vpop.permute.xlu0 %4518 }
 0xb4b   : > { %4560 = vrot.lane.b32.xlu1 %v16524_v51, %s14905_s10  ;;  %v16530_v17 = vadd.f32 %v14409_v23, %v4519_v55 }
 0xb4c   : > { %v4525_v16 = vpop.permute.xlu1 %4524 }
 0xb4d   : > { %v16532_v57 = vadd.f32 %v14411_v63, %v4525_v16  ;;  %4558 = vrot.lane.b32.xlu0 %v16530_v17, %s14905_s10 }
 0xb4e   : > { %v4523_v7 = vpop.permute.xlu0 %4522 }
 0xb4f   : > { %4564 = vrot.lane.b32.xlu1 %v16532_v57, %s14905_s10  ;;  %v16538_v24 = vadd.f32 %v14413_v40, %v4523_v7 }
 0xb50   : > { %v4529_v29 = vpop.permute.xlu1 %4528 }
 0xb51   : > { %v16540_v10 = vadd.f32 %v14415_v2, %v4529_v29  ;;  %4562 = vrot.lane.b32.xlu0 %v16538_v24, %s14905_s10 }
 0xb52   : > { %v4527_v34 = vpop.permute.xlu0 %4526 }
 0xb53   : > { %4568 = vrot.lane.b32.xlu1 %v16540_v10, %s14905_s10  ;;  %v16546_v1 = vadd.f32 %v14417_v54, %v4527_v34  ;;  %v18978_v54 = vld [vmem:[#allocation24_spill] sm:$0xff] }
 0xb55   : > { %4566 = vrot.lane.b32.xlu0 %v16546_v1, %s14905_s10 }
 0xbb9   : > { %v4557_v23 = vpop.permute.xlu1 %4556 }
 0xbba   : > { %13430 = vmatprep.subr.mxu1 %v4557_v23 }
 0xbbb   : > { %13431 = vmatpush3.msra.mxu1 %v4557_v23  ;;  %v4555_v63 = vpop.permute.xlu0 %4554 }
 0xbbc   : > { %13418 = vmatprep.mubr.msk.f32.mxu0 %vm381_vm1, %v4555_v63  ;;  %13432 = vmatprep.subr.mxu1 %v4555_v63 }
 0xbbd   : > { %v4561_v26 = vpop.permute.xlu1 %4560  ;;  %13419 = vmatmul.mubr.msk.f32.vlgmr.msra.gmra.mxu0 %vm381_vm1, %v4557_v23  ;;  %13433 = vmatpush3.msra.mxu1 %v4555_v63  ;;  %v18987_v63 = vld [vmem:[#allocation29_spill] sm:$0xff] }
 0xbbe   : > { %13446 = vmatprep.subr.mxu0 %v4561_v26  ;;  %13435 = vmatmul.mubr.msk.f32.vlgmr.msra.gmra.mxu1 %vm511_vm0, %v16031_v46 }
 0xbbf   : > { %13447 = vmatpush3.msra.mxu0 %v4561_v26  ;;  %13437 = vmatprep.mubr.msk.f32.mxu1 %vm511_vm0, %v16036_v15  ;;  %v4559_v37 = vpop.permute.xlu0 %4558  ;;  %v16563_v15 = vld [vmem:[%s15027_s28 + $0x20] sm:$0xff] }
 0xbc0   : > { %13421 = vmatprep.mubr.msk.f32.mxu0 %vm381_vm1, %v4559_v37  ;;  %13448 = vmatprep.subr.mxu0 %v4559_v37 }
 0xbc1   : > { %v4565_v40 = vpop.permute.xlu1 %4564  ;;  %13422 = vmatmul.mubr.msk.f32.gmra.mxu0 %vm381_vm1, %v4561_v26  ;;  %v18988_v26 = vld [vmem:[#allocation30_spill] sm:$0xff] }
 0xbc2   : > { %13462 = vmatprep.subr.mxu1 %v4565_v40  ;;  %13449 = vmatpush3.msra.mxu0 %v4559_v37 }
 0xbc3   : > { %13463 = vmatpush3.msra.mxu1 %v4565_v40  ;;  %v4563_v2 = vpop.permute.xlu0 %4562 }
 0xbc4   : > { %13438 = vmatmul.mubr.msk.f32.gmra.mxu1 %vm511_vm0, %v16043_v19  ;;  %13424 = vmatprep.mubr.msk.f32.mxu0 %vm381_vm1, %v4563_v2  ;;  %v16572_v19 = vld [vmem:[%s18667_s3 + $0x18] sm:$0xff] }
 0xbc5   : > { %13464 = vmatprep.subr.mxu1 %v4563_v2  ;;  %v4569_v46 = vpop.permute.xlu1 %4568  ;;  %13425 = vmatmul.mubr.msk.f32.gmra.mxu0 %vm381_vm1, %v4565_v40 }
 0xbc6   : > { %13465 = vmatpush3.msra.mxu1 %v4563_v2  ;;  %13478 = vmatprep.subr.mxu0 %v4569_v46 }
 0xbc7   : > { %13440 = vmatprep.mubr.msk.f32.mxu1 %vm511_vm0, %v16563_v15  ;;  %v4567_v0 = vpop.permute.xlu0 %4566  ;;  %13494 = vmatprep.subr.mxu1 %v16572_v19 }
 0xbc8   : > { %13441 = vmatmul.mubr.msk.f32.gmra.mxu1 %vm511_vm0, %v16052_v52  ;;  %13427 = vmatprep.mubr.msk.f32.mxu0 %vm381_vm1, %v4567_v0  ;;  %v18963_v52 = vld [vmem:[#allocation5_spill] sm:$0xff] }
 0xbc9   : > { %13443 = vmatprep.mubr.msk.f32.mxu1 %vm511_vm0, %v16059_v41  ;;  %13428 = vmatmul.mubr.msk.f32.gmra.mxu0 %vm381_vm1, %v4569_v46  ;;  %v18964_v41 = vld [vmem:[#allocation22_spill] sm:$0xff] }
 0xbca   : > { %13450 = vmatprep.mubr.msk.f32.mxu0 %vm511_vm0, %v16065_v9  ;;  %v18965_v9 = vld [vmem:[#allocation6_spill] sm:$0xff] }
 0xbcc   : > { %13444 = vmatmul.mubr.msk.f32.gmra.mxu1 %vm511_vm0, %v16070_v31  ;;  %v18966_v31 = vld [vmem:[#allocation9_spill] sm:$0xff] }
 0xbcd   : > { %13466 = vmatprep.mubr.msk.f32.mxu1 %vm511_vm0, %v16075_v25  ;;  %13451 = vmatmul.mubr.msk.f32.vlgmr.msra.gmra.mxu0 %vm511_vm0, %v16080_v48  ;;  %v18967_v25 = vld [vmem:[#allocation21_spill] sm:$0xff]  ;;  %v18968_v48 = vld [vmem:[#allocation10_spill] sm:$0xff] }
 0xbce   : > { %13479 = vmatpush3.msra.mxu0 %v4569_v46  ;;  %13453 = vmatprep.mubr.msk.f32.mxu0 %vm511_vm0, %v16085_v60  ;;  %v18969_v60 = vld [vmem:[#allocation7_spill] sm:$0xff] }
 0xbcf   : > { %13480 = vmatprep.subr.mxu0 %v4567_v0  ;;  %v18989_v46 = vld [vmem:[#allocation31_spill] sm:$0xff] }
 0xbd0   : > { %13467 = vmatmul.mubr.msk.f32.vlgmr.msra.gmra.mxu1 %vm511_vm0, %v16090_v62  ;;  %13481 = vmatpush3.msra.mxu0 %v4567_v0  ;;  %v18970_v62 = vld [vmem:[#allocation23_spill] sm:$0xff] }
 0xbd1   : > { %13469 = vmatprep.mubr.msk.f32.mxu1 %vm511_vm0, %v16095_v14  ;;  %13454 = vmatmul.mubr.msk.f32.gmra.mxu0 %vm511_vm0, %v16100_v6  ;;  %v18971_v14 = vld [vmem:[#allocation8_spill] sm:$0xff] }
 0xbd2   : > { %13495 = vmatpush3.msra.mxu1 %v16572_v19  ;;  %13456 = vmatprep.mubr.msk.f32.mxu0 %vm511_vm0, %v16106_v45  ;;  %v18972_v6 = vld [vmem:[#allocation12_spill] sm:$0xff]  ;;  %v18973_v45 = vld [vmem:[#allocation27_spill] sm:$0xff] }
 0xbd3   : > { %13496 = vmatprep.subr.mxu1 %v16113_v44  ;;  %13514 = vmatprep.subr.mxu0 %v16124_v13 }
 0xbd4   : > { %13470 = vmatmul.mubr.msk.f32.gmra.mxu1 %vm511_vm0, %v16117_v11  ;;  %v18975_v11 = vld [vmem:[#allocation11_spill] sm:$0xff] }
 0xbd5   : > { %13472 = vmatprep.mubr.msk.f32.mxu1 %vm511_vm0, %v16128_v28  ;;  %13497 = vmatpush3.msra.mxu1 %v16113_v44  ;;  %v18974_v44 = vld [vmem:[#allocation13_spill] sm:$0xff]  ;;  %v18976_v28 = vld [vmem:[#allocation14_spill] sm:$0xff] }
 0xbd6   : > { %13457 = vmatmul.mubr.msk.f32.gmra.mxu0 %vm511_vm0, %v18963_v52  ;;  %13498 = vmatprep.subr.mxu1 %v18964_v41 }
 0xbd7   : > { %13459 = vmatprep.mubr.msk.f32.mxu0 %vm511_vm0, %v18965_v9  ;;  %13499 = vmatpush3.msra.mxu1 %v18964_v41  ;;  %v18990_v9 = vld [vmem:[#allocation32_spill] sm:$0xff] }
 0xbd8   : > { %13473 = vmatmul.mubr.msk.f32.gmra.mxu1 %vm511_vm0, %v18966_v31  ;;  %13500 = vmatprep.subr.mxu1 %v18967_v25  ;;  %v16704_v31 = vld [vmem:[%s18668_s4 + $0x18] sm:$0xff] }
 0xbd9   : > { %13475 = vmatprep.mubr.msk.f32.mxu1 %vm511_vm0, %v18968_v48  ;;  %13501 = vmatpush3.msra.mxu1 %v18967_v25 }
 0xbda   : > { %13460 = vmatmul.mubr.msk.f32.gmra.mxu0 %vm511_vm0, %v18969_v60  ;;  %13534 = vmatprep.subr.mxu1 %v18970_v62 }
 0xbdb   : > { %13482 = vmatprep.mubr.msk.f32.mxu0 %vm511_vm0, %v18971_v14 }
 0xbdc   : > { %13476 = vmatmul.mubr.msk.f32.gmra.mxu1 %vm511_vm0, %v18972_v6 }
 0xbde   : > { %13483 = vmatmul.mubr.msk.f32.vlgmr.msra.gmra.mxu0 %vm511_vm0, %v18973_v45 }
 0xbdf   : > { %13485 = vmatprep.mubr.msk.f32.mxu0 %vm511_vm0, %v18974_v44  ;;  %13515 = vmatpush3.msra.mxu0 %v16124_v13  ;;  %v18981_v13 = vld [vmem:[#allocation17_spill] sm:$0xff] }
 0xbe0   : > { %13516 = vmatprep.subr.mxu0 %v18975_v11 }
 0xbe1   : > { %13517 = vmatpush3.msra.mxu0 %v18975_v11 }
 0xbe2   : > { %13486 = vmatmul.mubr.msk.f32.gmra.mxu0 %vm511_vm0, %v18976_v28  ;;  %13518 = vmatprep.subr.mxu0 %v18977_v32 }
 0xbe3   : > { %13488 = vmatprep.mubr.msk.f32.mxu0 %vm511_vm0, %v18978_v54  ;;  %13519 = vmatpush3.msra.mxu0 %v18977_v32 }
 0xbe4   : > { %13520 = vmatprep.subr.mxu0 %v18979_v59 }
 0xbe5   : > { %13521 = vmatpush3.msra.mxu0 %v18979_v59 }
 0xbe6   : > { %13489 = vmatmul.mubr.msk.f32.gmra.mxu0 %vm511_vm0, %v18980_v47  ;;  %13554 = vmatprep.subr.mxu0 %v18981_v13 }
 0xbe7   : > { %13491 = vmatprep.mubr.msk.f32.mxu0 %vm511_vm0, %v18982_v35 }
 0xbea   : > { %13492 = vmatmul.mubr.msk.f32.gmra.mxu0 %vm511_vm0, %v18983_v50 }
 0xc7d   : > { %v13420_v5 = vpop.f32.mrf.mxu0 }
 0xc7e   : > { %v16647_v21 = vadd.f32 %v18984_v49, %v13420_v5  ;;  %v13436_v38 = vpop.f32.mrf.mxu1 }
 0xc7f   : > { %v4652_v22 = vpop.f32.mrf.mxu0 }
 0xc80   : > { %v16650_v18 = vadd.f32 %v18984_v49, %v4652_v22  ;;  %5733 = vrot.lane.b32.xlu1 %v16647_v21, %s14905_s10  ;;  %v4759_v42 = vpop.f32.mrf.mxu1  ;;  %v16730_v22 = vld [vmem:[%s18668_s4 + $0x10] sm:$0xff] }
 0xc81   : > { %13502 = vmatprep.mubr.msk.f32.mxu1 %vm381_vm1, %v4759_v42  ;;  %v13423_v43 = vpop.f32.mrf.mxu0 }
 0xc82   : > { %5731 = vrot.lane.b32.xlu0 %v16650_v18, %s14905_s10  ;;  %13503 = vmatmul.mubr.msk.f32.vlgmr.msra.gmra.mxu1 %vm381_vm1, %v13436_v38  ;;  %v16659_v61 = vadd.f32 %v18984_v49, %v13423_v43 }
 0xc83   : > { %13535 = vmatpush3.msra.mxu1 %v18970_v62  ;;  %v4662_v58 = vpop.f32.mrf.mxu0 }
 0xc84   : > { %v13439_v20 = vpop.f32.mrf.mxu1  ;;  %13536 = vmatprep.subr.mxu1 %v18985_v8  ;;  %v16664_v27 = vadd.f32 %v18984_v49, %v4662_v58  ;;  %5737 = vrot.lane.b32.xlu1 %v16659_v61, %s14905_s10  ;;  %v16741_v58 = vld [vmem:[%s18668_s4 + $0x8] sm:$0xff] }
 0xc85   : > { %13537 = vmatpush3.msra.mxu1 %v18985_v8  ;;  %v13426_v33 = vpop.f32.mrf.mxu0  ;;  %v16752_v8 = vld [vmem:[%s18668_s4] sm:$0xff] }
 0xc86   : > { %v4769_v56 = vpop.f32.mrf.mxu1  ;;  %13538 = vmatprep.subr.mxu1 %v18986_v30  ;;  %v16671_v55 = vadd.f32 %v18984_v49, %v13426_v33  ;;  %5735 = vrot.lane.b32.xlu0 %v16664_v27, %s14905_s10  ;;  %v16761_v33 = vld [vmem:[%s15027_s28] sm:$0xff] }
 0xc87   : > { %13522 = vmatprep.mubr.msk.f32.mxu0 %vm381_vm1, %v4769_v56  ;;  %v4672_v16 = vpop.f32.mrf.mxu0  ;;  %13539 = vmatpush3.msra.mxu1 %v18986_v30 }
 0xc88   : > { %v13442_v7 = vpop.f32.mrf.mxu1  ;;  %13523 = vmatmul.mubr.msk.f32.vlgmr.msra.gmra.mxu0 %vm381_vm1, %v13439_v20  ;;  %v16679_v29 = vadd.f32 %v18984_v49, %v4672_v16  ;;  %5741 = vrot.lane.b32.xlu1 %v16671_v55, %s14905_s10 }
 0xc89   : > { %13555 = vmatpush3.msra.mxu0 %v18981_v13  ;;  %v13429_v34 = vpop.f32.mrf.mxu0  ;;  %13540 = vmatprep.subr.mxu1 %v18988_v26 }
 0xc8a   : > { %v4779_v23 = vpop.f32.mrf.mxu1  ;;  %13556 = vmatprep.subr.mxu0 %v18987_v63  ;;  %v16687_v37 = vadd.f32 %v18984_v49, %v13429_v34  ;;  %5739 = vrot.lane.b32.xlu0 %v16679_v29, %s14905_s10 }
 0xc8b   : > { %13557 = vmatpush3.msra.mxu0 %v18987_v63  ;;  %v4682_v40 = vpop.f32.mrf.mxu0  ;;  %13541 = vmatpush3.msra.mxu1 %v18988_v26 }
 0xc8c   : > { %v13445_v2 = vpop.f32.mrf.mxu1  ;;  %13558 = vmatprep.subr.mxu0 %v18989_v46  ;;  %v16695_v0 = vadd.f32 %v18984_v49, %v4682_v40  ;;  %5745 = vrot.lane.b32.xlu1 %v16687_v37, %s14905_s10 }
 0xc8d   : > { %13559 = vmatpush3.msra.mxu0 %v18989_v46  ;;  %v13452_v52 = vpop.f32.mrf.mxu0  ;;  %13574 = vmatprep.subr.mxu1 %v16704_v31 }
 0xc8e   : > { %v4789_v41 = vpop.f32.mrf.mxu1  ;;  %13560 = vmatprep.subr.mxu0 %v18990_v9  ;;  %5743 = vrot.lane.b32.xlu0 %v16695_v0, %s14905_s10 }
 0xc8f   : > { %13561 = vmatpush3.msra.mxu0 %v18990_v9  ;;  %v4866_v25 = vpop.f32.mrf.mxu0 }
 0xc90   : > { %v13468_v48 = vpop.f32.mrf.mxu1  ;;  %13505 = vmatprep.mubr.msk.f32.mxu1 %vm381_vm1, %v4866_v25 }
 0xc91   : > { %v13455_v60 = vpop.f32.mrf.mxu0  ;;  %13506 = vmatmul.mubr.msk.f32.gmra.mxu1 %vm381_vm1, %v13452_v52 }
 0xc92   : > { %v4973_v62 = vpop.f32.mrf.mxu1 }
 0xc93   : > { %13508 = vmatprep.mubr.msk.f32.mxu1 %vm381_vm1, %v4973_v62  ;;  %v4876_v14 = vpop.f32.mrf.mxu0 }
 0xc94   : > { %v13471_v6 = vpop.f32.mrf.mxu1  ;;  %13525 = vmatprep.mubr.msk.f32.mxu0 %vm381_vm1, %v4876_v14 }
 0xc95   : > { %13526 = vmatmul.mubr.msk.f32.gmra.mxu0 %vm381_vm1, %v13455_v60  ;;  %13509 = vmatmul.mubr.msk.f32.gmra.mxu1 %vm381_vm1, %v13468_v48  ;;  %v18992_v60 = vld [vmem:[#allocation34_spill] sm:$0xff] }
 0xc96   : > { %v13458_v45 = vpop.f32.mrf.mxu0  ;;  %v4983_v44 = vpop.f32.mrf.mxu1 }
 0xc97   : > { %13528 = vmatprep.mubr.msk.f32.mxu0 %vm381_vm1, %v4983_v44 }
 0xc98   : > { %v4886_v11 = vpop.f32.mrf.mxu0  ;;  %v13474_v47 = vpop.f32.mrf.mxu1 }
 0xc99   : > { %13529 = vmatmul.mubr.msk.f32.gmra.mxu0 %vm381_vm1, %v13471_v6 }
 0xc9a   : > { %v13461_v28 = vpop.f32.mrf.mxu0  ;;  %v4993_v50 = vpop.f32.mrf.mxu1 }
 0xc9c   : > { %v4896_v32 = vpop.f32.mrf.mxu0  ;;  %v13477_v49 = vpop.f32.mrf.mxu1 }
 0xc9e   : > { %v13484_v54 = vpop.f32.mrf.mxu0  ;;  %v5003_v42 = vpop.f32.mrf.mxu1 }
 0xca0   : > { %v5080_v59 = vpop.f32.mrf.mxu0 }
 0xca1   : > { %13511 = vmatprep.mubr.msk.f32.mxu1 %vm381_vm1, %v5080_v59 }
 0xca2   : > { %v13487_v13 = vpop.f32.mrf.mxu0  ;;  %13512 = vmatmul.mubr.msk.f32.gmra.mxu1 %vm381_vm1, %v13484_v54 }
 0xca3   : > { %13542 = vmatprep.mubr.msk.f32.mxu1 %vm381_vm1, %v4779_v23 }
 0xca4   : > { %v5090_v35 = vpop.f32.mrf.mxu0 }
 0xca5   : > { %13531 = vmatprep.mubr.msk.f32.mxu0 %vm381_vm1, %v5090_v35 }
 0xca6   : > { %13532 = vmatmul.mubr.msk.f32.gmra.mxu0 %vm381_vm1, %v13487_v13  ;;  %13543 = vmatmul.mubr.msk.f32.vlgmr.msra.gmra.mxu1 %vm381_vm1, %v13442_v7  ;;  %v13490_v5 = vpop.f32.mrf.mxu0 }
 0xca7   : > { %13545 = vmatprep.mubr.msk.f32.mxu1 %vm381_vm1, %v4886_v11  ;;  %13562 = vmatprep.mubr.msk.f32.mxu0 %vm381_vm1, %v4789_v41  ;;  %v18991_v41 = vld [vmem:[#allocation33_spill] sm:$0xff] }
 0xca8   : > { %v5100_v38 = vpop.f32.mrf.mxu0  ;;  %13575 = vmatpush3.msra.mxu1 %v16704_v31 }
 0xca9   : > { %13576 = vmatprep.subr.mxu1 %v16730_v22 }
 0xcaa   : > { %13546 = vmatmul.mubr.msk.f32.gmra.mxu1 %vm381_vm1, %v13458_v45  ;;  %13563 = vmatmul.mubr.msk.f32.vlgmr.msra.gmra.mxu0 %vm381_vm1, %v13445_v2  ;;  %v13493_v43 = vpop.f32.mrf.mxu0 }
 0xcab   : > { %13548 = vmatprep.mubr.msk.f32.mxu1 %vm381_vm1, %v4993_v50  ;;  %13565 = vmatprep.mubr.msk.f32.mxu0 %vm381_vm1, %v4896_v32 }
 0xcac   : > { %13577 = vmatpush3.msra.mxu1 %v16730_v22  ;;  %v5110_v20 = vpop.f32.mrf.mxu0 }
 0xcad   : > { %13578 = vmatprep.subr.mxu1 %v16741_v58 }
 0xcae   : > { %13549 = vmatmul.mubr.msk.f32.gmra.mxu1 %vm381_vm1, %v13474_v47  ;;  %13566 = vmatmul.mubr.msk.f32.gmra.mxu0 %vm381_vm1, %v13461_v28 }
 0xcaf   : > { %13551 = vmatprep.mubr.msk.f32.mxu1 %vm381_vm1, %v5100_v38  ;;  %13568 = vmatprep.mubr.msk.f32.mxu0 %vm381_vm1, %v5003_v42  ;;  %v18994_v42 = vld [vmem:[#allocation36_spill] sm:$0xff] }
 0xcb0   : > { %13579 = vmatpush3.msra.mxu1 %v16741_v58 }
 0xcb1   : > { %13580 = vmatprep.subr.mxu1 %v16752_v8 }
 0xcb2   : > { %13552 = vmatmul.mubr.msk.f32.gmra.mxu1 %vm381_vm1, %v13490_v5  ;;  %13569 = vmatmul.mubr.msk.f32.gmra.mxu0 %vm381_vm1, %v13477_v49  ;;  %v18993_v49 = vld [vmem:[#allocation35_spill] sm:$0xff] }
 0xcb3   : > { %13571 = vmatprep.mubr.msk.f32.mxu0 %vm381_vm1, %v5110_v20  ;;  %13581 = vmatpush3.msra.mxu1 %v16752_v8 }
 0xcb6   : > { %13572 = vmatmul.mubr.msk.f32.gmra.mxu0 %vm381_vm1, %v13493_v43 }
 0xcb7   : > { %13598 = vmatprep.mubr.msk.f32.mxu0 %vm511_vm0, %v16761_v33 }
 0xd42   : > { %v13504_v56 = vpop.f32.mrf.mxu1 }
 0xd43   : > { %v5249_v9 = vadd.f32 %v18991_v41, %v13504_v56 }
 0xd44   : > { %v5209_v16 = vpop.f32.mrf.mxu1 }
 0xd45   : > { %v5248_v62 = vadd.f32 %v18992_v60, %v5209_v16 }
 0xd48   : > { %v13524_v30 = vpop.f32.mrf.mxu0 }
 0xd49   : > { %v5386_v45 = vadd.f32 %v13524_v30, %v5249_v9 }
 0xd4a   : > { %v5346_v7 = vpop.f32.mrf.mxu0 }
 0xd4b   : > { %v5385_v28 = vadd.f32 %v5346_v7, %v5248_v62 }
 0xd51   : > { %v13507_v34 = vpop.f32.mrf.mxu1 }
 0xd52   : > { %v5251_v32 = vadd.f32 %v16391_v53, %v13507_v34 }
 0xd53   : > { %v5219_v63 = vpop.f32.mrf.mxu1 }
 0xd54   : > { %v5250_v38 = vadd.f32 %v18993_v49, %v5219_v63 }
 0xd55   : > { %v13527_v23 = vpop.f32.mrf.mxu0  ;;  %v13510_v40 = vpop.f32.mrf.mxu1 }
 0xd56   : > { %v5388_v13 = vadd.f32 %v13527_v23, %v5251_v32  ;;  %v5253_v35 = vadd.f32 %v16395_v4, %v13510_v40 }
 0xd57   : > { %v5356_v26 = vpop.f32.mrf.mxu0  ;;  %v5229_v2 = vpop.f32.mrf.mxu1 }
 0xd58   : > { %v5252_v43 = vadd.f32 %v18994_v42, %v5229_v2  ;;  %v5387_v7 = vadd.f32 %v5356_v26, %v5250_v38 }
 0xd59   : > { %v13530_v46 = vpop.f32.mrf.mxu0 }
 0xd5a   : > { %v5390_v41 = vadd.f32 %v13530_v46, %v5253_v35 }
 0xd5b   : > { %v5366_v25 = vpop.f32.mrf.mxu0 }
 0xd5c   : > { %v5389_v63 = vadd.f32 %v5366_v25, %v5252_v43 }
 0xd62   : > { %v13513_v52 = vpop.f32.mrf.mxu1 }
 0xd63   : > { %v5255_v2 = vadd.f32 %v16417_v12, %v13513_v52 }
 0xd64   : > { %v5239_v48 = vpop.f32.mrf.mxu1 }
 0xd65   : > { %v5254_v46 = vadd.f32 %v16423_v36, %v5239_v48 }
 0xd66   : > { %v13533_v14 = vpop.f32.mrf.mxu0  ;;  %v13544_v6 = vpop.f32.mrf.mxu1 }
 0xd67   : > { %v5523_v54 = vadd.f32 %v13544_v6, %v5386_v45 }
 0xd68   : > { %v5376_v44 = vpop.f32.mrf.mxu0  ;;  %v5483_v11 = vpop.f32.mrf.mxu1 }
 0xd69   : > { %v5522_v50 = vadd.f32 %v5483_v11, %v5385_v28  ;;  %v5392_v11 = vadd.f32 %v13533_v14, %v5255_v2  ;;  %v5391_v52 = vadd.f32 %v5376_v44, %v5254_v46 }
 0xd6a   : > { %v13547_v59 = vpop.f32.mrf.mxu1  ;;  %v13564_v47 = vpop.f32.mrf.mxu0 }
 0xd6b   : > { %v16769_v5 = vadd.f32 %v13564_v47, %v5523_v54  ;;  %v5525_v30 = vadd.f32 %v13547_v59, %v5388_v13 }
 0xd6c   : > { %v5493_v20 = vpop.f32.mrf.mxu1  ;;  %v5620_v56 = vpop.f32.mrf.mxu0 }
 0xd6d   : > { %v5668_v16 = vadd.f32 %v16769_v5, %v16647_v21  ;;  %v16775_v53 = vadd.f32 %v5620_v56, %v5522_v50  ;;  %v5524_v60 = vadd.f32 %v5493_v20, %v5387_v7 }
 0xd6e   : > { %v13550_v34 = vpop.f32.mrf.mxu1  ;;  %v13567_v23 = vpop.f32.mrf.mxu0 }
 0xd6f   : > { %v11780_v4 = vmul.f32 -1.442695, %v5668_v16  ;;  %v5667_v40 = vadd.f32 %v16775_v53, %v16650_v18  ;;  %v16779_v9 = vadd.f32 %v13567_v23, %v5525_v30  ;;  %v5527_v45 = vadd.f32 %v13550_v34, %v5390_v41 }
 0xd70   : > { %v5503_v62 = vpop.f32.mrf.mxu1  ;;  %v5630_v6 = vpop.f32.mrf.mxu0 }
 0xd71   : > { %14418 = vpow2.f32 %v11780_v4  ;;  %v11779_v21 = vmul.f32 -1.442695, %v5667_v40  ;;  %v5670_v26 = vadd.f32 %v16779_v9, %v16659_v61  ;;  %v16785_v28 = vadd.f32 %v5630_v6, %v5524_v60  ;;  %v5734_v60 = vpop.permute.xlu1 %5733  ;;  %v5732_v6 = vpop.permute.xlu0 %5731 }
 0xd72   : > { %v13553_v18 = vpop.f32.mrf.mxu1  ;;  %v13570_v32 = vpop.f32.mrf.mxu0  ;;  %v5526_v54 = vadd.f32 %v5503_v62, %v5389_v63 }
 0xd73   : > { %14420 = vpow2.f32 %v11779_v21  ;;  %v11782_v25 = vmul.f32 -1.442695, %v5670_v26  ;;  %v16787_v12 = vadd.f32 %v13570_v32, %v5527_v45  ;;  %v5669_v59 = vadd.f32 %v16785_v28, %v16664_v27 }
 0xd74   : > { %v5513_v47 = vpop.f32.mrf.mxu1  ;;  %v5640_v13 = vpop.f32.mrf.mxu0  ;;  %v5529_v61 = vadd.f32 %v13553_v18, %v5392_v11 }
 0xd75   : > { %14422 = vpow2.f32 %v11782_v25  ;;  %v5672_v36 = vadd.f32 %v16787_v12, %v16671_v55  ;;  %v16793_v48 = vadd.f32 %v5640_v13, %v5526_v54  ;;  %v11781_v14 = vmul.f32 -1.442695, %v5669_v59  ;;  %v5738_v11 = vpop.permute.xlu1 %5737  ;;  %v5736_v25 = vpop.permute.xlu0 %5735 }
 0xd76   : > { %v13573_v35 = vpop.f32.mrf.mxu0  ;;  %v5528_v49 = vadd.f32 %v5513_v47, %v5391_v52 }
 0xd77   : > { %v11784_v50 = vmul.f32 -1.442695, %v5672_v36  ;;  %v5671_v38 = vadd.f32 %v16793_v48, %v16679_v29  ;;  %v16797_v44 = vadd.f32 %v13573_v35, %v5529_v61  ;;  %14424 = vpow2.f32 %v11781_v14 }
 0xd78   : > { %v5650_v27 = vpop.f32.mrf.mxu0 }
 0xd79   : > { %14426 = vpow2.f32 %v11784_v50  ;;  %v11783_v42 = vmul.f32 -1.442695, %v5671_v38  ;;  %v5674_v43 = vadd.f32 %v16797_v44, %v16687_v37  ;;  %v16801_v20 = vadd.f32 %v5650_v27, %v5528_v49  ;;  %v5742_v47 = vpop.permute.xlu1 %5741  ;;  %v5740_v36 = vpop.permute.xlu0 %5739 }
 0xd7b   : > { %14428 = vpow2.f32 %v11783_v42  ;;  %v11786_v55 = vmul.f32 -1.442695, %v5674_v43  ;;  %v5673_v56 = vadd.f32 %v16801_v20, %v16695_v0 }
 0xd7d   : > { %14430 = vpow2.f32 %v11786_v55  ;;  %v11785_v30 = vmul.f32 -1.442695, %v5673_v56  ;;  %v5746_v27 = vpop.permute.xlu1 %5745  ;;  %v5744_v55 = vpop.permute.xlu0 %5743 }
 0xd7e   : > { %v14419_v16 = vpop.eup %14418 }
 0xd7f   : > { %v5700_v29 = vadd.f32 1.0, %v14419_v16  ;;  %14432 = vpow2.f32 %v11785_v30 }
 0xd80   : > { %v14421_v7 = vpop.eup %14420 }
 0xd81   : > { %14434 = vrcp.f32 %v5700_v29  ;;  %v5699_v34 = vadd.f32 1.0, %v14421_v7 }
 0xd82   : > { %v14423_v23 = vpop.eup %14422 }
 0xd83   : > { %14436 = vrcp.f32 %v5699_v34  ;;  %v5702_v41 = vadd.f32 1.0, %v14423_v23 }
 0xd84   : > { %v14425_v4 = vpop.eup %14424 }
 0xd85   : > { %14438 = vrcp.f32 %v5702_v41  ;;  %v5701_v40 = vadd.f32 1.0, %v14425_v4 }
 0xd86   : > { %v14427_v37 = vpop.eup %14426 }
 0xd87   : > { %v5704_v63 = vadd.f32 1.0, %v14427_v37  ;;  %14440 = vrcp.f32 %v5701_v40 }
 0xd88   : > { %v14429_v2 = vpop.eup %14428 }
 0xd89   : > { %14442 = vrcp.f32 %v5704_v63  ;;  %v5703_v0 = vadd.f32 1.0, %v14429_v2 }
 0xd8a   : > { %v14431_v62 = vpop.eup %14430 }
 0xd8b   : > { %14444 = vrcp.f32 %v5703_v0  ;;  %v5706_v21 = vadd.f32 1.0, %v14431_v62 }
 0xd8c   : > { %v14433_v45 = vpop.eup %14432 }
 0xd8d   : > { %14446 = vrcp.f32 %v5706_v21  ;;  %v5705_v26 = vadd.f32 1.0, %v14433_v45 }
 0xd8e   : > { %v16805_v46 = vpop.eup %14434 }
 0xd8f   : > { %14448 = vrcp.f32 %v5705_v26  ;;  %v5756_v18 = vmul.f32 %v16805_v46, %v5734_v60 }
 0xd90   : > { %v16808_v32 = vpop.eup %14436 }
 0xd91   : > { %5773 = vrot.lane.b32.xlu1 %v5756_v18, %s14905_s10  ;;  %v5755_v54 = vmul.f32 %v16808_v32, %v5732_v6 }
 0xd92   : > { %v16812_v52 = vpop.eup %14438 }
 0xd93   : > { %5771 = vrot.lane.b32.xlu0 %v5755_v54, %s14905_s10  ;;  %v5758_v59 = vmul.f32 %v16812_v52, %v5738_v11 }
 0xd94   : > { %v16816_v13 = vpop.eup %14440 }
 0xd95   : > { %5777 = vrot.lane.b32.xlu1 %v5758_v59, %s14905_s10  ;;  %v5757_v14 = vmul.f32 %v16816_v13, %v5736_v25 }
 0xd96   : > { %v16819_v61 = vpop.eup %14442 }
 0xd97   : > { %v5760_v35 = vmul.f32 %v16819_v61, %v5742_v47  ;;  %5775 = vrot.lane.b32.xlu0 %v5757_v14, %s14905_s10 }
 0xd98   : > { %v16823_v50 = vpop.eup %14444 }
 0xd99   : > { %5781 = vrot.lane.b32.xlu1 %v5760_v35, %s14905_s10  ;;  %v5759_v49 = vmul.f32 %v16823_v50, %v5740_v36 }
 0xd9a   : > { %v16828_v38 = vpop.eup %14446 }
 0xd9b   : > { %v5762_v42 = vmul.f32 %v16828_v38, %v5746_v27  ;;  %5779 = vrot.lane.b32.xlu0 %v5759_v49, %s14905_s10 }
 0xd9c   : > { %v16831_v43 = vpop.eup %14448 }
 0xd9d   : > { %5785 = vrot.lane.b32.xlu1 %v5762_v42, %s14905_s10  ;;  %v5761_v56 = vmul.f32 %v16831_v43, %v5744_v55 }
 0xd9f   : > { %5783 = vrot.lane.b32.xlu0 %v5761_v56, %s14905_s10 }
 0xe03   : > { %v5774_v30 = vpop.permute.xlu1 %5773 }
 0xe04   : > { %v5796_v16 = vadd.f32 %v5774_v30, %v16769_v5 }
 0xe05   : > { %v5772_v29 = vpop.permute.xlu0 %5771 }
 0xe06   : > { %14450 = vtanh.f32 %v5796_v16  ;;  %v5795_v7 = vadd.f32 %v5772_v29, %v16775_v53 }
 0xe07   : > { %v5778_v34 = vpop.permute.xlu1 %5777 }
 0xe08   : > { %14452 = vtanh.f32 %v5795_v7  ;;  %v5798_v23 = vadd.f32 %v5778_v34, %v16779_v9 }
 0xe09   : > { %v5776_v41 = vpop.permute.xlu0 %5775 }
 0xe0a   : > { %14454 = vtanh.f32 %v5798_v23  ;;  %v5797_v4 = vadd.f32 %v5776_v41, %v16785_v28 }
 0xe0b   : > { %v5782_v37 = vpop.permute.xlu1 %5781 }
 0xe0c   : > { %v5800_v40 = vadd.f32 %v5782_v37, %v16787_v12  ;;  %14456 = vtanh.f32 %v5797_v4 }
 0xe0d   : > { %v5780_v63 = vpop.permute.xlu0 %5779 }
 0xe0e   : > { %14458 = vtanh.f32 %v5800_v40  ;;  %v5799_v5 = vadd.f32 %v5780_v63, %v16793_v48  ;;  %v16912_v63 = vld [vmem:[%s15027_s28 + $0x8] sm:$0xff] }
 0xe0f   : > { %v5786_v2 = vpop.permute.xlu1 %5785 }
 0xe10   : > { %v5802_v60 = vadd.f32 %v5786_v2, %v16797_v44  ;;  %14460 = vtanh.f32 %v5799_v5  ;;  %v16917_v5 = vld [vmem:[%s15027_s28 + $0x10] sm:$0xff] }
 0xe11   : > { %v5784_v53 = vpop.permute.xlu0 %5783 }
 0xe12   : > { %14462 = vtanh.f32 %v5802_v60  ;;  %v5801_v9 = vadd.f32 %v5784_v53, %v16801_v20 }
 0xe13   : > { %v14451_v0 = vpop.eup %14450 }
 0xe14   : > { %v5812_v62 = vsub.f32 %v16518_v3, %v14451_v0  ;;  %14464 = vtanh.f32 %v5801_v9 }
 0xe15   : > { %v14453_v28 = vpop.eup %14452 }
 0xe16   : > { %5829 = vrot.lane.b32.xlu1 %v5812_v62, %s14907_s13  ;;  %v5811_v12 = vsub.f32 %v16520_v39, %v14453_v28 }
 0xe17   : > { %v14455_v6 = vpop.eup %14454 }
 0xe18   : > { %5827 = vrot.lane.b32.xlu0 %v5811_v12, %s14907_s13  ;;  %v5814_v48 = vsub.f32 %v16524_v51, %v14455_v6  ;;  %v16940_v12 = vld [vmem:[%s15027_s28 + $0x30] sm:$0xff] }
 0xe19   : > { %v14457_v44 = vpop.eup %14456 }
 0xe1a   : > { %5833 = vrot.lane.b32.xlu1 %v5814_v48, %s14907_s13  ;;  %v5813_v45 = vsub.f32 %v16530_v17, %v14457_v44  ;;  %v16956_v48 = vld [vmem:[%s15027_s28 + $0x80] sm:$0xff] }
 0xe1b   : > { %v14459_v21 = vpop.eup %14458 }
 0xe1c   : > { %v5816_v20 = vsub.f32 %v16532_v57, %v14459_v21  ;;  %5831 = vrot.lane.b32.xlu0 %v5813_v45, %s14907_s13  ;;  %v16971_v45 = vld [vmem:[%s15027_s28 + $0x88] sm:$0xff] }
 0xe1d   : > { %v14461_v3 = vpop.eup %14460 }
 0xe1e   : > { %5837 = vrot.lane.b32.xlu1 %v5816_v20, %s14907_s13  ;;  %v5815_v39 = vsub.f32 %v16538_v24, %v14461_v3  ;;  %v16976_v20 = vld [vmem:[%s15027_s28 + $0x90] sm:$0xff] }
 0xe1f   : > { %v14463_v26 = vpop.eup %14462 }
 0xe20   : > { %v5818_v11 = vsub.f32 %v16540_v10, %v14463_v26  ;;  %5835 = vrot.lane.b32.xlu0 %v5815_v39, %s14907_s13  ;;  %v16994_v39 = vld [vmem:[%s18667_s3 + $0x10] sm:$0xff] }
 0xe21   : > { %v14465_v51 = vpop.eup %14464 }
 0xe22   : > { %5841 = vrot.lane.b32.xlu1 %v5818_v11, %s14907_s13  ;;  %v5817_v18 = vsub.f32 %v16546_v1, %v14465_v51  ;;  %v16998_v11 = vld [vmem:[%s15027_s28 + $0x98] sm:$0xff] }
 0xe24   : > { %5839 = vrot.lane.b32.xlu0 %v5817_v18, %s14907_s13  ;;  %v17015_v18 = vld [vmem:[%s15027_s28 + $0x68] sm:$0xff] }
 0xe25   : > { %18995 = vst [vmem:[#allocation37_spill] sm:$0xff] %v17015_v18 }
 0xe88   : > { %v5830_v17 = vpop.permute.xlu1 %5829 }
 0xe89   : > { %v5852_v57 = vmul.f32 %v16805_v46, %v5830_v17  ;;  %v17022_v17 = vld [vmem:[%s18667_s3 + $0x8] sm:$0xff] }
 0xe8a   : > { %v5828_v25 = vpop.permute.xlu0 %5827  ;;  %18996 = vst [vmem:[#allocation38_spill] sm:$0xff] %v17022_v17 }
 0xe8b   : > { %v5851_v54 = vmul.f32 %v16808_v32, %v5828_v25  ;;  %5869 = vrot.lane.b32.xlu1 %v5852_v57, %s14906_s9  ;;  %v17026_v57 = vld [vmem:[%s15027_s28 + $0x70] sm:$0xff]  ;;  %v17032_v25 = vld [vmem:[%s15027_s28 + $0xa8] sm:$0xff] }
 0xe8c   : > { %v5834_v24 = vpop.permute.xlu1 %5833  ;;  %18997 = vst [vmem:[#allocation39_spill] sm:$0xff] %v17026_v57  ;;  %18998 = vst [vmem:[#allocation5_spill] sm:$0xff] %v17032_v25 }
 0xe8d   : > { %v5854_v10 = vmul.f32 %v16812_v52, %v5834_v24  ;;  %5867 = vrot.lane.b32.xlu0 %v5851_v54, %s14906_s9  ;;  %v17039_v54 = vld [vmem:[%s18667_s3] sm:$0xff]  ;;  %v17043_v24 = vld [vmem:[%s15027_s28 + $0xb0] sm:$0xff] }
 0xe8e   : > { %v5832_v59 = vpop.permute.xlu0 %5831  ;;  %18999 = vst [vmem:[#allocation22_spill] sm:$0xff] %v17039_v54  ;;  %19000 = vst [vmem:[#allocation6_spill] sm:$0xff] %v17043_v24 }
 0xe8f   : > { %5873 = vrot.lane.b32.xlu1 %v5854_v10, %s14906_s9  ;;  %v5853_v1 = vmul.f32 %v16816_v13, %v5832_v59  ;;  %v17049_v10 = vld [vmem:[%s15027_s28 + $0x78] sm:$0xff] }
 0xe90   : > { %v5838_v47 = vpop.permute.xlu1 %5837  ;;  %19001 = vst [vmem:[#allocation9_spill] sm:$0xff] %v17049_v10  ;;  %v17056_v59 = vld [vmem:[%s18667_s3 + $0x58] sm:$0xff] }
 0xe91   : > { %v5856_v36 = vmul.f32 %v16819_v61, %v5838_v47  ;;  %5871 = vrot.lane.b32.xlu0 %v5853_v1, %s14906_s9  ;;  %19002 = vst [vmem:[#allocation21_spill] sm:$0xff] %v17056_v59  ;;  %v17060_v1 = vld [vmem:[%s15027_s28 + $0xc0] sm:$0xff]  ;;  %v17065_v47 = vld [vmem:[%s15027_s28 + $0xb8] sm:$0xff] }
 0xe92   : > { %v5836_v46 = vpop.permute.xlu0 %5835  ;;  %19003 = vst [vmem:[#allocation10_spill] sm:$0xff] %v17060_v1  ;;  %19004 = vst [vmem:[#allocation7_spill] sm:$0xff] %v17065_v47 }
 0xe93   : > { %5877 = vrot.lane.b32.xlu1 %v5856_v36, %s14906_s9  ;;  %v5855_v32 = vmul.f32 %v16823_v50, %v5836_v46  ;;  %v17070_v36 = vld [vmem:[%s15027_s28 + $0xc8] sm:$0xff]  ;;  %v17075_v46 = vld [vmem:[%s15027_s28 + $0xd0] sm:$0xff] }
 0xe94   : > { %v5842_v14 = vpop.permute.xlu1 %5841  ;;  %19005 = vst [vmem:[#allocation23_spill] sm:$0xff] %v17070_v36  ;;  %19006 = vst [vmem:[#allocation8_spill] sm:$0xff] %v17075_v46 }
 0xe95   : > { %v5858_v52 = vmul.f32 %v16828_v38, %v5842_v14  ;;  %5875 = vrot.lane.b32.xlu0 %v5855_v32, %s14906_s9  ;;  %v17083_v32 = vld [vmem:[%s18667_s3 + $0x30] sm:$0xff]  ;;  %v17088_v14 = vld [vmem:[%s15027_s28 + $0xd8] sm:$0xff] }
 0xe96   : > { %v5840_v35 = vpop.permute.xlu0 %5839  ;;  %19007 = vst [vmem:[#allocation12_spill] sm:$0xff] %v17083_v32  ;;  %19008 = vst [vmem:[#allocation27_spill] sm:$0xff] %v17088_v14 }
 0xe97   : > { %5881 = vrot.lane.b32.xlu1 %v5858_v52, %s14906_s9  ;;  %v5857_v13 = vmul.f32 %v16831_v43, %v5840_v35  ;;  %v17095_v52 = vld [vmem:[%s18667_s3 + $0x28] sm:$0xff]  ;;  %v17099_v35 = vld [vmem:[%s15027_s28 + $0xe0] sm:$0xff] }
 0xe98   : > { %19009 = vst [vmem:[#allocation13_spill] sm:$0xff] %v17095_v52  ;;  %19010 = vst [vmem:[#allocation11_spill] sm:$0xff] %v17099_v35 }
 0xe99   : > { %5879 = vrot.lane.b32.xlu0 %v5857_v13, %s14906_s9  ;;  %v17107_v13 = vld [vmem:[%s18667_s3 + $0x20] sm:$0xff] }
 0xe9a   : > { %19011 = vst [vmem:[#allocation14_spill] sm:$0xff] %v17107_v13 }
 0xefd   : > { %v5870_v61 = vpop.permute.xlu1 %5869 }
 0xefe   : > { %v16877_v49 = vadd.f32 %v14451_v0, %v5870_v61  ;;  %v16924_v0 = vld [vmem:[%s15027_s28 + $0x18] sm:$0xff]  ;;  %v17112_v61 = vld [vmem:[%s15027_s28 + $0xe8] sm:$0xff] }
 0xeff   : > { %v5868_v27 = vpop.permute.xlu0 %5867  ;;  %19012 = vst [vmem:[#allocation15_spill] sm:$0xff] %v17112_v61 }
 0xf00   : > { %v16879_v42 = vadd.f32 %v14453_v28, %v5868_v27  ;;  %5909 = vrot.lane.b32.xlu1 %v16877_v49, %s14905_s10  ;;  %v16933_v28 = vld [vmem:[%s15027_s28 + $0x28] sm:$0xff]  ;;  %v17119_v27 = vld [vmem:[%s18667_s3 + $0x78] sm:$0xff] }
 0xf01   : > { %v5874_v50 = vpop.permute.xlu1 %5873  ;;  %19013 = vst [vmem:[#allocation24_spill] sm:$0xff] %v17119_v27 }
 0xf02   : > { %v16883_v38 = vadd.f32 %v14455_v6, %v5874_v50  ;;  %5907 = vrot.lane.b32.xlu0 %v16879_v42, %s14905_s10  ;;  %v16951_v6 = vld [vmem:[%s15027_s28 + $0x38] sm:$0xff]  ;;  %v17123_v50 = vld [vmem:[%s15027_s28 + $0xf0] sm:$0xff] }
 0xf03   : > { %v5872_v55 = vpop.permute.xlu0 %5871  ;;  %19014 = vst [vmem:[#allocation16_spill] sm:$0xff] %v17123_v50 }
 0xf04   : > { %5913 = vrot.lane.b32.xlu1 %v16883_v38, %s14905_s10  ;;  %v16889_v43 = vadd.f32 %v14457_v44, %v5872_v55  ;;  %v16961_v44 = vld [vmem:[%s15027_s28 + $0x48] sm:$0xff]  ;;  %v17128_v55 = vld [vmem:[%s15027_s28 + $0xf8] sm:$0xff] }
 0xf05   : > { %v5878_v56 = vpop.permute.xlu1 %5877  ;;  %19015 = vst [vmem:[#allocation25_spill] sm:$0xff] %v17128_v55 }
 0xf06   : > { %v16891_v30 = vadd.f32 %v14459_v21, %v5878_v56  ;;  %5911 = vrot.lane.b32.xlu0 %v16889_v43, %s14905_s10  ;;  %v16966_v21 = vld [vmem:[%s15027_s28 + $0x50] sm:$0xff] }
 0xf07   : > { %v5876_v16 = vpop.permute.xlu0 %5875 }
 0xf08   : > { %5917 = vrot.lane.b32.xlu1 %v16891_v30, %s14905_s10  ;;  %v16897_v29 = vadd.f32 %v14461_v3, %v5876_v16  ;;  %v16981_v3 = vld [vmem:[%s15027_s28 + $0x58] sm:$0xff]  ;;  %v17135_v16 = vld [vmem:[%s18669_s5] ss:$0 sm:$0xff] }
 0xf09   : > { %v5882_v7 = vpop.permute.xlu1 %5881  ;;  %19016 = vst [vmem:[#allocation17_spill] sm:$0xff] %v17135_v16 }
 0xf0a   : > { %v16899_v34 = vadd.f32 %v14463_v26, %v5882_v7  ;;  %5915 = vrot.lane.b32.xlu0 %v16897_v29, %s14905_s10  ;;  %v16987_v26 = vld [vmem:[%s15027_s28 + $0x60] sm:$0xff] }
 0xf0b   : > { %v5880_v23 = vpop.permute.xlu0 %5879 }
 0xf0c   : > { %5921 = vrot.lane.b32.xlu1 %v16899_v34, %s14905_s10  ;;  %v16905_v41 = vadd.f32 %v14465_v51, %v5880_v23  ;;  %v17009_v51 = vld [vmem:[%s15027_s28 + $0xa0] sm:$0xff] }
 0xf0e   : > { %5919 = vrot.lane.b32.xlu0 %v16905_v41, %s14905_s10 }
 0xf72   : > { %v5910_v4 = vpop.permute.xlu1 %5909 }
 0xf73   : > { %13594 = vmatprep.subr.mxu0 %v5910_v4 }
 0xf74   : > { %13595 = vmatpush3.msra.mxu0 %v5910_v4  ;;  %v5908_v37 = vpop.permute.xlu0 %5907 }
 0xf75   : > { %13582 = vmatprep.mubr.msk.f32.mxu1 %vm381_vm1, %v5908_v37  ;;  %13596 = vmatprep.subr.mxu0 %v5908_v37 }
 0xf76   : > { %v5914_v40 = vpop.permute.xlu1 %5913  ;;  %13583 = vmatmul.mubr.msk.f32.vlgmr.msra.gmra.mxu1 %vm381_vm1, %v5910_v4  ;;  %13597 = vmatpush3.msra.mxu0 %v5908_v37 }
 0xf77   : > { %13610 = vmatprep.subr.mxu1 %v5914_v40  ;;  %13599 = vmatmul.mubr.msk.f32.vlgmr.msra.gmra.mxu0 %vm511_vm0, %v16912_v63 }
 0xf78   : > { %13611 = vmatpush3.msra.mxu1 %v5914_v40  ;;  %13601 = vmatprep.mubr.msk.f32.mxu0 %vm511_vm0, %v16917_v5  ;;  %v5912_v2 = vpop.permute.xlu0 %5911 }
 0xf79   : > { %13585 = vmatprep.mubr.msk.f32.mxu1 %vm381_vm1, %v5912_v2  ;;  %13612 = vmatprep.subr.mxu1 %v5912_v2 }
 0xf7a   : > { %v5918_v60 = vpop.permute.xlu1 %5917  ;;  %13586 = vmatmul.mubr.msk.f32.gmra.mxu1 %vm381_vm1, %v5914_v40 }
 0xf7b   : > { %13626 = vmatprep.subr.mxu0 %v5918_v60  ;;  %13613 = vmatpush3.msra.mxu1 %v5912_v2 }
 0xf7c   : > { %13627 = vmatpush3.msra.mxu0 %v5918_v60  ;;  %v5916_v53 = vpop.permute.xlu0 %5915 }
 0xf7d   : > { %13602 = vmatmul.mubr.msk.f32.gmra.mxu0 %vm511_vm0, %v16924_v0  ;;  %13588 = vmatprep.mubr.msk.f32.mxu1 %vm381_vm1, %v5916_v53 }
 0xf7e   : > { %13628 = vmatprep.subr.mxu0 %v5916_v53  ;;  %v5922_v9 = vpop.permute.xlu1 %5921  ;;  %13589 = vmatmul.mubr.msk.f32.gmra.mxu1 %vm381_vm1, %v5918_v60 }
 0xf7f   : > { %13629 = vmatpush3.msra.mxu0 %v5916_v53  ;;  %13642 = vmatprep.subr.mxu1 %v5922_v9 }
 0xf80   : > { %13604 = vmatprep.mubr.msk.f32.mxu0 %vm511_vm0, %v16563_v15  ;;  %v5920_v62 = vpop.permute.xlu0 %5919  ;;  %13658 = vmatprep.subr.mxu0 %v16572_v19  ;;  %v16946_v15 = vld [vmem:[%s15027_s28 + $0x40] sm:$0xff] }
 0xf81   : > { %13605 = vmatmul.mubr.msk.f32.gmra.mxu0 %vm511_vm0, %v16933_v28  ;;  %13591 = vmatprep.mubr.msk.f32.mxu1 %vm381_vm1, %v5920_v62 }
 0xf82   : > { %13607 = vmatprep.mubr.msk.f32.mxu0 %vm511_vm0, %v16940_v12  ;;  %13592 = vmatmul.mubr.msk.f32.gmra.mxu1 %vm381_vm1, %v5922_v9 }
 0xf83   : > { %13614 = vmatprep.mubr.msk.f32.mxu1 %vm511_vm0, %v16946_v15 }
 0xf85   : > { %13608 = vmatmul.mubr.msk.f32.gmra.mxu0 %vm511_vm0, %v16951_v6 }
 0xf86   : > { %13630 = vmatprep.mubr.msk.f32.mxu0 %vm511_vm0, %v16956_v48  ;;  %13615 = vmatmul.mubr.msk.f32.vlgmr.msra.gmra.mxu1 %vm511_vm0, %v16961_v44 }
 0xf87   : > { %13643 = vmatpush3.msra.mxu1 %v5922_v9  ;;  %13617 = vmatprep.mubr.msk.f32.mxu1 %vm511_vm0, %v16966_v21 }
 0xf88   : > { %13644 = vmatprep.subr.mxu1 %v5920_v62 }
 0xf89   : > { %13631 = vmatmul.mubr.msk.f32.vlgmr.msra.gmra.mxu0 %vm511_vm0, %v16971_v45  ;;  %13645 = vmatpush3.msra.mxu1 %v5920_v62  ;;  %v17156_v62 = vld [vmem:[%s18667_s3 + $0x50] sm:$0xff] }
 0xf8a   : > { %13633 = vmatprep.mubr.msk.f32.mxu0 %vm511_vm0, %v16976_v20  ;;  %13618 = vmatmul.mubr.msk.f32.gmra.mxu1 %vm511_vm0, %v16981_v3  ;;  %19017 = vst [vmem:[#allocation26_spill] sm:$0xff] %v17156_v62 }
 0xf8b   : > { %13659 = vmatpush3.msra.mxu0 %v16572_v19  ;;  %13620 = vmatprep.mubr.msk.f32.mxu1 %vm511_vm0, %v16987_v26  ;;  %v17005_v19 = vld [vmem:[%s18667_s3 + $0x38] sm:$0xff] }
 0xf8c   : > { %13660 = vmatprep.subr.mxu0 %v16994_v39  ;;  %13678 = vmatprep.subr.mxu1 %v17005_v19 }
 0xf8d   : > { %13634 = vmatmul.mubr.msk.f32.gmra.mxu0 %vm511_vm0, %v16998_v11 }
 0xf8e   : > { %13636 = vmatprep.mubr.msk.f32.mxu0 %vm511_vm0, %v17009_v51  ;;  %13661 = vmatpush3.msra.mxu0 %v16994_v39 }
 0xf8f   : > { %13621 = vmatmul.mubr.msk.f32.gmra.mxu1 %vm511_vm0, %v17015_v18  ;;  %13662 = vmatprep.subr.mxu0 %v17022_v17 }
 0xf90   : > { %13623 = vmatprep.mubr.msk.f32.mxu1 %vm511_vm0, %v17026_v57  ;;  %13663 = vmatpush3.msra.mxu0 %v17022_v17  ;;  %v17276_v17 = vld [vmem:[%s15459_s14 + $0x28] sm:$0xff] }
 0xf91   : > { %13637 = vmatmul.mubr.msk.f32.gmra.mxu0 %vm511_vm0, %v17032_v25  ;;  %13664 = vmatprep.subr.mxu0 %v17039_v54 }
 0xf92   : > { %13639 = vmatprep.mubr.msk.f32.mxu0 %vm511_vm0, %v17043_v24  ;;  %13665 = vmatpush3.msra.mxu0 %v17039_v54  ;;  %v17272_v24 = vld [vmem:[%s15459_s14 + $0x18] sm:$0xff] }
 0xf93   : > { %13624 = vmatmul.mubr.msk.f32.gmra.mxu1 %vm511_vm0, %v17049_v10  ;;  %13698 = vmatprep.subr.mxu0 %v17056_v59 }
 0xf94   : > { %13646 = vmatprep.mubr.msk.f32.mxu1 %vm511_vm0, %v17060_v1 }
 0xf95   : > { %13640 = vmatmul.mubr.msk.f32.gmra.mxu0 %vm511_vm0, %v17065_v47 }
 0xf97   : > { %13647 = vmatmul.mubr.msk.f32.vlgmr.msra.gmra.mxu1 %vm511_vm0, %v17070_v36 }
 0xf98   : > { %13649 = vmatprep.mubr.msk.f32.mxu1 %vm511_vm0, %v17075_v46  ;;  %13679 = vmatpush3.msra.mxu1 %v17005_v19 }
 0xf99   : > { %13680 = vmatprep.subr.mxu1 %v17083_v32 }
 0xf9a   : > { %13681 = vmatpush3.msra.mxu1 %v17083_v32 }
 0xf9b   : > { %13650 = vmatmul.mubr.msk.f32.gmra.mxu1 %vm511_vm0, %v17088_v14  ;;  %13682 = vmatprep.subr.mxu1 %v17095_v52 }
 0xf9c   : > { %13652 = vmatprep.mubr.msk.f32.mxu1 %vm511_vm0, %v17099_v35  ;;  %13683 = vmatpush3.msra.mxu1 %v17095_v52  ;;  %v17219_v35 = vld [vmem:[%s18667_s3 + $0x60] sm:$0xff] }
 0xf9d   : > { %13684 = vmatprep.subr.mxu1 %v17107_v13  ;;  %19022 = vst [vmem:[#allocation29_spill] sm:$0xff] %v17219_v35 }
 0xf9e   : > { %13685 = vmatpush3.msra.mxu1 %v17107_v13 }
 0xf9f   : > { %13653 = vmatmul.mubr.msk.f32.gmra.mxu1 %vm511_vm0, %v17112_v61  ;;  %13718 = vmatprep.subr.mxu1 %v17119_v27  ;;  %v17206_v61 = vld [vmem:[%s18667_s3 + $0x68] sm:$0xff] }
 0xfa0   : > { %13655 = vmatprep.mubr.msk.f32.mxu1 %vm511_vm0, %v17123_v50  ;;  %19021 = vst [vmem:[#allocation20_spill] sm:$0xff] %v17206_v61 }
 0xfa3   : > { %13656 = vmatmul.mubr.msk.f32.gmra.mxu1 %vm511_vm0, %v17128_v55 }
0x1036   : > { %v13584_v56 = vpop.f32.mrf.mxu1 }
0x1037   : > { %v17138_v7 = vadd.f32 %v17135_v16, %v13584_v56  ;;  %v13600_v23 = vpop.f32.mrf.mxu0 }
0x1038   : > { %v6005_v4 = vpop.f32.mrf.mxu1 }
0x1039   : > { %v17141_v37 = vadd.f32 %v17135_v16, %v6005_v4  ;;  %7086 = vrot.lane.b32.xlu1 %v17138_v7, %s14905_s10  ;;  %v6112_v40 = vpop.f32.mrf.mxu0 }
0x103a   : > { %13666 = vmatprep.mubr.msk.f32.mxu0 %vm381_vm1, %v6112_v40  ;;  %v13587_v2 = vpop.f32.mrf.mxu1  ;;  %v17168_v40 = vld [vmem:[%s18667_s3 + $0x48] sm:$0xff] }
0x103b   : > { %7084 = vrot.lane.b32.xlu0 %v17141_v37, %s14905_s10  ;;  %13667 = vmatmul.mubr.msk.f32.vlgmr.msra.gmra.mxu0 %vm381_vm1, %v13600_v23  ;;  %v17150_v60 = vadd.f32 %v17135_v16, %v13587_v2  ;;  %19018 = vst [vmem:[#allocation18_spill] sm:$0xff] %v17168_v40 }
0x103c   : > { %13699 = vmatpush3.msra.mxu0 %v17056_v59  ;;  %v6015_v53 = vpop.f32.mrf.mxu1 }
0x103d   : > { %v13603_v9 = vpop.f32.mrf.mxu0  ;;  %13700 = vmatprep.subr.mxu0 %v17156_v62  ;;  %v17160_v56 = vadd.f32 %v17135_v16, %v6015_v53  ;;  %7090 = vrot.lane.b32.xlu1 %v17150_v60, %s14905_s10 }
0x103e   : > { %13701 = vmatpush3.msra.mxu0 %v17156_v62  ;;  %v13590_v23 = vpop.f32.mrf.mxu1 }
0x103f   : > { %v6122_v4 = vpop.f32.mrf.mxu0  ;;  %13702 = vmatprep.subr.mxu0 %v17168_v40  ;;  %v17172_v2 = vadd.f32 %v17135_v16, %v13590_v23  ;;  %7088 = vrot.lane.b32.xlu0 %v17160_v56, %s14905_s10 }
0x1040   : > { %13686 = vmatprep.mubr.msk.f32.mxu1 %vm381_vm1, %v6122_v4  ;;  %v6025_v53 = vpop.f32.mrf.mxu1  ;;  %13703 = vmatpush3.msra.mxu0 %v17168_v40  ;;  %v17188_v4 = vld [vmem:[%s18667_s3 + $0x70] sm:$0xff] }
0x1041   : > { %v13606_v55 = vpop.f32.mrf.mxu0  ;;  %13687 = vmatmul.mubr.msk.f32.vlgmr.msra.gmra.mxu1 %vm381_vm1, %v13603_v9  ;;  %v17180_v62 = vadd.f32 %v17135_v16, %v6025_v53  ;;  %7094 = vrot.lane.b32.xlu1 %v17172_v2, %s14905_s10  ;;  %19019 = vst [vmem:[#allocation28_spill] sm:$0xff] %v17188_v4  ;;  %v17194_v9 = vld [vmem:[%s18667_s3 + $0x40] sm:$0xff] }
0x1042   : > { %13719 = vmatpush3.msra.mxu1 %v17119_v27  ;;  %v13593_v23 = vpop.f32.mrf.mxu1  ;;  %19020 = vst [vmem:[#allocation19_spill] sm:$0xff] %v17194_v9  ;;  %13704 = vmatprep.subr.mxu0 %v17194_v9 }
0x1043   : > { %v6132_v50 = vpop.f32.mrf.mxu0  ;;  %13720 = vmatprep.subr.mxu1 %v17188_v4  ;;  %v17198_v53 = vadd.f32 %v17135_v16, %v13593_v23  ;;  %7092 = vrot.lane.b32.xlu0 %v17180_v62, %s14905_s10 }
0x1044   : > { %13721 = vmatpush3.msra.mxu1 %v17188_v4  ;;  %v6035_v40 = vpop.f32.mrf.mxu1  ;;  %13705 = vmatpush3.msra.mxu0 %v17194_v9 }
0x1045   : > { %v13609_v27 = vpop.f32.mrf.mxu0  ;;  %13722 = vmatprep.subr.mxu1 %v17206_v61  ;;  %v17211_v13 = vadd.f32 %v17135_v16, %v6035_v40  ;;  %7098 = vrot.lane.b32.xlu1 %v17198_v53, %s14905_s10 }
0x1046   : > { %13723 = vmatpush3.msra.mxu1 %v17206_v61  ;;  %v13616_v23 = vpop.f32.mrf.mxu1  ;;  %13738 = vmatprep.subr.mxu0 %v16704_v31 }
0x1047   : > { %v6142_v4 = vpop.f32.mrf.mxu0  ;;  %13724 = vmatprep.subr.mxu1 %v17219_v35  ;;  %7096 = vrot.lane.b32.xlu0 %v17211_v13, %s14905_s10 }
0x1048   : > { %13725 = vmatpush3.msra.mxu1 %v17219_v35  ;;  %v6219_v40 = vpop.f32.mrf.mxu1 }
0x1049   : > { %v13632_v9 = vpop.f32.mrf.mxu0  ;;  %13669 = vmatprep.mubr.msk.f32.mxu0 %vm381_vm1, %v6219_v40 }
0x104a   : > { %v13619_v61 = vpop.f32.mrf.mxu1  ;;  %13670 = vmatmul.mubr.msk.f32.gmra.mxu0 %vm381_vm1, %v13616_v23 }
0x104b   : > { %v6326_v16 = vpop.f32.mrf.mxu0 }
0x104c   : > { %13672 = vmatprep.mubr.msk.f32.mxu0 %vm381_vm1, %v6326_v16  ;;  %v6229_v52 = vpop.f32.mrf.mxu1 }
0x104d   : > { %v13635_v14 = vpop.f32.mrf.mxu0  ;;  %13689 = vmatprep.mubr.msk.f32.mxu1 %vm381_vm1, %v6229_v52 }
0x104e   : > { %13690 = vmatmul.mubr.msk.f32.gmra.mxu1 %vm381_vm1, %v13619_v61  ;;  %13673 = vmatmul.mubr.msk.f32.gmra.mxu0 %vm381_vm1, %v13632_v9 }
0x104f   : > { %v13622_v32 = vpop.f32.mrf.mxu1  ;;  %v6336_v46 = vpop.f32.mrf.mxu0 }
0x1050   : > { %13692 = vmatprep.mubr.msk.f32.mxu1 %vm381_vm1, %v6336_v46 }
0x1051   : > { %v6239_v35 = vpop.f32.mrf.mxu1  ;;  %v13638_v16 = vpop.f32.mrf.mxu0 }
0x1052   : > { %13693 = vmatmul.mubr.msk.f32.gmra.mxu1 %vm381_vm1, %v13635_v14 }
0x1053   : > { %v13625_v40 = vpop.f32.mrf.mxu1  ;;  %v6346_v61 = vpop.f32.mrf.mxu0 }
0x1055   : > { %v6249_v23 = vpop.f32.mrf.mxu1  ;;  %v13641_v14 = vpop.f32.mrf.mxu0 }
0x1057   : > { %v13648_v36 = vpop.f32.mrf.mxu1 }
0x1059   : > { %v6433_v47 = vpop.f32.mrf.mxu1 }
0x105a   : > { %13675 = vmatprep.mubr.msk.f32.mxu0 %vm381_vm1, %v6433_v47 }
0x105b   : > { %v13651_v1 = vpop.f32.mrf.mxu1  ;;  %13676 = vmatmul.mubr.msk.f32.gmra.mxu0 %vm381_vm1, %v13648_v36 }
0x105c   : > { %13706 = vmatprep.mubr.msk.f32.mxu0 %vm381_vm1, %v6132_v50 }
0x105d   : > { %v6443_v52 = vpop.f32.mrf.mxu1 }
0x105e   : > { %13695 = vmatprep.mubr.msk.f32.mxu1 %vm381_vm1, %v6443_v52 }
0x105f   : > { %13696 = vmatmul.mubr.msk.f32.gmra.mxu1 %vm381_vm1, %v13651_v1  ;;  %13707 = vmatmul.mubr.msk.f32.vlgmr.msra.gmra.mxu0 %vm381_vm1, %v13606_v55  ;;  %v13654_v46 = vpop.f32.mrf.mxu1  ;;  %v6356_v1 = vpop.f32.mrf.mxu0 }
0x1060   : > { %13709 = vmatprep.mubr.msk.f32.mxu0 %vm381_vm1, %v6239_v35  ;;  %13726 = vmatprep.mubr.msk.f32.mxu1 %vm381_vm1, %v6142_v4 }
0x1061   : > { %v6453_v47 = vpop.f32.mrf.mxu1  ;;  %13739 = vmatpush3.msra.mxu0 %v16704_v31 }
0x1062   : > { %13740 = vmatprep.subr.mxu0 %v16730_v22 }
0x1063   : > { %13710 = vmatmul.mubr.msk.f32.gmra.mxu0 %vm381_vm1, %v13622_v32  ;;  %13727 = vmatmul.mubr.msk.f32.vlgmr.msra.gmra.mxu1 %vm381_vm1, %v13609_v27  ;;  %v13657_v36 = vpop.f32.mrf.mxu1 }
0x1064   : > { %13712 = vmatprep.mubr.msk.f32.mxu0 %vm381_vm1, %v6346_v61  ;;  %13729 = vmatprep.mubr.msk.f32.mxu1 %vm381_vm1, %v6249_v23 }
0x1065   : > { %13741 = vmatpush3.msra.mxu0 %v16730_v22  ;;  %v6463_v31 = vpop.f32.mrf.mxu1 }
0x1066   : > { %13742 = vmatprep.subr.mxu0 %v16741_v58 }
0x1067   : > { %13713 = vmatmul.mubr.msk.f32.gmra.mxu0 %vm381_vm1, %v13638_v16  ;;  %13730 = vmatmul.mubr.msk.f32.gmra.mxu1 %vm381_vm1, %v13625_v40 }
0x1068   : > { %13715 = vmatprep.mubr.msk.f32.mxu0 %vm381_vm1, %v6453_v47  ;;  %13732 = vmatprep.mubr.msk.f32.mxu1 %vm381_vm1, %v6356_v1 }
0x1069   : > { %13743 = vmatpush3.msra.mxu0 %v16741_v58 }
0x106a   : > { %13744 = vmatprep.subr.mxu0 %v16752_v8 }
0x106b   : > { %13716 = vmatmul.mubr.msk.f32.gmra.mxu0 %vm381_vm1, %v13654_v46  ;;  %13733 = vmatmul.mubr.msk.f32.gmra.mxu1 %vm381_vm1, %v13641_v14  ;;  %v17268_v46 = vld [vmem:[%s15459_s14] sm:$0xff] }
0x106c   : > { %13735 = vmatprep.mubr.msk.f32.mxu1 %vm381_vm1, %v6463_v31  ;;  %13745 = vmatpush3.msra.mxu0 %v16752_v8  ;;  %v17264_v8 = vld [vmem:[%s15459_s14 + $0x8] sm:$0xff]  ;;  %19024 = vst [vmem:[#allocation31_spill] sm:$0xff] %v17268_v46 }
0x106d   : > { %19023 = vst [vmem:[#allocation30_spill] sm:$0xff] %v17264_v8 }
0x106f   : > { %13736 = vmatmul.mubr.msk.f32.gmra.mxu1 %vm381_vm1, %v13657_v36 }
0x1070   : > { %13762 = vmatprep.mubr.msk.f32.mxu1 %vm511_vm0, %v16761_v33 }
0x10fb   : > { %v13668_v22 = vpop.f32.mrf.mxu0 }
0x10fc   : > { %v6602_v52 = vadd.f32 %v17264_v8, %v13668_v22 }
0x10fd   : > { %v6562_v58 = vpop.f32.mrf.mxu0 }
0x10fe   : > { %v6601_v14 = vadd.f32 %v17268_v46, %v6562_v58 }
0x1101   : > { %v13688_v32 = vpop.f32.mrf.mxu1 }
0x1102   : > { %v6739_v36 = vadd.f32 %v13688_v32, %v6602_v52  ;;  %v17282_v32 = vld [vmem:[%s15459_s14 + $0x10] sm:$0xff] }
0x1103   : > { %v6699_v35 = vpop.f32.mrf.mxu1  ;;  %19025 = vst [vmem:[#allocation32_spill] sm:$0xff] %v17282_v32 }
0x1104   : > { %v6738_v10 = vadd.f32 %v6699_v35, %v6601_v14  ;;  %v17286_v35 = vld [vmem:[%s15459_s14 + $0x20] sm:$0xff] }
0x1105   : > { %19026 = vst [vmem:[#allocation33_spill] sm:$0xff] %v17286_v35 }
0x110a   : > { %v13671_v27 = vpop.f32.mrf.mxu0 }
0x110b   : > { %v6604_v54 = vadd.f32 %v17272_v24, %v13671_v27 }
0x110c   : > { %v6572_v55 = vpop.f32.mrf.mxu0 }
0x110d   : > { %v6603_v52 = vadd.f32 %v17282_v32, %v6572_v55 }
0x110e   : > { %v13691_v50 = vpop.f32.mrf.mxu1  ;;  %v13674_v9 = vpop.f32.mrf.mxu0 }
0x110f   : > { %v6741_v57 = vadd.f32 %v13691_v50, %v6604_v54  ;;  %v6606_v58 = vadd.f32 %v17276_v17, %v13674_v9 }
0x1110   : > { %v6709_v4 = vpop.f32.mrf.mxu1  ;;  %v6582_v40 = vpop.f32.mrf.mxu0 }
0x1111   : > { %v6605_v27 = vadd.f32 %v17286_v35, %v6582_v40  ;;  %v17298_v35 = vld [vmem:[%s15459_s14 + $0x38] sm:$0xff] }
0x1112   : > { %v13694_v23 = vpop.f32.mrf.mxu1 }
0x1113   : > { %v6743_v9 = vadd.f32 %v13694_v23, %v6606_v58  ;;  %v17304_v58 = vld [vmem:[%s15459_s14 + $0x30] sm:$0xff] }
0x1114   : > { %v6719_v61 = vpop.f32.mrf.mxu1 }
0x1115   : > { %v6742_v40 = vadd.f32 %v6719_v61, %v6605_v27 }
0x111b   : > { %v13677_v16 = vpop.f32.mrf.mxu0 }
0x111d   : > { %v6592_v33 = vpop.f32.mrf.mxu0 }
0x111f   : > { %v13697_v47 = vpop.f32.mrf.mxu1  ;;  %v13708_v1 = vpop.f32.mrf.mxu0 }
0x1120   : > { %v6876_v22 = vadd.f32 %v13708_v1, %v6739_v36 }
0x1121   : > { %v6729_v31 = vpop.f32.mrf.mxu1  ;;  %v6836_v59 = vpop.f32.mrf.mxu0 }
0x1122   : > { %v6875_v46 = vadd.f32 %v6836_v59, %v6738_v10  ;;  %v6740_v10 = vadd.f32 %v6709_v4, %v6603_v52 }
0x1123   : > { %v13711_v8 = vpop.f32.mrf.mxu0  ;;  %v13728_v25 = vpop.f32.mrf.mxu1 }
0x1124   : > { %v17279_v18 = vadd.f32 %v13728_v25, %v6876_v22  ;;  %v6878_v36 = vadd.f32 %v13711_v8, %v6741_v57  ;;  %v6608_v57 = vadd.f32 %v17298_v35, %v13677_v16 }
0x1125   : > { %v6846_v14 = vpop.f32.mrf.mxu0  ;;  %v6973_v1 = vpop.f32.mrf.mxu1 }
0x1126   : > { %v7021_v54 = vadd.f32 %v17279_v18, %v17138_v7  ;;  %v17291_v50 = vadd.f32 %v6973_v1, %v6875_v46  ;;  %v6877_v8 = vadd.f32 %v6846_v14, %v6740_v10  ;;  %v6745_v1 = vadd.f32 %v13697_v47, %v6608_v57 }
0x1127   : > { %v13714_v25 = vpop.f32.mrf.mxu0  ;;  %v13731_v59 = vpop.f32.mrf.mxu1 }
0x1128   : > { %v11860_v22 = vmul.f32 -1.442695, %v7021_v54  ;;  %v7020_v55 = vadd.f32 %v17291_v50, %v17141_v37  ;;  %v17295_v32 = vadd.f32 %v13731_v59, %v6878_v36  ;;  %v6880_v52 = vadd.f32 %v13714_v25, %v6743_v9 }
0x1129   : > { %v6856_v7 = vpop.f32.mrf.mxu0  ;;  %v6983_v46 = vpop.f32.mrf.mxu1  ;;  %v6607_v37 = vadd.f32 %v17304_v58, %v6592_v33 }
0x112a   : > { %14466 = vpow2.f32 %v11860_v22  ;;  %v11859_v4 = vmul.f32 -1.442695, %v7020_v55  ;;  %v7023_v23 = vadd.f32 %v17295_v32, %v17150_v60  ;;  %v17307_v36 = vadd.f32 %v6983_v46, %v6877_v8 }
0x112b   : > { %v13717_v61 = vpop.f32.mrf.mxu0  ;;  %v13734_v27 = vpop.f32.mrf.mxu1  ;;  %v6879_v14 = vadd.f32 %v6856_v7, %v6742_v40  ;;  %v6744_v10 = vadd.f32 %v6729_v31, %v6607_v37 }
0x112c   : > { %14468 = vpow2.f32 %v11859_v4  ;;  %v11862_v16 = vmul.f32 -1.442695, %v7023_v23  ;;  %v17309_v54 = vadd.f32 %v13734_v27, %v6880_v52  ;;  %v7022_v25 = vadd.f32 %v17307_v36, %v17160_v56 }
0x112d   : > { %v6866_v59 = vpop.f32.mrf.mxu0  ;;  %v6993_v60 = vpop.f32.mrf.mxu1  ;;  %v6882_v9 = vadd.f32 %v13717_v61, %v6745_v1 }
0x112e   : > { %14470 = vpow2.f32 %v11862_v16  ;;  %v7025_v33 = vadd.f32 %v17309_v54, %v17172_v2  ;;  %v17315_v47 = vadd.f32 %v6993_v60, %v6879_v14  ;;  %v11861_v22 = vmul.f32 -1.442695, %v7022_v25  ;;  %v7087_v60 = vpop.permute.xlu1 %7086 }
0x112f   : > { %v13737_v55 = vpop.f32.mrf.mxu1  ;;  %v6881_v8 = vadd.f32 %v6866_v59, %v6744_v10 }
0x1130   : > { %v11864_v57 = vmul.f32 -1.442695, %v7025_v33  ;;  %v7024_v40 = vadd.f32 %v17315_v47, %v17180_v62  ;;  %v17319_v31 = vadd.f32 %v13737_v55, %v6882_v9  ;;  %14472 = vpow2.f32 %v11861_v22  ;;  %v7085_v33 = vpop.permute.xlu0 %7084 }
0x1131   : > { %v7003_v56 = vpop.f32.mrf.mxu1 }
0x1132   : > { %14474 = vpow2.f32 %v11864_v57  ;;  %v11863_v7 = vmul.f32 -1.442695, %v7024_v40  ;;  %v7027_v46 = vadd.f32 %v17319_v31, %v17198_v53  ;;  %v17323_v4 = vadd.f32 %v7003_v56, %v6881_v8  ;;  %v7091_v40 = vpop.permute.xlu1 %7090 }
0x1134   : > { %14476 = vpow2.f32 %v11863_v7  ;;  %v11866_v2 = vmul.f32 -1.442695, %v7027_v46  ;;  %v7026_v52 = vadd.f32 %v17323_v4, %v17211_v13  ;;  %v7089_v46 = vpop.permute.xlu0 %7088 }
0x1136   : > { %14478 = vpow2.f32 %v11866_v2  ;;  %v11865_v23 = vmul.f32 -1.442695, %v7026_v52 }
0x1137   : > { %v14467_v37 = vpop.eup %14466 }
0x1138   : > { %v7053_v62 = vadd.f32 1.0, %v14467_v37  ;;  %14480 = vpow2.f32 %v11865_v23  ;;  %v7095_v37 = vpop.permute.xlu1 %7094 }
0x1139   : > { %v14469_v1 = vpop.eup %14468 }
0x113a   : > { %14482 = vrcp.f32 %v7053_v62  ;;  %v7052_v61 = vadd.f32 1.0, %v14469_v1 }
0x113b   : > { %v14471_v27 = vpop.eup %14470 }
0x113c   : > { %14484 = vrcp.f32 %v7052_v61  ;;  %v7055_v16 = vadd.f32 1.0, %v14471_v27  ;;  %v7093_v61 = vpop.permute.xlu0 %7092 }
0x113d   : > { %v14473_v14 = vpop.eup %14472 }
0x113e   : > { %14486 = vrcp.f32 %v7055_v16  ;;  %v7054_v10 = vadd.f32 1.0, %v14473_v14 }
0x113f   : > { %v14475_v53 = vpop.eup %14474 }
0x1140   : > { %v7057_v25 = vadd.f32 1.0, %v14475_v53  ;;  %14488 = vrcp.f32 %v7054_v10 }
0x1141   : > { %v14477_v59 = vpop.eup %14476 }
0x1142   : > { %14490 = vrcp.f32 %v7057_v25  ;;  %v7056_v13 = vadd.f32 1.0, %v14477_v59  ;;  %v7099_v25 = vpop.permute.xlu1 %7098 }
0x1143   : > { %v14479_v9 = vpop.eup %14478 }
0x1144   : > { %14492 = vrcp.f32 %v7056_v13  ;;  %v7059_v22 = vadd.f32 1.0, %v14479_v9  ;;  %v7097_v13 = vpop.permute.xlu0 %7096 }
0x1145   : > { %v14481_v55 = vpop.eup %14480 }
0x1146   : > { %14494 = vrcp.f32 %v7059_v22  ;;  %v7058_v57 = vadd.f32 1.0, %v14481_v55 }
0x1147   : > { %v17327_v8 = vpop.eup %14482 }
0x1148   : > { %14496 = vrcp.f32 %v7058_v57  ;;  %v7109_v56 = vmul.f32 %v17327_v8, %v7087_v60 }
0x1149   : > { %v17330_v7 = vpop.eup %14484 }
0x114a   : > { %7126 = vrot.lane.b32.xlu1 %v7109_v56, %s14905_s10  ;;  %v7108_v2 = vmul.f32 %v17330_v7, %v7085_v33 }
0x114b   : > { %v17334_v52 = vpop.eup %14486 }
0x114c   : > { %7124 = vrot.lane.b32.xlu0 %v7108_v2, %s14905_s10  ;;  %v7111_v23 = vmul.f32 %v17334_v52, %v7091_v40 }
0x114d   : > { %v17338_v62 = vpop.eup %14488 }
0x114e   : > { %7130 = vrot.lane.b32.xlu1 %v7111_v23, %s14905_s10  ;;  %v7110_v27 = vmul.f32 %v17338_v62, %v7089_v46 }
0x114f   : > { %v17341_v1 = vpop.eup %14490 }
0x1150   : > { %v7113_v16 = vmul.f32 %v17341_v1, %v7095_v37  ;;  %7128 = vrot.lane.b32.xlu0 %v7110_v27, %s14905_s10 }
0x1151   : > { %v17345_v14 = vpop.eup %14492 }
0x1152   : > { %7134 = vrot.lane.b32.xlu1 %v7113_v16, %s14905_s10  ;;  %v7112_v53 = vmul.f32 %v17345_v14, %v7093_v61 }
0x1153   : > { %v17350_v10 = vpop.eup %14494 }
0x1154   : > { %v7115_v59 = vmul.f32 %v17350_v10, %v7099_v25  ;;  %7132 = vrot.lane.b32.xlu0 %v7112_v53, %s14905_s10 }
0x1155   : > { %v17353_v60 = vpop.eup %14496 }
0x1156   : > { %7138 = vrot.lane.b32.xlu1 %v7115_v59, %s14905_s10  ;;  %v7114_v9 = vmul.f32 %v17353_v60, %v7097_v13 }
0x1158   : > { %7136 = vrot.lane.b32.xlu0 %v7114_v9, %s14905_s10 }
0x11bc   : > { %v7127_v33 = vpop.permute.xlu1 %7126 }
0x11bd   : > { %v7149_v22 = vadd.f32 %v7127_v33, %v17279_v18 }
0x11be   : > { %v7125_v55 = vpop.permute.xlu0 %7124 }
0x11bf   : > { %14498 = vtanh.f32 %v7149_v22  ;;  %v7148_v57 = vadd.f32 %v7125_v55, %v17291_v50 }
0x11c0   : > { %v7131_v40 = vpop.permute.xlu1 %7130 }
0x11c1   : > { %14500 = vtanh.f32 %v7148_v57  ;;  %v7151_v56 = vadd.f32 %v7131_v40, %v17295_v32 }
0x11c2   : > { %v7129_v46 = vpop.permute.xlu0 %7128 }
0x11c3   : > { %14502 = vtanh.f32 %v7151_v56  ;;  %v7150_v2 = vadd.f32 %v7129_v46, %v17307_v36 }
0x11c4   : > { %v7135_v23 = vpop.permute.xlu1 %7134 }
0x11c5   : > { %v7153_v37 = vadd.f32 %v7135_v23, %v17309_v54  ;;  %14504 = vtanh.f32 %v7150_v2 }
0x11c6   : > { %v7133_v61 = vpop.permute.xlu0 %7132 }
0x11c7   : > { %14506 = vtanh.f32 %v7153_v37  ;;  %v7152_v18 = vadd.f32 %v7133_v61, %v17315_v47 }
0x11c8   : > { %v7139_v27 = vpop.permute.xlu1 %7138 }
0x11c9   : > { %v7155_v16 = vadd.f32 %v7139_v27, %v17319_v31  ;;  %14508 = vtanh.f32 %v7152_v18 }
0x11ca   : > { %v7137_v50 = vpop.permute.xlu0 %7136 }
0x11cb   : > { %14510 = vtanh.f32 %v7155_v16  ;;  %v7154_v32 = vadd.f32 %v7137_v50, %v17323_v4 }
0x11cc   : > { %v14499_v53 = vpop.eup %14498 }
0x11cd   : > { %v7165_v25 = vsub.f32 %v16877_v49, %v14499_v53  ;;  %14512 = vtanh.f32 %v7154_v32 }
0x11ce   : > { %v14501_v36 = vpop.eup %14500 }
0x11cf   : > { %7182 = vrot.lane.b32.xlu1 %v7165_v25, %s14907_s13  ;;  %v7164_v54 = vsub.f32 %v16879_v42, %v14501_v36 }
0x11d0   : > { %v14503_v59 = vpop.eup %14502 }
0x11d1   : > { %7180 = vrot.lane.b32.xlu0 %v7164_v54, %s14907_s13  ;;  %v7167_v47 = vsub.f32 %v16883_v38, %v14503_v59 }
0x11d2   : > { %v14505_v31 = vpop.eup %14504 }
0x11d3   : > { %7186 = vrot.lane.b32.xlu1 %v7167_v47, %s14907_s13  ;;  %v7166_v9 = vsub.f32 %v16889_v43, %v14505_v31 }
0x11d4   : > { %v14507_v13 = vpop.eup %14506 }
0x11d5   : > { %v7169_v4 = vsub.f32 %v16891_v30, %v14507_v13  ;;  %7184 = vrot.lane.b32.xlu0 %v7166_v9, %s14907_s13 }
0x11d6   : > { %v14509_v49 = vpop.eup %14508 }
0x11d7   : > { %7190 = vrot.lane.b32.xlu1 %v7169_v4, %s14907_s13  ;;  %v7168_v42 = vsub.f32 %v16897_v29, %v14509_v49 }
0x11d8   : > { %v14511_v33 = vpop.eup %14510 }
0x11d9   : > { %v7171_v22 = vsub.f32 %v16899_v34, %v14511_v33  ;;  %7188 = vrot.lane.b32.xlu0 %v7168_v42, %s14907_s13 }
0x11da   : > { %v14513_v38 = vpop.eup %14512 }
0x11db   : > { %7194 = vrot.lane.b32.xlu1 %v7171_v22, %s14907_s13  ;;  %v7170_v55 = vsub.f32 %v16905_v41, %v14513_v38  ;;  %v19041_v22 = vld [vmem:[#allocation13_spill] sm:$0xff] }
0x11dd   : > { %7192 = vrot.lane.b32.xlu0 %v7170_v55, %s14907_s13  ;;  %v19043_v55 = vld [vmem:[#allocation14_spill] sm:$0xff] }
0x1241   : > { %v7183_v43 = vpop.permute.xlu1 %7182 }
0x1242   : > { %v7205_v30 = vmul.f32 %v17327_v8, %v7183_v43  ;;  %v19044_v43 = vld [vmem:[#allocation15_spill] sm:$0xff] }
0x1243   : > { %v7181_v57 = vpop.permute.xlu0 %7180 }
0x1244   : > { %v7204_v40 = vmul.f32 %v17330_v7, %v7181_v57  ;;  %7222 = vrot.lane.b32.xlu1 %v7205_v30, %s14906_s9  ;;  %v19046_v30 = vld [vmem:[#allocation16_spill] sm:$0xff]  ;;  %v19047_v57 = vld [vmem:[#allocation25_spill] sm:$0xff] }
0x1245   : > { %v7187_v29 = vpop.permute.xlu1 %7186 }
0x1246   : > { %v7207_v34 = vmul.f32 %v17334_v52, %v7187_v29  ;;  %7220 = vrot.lane.b32.xlu0 %v7204_v40, %s14906_s9  ;;  %v19048_v29 = vld [vmem:[#allocation17_spill] sm:$0xff] }
0x1247   : > { %v7185_v56 = vpop.permute.xlu0 %7184 }
0x1248   : > { %7226 = vrot.lane.b32.xlu1 %v7207_v34, %s14906_s9  ;;  %v7206_v41 = vmul.f32 %v17338_v62, %v7185_v56 }
0x1249   : > { %v7191_v46 = vpop.permute.xlu1 %7190 }
0x124a   : > { %v7209_v2 = vmul.f32 %v17341_v1, %v7191_v46  ;;  %7224 = vrot.lane.b32.xlu0 %v7206_v41, %s14906_s9 }
0x124b   : > { %v7189_v8 = vpop.permute.xlu0 %7188 }
0x124c   : > { %7230 = vrot.lane.b32.xlu1 %v7209_v2, %s14906_s9  ;;  %v7208_v7 = vmul.f32 %v17345_v14, %v7189_v8 }
0x124d   : > { %v7195_v23 = vpop.permute.xlu1 %7194 }
0x124e   : > { %v7211_v52 = vmul.f32 %v17350_v10, %v7195_v23  ;;  %7228 = vrot.lane.b32.xlu0 %v7208_v7, %s14906_s9 }
0x124f   : > { %v7193_v37 = vpop.permute.xlu0 %7192 }
0x1250   : > { %7234 = vrot.lane.b32.xlu1 %v7211_v52, %s14906_s9  ;;  %v7210_v62 = vmul.f32 %v17353_v60, %v7193_v37  ;;  %v19049_v37 = vld [vmem:[#allocation26_spill] sm:$0xff] }
0x1252   : > { %7232 = vrot.lane.b32.xlu0 %v7210_v62, %s14906_s9 }
0x12b6   : > { %v7223_v1 = vpop.permute.xlu1 %7222 }
0x12b7   : > { %v17399_v61 = vadd.f32 %v14499_v53, %v7223_v1 }
0x12b8   : > { %v7221_v18 = vpop.permute.xlu0 %7220 }
0x12b9   : > { %v17401_v27 = vadd.f32 %v14501_v36, %v7221_v18  ;;  %7262 = vrot.lane.b32.xlu1 %v17399_v61, %s14905_s10 }
0x12ba   : > { %v7227_v14 = vpop.permute.xlu1 %7226 }
0x12bb   : > { %v17405_v10 = vadd.f32 %v14503_v59, %v7227_v14  ;;  %7260 = vrot.lane.b32.xlu0 %v17401_v27, %s14905_s10  ;;  %v19050_v14 = vld [vmem:[#allocation18_spill] sm:$0xff] }
0x12bc   : > { %v7225_v16 = vpop.permute.xlu0 %7224 }
0x12bd   : > { %7266 = vrot.lane.b32.xlu1 %v17405_v10, %s14905_s10  ;;  %v17411_v60 = vadd.f32 %v14505_v31, %v7225_v16 }
0x12be   : > { %v7231_v50 = vpop.permute.xlu1 %7230 }
0x12bf   : > { %v17413_v53 = vadd.f32 %v14507_v13, %v7231_v50  ;;  %7264 = vrot.lane.b32.xlu0 %v17411_v60, %s14905_s10 }
0x12c0   : > { %v7229_v32 = vpop.permute.xlu0 %7228 }
0x12c1   : > { %7270 = vrot.lane.b32.xlu1 %v17413_v53, %s14905_s10  ;;  %v17419_v25 = vadd.f32 %v14509_v49, %v7229_v32 }
0x12c2   : > { %v7235_v36 = vpop.permute.xlu1 %7234 }
0x12c3   : > { %v17421_v54 = vadd.f32 %v14511_v33, %v7235_v36  ;;  %7268 = vrot.lane.b32.xlu0 %v17419_v25, %s14905_s10 }
0x12c4   : > { %v7233_v59 = vpop.permute.xlu0 %7232 }
0x12c5   : > { %7274 = vrot.lane.b32.xlu1 %v17421_v54, %s14905_s10  ;;  %v17427_v47 = vadd.f32 %v14513_v38, %v7233_v59  ;;  %v19042_v38 = vld [vmem:[#allocation11_spill] sm:$0xff] }
0x12c7   : > { %7272 = vrot.lane.b32.xlu0 %v17427_v47, %s14905_s10 }
0x132b   : > { %v7263_v31 = vpop.permute.xlu1 %7262 }
0x132c   : > { %13758 = vmatprep.subr.mxu1 %v7263_v31 }
0x132d   : > { %13759 = vmatpush3.msra.mxu1 %v7263_v31  ;;  %v7261_v13 = vpop.permute.xlu0 %7260 }
0x132e   : > { %13746 = vmatprep.mubr.msk.f32.mxu0 %vm381_vm1, %v7261_v13  ;;  %13760 = vmatprep.subr.mxu1 %v7261_v13 }
0x132f   : > { %v7267_v9 = vpop.permute.xlu1 %7266  ;;  %13747 = vmatmul.mubr.msk.f32.vlgmr.msra.gmra.mxu0 %vm381_vm1, %v7263_v31  ;;  %13761 = vmatpush3.msra.mxu1 %v7261_v13  ;;  %v19051_v13 = vld [vmem:[#allocation28_spill] sm:$0xff] }
0x1330   : > { %13774 = vmatprep.subr.mxu0 %v7267_v9  ;;  %13763 = vmatmul.mubr.msk.f32.vlgmr.msra.gmra.mxu1 %vm511_vm0, %v16912_v63 }
0x1331   : > { %13775 = vmatpush3.msra.mxu0 %v7267_v9  ;;  %13765 = vmatprep.mubr.msk.f32.mxu1 %vm511_vm0, %v16917_v5  ;;  %v7265_v4 = vpop.permute.xlu0 %7264  ;;  %v17444_v5 = vld [vmem:[%s15027_s28 + $0x20] sm:$0xff] }
0x1332   : > { %13749 = vmatprep.mubr.msk.f32.mxu0 %vm381_vm1, %v7265_v4  ;;  %13776 = vmatprep.subr.mxu0 %v7265_v4 }
0x1333   : > { %v7271_v49 = vpop.permute.xlu1 %7270  ;;  %13750 = vmatmul.mubr.msk.f32.gmra.mxu0 %vm381_vm1, %v7267_v9  ;;  %v19052_v9 = vld [vmem:[#allocation19_spill] sm:$0xff] }
0x1334   : > { %13790 = vmatprep.subr.mxu1 %v7271_v49  ;;  %13777 = vmatpush3.msra.mxu0 %v7265_v4 }
0x1335   : > { %13791 = vmatpush3.msra.mxu1 %v7271_v49  ;;  %v7269_v33 = vpop.permute.xlu0 %7268 }
0x1336   : > { %13766 = vmatmul.mubr.msk.f32.gmra.mxu1 %vm511_vm0, %v16924_v0  ;;  %13752 = vmatprep.mubr.msk.f32.mxu0 %vm381_vm1, %v7269_v33  ;;  %v17453_v0 = vld [vmem:[%s18667_s3 + $0x18] sm:$0xff] }
0x1337   : > { %13792 = vmatprep.subr.mxu1 %v7269_v33  ;;  %v7275_v63 = vpop.permute.xlu1 %7274  ;;  %13753 = vmatmul.mubr.msk.f32.gmra.mxu0 %vm381_vm1, %v7271_v49 }
0x1338   : > { %13793 = vmatpush3.msra.mxu1 %v7269_v33  ;;  %13806 = vmatprep.subr.mxu0 %v7275_v63 }
0x1339   : > { %13768 = vmatprep.mubr.msk.f32.mxu1 %vm511_vm0, %v17444_v5  ;;  %v7273_v42 = vpop.permute.xlu0 %7272  ;;  %13822 = vmatprep.subr.mxu1 %v17453_v0 }
0x133a   : > { %13769 = vmatmul.mubr.msk.f32.gmra.mxu1 %vm511_vm0, %v16933_v28  ;;  %13755 = vmatprep.mubr.msk.f32.mxu0 %vm381_vm1, %v7273_v42  ;;  %v19027_v28 = vld [vmem:[#allocation37_spill] sm:$0xff] }
0x133b   : > { %13771 = vmatprep.mubr.msk.f32.mxu1 %vm511_vm0, %v16940_v12  ;;  %13756 = vmatmul.mubr.msk.f32.gmra.mxu0 %vm381_vm1, %v7275_v63  ;;  %v19028_v12 = vld [vmem:[#allocation38_spill] sm:$0xff] }
0x133c   : > { %13778 = vmatprep.mubr.msk.f32.mxu0 %vm511_vm0, %v16946_v15  ;;  %v19029_v15 = vld [vmem:[#allocation39_spill] sm:$0xff] }
0x133e   : > { %13772 = vmatmul.mubr.msk.f32.gmra.mxu1 %vm511_vm0, %v16951_v6  ;;  %v19030_v6 = vld [vmem:[#allocation5_spill] sm:$0xff] }
0x133f   : > { %13794 = vmatprep.mubr.msk.f32.mxu1 %vm511_vm0, %v16956_v48  ;;  %13779 = vmatmul.mubr.msk.f32.vlgmr.msra.gmra.mxu0 %vm511_vm0, %v16961_v44  ;;  %v19031_v48 = vld [vmem:[#allocation22_spill] sm:$0xff] }
0x1340   : > { %13807 = vmatpush3.msra.mxu0 %v7275_v63  ;;  %13781 = vmatprep.mubr.msk.f32.mxu0 %vm511_vm0, %v16966_v21  ;;  %v19032_v44 = vld [vmem:[#allocation6_spill] sm:$0xff]  ;;  %v19033_v21 = vld [vmem:[#allocation9_spill] sm:$0xff]  ;;  %v19053_v63 = vld [vmem:[#allocation20_spill] sm:$0xff] }
0x1341   : > { %13808 = vmatprep.subr.mxu0 %v7273_v42 }
0x1342   : > { %13795 = vmatmul.mubr.msk.f32.vlgmr.msra.gmra.mxu1 %vm511_vm0, %v16971_v45  ;;  %13809 = vmatpush3.msra.mxu0 %v7273_v42  ;;  %v19034_v45 = vld [vmem:[#allocation21_spill] sm:$0xff] }
0x1343   : > { %13797 = vmatprep.mubr.msk.f32.mxu1 %vm511_vm0, %v16976_v20  ;;  %13782 = vmatmul.mubr.msk.f32.gmra.mxu0 %vm511_vm0, %v16981_v3  ;;  %v19035_v20 = vld [vmem:[#allocation10_spill] sm:$0xff]  ;;  %v19036_v3 = vld [vmem:[#allocation7_spill] sm:$0xff] }
0x1344   : > { %13823 = vmatpush3.msra.mxu1 %v17453_v0  ;;  %13784 = vmatprep.mubr.msk.f32.mxu0 %vm511_vm0, %v16987_v26  ;;  %v19037_v26 = vld [vmem:[#allocation23_spill] sm:$0xff] }
0x1345   : > { %13824 = vmatprep.subr.mxu1 %v16994_v39  ;;  %13842 = vmatprep.subr.mxu0 %v17005_v19 }
0x1346   : > { %13798 = vmatmul.mubr.msk.f32.gmra.mxu1 %vm511_vm0, %v16998_v11  ;;  %v19039_v11 = vld [vmem:[#allocation12_spill] sm:$0xff] }
0x1347   : > { %13800 = vmatprep.mubr.msk.f32.mxu1 %vm511_vm0, %v17009_v51  ;;  %13825 = vmatpush3.msra.mxu1 %v16994_v39  ;;  %v19038_v39 = vld [vmem:[#allocation8_spill] sm:$0xff]  ;;  %v19040_v51 = vld [vmem:[#allocation27_spill] sm:$0xff] }
0x1348   : > { %13785 = vmatmul.mubr.msk.f32.gmra.mxu0 %vm511_vm0, %v19027_v28  ;;  %13826 = vmatprep.subr.mxu1 %v19028_v12 }
0x1349   : > { %13787 = vmatprep.mubr.msk.f32.mxu0 %vm511_vm0, %v19029_v15  ;;  %13827 = vmatpush3.msra.mxu1 %v19028_v12  ;;  %v19054_v15 = vld [vmem:[#allocation29_spill] sm:$0xff] }
0x134a   : > { %13801 = vmatmul.mubr.msk.f32.gmra.mxu1 %vm511_vm0, %v19030_v6  ;;  %13828 = vmatprep.subr.mxu1 %v19031_v48  ;;  %v17585_v6 = vld [vmem:[%s18668_s4 + $0x18] sm:$0xff] }
0x134b   : > { %13803 = vmatprep.mubr.msk.f32.mxu1 %vm511_vm0, %v19032_v44  ;;  %13829 = vmatpush3.msra.mxu1 %v19031_v48 }
0x134c   : > { %13788 = vmatmul.mubr.msk.f32.gmra.mxu0 %vm511_vm0, %v19033_v21  ;;  %13862 = vmatprep.subr.mxu1 %v19034_v45 }
0x134d   : > { %13810 = vmatprep.mubr.msk.f32.mxu0 %vm511_vm0, %v19035_v20 }
0x134e   : > { %13804 = vmatmul.mubr.msk.f32.gmra.mxu1 %vm511_vm0, %v19036_v3 }
0x1350   : > { %13811 = vmatmul.mubr.msk.f32.vlgmr.msra.gmra.mxu0 %vm511_vm0, %v19037_v26 }
0x1351   : > { %13813 = vmatprep.mubr.msk.f32.mxu0 %vm511_vm0, %v19038_v39  ;;  %13843 = vmatpush3.msra.mxu0 %v17005_v19  ;;  %v19045_v19 = vld [vmem:[#allocation24_spill] sm:$0xff] }
0x1352   : > { %13844 = vmatprep.subr.mxu0 %v19039_v11 }
0x1353   : > { %13845 = vmatpush3.msra.mxu0 %v19039_v11 }
0x1354   : > { %13814 = vmatmul.mubr.msk.f32.gmra.mxu0 %vm511_vm0, %v19040_v51  ;;  %13846 = vmatprep.subr.mxu0 %v19041_v22 }
0x1355   : > { %13816 = vmatprep.mubr.msk.f32.mxu0 %vm511_vm0, %v19042_v38  ;;  %13847 = vmatpush3.msra.mxu0 %v19041_v22 }
0x1356   : > { %13848 = vmatprep.subr.mxu0 %v19043_v55 }
0x1357   : > { %13849 = vmatpush3.msra.mxu0 %v19043_v55 }
0x1358   : > { %13817 = vmatmul.mubr.msk.f32.gmra.mxu0 %vm511_vm0, %v19044_v43  ;;  %13882 = vmatprep.subr.mxu0 %v19045_v19 }
0x1359   : > { %13819 = vmatprep.mubr.msk.f32.mxu0 %vm511_vm0, %v19046_v30 }
0x135c   : > { %13820 = vmatmul.mubr.msk.f32.gmra.mxu0 %vm511_vm0, %v19047_v57 }
0x13ef   : > { %v13748_v40 = vpop.f32.mrf.mxu0 }
0x13f0   : > { %v17528_v34 = vadd.f32 %v19048_v29, %v13748_v40  ;;  %v13764_v56 = vpop.f32.mrf.mxu1 }
0x13f1   : > { %v7358_v41 = vpop.f32.mrf.mxu0 }
0x13f2   : > { %v17531_v46 = vadd.f32 %v19048_v29, %v7358_v41  ;;  %8439 = vrot.lane.b32.xlu1 %v17528_v34, %s14905_s10  ;;  %v7465_v2 = vpop.f32.mrf.mxu1  ;;  %v17611_v41 = vld [vmem:[%s18668_s4 + $0x10] sm:$0xff] }
0x13f3   : > { %13830 = vmatprep.mubr.msk.f32.mxu1 %vm381_vm1, %v7465_v2  ;;  %v13751_v8 = vpop.f32.mrf.mxu0 }
0x13f4   : > { %8437 = vrot.lane.b32.xlu0 %v17531_v46, %s14905_s10  ;;  %13831 = vmatmul.mubr.msk.f32.vlgmr.msra.gmra.mxu1 %vm381_vm1, %v13764_v56  ;;  %v17540_v7 = vadd.f32 %v19048_v29, %v13751_v8 }
0x13f5   : > { %13863 = vmatpush3.msra.mxu1 %v19034_v45  ;;  %v7368_v23 = vpop.f32.mrf.mxu0 }
0x13f6   : > { %v13767_v52 = vpop.f32.mrf.mxu1  ;;  %13864 = vmatprep.subr.mxu1 %v19049_v37  ;;  %v17545_v62 = vadd.f32 %v19048_v29, %v7368_v23  ;;  %8443 = vrot.lane.b32.xlu1 %v17540_v7, %s14905_s10  ;;  %v17622_v23 = vld [vmem:[%s18668_s4 + $0x8] sm:$0xff] }
0x13f7   : > { %13865 = vmatpush3.msra.mxu1 %v19049_v37  ;;  %v13754_v1 = vpop.f32.mrf.mxu0  ;;  %v17633_v37 = vld [vmem:[%s18668_s4] sm:$0xff] }
0x13f8   : > { %v7475_v18 = vpop.f32.mrf.mxu1  ;;  %13866 = vmatprep.subr.mxu1 %v19050_v14  ;;  %v17552_v16 = vadd.f32 %v19048_v29, %v13754_v1  ;;  %8441 = vrot.lane.b32.xlu0 %v17545_v62, %s14905_s10  ;;  %v17642_v1 = vld [vmem:[%s15027_s28] sm:$0xff] }
0x13f9   : > { %13850 = vmatprep.mubr.msk.f32.mxu0 %vm381_vm1, %v7475_v18  ;;  %v7378_v50 = vpop.f32.mrf.mxu0  ;;  %13867 = vmatpush3.msra.mxu1 %v19050_v14 }
0x13fa   : > { %v13770_v32 = vpop.f32.mrf.mxu1  ;;  %13851 = vmatmul.mubr.msk.f32.vlgmr.msra.gmra.mxu0 %vm381_vm1, %v13767_v52  ;;  %v17560_v36 = vadd.f32 %v19048_v29, %v7378_v50  ;;  %8447 = vrot.lane.b32.xlu1 %v17552_v16, %s14905_s10 }
0x13fb   : > { %13883 = vmatpush3.msra.mxu0 %v19045_v19  ;;  %v13757_v59 = vpop.f32.mrf.mxu0  ;;  %13868 = vmatprep.subr.mxu1 %v19052_v9 }
0x13fc   : > { %v7485_v31 = vpop.f32.mrf.mxu1  ;;  %13884 = vmatprep.subr.mxu0 %v19051_v13  ;;  %v17568_v4 = vadd.f32 %v19048_v29, %v13757_v59  ;;  %8445 = vrot.lane.b32.xlu0 %v17560_v36, %s14905_s10 }
0x13fd   : > { %13885 = vmatpush3.msra.mxu0 %v19051_v13  ;;  %v7388_v49 = vpop.f32.mrf.mxu0  ;;  %13869 = vmatpush3.msra.mxu1 %v19052_v9 }
0x13fe   : > { %v13773_v33 = vpop.f32.mrf.mxu1  ;;  %13886 = vmatprep.subr.mxu0 %v19053_v63  ;;  %v17576_v42 = vadd.f32 %v19048_v29, %v7388_v49  ;;  %8451 = vrot.lane.b32.xlu1 %v17568_v4, %s14905_s10 }
0x13ff   : > { %13887 = vmatpush3.msra.mxu0 %v19053_v63  ;;  %v13780_v28 = vpop.f32.mrf.mxu0  ;;  %13902 = vmatprep.subr.mxu1 %v17585_v6 }
0x1400   : > { %v7495_v12 = vpop.f32.mrf.mxu1  ;;  %13888 = vmatprep.subr.mxu0 %v19054_v15  ;;  %8449 = vrot.lane.b32.xlu0 %v17576_v42, %s14905_s10 }
0x1401   : > { %13889 = vmatpush3.msra.mxu0 %v19054_v15  ;;  %v7572_v48 = vpop.f32.mrf.mxu0 }
0x1402   : > { %v13796_v44 = vpop.f32.mrf.mxu1  ;;  %13833 = vmatprep.mubr.msk.f32.mxu1 %vm381_vm1, %v7572_v48 }
0x1403   : > { %v13783_v21 = vpop.f32.mrf.mxu0  ;;  %13834 = vmatmul.mubr.msk.f32.gmra.mxu1 %vm381_vm1, %v13780_v28 }
0x1404   : > { %v7679_v45 = vpop.f32.mrf.mxu1 }
0x1405   : > { %13836 = vmatprep.mubr.msk.f32.mxu1 %vm381_vm1, %v7679_v45  ;;  %v7582_v20 = vpop.f32.mrf.mxu0 }
0x1406   : > { %v13799_v3 = vpop.f32.mrf.mxu1  ;;  %13853 = vmatprep.mubr.msk.f32.mxu0 %vm381_vm1, %v7582_v20 }
0x1407   : > { %13854 = vmatmul.mubr.msk.f32.gmra.mxu0 %vm381_vm1, %v13783_v21  ;;  %13837 = vmatmul.mubr.msk.f32.gmra.mxu1 %vm381_vm1, %v13796_v44  ;;  %v19056_v21 = vld [vmem:[#allocation31_spill] sm:$0xff] }
0x1408   : > { %v13786_v26 = vpop.f32.mrf.mxu0  ;;  %v7689_v39 = vpop.f32.mrf.mxu1 }
0x1409   : > { %13856 = vmatprep.mubr.msk.f32.mxu0 %vm381_vm1, %v7689_v39 }
0x140a   : > { %v7592_v11 = vpop.f32.mrf.mxu0  ;;  %v13802_v43 = vpop.f32.mrf.mxu1 }
0x140b   : > { %13857 = vmatmul.mubr.msk.f32.gmra.mxu0 %vm381_vm1, %v13799_v3 }
0x140c   : > { %v13789_v51 = vpop.f32.mrf.mxu0  ;;  %v7699_v57 = vpop.f32.mrf.mxu1 }
0x140e   : > { %v7602_v22 = vpop.f32.mrf.mxu0  ;;  %v13805_v29 = vpop.f32.mrf.mxu1 }
0x1410   : > { %v13812_v38 = vpop.f32.mrf.mxu0  ;;  %v7709_v2 = vpop.f32.mrf.mxu1 }
0x1412   : > { %v7786_v55 = vpop.f32.mrf.mxu0 }
0x1413   : > { %13839 = vmatprep.mubr.msk.f32.mxu1 %vm381_vm1, %v7786_v55 }
0x1414   : > { %v13815_v19 = vpop.f32.mrf.mxu0  ;;  %13840 = vmatmul.mubr.msk.f32.gmra.mxu1 %vm381_vm1, %v13812_v38 }
0x1415   : > { %13870 = vmatprep.mubr.msk.f32.mxu1 %vm381_vm1, %v7485_v31 }
0x1416   : > { %v7796_v30 = vpop.f32.mrf.mxu0 }
0x1417   : > { %13859 = vmatprep.mubr.msk.f32.mxu0 %vm381_vm1, %v7796_v30 }
0x1418   : > { %13860 = vmatmul.mubr.msk.f32.gmra.mxu0 %vm381_vm1, %v13815_v19  ;;  %13871 = vmatmul.mubr.msk.f32.vlgmr.msra.gmra.mxu1 %vm381_vm1, %v13770_v32  ;;  %v13818_v40 = vpop.f32.mrf.mxu0 }
0x1419   : > { %13873 = vmatprep.mubr.msk.f32.mxu1 %vm381_vm1, %v7592_v11  ;;  %13890 = vmatprep.mubr.msk.f32.mxu0 %vm381_vm1, %v7495_v12  ;;  %v19055_v12 = vld [vmem:[#allocation30_spill] sm:$0xff] }
0x141a   : > { %v7806_v56 = vpop.f32.mrf.mxu0  ;;  %13903 = vmatpush3.msra.mxu1 %v17585_v6 }
0x141b   : > { %13904 = vmatprep.subr.mxu1 %v17611_v41 }
0x141c   : > { %13874 = vmatmul.mubr.msk.f32.gmra.mxu1 %vm381_vm1, %v13786_v26  ;;  %13891 = vmatmul.mubr.msk.f32.vlgmr.msra.gmra.mxu0 %vm381_vm1, %v13773_v33  ;;  %v13821_v8 = vpop.f32.mrf.mxu0 }
0x141d   : > { %13876 = vmatprep.mubr.msk.f32.mxu1 %vm381_vm1, %v7699_v57  ;;  %13893 = vmatprep.mubr.msk.f32.mxu0 %vm381_vm1, %v7602_v22 }
0x141e   : > { %13905 = vmatpush3.msra.mxu1 %v17611_v41  ;;  %v7816_v52 = vpop.f32.mrf.mxu0 }
0x141f   : > { %13906 = vmatprep.subr.mxu1 %v17622_v23 }
0x1420   : > { %13877 = vmatmul.mubr.msk.f32.gmra.mxu1 %vm381_vm1, %v13802_v43  ;;  %13894 = vmatmul.mubr.msk.f32.gmra.mxu0 %vm381_vm1, %v13789_v51 }
0x1421   : > { %13879 = vmatprep.mubr.msk.f32.mxu1 %vm381_vm1, %v7806_v56  ;;  %13896 = vmatprep.mubr.msk.f32.mxu0 %vm381_vm1, %v7709_v2  ;;  %v19058_v2 = vld [vmem:[#allocation33_spill] sm:$0xff] }
0x1422   : > { %13907 = vmatpush3.msra.mxu1 %v17622_v23 }
0x1423   : > { %13908 = vmatprep.subr.mxu1 %v17633_v37 }
0x1424   : > { %13880 = vmatmul.mubr.msk.f32.gmra.mxu1 %vm381_vm1, %v13818_v40  ;;  %13897 = vmatmul.mubr.msk.f32.gmra.mxu0 %vm381_vm1, %v13805_v29  ;;  %v19057_v29 = vld [vmem:[#allocation32_spill] sm:$0xff] }
0x1425   : > { %13899 = vmatprep.mubr.msk.f32.mxu0 %vm381_vm1, %v7816_v52  ;;  %13909 = vmatpush3.msra.mxu1 %v17633_v37 }
0x1428   : > { %13900 = vmatmul.mubr.msk.f32.gmra.mxu0 %vm381_vm1, %v13821_v8 }
0x1429   : > { %13926 = vmatprep.mubr.msk.f32.mxu0 %vm511_vm0, %v17642_v1 }
0x14b4   : > { %v13832_v18 = vpop.f32.mrf.mxu1 }
0x14b5   : > { %v7955_v15 = vadd.f32 %v19055_v12, %v13832_v18 }
0x14b6   : > { %v7915_v50 = vpop.f32.mrf.mxu1 }
0x14b7   : > { %v7954_v45 = vadd.f32 %v19056_v21, %v7915_v50 }
0x14ba   : > { %v13852_v14 = vpop.f32.mrf.mxu0 }
0x14bb   : > { %v8092_v26 = vadd.f32 %v13852_v14, %v7955_v15 }
0x14bc   : > { %v8052_v32 = vpop.f32.mrf.mxu0 }
0x14bd   : > { %v8091_v51 = vadd.f32 %v8052_v32, %v7954_v45 }
0x14c3   : > { %v13835_v59 = vpop.f32.mrf.mxu1 }
0x14c4   : > { %v7957_v22 = vadd.f32 %v17272_v24, %v13835_v59 }
0x14c5   : > { %v7925_v13 = vpop.f32.mrf.mxu1 }
0x14c6   : > { %v7956_v56 = vadd.f32 %v19057_v29, %v7925_v13 }
0x14c7   : > { %v13855_v31 = vpop.f32.mrf.mxu0  ;;  %v13838_v49 = vpop.f32.mrf.mxu1 }
0x14c8   : > { %v8094_v19 = vadd.f32 %v13855_v31, %v7957_v22  ;;  %v7959_v30 = vadd.f32 %v17276_v17, %v13838_v49 }
0x14c9   : > { %v8062_v9 = vpop.f32.mrf.mxu0  ;;  %v7935_v33 = vpop.f32.mrf.mxu1 }
0x14ca   : > { %v7958_v8 = vadd.f32 %v19058_v2, %v7935_v33  ;;  %v8093_v32 = vadd.f32 %v8062_v9, %v7956_v56 }
0x14cb   : > { %v13858_v63 = vpop.f32.mrf.mxu0 }
0x14cc   : > { %v8096_v12 = vadd.f32 %v13858_v63, %v7959_v30 }
0x14cd   : > { %v8072_v48 = vpop.f32.mrf.mxu0 }
0x14ce   : > { %v8095_v13 = vadd.f32 %v8072_v48, %v7958_v8 }
0x14d4   : > { %v13841_v28 = vpop.f32.mrf.mxu1 }
0x14d5   : > { %v7961_v33 = vadd.f32 %v17298_v35, %v13841_v28 }
0x14d6   : > { %v7945_v44 = vpop.f32.mrf.mxu1 }
0x14d7   : > { %v7960_v63 = vadd.f32 %v17304_v58, %v7945_v44 }
0x14d8   : > { %v13861_v20 = vpop.f32.mrf.mxu0  ;;  %v13872_v3 = vpop.f32.mrf.mxu1 }
0x14d9   : > { %v8229_v38 = vadd.f32 %v13872_v3, %v8092_v26 }
0x14da   : > { %v8082_v39 = vpop.f32.mrf.mxu0  ;;  %v8189_v11 = vpop.f32.mrf.mxu1 }
0x14db   : > { %v8228_v57 = vadd.f32 %v8189_v11, %v8091_v51  ;;  %v8098_v11 = vadd.f32 %v13861_v20, %v7961_v33  ;;  %v8097_v28 = vadd.f32 %v8082_v39, %v7960_v63 }
0x14dc   : > { %v13875_v55 = vpop.f32.mrf.mxu1  ;;  %v13892_v43 = vpop.f32.mrf.mxu0 }
0x14dd   : > { %v17650_v40 = vadd.f32 %v13892_v43, %v8229_v38  ;;  %v8231_v14 = vadd.f32 %v13875_v55, %v8094_v19 }
0x14de   : > { %v8199_v52 = vpop.f32.mrf.mxu1  ;;  %v8326_v18 = vpop.f32.mrf.mxu0 }
0x14df   : > { %v8374_v50 = vadd.f32 %v17650_v40, %v17528_v34  ;;  %v17656_v24 = vadd.f32 %v8326_v18, %v8228_v57  ;;  %v8230_v21 = vadd.f32 %v8199_v52, %v8093_v32 }
0x14e0   : > { %v13878_v59 = vpop.f32.mrf.mxu1  ;;  %v13895_v31 = vpop.f32.mrf.mxu0 }
0x14e1   : > { %v11940_v17 = vmul.f32 -1.442695, %v8374_v50  ;;  %v8373_v49 = vadd.f32 %v17656_v24, %v17531_v46  ;;  %v17660_v15 = vadd.f32 %v13895_v31, %v8231_v14  ;;  %v8233_v26 = vadd.f32 %v13878_v59, %v8096_v12 }
0x14e2   : > { %v8209_v45 = vpop.f32.mrf.mxu1  ;;  %v8336_v3 = vpop.f32.mrf.mxu0 }
0x14e3   : > { %14514 = vpow2.f32 %v11940_v17  ;;  %v11939_v34 = vmul.f32 -1.442695, %v8373_v49  ;;  %v8376_v9 = vadd.f32 %v17660_v15, %v17540_v7  ;;  %v17666_v51 = vadd.f32 %v8336_v3, %v8230_v21  ;;  %v8440_v21 = vpop.permute.xlu1 %8439  ;;  %v8438_v3 = vpop.permute.xlu0 %8437 }
0x14e4   : > { %v13881_v46 = vpop.f32.mrf.mxu1  ;;  %v13898_v22 = vpop.f32.mrf.mxu0  ;;  %v8232_v38 = vadd.f32 %v8209_v45, %v8095_v13 }
0x14e5   : > { %14516 = vpow2.f32 %v11939_v34  ;;  %v11942_v48 = vmul.f32 -1.442695, %v8376_v9  ;;  %v17668_v35 = vadd.f32 %v13898_v22, %v8233_v26  ;;  %v8375_v55 = vadd.f32 %v17666_v51, %v17545_v62 }
0x14e6   : > { %v8219_v43 = vpop.f32.mrf.mxu1  ;;  %v8346_v19 = vpop.f32.mrf.mxu0  ;;  %v8235_v7 = vadd.f32 %v13881_v46, %v8098_v11 }
0x14e7   : > { %14518 = vpow2.f32 %v11942_v48  ;;  %v8378_v58 = vadd.f32 %v17668_v35, %v17552_v16  ;;  %v17674_v44 = vadd.f32 %v8346_v19, %v8232_v38  ;;  %v11941_v20 = vmul.f32 -1.442695, %v8375_v55  ;;  %v8444_v11 = vpop.permute.xlu1 %8443  ;;  %v8442_v48 = vpop.permute.xlu0 %8441 }
0x14e8   : > { %v13901_v30 = vpop.f32.mrf.mxu0  ;;  %v8234_v29 = vadd.f32 %v8219_v43, %v8097_v28 }
0x14e9   : > { %v11944_v57 = vmul.f32 -1.442695, %v8378_v58  ;;  %v8377_v56 = vadd.f32 %v17674_v44, %v17560_v36  ;;  %v17678_v39 = vadd.f32 %v13901_v30, %v8235_v7  ;;  %14520 = vpow2.f32 %v11941_v20 }
0x14ea   : > { %v8356_v62 = vpop.f32.mrf.mxu0 }
0x14eb   : > { %14522 = vpow2.f32 %v11944_v57  ;;  %v11943_v2 = vmul.f32 -1.442695, %v8377_v56  ;;  %v8380_v8 = vadd.f32 %v17678_v39, %v17568_v4  ;;  %v17682_v52 = vadd.f32 %v8356_v62, %v8234_v29  ;;  %v8448_v43 = vpop.permute.xlu1 %8447  ;;  %v8446_v58 = vpop.permute.xlu0 %8445 }
0x14ed   : > { %14524 = vpow2.f32 %v11943_v2  ;;  %v11946_v16 = vmul.f32 -1.442695, %v8380_v8  ;;  %v8379_v18 = vadd.f32 %v17682_v52, %v17576_v42 }
0x14ef   : > { %14526 = vpow2.f32 %v11946_v16  ;;  %v11945_v14 = vmul.f32 -1.442695, %v8379_v18  ;;  %v8452_v62 = vpop.permute.xlu1 %8451  ;;  %v8450_v16 = vpop.permute.xlu0 %8449 }
0x14f0   : > { %v14515_v50 = vpop.eup %14514 }
0x14f1   : > { %v8406_v36 = vadd.f32 1.0, %v14515_v50  ;;  %14528 = vpow2.f32 %v11945_v14 }
0x14f2   : > { %v14517_v32 = vpop.eup %14516 }
0x14f3   : > { %14530 = vrcp.f32 %v8406_v36  ;;  %v8405_v59 = vadd.f32 1.0, %v14517_v32 }
0x14f4   : > { %v14519_v31 = vpop.eup %14518 }
0x14f5   : > { %14532 = vrcp.f32 %v8405_v59  ;;  %v8408_v12 = vadd.f32 1.0, %v14519_v31 }
0x14f6   : > { %v14521_v17 = vpop.eup %14520 }
0x14f7   : > { %14534 = vrcp.f32 %v8408_v12  ;;  %v8407_v49 = vadd.f32 1.0, %v14521_v17 }
0x14f8   : > { %v14523_v4 = vpop.eup %14522 }
0x14f9   : > { %v8410_v13 = vadd.f32 1.0, %v14523_v4  ;;  %14536 = vrcp.f32 %v8407_v49 }
0x14fa   : > { %v14525_v33 = vpop.eup %14524 }
0x14fb   : > { %14538 = vrcp.f32 %v8410_v13  ;;  %v8409_v42 = vadd.f32 1.0, %v14525_v33 }
0x14fc   : > { %v14527_v45 = vpop.eup %14526 }
0x14fd   : > { %14540 = vrcp.f32 %v8409_v42  ;;  %v8412_v34 = vadd.f32 1.0, %v14527_v45 }
0x14fe   : > { %v14529_v26 = vpop.eup %14528 }
0x14ff   : > { %14542 = vrcp.f32 %v8412_v34  ;;  %v8411_v9 = vadd.f32 1.0, %v14529_v26 }
0x1500   : > { %v17686_v63 = vpop.eup %14530 }
0x1501   : > { %14544 = vrcp.f32 %v8411_v9  ;;  %v8462_v46 = vmul.f32 %v17686_v63, %v8440_v21 }
0x1502   : > { %v17689_v22 = vpop.eup %14532 }
0x1503   : > { %8479 = vrot.lane.b32.xlu1 %v8462_v46, %s14905_s10  ;;  %v8461_v38 = vmul.f32 %v17689_v22, %v8438_v3 }
0x1504   : > { %v17693_v28 = vpop.eup %14534 }
0x1505   : > { %8477 = vrot.lane.b32.xlu0 %v8461_v38, %s14905_s10  ;;  %v8464_v55 = vmul.f32 %v17693_v28, %v8444_v11 }
0x1506   : > { %v17697_v19 = vpop.eup %14536 }
0x1507   : > { %8483 = vrot.lane.b32.xlu1 %v8464_v55, %s14905_s10  ;;  %v8463_v20 = vmul.f32 %v17697_v19, %v8442_v48 }
0x1508   : > { %v17700_v7 = vpop.eup %14538 }
0x1509   : > { %v8466_v30 = vmul.f32 %v17700_v7, %v8448_v43  ;;  %8481 = vrot.lane.b32.xlu0 %v8463_v20, %s14905_s10 }
0x150a   : > { %v17704_v57 = vpop.eup %14540 }
0x150b   : > { %8487 = vrot.lane.b32.xlu1 %v8466_v30, %s14905_s10  ;;  %v8465_v29 = vmul.f32 %v17704_v57, %v8446_v58 }
0x150c   : > { %v17709_v56 = vpop.eup %14542 }
0x150d   : > { %v8468_v2 = vmul.f32 %v17709_v56, %v8452_v62  ;;  %8485 = vrot.lane.b32.xlu0 %v8465_v29, %s14905_s10 }
0x150e   : > { %v17712_v8 = vpop.eup %14544 }
0x150f   : > { %8491 = vrot.lane.b32.xlu1 %v8468_v2, %s14905_s10  ;;  %v8467_v18 = vmul.f32 %v17712_v8, %v8450_v16 }
0x1511   : > { %8489 = vrot.lane.b32.xlu0 %v8467_v18, %s14905_s10 }
0x1575   : > { %v8480_v14 = vpop.permute.xlu1 %8479 }
0x1576   : > { %v8502_v50 = vadd.f32 %v8480_v14, %v17650_v40 }
0x1577   : > { %v8478_v36 = vpop.permute.xlu0 %8477 }
0x1578   : > { %14546 = vtanh.f32 %v8502_v50  ;;  %v8501_v32 = vadd.f32 %v8478_v36, %v17656_v24 }
0x1579   : > { %v8484_v59 = vpop.permute.xlu1 %8483 }
0x157a   : > { %14548 = vtanh.f32 %v8501_v32  ;;  %v8504_v31 = vadd.f32 %v8484_v59, %v17660_v15 }
0x157b   : > { %v8482_v12 = vpop.permute.xlu0 %8481 }
0x157c   : > { %14550 = vtanh.f32 %v8504_v31  ;;  %v8503_v17 = vadd.f32 %v8482_v12, %v17666_v51 }
0x157d   : > { %v8488_v4 = vpop.permute.xlu1 %8487 }
0x157e   : > { %v8506_v49 = vadd.f32 %v8488_v4, %v17668_v35  ;;  %14552 = vtanh.f32 %v8503_v17 }
0x157f   : > { %v8486_v13 = vpop.permute.xlu0 %8485 }
0x1580   : > { %14554 = vtanh.f32 %v8506_v49  ;;  %v8505_v40 = vadd.f32 %v8486_v13, %v17674_v44  ;;  %v17793_v13 = vld [vmem:[%s15027_s28 + $0x8] sm:$0xff] }
0x1581   : > { %v8492_v33 = vpop.permute.xlu1 %8491 }
0x1582   : > { %v8508_v21 = vadd.f32 %v8492_v33, %v17678_v39  ;;  %14556 = vtanh.f32 %v8505_v40  ;;  %v17798_v40 = vld [vmem:[%s15027_s28 + $0x10] sm:$0xff] }
0x1583   : > { %v8490_v24 = vpop.permute.xlu0 %8489 }
0x1584   : > { %14558 = vtanh.f32 %v8508_v21  ;;  %v8507_v15 = vadd.f32 %v8490_v24, %v17682_v52 }
0x1585   : > { %v14547_v42 = vpop.eup %14546 }
0x1586   : > { %v8518_v45 = vsub.f32 %v17399_v61, %v14547_v42  ;;  %14560 = vtanh.f32 %v8507_v15 }
0x1587   : > { %v14549_v51 = vpop.eup %14548 }
0x1588   : > { %8535 = vrot.lane.b32.xlu1 %v8518_v45, %s14907_s13  ;;  %v8517_v35 = vsub.f32 %v17401_v27, %v14549_v51 }
0x1589   : > { %v14551_v3 = vpop.eup %14550 }
0x158a   : > { %8533 = vrot.lane.b32.xlu0 %v8517_v35, %s14907_s13  ;;  %v8520_v44 = vsub.f32 %v17405_v10, %v14551_v3  ;;  %v17821_v35 = vld [vmem:[%s15027_s28 + $0x30] sm:$0xff] }
0x158b   : > { %v14553_v39 = vpop.eup %14552 }
0x158c   : > { %8539 = vrot.lane.b32.xlu1 %v8520_v44, %s14907_s13  ;;  %v8519_v26 = vsub.f32 %v17411_v60, %v14553_v39  ;;  %v17837_v44 = vld [vmem:[%s15027_s28 + $0x80] sm:$0xff] }
0x158d   : > { %v14555_v34 = vpop.eup %14554 }
0x158e   : > { %v8522_v52 = vsub.f32 %v17413_v53, %v14555_v34  ;;  %8537 = vrot.lane.b32.xlu0 %v8519_v26, %s14907_s13  ;;  %v17852_v26 = vld [vmem:[%s15027_s28 + $0x88] sm:$0xff] }
0x158f   : > { %v14557_v61 = vpop.eup %14556 }
0x1590   : > { %8543 = vrot.lane.b32.xlu1 %v8522_v52, %s14907_s13  ;;  %v8521_v27 = vsub.f32 %v17419_v25, %v14557_v61  ;;  %v17857_v52 = vld [vmem:[%s15027_s28 + $0x90] sm:$0xff] }
0x1591   : > { %v14559_v9 = vpop.eup %14558 }
0x1592   : > { %v8524_v11 = vsub.f32 %v17421_v54, %v14559_v9  ;;  %8541 = vrot.lane.b32.xlu0 %v8521_v27, %s14907_s13  ;;  %v17875_v27 = vld [vmem:[%s18667_s3 + $0x10] sm:$0xff] }
0x1593   : > { %v14561_v10 = vpop.eup %14560 }
0x1594   : > { %8547 = vrot.lane.b32.xlu1 %v8524_v11, %s14907_s13  ;;  %v8523_v46 = vsub.f32 %v17427_v47, %v14561_v10  ;;  %v17879_v11 = vld [vmem:[%s15027_s28 + $0x98] sm:$0xff] }
0x1596   : > { %8545 = vrot.lane.b32.xlu0 %v8523_v46, %s14907_s13  ;;  %v17896_v46 = vld [vmem:[%s15027_s28 + $0x68] sm:$0xff] }
0x1597   : > { %19059 = vst [vmem:[#allocation34_spill] sm:$0xff] %v17896_v46 }
0x15fa   : > { %v8536_v60 = vpop.permute.xlu1 %8535 }
0x15fb   : > { %v8558_v53 = vmul.f32 %v17686_v63, %v8536_v60  ;;  %v17903_v60 = vld [vmem:[%s18667_s3 + $0x8] sm:$0xff] }
0x15fc   : > { %v8534_v48 = vpop.permute.xlu0 %8533  ;;  %19060 = vst [vmem:[#allocation35_spill] sm:$0xff] %v17903_v60 }
0x15fd   : > { %v8557_v38 = vmul.f32 %v17689_v22, %v8534_v48  ;;  %8575 = vrot.lane.b32.xlu1 %v8558_v53, %s14906_s9  ;;  %v17907_v53 = vld [vmem:[%s15027_s28 + $0x70] sm:$0xff]  ;;  %v17913_v48 = vld [vmem:[%s15027_s28 + $0xa8] sm:$0xff] }
0x15fe   : > { %v8540_v25 = vpop.permute.xlu1 %8539  ;;  %19061 = vst [vmem:[#allocation36_spill] sm:$0xff] %v17907_v53  ;;  %19062 = vst [vmem:[#allocation37_spill] sm:$0xff] %v17913_v48 }
0x15ff   : > { %v8560_v54 = vmul.f32 %v17693_v28, %v8540_v25  ;;  %8573 = vrot.lane.b32.xlu0 %v8557_v38, %s14906_s9  ;;  %v17920_v38 = vld [vmem:[%s18667_s3] sm:$0xff]  ;;  %v17924_v25 = vld [vmem:[%s15027_s28 + $0xb0] sm:$0xff] }
0x1600   : > { %v8538_v55 = vpop.permute.xlu0 %8537  ;;  %19063 = vst [vmem:[#allocation38_spill] sm:$0xff] %v17920_v38  ;;  %19064 = vst [vmem:[#allocation39_spill] sm:$0xff] %v17924_v25 }
0x1601   : > { %8579 = vrot.lane.b32.xlu1 %v8560_v54, %s14906_s9  ;;  %v8559_v47 = vmul.f32 %v17697_v19, %v8538_v55  ;;  %v17930_v54 = vld [vmem:[%s15027_s28 + $0x78] sm:$0xff] }
0x1602   : > { %v8544_v43 = vpop.permute.xlu1 %8543  ;;  %19065 = vst [vmem:[#allocation5_spill] sm:$0xff] %v17930_v54  ;;  %v17937_v55 = vld [vmem:[%s18667_s3 + $0x58] sm:$0xff] }
0x1603   : > { %v8562_v58 = vmul.f32 %v17700_v7, %v8544_v43  ;;  %8577 = vrot.lane.b32.xlu0 %v8559_v47, %s14906_s9  ;;  %19066 = vst [vmem:[#allocation22_spill] sm:$0xff] %v17937_v55  ;;  %v17941_v47 = vld [vmem:[%s15027_s28 + $0xc0] sm:$0xff]  ;;  %v17946_v43 = vld [vmem:[%s15027_s28 + $0xb8] sm:$0xff] }
0x1604   : > { %v8542_v63 = vpop.permute.xlu0 %8541  ;;  %19067 = vst [vmem:[#allocation6_spill] sm:$0xff] %v17941_v47  ;;  %19068 = vst [vmem:[#allocation9_spill] sm:$0xff] %v17946_v43 }
0x1605   : > { %8583 = vrot.lane.b32.xlu1 %v8562_v58, %s14906_s9  ;;  %v8561_v22 = vmul.f32 %v17704_v57, %v8542_v63  ;;  %v17951_v58 = vld [vmem:[%s15027_s28 + $0xc8] sm:$0xff]  ;;  %v17956_v63 = vld [vmem:[%s15027_s28 + $0xd0] sm:$0xff] }
0x1606   : > { %v8548_v20 = vpop.permute.xlu1 %8547  ;;  %19069 = vst [vmem:[#allocation21_spill] sm:$0xff] %v17951_v58  ;;  %19070 = vst [vmem:[#allocation10_spill] sm:$0xff] %v17956_v63 }
0x1607   : > { %v8564_v28 = vmul.f32 %v17709_v56, %v8548_v20  ;;  %8581 = vrot.lane.b32.xlu0 %v8561_v22, %s14906_s9  ;;  %v17964_v22 = vld [vmem:[%s18667_s3 + $0x30] sm:$0xff]  ;;  %v17969_v20 = vld [vmem:[%s15027_s28 + $0xd8] sm:$0xff] }
0x1608   : > { %v8546_v30 = vpop.permute.xlu0 %8545  ;;  %19071 = vst [vmem:[#allocation7_spill] sm:$0xff] %v17964_v22  ;;  %19072 = vst [vmem:[#allocation23_spill] sm:$0xff] %v17969_v20 }
0x1609   : > { %8587 = vrot.lane.b32.xlu1 %v8564_v28, %s14906_s9  ;;  %v8563_v19 = vmul.f32 %v17712_v8, %v8546_v30  ;;  %v17976_v28 = vld [vmem:[%s18667_s3 + $0x28] sm:$0xff]  ;;  %v17980_v30 = vld [vmem:[%s15027_s28 + $0xe0] sm:$0xff] }
0x160a   : > { %19073 = vst [vmem:[#allocation8_spill] sm:$0xff] %v17976_v28  ;;  %19074 = vst [vmem:[#allocation12_spill] sm:$0xff] %v17980_v30 }
0x160b   : > { %8585 = vrot.lane.b32.xlu0 %v8563_v19, %s14906_s9  ;;  %v17988_v19 = vld [vmem:[%s18667_s3 + $0x20] sm:$0xff] }
0x160c   : > { %19075 = vst [vmem:[#allocation27_spill] sm:$0xff] %v17988_v19 }
0x166f   : > { %v8576_v7 = vpop.permute.xlu1 %8575 }
0x1670   : > { %v17758_v29 = vadd.f32 %v14547_v42, %v8576_v7  ;;  %v17805_v42 = vld [vmem:[%s15027_s28 + $0x18] sm:$0xff]  ;;  %v17993_v7 = vld [vmem:[%s15027_s28 + $0xe8] sm:$0xff] }
0x1671   : > { %v8574_v62 = vpop.permute.xlu0 %8573  ;;  %19076 = vst [vmem:[#allocation13_spill] sm:$0xff] %v17993_v7 }
0x1672   : > { %v17760_v2 = vadd.f32 %v14549_v51, %v8574_v62  ;;  %8615 = vrot.lane.b32.xlu1 %v17758_v29, %s14905_s10  ;;  %v17814_v51 = vld [vmem:[%s15027_s28 + $0x28] sm:$0xff]  ;;  %v18000_v62 = vld [vmem:[%s18667_s3 + $0x78] sm:$0xff] }
0x1673   : > { %v8580_v57 = vpop.permute.xlu1 %8579  ;;  %19077 = vst [vmem:[#allocation11_spill] sm:$0xff] %v18000_v62 }
0x1674   : > { %v17764_v56 = vadd.f32 %v14551_v3, %v8580_v57  ;;  %8613 = vrot.lane.b32.xlu0 %v17760_v2, %s14905_s10  ;;  %v17832_v3 = vld [vmem:[%s15027_s28 + $0x38] sm:$0xff]  ;;  %v18004_v57 = vld [vmem:[%s15027_s28 + $0xf0] sm:$0xff] }
0x1675   : > { %v8578_v16 = vpop.permute.xlu0 %8577  ;;  %19078 = vst [vmem:[#allocation14_spill] sm:$0xff] %v18004_v57 }
0x1676   : > { %8619 = vrot.lane.b32.xlu1 %v17764_v56, %s14905_s10  ;;  %v17770_v8 = vadd.f32 %v14553_v39, %v8578_v16  ;;  %v17842_v39 = vld [vmem:[%s15027_s28 + $0x48] sm:$0xff]  ;;  %v18009_v16 = vld [vmem:[%s15027_s28 + $0xf8] sm:$0xff] }
0x1677   : > { %v8584_v18 = vpop.permute.xlu1 %8583  ;;  %19079 = vst [vmem:[#allocation15_spill] sm:$0xff] %v18009_v16 }
0x1678   : > { %v17772_v14 = vadd.f32 %v14555_v34, %v8584_v18  ;;  %8617 = vrot.lane.b32.xlu0 %v17770_v8, %s14905_s10  ;;  %v17847_v34 = vld [vmem:[%s15027_s28 + $0x50] sm:$0xff] }
0x1679   : > { %v8582_v50 = vpop.permute.xlu0 %8581 }
0x167a   : > { %8623 = vrot.lane.b32.xlu1 %v17772_v14, %s14905_s10  ;;  %v17778_v36 = vadd.f32 %v14557_v61, %v8582_v50  ;;  %v17862_v61 = vld [vmem:[%s15027_s28 + $0x58] sm:$0xff]  ;;  %v18016_v50 = vld [vmem:[%s18669_s5] ss:$0 sm:$0xff] }
0x167b   : > { %v8588_v32 = vpop.permute.xlu1 %8587  ;;  %19080 = vst [vmem:[#allocation24_spill] sm:$0xff] %v18016_v50 }
0x167c   : > { %v17780_v59 = vadd.f32 %v14559_v9, %v8588_v32  ;;  %8621 = vrot.lane.b32.xlu0 %v17778_v36, %s14905_s10  ;;  %v17868_v9 = vld [vmem:[%s15027_s28 + $0x60] sm:$0xff] }
0x167d   : > { %v8586_v31 = vpop.permute.xlu0 %8585 }
0x167e   : > { %8627 = vrot.lane.b32.xlu1 %v17780_v59, %s14905_s10  ;;  %v17786_v12 = vadd.f32 %v14561_v10, %v8586_v31  ;;  %v17890_v10 = vld [vmem:[%s15027_s28 + $0xa0] sm:$0xff] }
0x1680   : > { %8625 = vrot.lane.b32.xlu0 %v17786_v12, %s14905_s10 }
0x16e4   : > { %v8616_v17 = vpop.permute.xlu1 %8615 }
0x16e5   : > { %13922 = vmatprep.subr.mxu0 %v8616_v17 }
0x16e6   : > { %13923 = vmatpush3.msra.mxu0 %v8616_v17  ;;  %v8614_v4 = vpop.permute.xlu0 %8613 }
0x16e7   : > { %13910 = vmatprep.mubr.msk.f32.mxu1 %vm381_vm1, %v8614_v4  ;;  %13924 = vmatprep.subr.mxu0 %v8614_v4 }
0x16e8   : > { %v8620_v49 = vpop.permute.xlu1 %8619  ;;  %13911 = vmatmul.mubr.msk.f32.vlgmr.msra.gmra.mxu1 %vm381_vm1, %v8616_v17  ;;  %13925 = vmatpush3.msra.mxu0 %v8614_v4 }
0x16e9   : > { %13938 = vmatprep.subr.mxu1 %v8620_v49  ;;  %13927 = vmatmul.mubr.msk.f32.vlgmr.msra.gmra.mxu0 %vm511_vm0, %v17793_v13 }
0x16ea   : > { %13939 = vmatpush3.msra.mxu1 %v8620_v49  ;;  %13929 = vmatprep.mubr.msk.f32.mxu0 %vm511_vm0, %v17798_v40  ;;  %v8618_v33 = vpop.permute.xlu0 %8617 }
0x16eb   : > { %13913 = vmatprep.mubr.msk.f32.mxu1 %vm381_vm1, %v8618_v33  ;;  %13940 = vmatprep.subr.mxu1 %v8618_v33 }
0x16ec   : > { %v8624_v21 = vpop.permute.xlu1 %8623  ;;  %13914 = vmatmul.mubr.msk.f32.gmra.mxu1 %vm381_vm1, %v8620_v49 }
0x16ed   : > { %13954 = vmatprep.subr.mxu0 %v8624_v21  ;;  %13941 = vmatpush3.msra.mxu1 %v8618_v33 }
0x16ee   : > { %13955 = vmatpush3.msra.mxu0 %v8624_v21  ;;  %v8622_v24 = vpop.permute.xlu0 %8621 }
0x16ef   : > { %13930 = vmatmul.mubr.msk.f32.gmra.mxu0 %vm511_vm0, %v17805_v42  ;;  %13916 = vmatprep.mubr.msk.f32.mxu1 %vm381_vm1, %v8622_v24 }
0x16f0   : > { %13956 = vmatprep.subr.mxu0 %v8622_v24  ;;  %v8628_v15 = vpop.permute.xlu1 %8627  ;;  %13917 = vmatmul.mubr.msk.f32.gmra.mxu1 %vm381_vm1, %v8624_v21 }
0x16f1   : > { %13957 = vmatpush3.msra.mxu0 %v8622_v24  ;;  %13970 = vmatprep.subr.mxu1 %v8628_v15 }
0x16f2   : > { %13932 = vmatprep.mubr.msk.f32.mxu0 %vm511_vm0, %v17444_v5  ;;  %v8626_v45 = vpop.permute.xlu0 %8625  ;;  %13986 = vmatprep.subr.mxu0 %v17453_v0  ;;  %v17827_v5 = vld [vmem:[%s15027_s28 + $0x40] sm:$0xff] }
0x16f3   : > { %13933 = vmatmul.mubr.msk.f32.gmra.mxu0 %vm511_vm0, %v17814_v51  ;;  %13919 = vmatprep.mubr.msk.f32.mxu1 %vm381_vm1, %v8626_v45 }
0x16f4   : > { %13935 = vmatprep.mubr.msk.f32.mxu0 %vm511_vm0, %v17821_v35  ;;  %13920 = vmatmul.mubr.msk.f32.gmra.mxu1 %vm381_vm1, %v8628_v15 }
0x16f5   : > { %13942 = vmatprep.mubr.msk.f32.mxu1 %vm511_vm0, %v17827_v5 }
0x16f7   : > { %13936 = vmatmul.mubr.msk.f32.gmra.mxu0 %vm511_vm0, %v17832_v3 }
0x16f8   : > { %13958 = vmatprep.mubr.msk.f32.mxu0 %vm511_vm0, %v17837_v44  ;;  %13943 = vmatmul.mubr.msk.f32.vlgmr.msra.gmra.mxu1 %vm511_vm0, %v17842_v39 }
0x16f9   : > { %13971 = vmatpush3.msra.mxu1 %v8628_v15  ;;  %13945 = vmatprep.mubr.msk.f32.mxu1 %vm511_vm0, %v17847_v34 }
0x16fa   : > { %13972 = vmatprep.subr.mxu1 %v8626_v45 }
0x16fb   : > { %13959 = vmatmul.mubr.msk.f32.vlgmr.msra.gmra.mxu0 %vm511_vm0, %v17852_v26  ;;  %13973 = vmatpush3.msra.mxu1 %v8626_v45  ;;  %v18037_v45 = vld [vmem:[%s18667_s3 + $0x50] sm:$0xff] }
0x16fc   : > { %13961 = vmatprep.mubr.msk.f32.mxu0 %vm511_vm0, %v17857_v52  ;;  %13946 = vmatmul.mubr.msk.f32.gmra.mxu1 %vm511_vm0, %v17862_v61  ;;  %19081 = vst [vmem:[#allocation16_spill] sm:$0xff] %v18037_v45 }
0x16fd   : > { %13987 = vmatpush3.msra.mxu0 %v17453_v0  ;;  %13948 = vmatprep.mubr.msk.f32.mxu1 %vm511_vm0, %v17868_v9  ;;  %v17886_v0 = vld [vmem:[%s18667_s3 + $0x38] sm:$0xff] }
0x16fe   : > { %13988 = vmatprep.subr.mxu0 %v17875_v27  ;;  %14006 = vmatprep.subr.mxu1 %v17886_v0 }
0x16ff   : > { %13962 = vmatmul.mubr.msk.f32.gmra.mxu0 %vm511_vm0, %v17879_v11 }
0x1700   : > { %13964 = vmatprep.mubr.msk.f32.mxu0 %vm511_vm0, %v17890_v10  ;;  %13989 = vmatpush3.msra.mxu0 %v17875_v27 }
0x1701   : > { %13949 = vmatmul.mubr.msk.f32.gmra.mxu1 %vm511_vm0, %v17896_v46  ;;  %13990 = vmatprep.subr.mxu0 %v17903_v60 }
0x1702   : > { %13951 = vmatprep.mubr.msk.f32.mxu1 %vm511_vm0, %v17907_v53  ;;  %13991 = vmatpush3.msra.mxu0 %v17903_v60  ;;  %v18157_v60 = vld [vmem:[%s15459_s14 + $0x28] sm:$0xff] }
0x1703   : > { %13965 = vmatmul.mubr.msk.f32.gmra.mxu0 %vm511_vm0, %v17913_v48  ;;  %13992 = vmatprep.subr.mxu0 %v17920_v38 }
0x1704   : > { %13967 = vmatprep.mubr.msk.f32.mxu0 %vm511_vm0, %v17924_v25  ;;  %13993 = vmatpush3.msra.mxu0 %v17920_v38  ;;  %v18153_v25 = vld [vmem:[%s15459_s14 + $0x18] sm:$0xff] }
0x1705   : > { %13952 = vmatmul.mubr.msk.f32.gmra.mxu1 %vm511_vm0, %v17930_v54  ;;  %14026 = vmatprep.subr.mxu0 %v17937_v55 }
0x1706   : > { %13974 = vmatprep.mubr.msk.f32.mxu1 %vm511_vm0, %v17941_v47 }
0x1707   : > { %13968 = vmatmul.mubr.msk.f32.gmra.mxu0 %vm511_vm0, %v17946_v43 }
0x1709   : > { %13975 = vmatmul.mubr.msk.f32.vlgmr.msra.gmra.mxu1 %vm511_vm0, %v17951_v58 }
0x170a   : > { %13977 = vmatprep.mubr.msk.f32.mxu1 %vm511_vm0, %v17956_v63  ;;  %14007 = vmatpush3.msra.mxu1 %v17886_v0 }
0x170b   : > { %14008 = vmatprep.subr.mxu1 %v17964_v22 }
0x170c   : > { %14009 = vmatpush3.msra.mxu1 %v17964_v22 }
0x170d   : > { %13978 = vmatmul.mubr.msk.f32.gmra.mxu1 %vm511_vm0, %v17969_v20  ;;  %14010 = vmatprep.subr.mxu1 %v17976_v28 }
0x170e   : > { %13980 = vmatprep.mubr.msk.f32.mxu1 %vm511_vm0, %v17980_v30  ;;  %14011 = vmatpush3.msra.mxu1 %v17976_v28  ;;  %v18100_v30 = vld [vmem:[%s18667_s3 + $0x60] sm:$0xff] }
0x170f   : > { %14012 = vmatprep.subr.mxu1 %v17988_v19  ;;  %19086 = vst [vmem:[#allocation28_spill] sm:$0xff] %v18100_v30 }
0x1710   : > { %14013 = vmatpush3.msra.mxu1 %v17988_v19 }
0x1711   : > { %13981 = vmatmul.mubr.msk.f32.gmra.mxu1 %vm511_vm0, %v17993_v7  ;;  %14046 = vmatprep.subr.mxu1 %v18000_v62  ;;  %v18087_v7 = vld [vmem:[%s18667_s3 + $0x68] sm:$0xff] }
0x1712   : > { %13983 = vmatprep.mubr.msk.f32.mxu1 %vm511_vm0, %v18004_v57  ;;  %19085 = vst [vmem:[#allocation18_spill] sm:$0xff] %v18087_v7 }
0x1715   : > { %13984 = vmatmul.mubr.msk.f32.gmra.mxu1 %vm511_vm0, %v18009_v16 }
0x17a8   : > { %v13912_v18 = vpop.f32.mrf.mxu1 }
0x17a9   : > { %v18019_v32 = vadd.f32 %v18016_v50, %v13912_v18  ;;  %v13928_v31 = vpop.f32.mrf.mxu0 }
0x17aa   : > { %v8711_v17 = vpop.f32.mrf.mxu1 }
0x17ab   : > { %v18022_v4 = vadd.f32 %v18016_v50, %v8711_v17  ;;  %9792 = vrot.lane.b32.xlu1 %v18019_v32, %s14905_s10  ;;  %v8818_v49 = vpop.f32.mrf.mxu0 }
0x17ac   : > { %13994 = vmatprep.mubr.msk.f32.mxu0 %vm381_vm1, %v8818_v49  ;;  %v13915_v33 = vpop.f32.mrf.mxu1  ;;  %v18049_v49 = vld [vmem:[%s18667_s3 + $0x48] sm:$0xff] }
0x17ad   : > { %9790 = vrot.lane.b32.xlu0 %v18022_v4, %s14905_s10  ;;  %13995 = vmatmul.mubr.msk.f32.vlgmr.msra.gmra.mxu0 %vm381_vm1, %v13928_v31  ;;  %v18031_v21 = vadd.f32 %v18016_v50, %v13915_v33  ;;  %19082 = vst [vmem:[#allocation25_spill] sm:$0xff] %v18049_v49 }
0x17ae   : > { %14027 = vmatpush3.msra.mxu0 %v17937_v55  ;;  %v8721_v24 = vpop.f32.mrf.mxu1 }
0x17af   : > { %v13931_v15 = vpop.f32.mrf.mxu0  ;;  %14028 = vmatprep.subr.mxu0 %v18037_v45  ;;  %v18041_v18 = vadd.f32 %v18016_v50, %v8721_v24  ;;  %9796 = vrot.lane.b32.xlu1 %v18031_v21, %s14905_s10 }
0x17b0   : > { %14029 = vmatpush3.msra.mxu0 %v18037_v45  ;;  %v13918_v31 = vpop.f32.mrf.mxu1 }
0x17b1   : > { %v8828_v17 = vpop.f32.mrf.mxu0  ;;  %14030 = vmatprep.subr.mxu0 %v18049_v49  ;;  %v18053_v33 = vadd.f32 %v18016_v50, %v13918_v31  ;;  %9794 = vrot.lane.b32.xlu0 %v18041_v18, %s14905_s10 }
0x17b2   : > { %14014 = vmatprep.mubr.msk.f32.mxu1 %vm381_vm1, %v8828_v17  ;;  %v8731_v24 = vpop.f32.mrf.mxu1  ;;  %14031 = vmatpush3.msra.mxu0 %v18049_v49  ;;  %v18069_v17 = vld [vmem:[%s18667_s3 + $0x70] sm:$0xff] }
0x17b3   : > { %v13934_v16 = vpop.f32.mrf.mxu0  ;;  %14015 = vmatmul.mubr.msk.f32.vlgmr.msra.gmra.mxu1 %vm381_vm1, %v13931_v15  ;;  %v18061_v45 = vadd.f32 %v18016_v50, %v8731_v24  ;;  %9800 = vrot.lane.b32.xlu1 %v18053_v33, %s14905_s10  ;;  %19083 = vst [vmem:[#allocation17_spill] sm:$0xff] %v18069_v17  ;;  %v18075_v15 = vld [vmem:[%s18667_s3 + $0x40] sm:$0xff] }
0x17b4   : > { %14047 = vmatpush3.msra.mxu1 %v18000_v62  ;;  %v13921_v31 = vpop.f32.mrf.mxu1  ;;  %19084 = vst [vmem:[#allocation26_spill] sm:$0xff] %v18075_v15  ;;  %14032 = vmatprep.subr.mxu0 %v18075_v15 }
0x17b5   : > { %v8838_v57 = vpop.f32.mrf.mxu0  ;;  %14048 = vmatprep.subr.mxu1 %v18069_v17  ;;  %v18079_v24 = vadd.f32 %v18016_v50, %v13921_v31  ;;  %9798 = vrot.lane.b32.xlu0 %v18061_v45, %s14905_s10 }
0x17b6   : > { %14049 = vmatpush3.msra.mxu1 %v18069_v17  ;;  %v8741_v49 = vpop.f32.mrf.mxu1  ;;  %14033 = vmatpush3.msra.mxu0 %v18075_v15 }
0x17b7   : > { %v13937_v62 = vpop.f32.mrf.mxu0  ;;  %14050 = vmatprep.subr.mxu1 %v18087_v7  ;;  %v18092_v19 = vadd.f32 %v18016_v50, %v8741_v49  ;;  %9804 = vrot.lane.b32.xlu1 %v18079_v24, %s14905_s10 }
0x17b8   : > { %14051 = vmatpush3.msra.mxu1 %v18087_v7  ;;  %v13944_v31 = vpop.f32.mrf.mxu1  ;;  %14066 = vmatprep.subr.mxu0 %v17585_v6 }
0x17b9   : > { %v8848_v17 = vpop.f32.mrf.mxu0  ;;  %14052 = vmatprep.subr.mxu1 %v18100_v30  ;;  %9802 = vrot.lane.b32.xlu0 %v18092_v19, %s14905_s10 }
0x17ba   : > { %14053 = vmatpush3.msra.mxu1 %v18100_v30  ;;  %v8925_v49 = vpop.f32.mrf.mxu1 }
0x17bb   : > { %v13960_v15 = vpop.f32.mrf.mxu0  ;;  %13997 = vmatprep.mubr.msk.f32.mxu0 %vm381_vm1, %v8925_v49 }
0x17bc   : > { %v13947_v7 = vpop.f32.mrf.mxu1  ;;  %13998 = vmatmul.mubr.msk.f32.gmra.mxu0 %vm381_vm1, %v13944_v31 }
0x17bd   : > { %v9032_v50 = vpop.f32.mrf.mxu0 }
0x17be   : > { %14000 = vmatprep.mubr.msk.f32.mxu0 %vm381_vm1, %v9032_v50  ;;  %v8935_v28 = vpop.f32.mrf.mxu1 }
0x17bf   : > { %v13963_v20 = vpop.f32.mrf.mxu0  ;;  %14017 = vmatprep.mubr.msk.f32.mxu1 %vm381_vm1, %v8935_v28 }
0x17c0   : > { %14018 = vmatmul.mubr.msk.f32.gmra.mxu1 %vm381_vm1, %v13947_v7  ;;  %14001 = vmatmul.mubr.msk.f32.gmra.mxu0 %vm381_vm1, %v13960_v15 }
0x17c1   : > { %v13950_v22 = vpop.f32.mrf.mxu1  ;;  %v9042_v63 = vpop.f32.mrf.mxu0 }
0x17c2   : > { %14020 = vmatprep.mubr.msk.f32.mxu1 %vm381_vm1, %v9042_v63 }
0x17c3   : > { %v8945_v30 = vpop.f32.mrf.mxu1  ;;  %v13966_v50 = vpop.f32.mrf.mxu0 }
0x17c4   : > { %14021 = vmatmul.mubr.msk.f32.gmra.mxu1 %vm381_vm1, %v13963_v20 }
0x17c5   : > { %v13953_v49 = vpop.f32.mrf.mxu1  ;;  %v9052_v7 = vpop.f32.mrf.mxu0 }
0x17c7   : > { %v8955_v31 = vpop.f32.mrf.mxu1  ;;  %v13969_v20 = vpop.f32.mrf.mxu0 }
0x17c9   : > { %v13976_v58 = vpop.f32.mrf.mxu1 }
0x17cb   : > { %v9139_v43 = vpop.f32.mrf.mxu1 }
0x17cc   : > { %14003 = vmatprep.mubr.msk.f32.mxu0 %vm381_vm1, %v9139_v43 }
0x17cd   : > { %v13979_v47 = vpop.f32.mrf.mxu1  ;;  %14004 = vmatmul.mubr.msk.f32.gmra.mxu0 %vm381_vm1, %v13976_v58 }
0x17ce   : > { %14034 = vmatprep.mubr.msk.f32.mxu0 %vm381_vm1, %v8838_v57 }
0x17cf   : > { %v9149_v28 = vpop.f32.mrf.mxu1 }
0x17d0   : > { %14023 = vmatprep.mubr.msk.f32.mxu1 %vm381_vm1, %v9149_v28 }
0x17d1   : > { %14024 = vmatmul.mubr.msk.f32.gmra.mxu1 %vm381_vm1, %v13979_v47  ;;  %14035 = vmatmul.mubr.msk.f32.vlgmr.msra.gmra.mxu0 %vm381_vm1, %v13934_v16  ;;  %v13982_v63 = vpop.f32.mrf.mxu1  ;;  %v9062_v47 = vpop.f32.mrf.mxu0 }
0x17d2   : > { %14037 = vmatprep.mubr.msk.f32.mxu0 %vm381_vm1, %v8945_v30  ;;  %14054 = vmatprep.mubr.msk.f32.mxu1 %vm381_vm1, %v8848_v17 }
0x17d3   : > { %v9159_v43 = vpop.f32.mrf.mxu1  ;;  %14067 = vmatpush3.msra.mxu0 %v17585_v6 }
0x17d4   : > { %14068 = vmatprep.subr.mxu0 %v17611_v41 }
0x17d5   : > { %14038 = vmatmul.mubr.msk.f32.gmra.mxu0 %vm381_vm1, %v13950_v22  ;;  %14055 = vmatmul.mubr.msk.f32.vlgmr.msra.gmra.mxu1 %vm381_vm1, %v13937_v62  ;;  %v13985_v58 = vpop.f32.mrf.mxu1 }
0x17d6   : > { %14057 = vmatprep.mubr.msk.f32.mxu1 %vm381_vm1, %v8955_v31  ;;  %14040 = vmatprep.mubr.msk.f32.mxu0 %vm381_vm1, %v9052_v7 }
0x17d7   : > { %14069 = vmatpush3.msra.mxu0 %v17611_v41  ;;  %v9169_v6 = vpop.f32.mrf.mxu1 }
0x17d8   : > { %14070 = vmatprep.subr.mxu0 %v17622_v23 }
0x17d9   : > { %14041 = vmatmul.mubr.msk.f32.gmra.mxu0 %vm381_vm1, %v13966_v50  ;;  %14058 = vmatmul.mubr.msk.f32.gmra.mxu1 %vm381_vm1, %v13953_v49 }
0x17da   : > { %14043 = vmatprep.mubr.msk.f32.mxu0 %vm381_vm1, %v9159_v43  ;;  %14060 = vmatprep.mubr.msk.f32.mxu1 %vm381_vm1, %v9062_v47 }
0x17db   : > { %14071 = vmatpush3.msra.mxu0 %v17622_v23 }
0x17dc   : > { %14072 = vmatprep.subr.mxu0 %v17633_v37 }
0x17dd   : > { %14044 = vmatmul.mubr.msk.f32.gmra.mxu0 %vm381_vm1, %v13982_v63  ;;  %14061 = vmatmul.mubr.msk.f32.gmra.mxu1 %vm381_vm1, %v13969_v20  ;;  %v18149_v63 = vld [vmem:[%s15459_s14] sm:$0xff] }
0x17de   : > { %14063 = vmatprep.mubr.msk.f32.mxu1 %vm381_vm1, %v9169_v6  ;;  %14073 = vmatpush3.msra.mxu0 %v17633_v37  ;;  %v18145_v37 = vld [vmem:[%s15459_s14 + $0x8] sm:$0xff]  ;;  %19088 = vst [vmem:[#allocation20_spill] sm:$0xff] %v18149_v63 }
0x17df   : > { %19087 = vst [vmem:[#allocation19_spill] sm:$0xff] %v18145_v37 }
0x17e1   : > { %14064 = vmatmul.mubr.msk.f32.gmra.mxu1 %vm381_vm1, %v13985_v58 }
0x17e2   : > { %14090 = vmatprep.mubr.msk.f32.mxu1 %vm511_vm0, %v17642_v1 }
0x186d   : > { %v13996_v41 = vpop.f32.mrf.mxu0 }
0x186e   : > { %v9308_v28 = vadd.f32 %v18145_v37, %v13996_v41 }
0x186f   : > { %v9268_v23 = vpop.f32.mrf.mxu0 }
0x1870   : > { %v9307_v20 = vadd.f32 %v18149_v63, %v9268_v23 }
0x1873   : > { %v14016_v22 = vpop.f32.mrf.mxu1 }
0x1874   : > { %v9445_v58 = vadd.f32 %v14016_v22, %v9308_v28  ;;  %v18163_v22 = vld [vmem:[%s15459_s14 + $0x10] sm:$0xff] }
0x1875   : > { %v9405_v30 = vpop.f32.mrf.mxu1  ;;  %19089 = vst [vmem:[#allocation29_spill] sm:$0xff] %v18163_v22 }
0x1876   : > { %v9444_v54 = vadd.f32 %v9405_v30, %v9307_v20  ;;  %v18167_v30 = vld [vmem:[%s15459_s14 + $0x20] sm:$0xff] }
0x1877   : > { %19090 = vst [vmem:[#allocation30_spill] sm:$0xff] %v18167_v30 }
0x187c   : > { %v13999_v62 = vpop.f32.mrf.mxu0 }
0x187d   : > { %v9310_v38 = vadd.f32 %v18153_v25, %v13999_v62 }
0x187e   : > { %v9278_v16 = vpop.f32.mrf.mxu0 }
0x187f   : > { %v9309_v28 = vadd.f32 %v18163_v22, %v9278_v16 }
0x1880   : > { %v14019_v57 = vpop.f32.mrf.mxu1  ;;  %v14002_v15 = vpop.f32.mrf.mxu0 }
0x1881   : > { %v9447_v53 = vadd.f32 %v14019_v57, %v9310_v38  ;;  %v9312_v23 = vadd.f32 %v18157_v60, %v14002_v15 }
0x1882   : > { %v9415_v17 = vpop.f32.mrf.mxu1  ;;  %v9288_v49 = vpop.f32.mrf.mxu0 }
0x1883   : > { %v9311_v62 = vadd.f32 %v18167_v30, %v9288_v49  ;;  %v18179_v30 = vld [vmem:[%s15459_s14 + $0x38] sm:$0xff] }
0x1884   : > { %v14022_v31 = vpop.f32.mrf.mxu1 }
0x1885   : > { %v9449_v15 = vadd.f32 %v14022_v31, %v9312_v23  ;;  %v18185_v23 = vld [vmem:[%s15459_s14 + $0x30] sm:$0xff] }
0x1886   : > { %v9425_v7 = vpop.f32.mrf.mxu1 }
0x1887   : > { %v9448_v49 = vadd.f32 %v9425_v7, %v9311_v62 }
0x188d   : > { %v14005_v50 = vpop.f32.mrf.mxu0 }
0x188f   : > { %v9298_v1 = vpop.f32.mrf.mxu0 }
0x1891   : > { %v14025_v43 = vpop.f32.mrf.mxu1  ;;  %v14036_v47 = vpop.f32.mrf.mxu0 }
0x1892   : > { %v9582_v41 = vadd.f32 %v14036_v47, %v9445_v58 }
0x1893   : > { %v9435_v6 = vpop.f32.mrf.mxu1  ;;  %v9542_v55 = vpop.f32.mrf.mxu0 }
0x1894   : > { %v9581_v63 = vadd.f32 %v9542_v55, %v9444_v54  ;;  %v9446_v54 = vadd.f32 %v9415_v17, %v9309_v28 }
0x1895   : > { %v14039_v37 = vpop.f32.mrf.mxu0  ;;  %v14056_v48 = vpop.f32.mrf.mxu1 }
0x1896   : > { %v18160_v46 = vadd.f32 %v14056_v48, %v9582_v41  ;;  %v9584_v58 = vadd.f32 %v14039_v37, %v9447_v53  ;;  %v9314_v53 = vadd.f32 %v18179_v30, %v14005_v50 }
0x1897   : > { %v9552_v20 = vpop.f32.mrf.mxu0  ;;  %v9679_v47 = vpop.f32.mrf.mxu1 }
0x1898   : > { %v9727_v38 = vadd.f32 %v18160_v46, %v18019_v32  ;;  %v18172_v57 = vadd.f32 %v9679_v47, %v9581_v63  ;;  %v9583_v37 = vadd.f32 %v9552_v20, %v9446_v54  ;;  %v9451_v47 = vadd.f32 %v14025_v43, %v9314_v53 }
0x1899   : > { %v14042_v48 = vpop.f32.mrf.mxu0  ;;  %v14059_v55 = vpop.f32.mrf.mxu1 }
0x189a   : > { %v12020_v41 = vmul.f32 -1.442695, %v9727_v38  ;;  %v9726_v16 = vadd.f32 %v18172_v57, %v18022_v4  ;;  %v18176_v22 = vadd.f32 %v14059_v55, %v9584_v58  ;;  %v9586_v28 = vadd.f32 %v14042_v48, %v9449_v15 }
0x189b   : > { %v9562_v32 = vpop.f32.mrf.mxu0  ;;  %v9689_v63 = vpop.f32.mrf.mxu1  ;;  %v9313_v4 = vadd.f32 %v18185_v23, %v9298_v1 }
0x189c   : > { %14562 = vpow2.f32 %v12020_v41  ;;  %v12019_v17 = vmul.f32 -1.442695, %v9726_v16  ;;  %v9729_v31 = vadd.f32 %v18176_v22, %v18031_v21  ;;  %v18188_v58 = vadd.f32 %v9689_v63, %v9583_v37 }
0x189d   : > { %v14045_v7 = vpop.f32.mrf.mxu0  ;;  %v14062_v62 = vpop.f32.mrf.mxu1  ;;  %v9585_v20 = vadd.f32 %v9562_v32, %v9448_v49  ;;  %v9450_v54 = vadd.f32 %v9435_v6, %v9313_v4 }
0x189e   : > { %14564 = vpow2.f32 %v12019_v17  ;;  %v12022_v50 = vmul.f32 -1.442695, %v9729_v31  ;;  %v18190_v38 = vadd.f32 %v14062_v62, %v9586_v28  ;;  %v9728_v48 = vadd.f32 %v18188_v58, %v18041_v18 }
0x189f   : > { %v9572_v55 = vpop.f32.mrf.mxu0  ;;  %v9699_v21 = vpop.f32.mrf.mxu1  ;;  %v9588_v15 = vadd.f32 %v14045_v7, %v9451_v47 }
0x18a0   : > { %14566 = vpow2.f32 %v12022_v50  ;;  %v9731_v1 = vadd.f32 %v18190_v38, %v18053_v33  ;;  %v18196_v43 = vadd.f32 %v9699_v21, %v9585_v20  ;;  %v12021_v41 = vmul.f32 -1.442695, %v9728_v48  ;;  %v9793_v21 = vpop.permute.xlu1 %9792 }
0x18a1   : > { %v14065_v16 = vpop.f32.mrf.mxu1  ;;  %v9587_v37 = vadd.f32 %v9572_v55, %v9450_v54 }
0x18a2   : > { %v12024_v53 = vmul.f32 -1.442695, %v9731_v1  ;;  %v9730_v49 = vadd.f32 %v18196_v43, %v18061_v45  ;;  %v18200_v6 = vadd.f32 %v14065_v16, %v9588_v15  ;;  %14568 = vpow2.f32 %v12021_v41  ;;  %v9791_v1 = vpop.permute.xlu0 %9790 }
0x18a3   : > { %v9709_v18 = vpop.f32.mrf.mxu1 }
0x18a4   : > { %14570 = vpow2.f32 %v12024_v53  ;;  %v12023_v32 = vmul.f32 -1.442695, %v9730_v49  ;;  %v9733_v63 = vadd.f32 %v18200_v6, %v18079_v24  ;;  %v18204_v17 = vadd.f32 %v9709_v18, %v9587_v37  ;;  %v9797_v49 = vpop.permute.xlu1 %9796 }
0x18a6   : > { %14572 = vpow2.f32 %v12023_v32  ;;  %v12026_v33 = vmul.f32 -1.442695, %v9733_v63  ;;  %v9732_v28 = vadd.f32 %v18204_v17, %v18092_v19  ;;  %v9795_v63 = vpop.permute.xlu0 %9794 }
0x18a8   : > { %14574 = vpow2.f32 %v12026_v33  ;;  %v12025_v31 = vmul.f32 -1.442695, %v9732_v28 }
0x18a9   : > { %v14563_v4 = vpop.eup %14562 }
0x18aa   : > { %v9759_v45 = vadd.f32 1.0, %v14563_v4  ;;  %14576 = vpow2.f32 %v12025_v31  ;;  %v9801_v4 = vpop.permute.xlu1 %9800 }
0x18ab   : > { %v14565_v47 = vpop.eup %14564 }
0x18ac   : > { %14578 = vrcp.f32 %v9759_v45  ;;  %v9758_v7 = vadd.f32 1.0, %v14565_v47 }
0x18ad   : > { %v14567_v62 = vpop.eup %14566 }
0x18ae   : > { %14580 = vrcp.f32 %v9758_v7  ;;  %v9761_v50 = vadd.f32 1.0, %v14567_v62  ;;  %v9799_v7 = vpop.permute.xlu0 %9798 }
0x18af   : > { %v14569_v20 = vpop.eup %14568 }
0x18b0   : > { %14582 = vrcp.f32 %v9761_v50  ;;  %v9760_v54 = vadd.f32 1.0, %v14569_v20 }
0x18b1   : > { %v14571_v24 = vpop.eup %14570 }
0x18b2   : > { %v9763_v48 = vadd.f32 1.0, %v14571_v24  ;;  %14584 = vrcp.f32 %v9760_v54 }
0x18b3   : > { %v14573_v55 = vpop.eup %14572 }
0x18b4   : > { %14586 = vrcp.f32 %v9763_v48  ;;  %v9762_v19 = vadd.f32 1.0, %v14573_v55  ;;  %v9805_v48 = vpop.permute.xlu1 %9804 }
0x18b5   : > { %v14575_v15 = vpop.eup %14574 }
0x18b6   : > { %14588 = vrcp.f32 %v9762_v19  ;;  %v9765_v41 = vadd.f32 1.0, %v14575_v15  ;;  %v9803_v19 = vpop.permute.xlu0 %9802 }
0x18b7   : > { %v14577_v16 = vpop.eup %14576 }
0x18b8   : > { %14590 = vrcp.f32 %v9765_v41  ;;  %v9764_v53 = vadd.f32 1.0, %v14577_v16 }
0x18b9   : > { %v18208_v37 = vpop.eup %14578 }
0x18ba   : > { %14592 = vrcp.f32 %v9764_v53  ;;  %v9815_v18 = vmul.f32 %v18208_v37, %v9793_v21 }
0x18bb   : > { %v18211_v32 = vpop.eup %14580 }
0x18bc   : > { %9832 = vrot.lane.b32.xlu1 %v9815_v18, %s14905_s10  ;;  %v9814_v33 = vmul.f32 %v18211_v32, %v9791_v1 }
0x18bd   : > { %v18215_v28 = vpop.eup %14582 }
0x18be   : > { %9830 = vrot.lane.b32.xlu0 %v9814_v33, %s14905_s10  ;;  %v9817_v31 = vmul.f32 %v18215_v28, %v9797_v49 }
0x18bf   : > { %v18219_v45 = vpop.eup %14584 }
0x18c0   : > { %9836 = vrot.lane.b32.xlu1 %v9817_v31, %s14905_s10  ;;  %v9816_v62 = vmul.f32 %v18219_v45, %v9795_v63 }
0x18c1   : > { %v18222_v47 = vpop.eup %14586 }
0x18c2   : > { %v9819_v50 = vmul.f32 %v18222_v47, %v9801_v4  ;;  %9834 = vrot.lane.b32.xlu0 %v9816_v62, %s14905_s10 }
0x18c3   : > { %v18226_v20 = vpop.eup %14588 }
0x18c4   : > { %9840 = vrot.lane.b32.xlu1 %v9819_v50, %s14905_s10  ;;  %v9818_v24 = vmul.f32 %v18226_v20, %v9799_v7 }
0x18c5   : > { %v18231_v54 = vpop.eup %14590 }
0x18c6   : > { %v9821_v55 = vmul.f32 %v18231_v54, %v9805_v48  ;;  %9838 = vrot.lane.b32.xlu0 %v9818_v24, %s14905_s10 }
0x18c7   : > { %v18234_v21 = vpop.eup %14592 }
0x18c8   : > { %9844 = vrot.lane.b32.xlu1 %v9821_v55, %s14905_s10  ;;  %v9820_v15 = vmul.f32 %v18234_v21, %v9803_v19 }
0x18ca   : > { %9842 = vrot.lane.b32.xlu0 %v9820_v15, %s14905_s10 }
0x192e   : > { %v9833_v1 = vpop.permute.xlu1 %9832 }
0x192f   : > { %v9855_v41 = vadd.f32 %v9833_v1, %v18160_v46 }
0x1930   : > { %v9831_v16 = vpop.permute.xlu0 %9830 }
0x1931   : > { %14594 = vtanh.f32 %v9855_v41  ;;  %v9854_v53 = vadd.f32 %v9831_v16, %v18172_v57 }
0x1932   : > { %v9837_v49 = vpop.permute.xlu1 %9836 }
0x1933   : > { %14596 = vtanh.f32 %v9854_v53  ;;  %v9857_v18 = vadd.f32 %v9837_v49, %v18176_v22 }
0x1934   : > { %v9835_v63 = vpop.permute.xlu0 %9834 }
0x1935   : > { %14598 = vtanh.f32 %v9857_v18  ;;  %v9856_v33 = vadd.f32 %v9835_v63, %v18188_v58 }
0x1936   : > { %v9841_v31 = vpop.permute.xlu1 %9840 }
0x1937   : > { %v9859_v4 = vadd.f32 %v9841_v31, %v18190_v38  ;;  %14600 = vtanh.f32 %v9856_v33 }
0x1938   : > { %v9839_v7 = vpop.permute.xlu0 %9838 }
0x1939   : > { %14602 = vtanh.f32 %v9859_v4  ;;  %v9858_v46 = vadd.f32 %v9839_v7, %v18196_v43 }
0x193a   : > { %v9845_v62 = vpop.permute.xlu1 %9844 }
0x193b   : > { %v9861_v50 = vadd.f32 %v9845_v62, %v18200_v6  ;;  %14604 = vtanh.f32 %v9858_v46 }
0x193c   : > { %v9843_v57 = vpop.permute.xlu0 %9842 }
0x193d   : > { %14606 = vtanh.f32 %v9861_v50  ;;  %v9860_v22 = vadd.f32 %v9843_v57, %v18204_v17 }
0x193e   : > { %v14595_v24 = vpop.eup %14594 }
0x193f   : > { %v9871_v48 = vsub.f32 %v17758_v29, %v14595_v24  ;;  %14608 = vtanh.f32 %v9860_v22 }
0x1940   : > { %v14597_v58 = vpop.eup %14596 }
0x1941   : > { %9888 = vrot.lane.b32.xlu1 %v9871_v48, %s14907_s13  ;;  %v9870_v38 = vsub.f32 %v17760_v2, %v14597_v58 }
0x1942   : > { %v14599_v55 = vpop.eup %14598 }
0x1943   : > { %9886 = vrot.lane.b32.xlu0 %v9870_v38, %s14907_s13  ;;  %v9873_v43 = vsub.f32 %v17764_v56, %v14599_v55 }
0x1944   : > { %v14601_v6 = vpop.eup %14600 }
0x1945   : > { %9892 = vrot.lane.b32.xlu1 %v9873_v43, %s14907_s13  ;;  %v9872_v15 = vsub.f32 %v17770_v8, %v14601_v6 }
0x1946   : > { %v14603_v19 = vpop.eup %14602 }
0x1947   : > { %v9875_v17 = vsub.f32 %v17772_v14, %v14603_v19  ;;  %9890 = vrot.lane.b32.xlu0 %v9872_v15, %s14907_s13 }
0x1948   : > { %v14605_v29 = vpop.eup %14604 }
0x1949   : > { %9896 = vrot.lane.b32.xlu1 %v9875_v17, %s14907_s13  ;;  %v9874_v2 = vsub.f32 %v17778_v36, %v14605_v29 }
0x194a   : > { %v14607_v1 = vpop.eup %14606 }
0x194b   : > { %v9877_v41 = vsub.f32 %v17780_v59, %v14607_v1  ;;  %9894 = vrot.lane.b32.xlu0 %v9874_v2, %s14907_s13 }
0x194c   : > { %v14609_v56 = vpop.eup %14608 }
0x194d   : > { %9900 = vrot.lane.b32.xlu1 %v9877_v41, %s14907_s13  ;;  %v9876_v16 = vsub.f32 %v17786_v12, %v14609_v56  ;;  %v14842_v41 = vld [vmem:[%s18667_s3 + $0x18] sm:$0xff] }
0x194f   : > { %9898 = vrot.lane.b32.xlu0 %v9876_v16, %s14907_s13  ;;  %v19107_v16 = vld [vmem:[#allocation27_spill] sm:$0xff] }
0x19b3   : > { %v9889_v8 = vpop.permute.xlu1 %9888 }
0x19b4   : > { %v9911_v14 = vmul.f32 %v18208_v37, %v9889_v8  ;;  %v19108_v8 = vld [vmem:[#allocation13_spill] sm:$0xff] }
0x19b5   : > { %v9887_v53 = vpop.permute.xlu0 %9886 }
0x19b6   : > { %v9910_v49 = vmul.f32 %v18211_v32, %v9887_v53  ;;  %9928 = vrot.lane.b32.xlu1 %v9911_v14, %s14906_s9  ;;  %v19110_v14 = vld [vmem:[#allocation14_spill] sm:$0xff]  ;;  %v19111_v53 = vld [vmem:[#allocation15_spill] sm:$0xff] }
0x19b7   : > { %v9893_v36 = vpop.permute.xlu1 %9892 }
0x19b8   : > { %v9913_v59 = vmul.f32 %v18215_v28, %v9893_v36  ;;  %9926 = vrot.lane.b32.xlu0 %v9910_v49, %s14906_s9  ;;  %v19112_v36 = vld [vmem:[#allocation24_spill] sm:$0xff] }
0x19b9   : > { %v9891_v18 = vpop.permute.xlu0 %9890 }
0x19ba   : > { %9932 = vrot.lane.b32.xlu1 %v9913_v59, %s14906_s9  ;;  %v9912_v12 = vmul.f32 %v18219_v45, %v9891_v18 }
0x19bb   : > { %v9897_v63 = vpop.permute.xlu1 %9896 }
0x19bc   : > { %v9915_v33 = vmul.f32 %v18222_v47, %v9897_v63  ;;  %9930 = vrot.lane.b32.xlu0 %v9912_v12, %s14906_s9 }
0x19bd   : > { %v9895_v37 = vpop.permute.xlu0 %9894 }
0x19be   : > { %9936 = vrot.lane.b32.xlu1 %v9915_v33, %s14906_s9  ;;  %v9914_v32 = vmul.f32 %v18226_v20, %v9895_v37 }
0x19bf   : > { %v9901_v31 = vpop.permute.xlu1 %9900 }
0x19c0   : > { %v9917_v28 = vmul.f32 %v18231_v54, %v9901_v31  ;;  %9934 = vrot.lane.b32.xlu0 %v9914_v32, %s14906_s9 }
0x19c1   : > { %v9899_v4 = vpop.permute.xlu0 %9898 }
0x19c2   : > { %9940 = vrot.lane.b32.xlu1 %v9917_v28, %s14906_s9  ;;  %v9916_v45 = vmul.f32 %v18234_v21, %v9899_v4  ;;  %v19113_v4 = vld [vmem:[#allocation16_spill] sm:$0xff] }
0x19c4   : > { %9938 = vrot.lane.b32.xlu0 %v9916_v45, %s14906_s9 }
0x1a28   : > { %v9929_v47 = vpop.permute.xlu1 %9928 }
0x1a29   : > { %v18280_v7 = vadd.f32 %v14595_v24, %v9929_v47 }
0x1a2a   : > { %v9927_v46 = vpop.permute.xlu0 %9926 }
0x1a2b   : > { %v18282_v62 = vadd.f32 %v14597_v58, %v9927_v46  ;;  %9968 = vrot.lane.b32.xlu1 %v18280_v7, %s14905_s10 }
0x1a2c   : > { %v9933_v20 = vpop.permute.xlu1 %9932 }
0x1a2d   : > { %v18286_v54 = vadd.f32 %v14599_v55, %v9933_v20  ;;  %9966 = vrot.lane.b32.xlu0 %v18282_v62, %s14905_s10  ;;  %v19114_v20 = vld [vmem:[#allocation25_spill] sm:$0xff] }
0x1a2e   : > { %v9931_v50 = vpop.permute.xlu0 %9930 }
0x1a2f   : > { %9972 = vrot.lane.b32.xlu1 %v18286_v54, %s14905_s10  ;;  %v18292_v21 = vadd.f32 %v14601_v6, %v9931_v50 }
0x1a30   : > { %v9937_v57 = vpop.permute.xlu1 %9936 }
0x1a31   : > { %v18294_v24 = vadd.f32 %v14603_v19, %v9937_v57  ;;  %9970 = vrot.lane.b32.xlu0 %v18292_v21, %s14905_s10 }
0x1a32   : > { %v9935_v22 = vpop.permute.xlu0 %9934 }
0x1a33   : > { %9976 = vrot.lane.b32.xlu1 %v18294_v24, %s14905_s10  ;;  %v18300_v48 = vadd.f32 %v14605_v29, %v9935_v22 }
0x1a34   : > { %v9941_v58 = vpop.permute.xlu1 %9940 }
0x1a35   : > { %v18302_v38 = vadd.f32 %v14607_v1, %v9941_v58  ;;  %9974 = vrot.lane.b32.xlu0 %v18300_v48, %s14905_s10 }
0x1a36   : > { %v9939_v55 = vpop.permute.xlu0 %9938 }
0x1a37   : > { %9980 = vrot.lane.b32.xlu1 %v18302_v38, %s14905_s10  ;;  %v18308_v43 = vadd.f32 %v14609_v56, %v9939_v55  ;;  %v19106_v56 = vld [vmem:[#allocation12_spill] sm:$0xff] }
0x1a39   : > { %9978 = vrot.lane.b32.xlu0 %v18308_v43, %s14905_s10 }
0x1a9d   : > { %v9969_v6 = vpop.permute.xlu1 %9968 }
0x1a9e   : > { %14086 = vmatprep.subr.mxu1 %v9969_v6 }
0x1a9f   : > { %14087 = vmatpush3.msra.mxu1 %v9969_v6  ;;  %v9967_v19 = vpop.permute.xlu0 %9966 }
0x1aa0   : > { %14074 = vmatprep.mubr.msk.f32.mxu0 %vm381_vm1, %v9967_v19  ;;  %14088 = vmatprep.subr.mxu1 %v9967_v19 }
0x1aa1   : > { %v9973_v15 = vpop.permute.xlu1 %9972  ;;  %14075 = vmatmul.mubr.msk.f32.vlgmr.msra.gmra.mxu0 %vm381_vm1, %v9969_v6  ;;  %14089 = vmatpush3.msra.mxu1 %v9967_v19  ;;  %v19115_v19 = vld [vmem:[#allocation17_spill] sm:$0xff] }
0x1aa2   : > { %14102 = vmatprep.subr.mxu0 %v9973_v15  ;;  %14091 = vmatmul.mubr.msk.f32.vlgmr.msra.gmra.mxu1 %vm511_vm0, %v17793_v13 }
0x1aa3   : > { %14103 = vmatpush3.msra.mxu0 %v9973_v15  ;;  %14093 = vmatprep.mubr.msk.f32.mxu1 %vm511_vm0, %v17798_v40  ;;  %v9971_v17 = vpop.permute.xlu0 %9970  ;;  %v14841_v40 = vld [vmem:[%s15027_s28 + $0x20] sm:$0xff]  ;;  %s281_s28 = sand.u32 1, %s14895_s22  }
0x1aa4   : > { %14077 = vmatprep.mubr.msk.f32.mxu0 %vm381_vm1, %v9971_v17  ;;  %14104 = vmatprep.subr.mxu0 %v9971_v17 }
0x1aa5   : > { %v9977_v29 = vpop.permute.xlu1 %9976  ;;  %14078 = vmatmul.mubr.msk.f32.gmra.mxu0 %vm381_vm1, %v9973_v15  ;;  %v19116_v15 = vld [vmem:[#allocation26_spill] sm:$0xff] }
0x1aa6   : > { %14118 = vmatprep.subr.mxu1 %v9977_v29  ;;  %14105 = vmatpush3.msra.mxu0 %v9971_v17 }
0x1aa7   : > { %14119 = vmatpush3.msra.mxu1 %v9977_v29  ;;  %v9975_v1 = vpop.permute.xlu0 %9974 }
0x1aa8   : > { %14094 = vmatmul.mubr.msk.f32.gmra.mxu1 %vm511_vm0, %v17805_v42  ;;  %14080 = vmatprep.mubr.msk.f32.mxu0 %vm381_vm1, %v9975_v1  ;;  %v19091_v42 = vld [vmem:[#allocation34_spill] sm:$0xff] }
0x1aa9   : > { %14120 = vmatprep.subr.mxu1 %v9975_v1  ;;  %v9981_v13 = vpop.permute.xlu1 %9980  ;;  %14081 = vmatmul.mubr.msk.f32.gmra.mxu0 %vm381_vm1, %v9977_v29 }
0x1aaa   : > { %14121 = vmatpush3.msra.mxu1 %v9975_v1  ;;  %14134 = vmatprep.subr.mxu0 %v9981_v13 }
0x1aab   : > { %14096 = vmatprep.mubr.msk.f32.mxu1 %vm511_vm0, %v14841_v40  ;;  %v9979_v2 = vpop.permute.xlu0 %9978  ;;  %14150 = vmatprep.subr.mxu1 %v14842_v41 }
0x1aac   : > { %14097 = vmatmul.mubr.msk.f32.gmra.mxu1 %vm511_vm0, %v17814_v51  ;;  %14083 = vmatprep.mubr.msk.f32.mxu0 %vm381_vm1, %v9979_v2  ;;  %v19092_v51 = vld [vmem:[#allocation35_spill] sm:$0xff] }
0x1aad   : > { %14099 = vmatprep.mubr.msk.f32.mxu1 %vm511_vm0, %v17821_v35  ;;  %14084 = vmatmul.mubr.msk.f32.gmra.mxu0 %vm381_vm1, %v9981_v13  ;;  %v19093_v35 = vld [vmem:[#allocation36_spill] sm:$0xff] }
0x1aae   : > { %14106 = vmatprep.mubr.msk.f32.mxu0 %vm511_vm0, %v17827_v5  ;;  %v19094_v5 = vld [vmem:[#allocation37_spill] sm:$0xff] }
0x1ab0   : > { %14100 = vmatmul.mubr.msk.f32.gmra.mxu1 %vm511_vm0, %v17832_v3  ;;  %v19095_v3 = vld [vmem:[#allocation38_spill] sm:$0xff] }
0x1ab1   : > { %14122 = vmatprep.mubr.msk.f32.mxu1 %vm511_vm0, %v17837_v44  ;;  %14107 = vmatmul.mubr.msk.f32.vlgmr.msra.gmra.mxu0 %vm511_vm0, %v17842_v39  ;;  %v19096_v44 = vld [vmem:[#allocation39_spill] sm:$0xff]  ;;  %v19097_v39 = vld [vmem:[#allocation5_spill] sm:$0xff] }
0x1ab2   : > { %14135 = vmatpush3.msra.mxu0 %v9981_v13  ;;  %14109 = vmatprep.mubr.msk.f32.mxu0 %vm511_vm0, %v17847_v34  ;;  %v19098_v34 = vld [vmem:[#allocation22_spill] sm:$0xff] }
0x1ab3   : > { %14136 = vmatprep.subr.mxu0 %v9979_v2  ;;  %v19117_v13 = vld [vmem:[#allocation18_spill] sm:$0xff] }
0x1ab4   : > { %14123 = vmatmul.mubr.msk.f32.vlgmr.msra.gmra.mxu1 %vm511_vm0, %v17852_v26  ;;  %14137 = vmatpush3.msra.mxu0 %v9979_v2  ;;  %v19099_v26 = vld [vmem:[#allocation6_spill] sm:$0xff] }
0x1ab5   : > { %14125 = vmatprep.mubr.msk.f32.mxu1 %vm511_vm0, %v17857_v52  ;;  %14110 = vmatmul.mubr.msk.f32.gmra.mxu0 %vm511_vm0, %v17862_v61  ;;  %v19100_v52 = vld [vmem:[#allocation9_spill] sm:$0xff] }
0x1ab6   : > { %14151 = vmatpush3.msra.mxu1 %v14842_v41  ;;  %14112 = vmatprep.mubr.msk.f32.mxu0 %vm511_vm0, %v17868_v9  ;;  %v19101_v61 = vld [vmem:[#allocation21_spill] sm:$0xff]  ;;  %v19102_v9 = vld [vmem:[#allocation10_spill] sm:$0xff] }
0x1ab7   : > { %14152 = vmatprep.subr.mxu1 %v17875_v27  ;;  %14170 = vmatprep.subr.mxu0 %v17886_v0 }
0x1ab8   : > { %14126 = vmatmul.mubr.msk.f32.gmra.mxu1 %vm511_vm0, %v17879_v11  ;;  %v19104_v11 = vld [vmem:[#allocation23_spill] sm:$0xff] }
0x1ab9   : > { %14128 = vmatprep.mubr.msk.f32.mxu1 %vm511_vm0, %v17890_v10  ;;  %14153 = vmatpush3.msra.mxu1 %v17875_v27  ;;  %v19103_v27 = vld [vmem:[#allocation7_spill] sm:$0xff]  ;;  %v19105_v10 = vld [vmem:[#allocation8_spill] sm:$0xff] }
0x1aba   : > { %14113 = vmatmul.mubr.msk.f32.gmra.mxu0 %vm511_vm0, %v19091_v42  ;;  %14154 = vmatprep.subr.mxu1 %v19092_v51  ;;  %v19118_v42 = vld [vmem:[#allocation28_spill] sm:$0xff] }
0x1abb   : > { %14115 = vmatprep.mubr.msk.f32.mxu0 %vm511_vm0, %v19093_v35  ;;  %14155 = vmatpush3.msra.mxu1 %v19092_v51 }
0x1abc   : > { %14129 = vmatmul.mubr.msk.f32.gmra.mxu1 %vm511_vm0, %v19094_v5  ;;  %14156 = vmatprep.subr.mxu1 %v19095_v3 }
0x1abd   : > { %14131 = vmatprep.mubr.msk.f32.mxu1 %vm511_vm0, %v19096_v44  ;;  %14157 = vmatpush3.msra.mxu1 %v19095_v3 }
0x1abe   : > { %14116 = vmatmul.mubr.msk.f32.gmra.mxu0 %vm511_vm0, %v19097_v39  ;;  %14190 = vmatprep.subr.mxu1 %v19098_v34 }
0x1abf   : > { %14138 = vmatprep.mubr.msk.f32.mxu0 %vm511_vm0, %v19099_v26 }
0x1ac0   : > { %14132 = vmatmul.mubr.msk.f32.gmra.mxu1 %vm511_vm0, %v19100_v52 }
0x1ac2   : > { %14139 = vmatmul.mubr.msk.f32.vlgmr.msra.gmra.mxu0 %vm511_vm0, %v19101_v61 }
0x1ac3   : > { %14141 = vmatprep.mubr.msk.f32.mxu0 %vm511_vm0, %v19102_v9  ;;  %14171 = vmatpush3.msra.mxu0 %v17886_v0  ;;  %v19109_v0 = vld [vmem:[#allocation11_spill] sm:$0xff] }
0x1ac4   : > { %14172 = vmatprep.subr.mxu0 %v19103_v27 }
0x1ac5   : > { %14173 = vmatpush3.msra.mxu0 %v19103_v27 }
0x1ac6   : > { %14142 = vmatmul.mubr.msk.f32.gmra.mxu0 %vm511_vm0, %v19104_v11  ;;  %14174 = vmatprep.subr.mxu0 %v19105_v10 }
0x1ac7   : > { %14144 = vmatprep.mubr.msk.f32.mxu0 %vm511_vm0, %v19106_v56  ;;  %14175 = vmatpush3.msra.mxu0 %v19105_v10 }
0x1ac8   : > { %14176 = vmatprep.subr.mxu0 %v19107_v16 }
0x1ac9   : > { %14177 = vmatpush3.msra.mxu0 %v19107_v16 }
0x1aca   : > { %14145 = vmatmul.mubr.msk.f32.gmra.mxu0 %vm511_vm0, %v19108_v8  ;;  %14210 = vmatprep.subr.mxu0 %v19109_v0 }
0x1acb   : > { %14147 = vmatprep.mubr.msk.f32.mxu0 %vm511_vm0, %v19110_v14 }
0x1ace   : > { %14148 = vmatmul.mubr.msk.f32.gmra.mxu0 %vm511_vm0, %v19111_v53 }
0x1b61   : > { %v14076_v49 = vpop.f32.mrf.mxu0 }
0x1b62   : > { %v18402_v59 = vadd.f32 %v19112_v36, %v14076_v49  ;;  %v14092_v18 = vpop.f32.mrf.mxu1 }
0x1b63   : > { %v10064_v12 = vpop.f32.mrf.mxu0 }
0x1b64   : > { %v18405_v63 = vadd.f32 %v19112_v36, %v10064_v12  ;;  %11145 = vrot.lane.b32.xlu1 %v18402_v59, %s14905_s10  ;;  %v10171_v33 = vpop.f32.mrf.mxu1 }
0x1b65   : > { %14158 = vmatprep.mubr.msk.f32.mxu1 %vm381_vm1, %v10171_v33  ;;  %v14079_v37 = vpop.f32.mrf.mxu0 }
0x1b66   : > { %11143 = vrot.lane.b32.xlu0 %v18405_v63, %s14905_s10  ;;  %14159 = vmatmul.mubr.msk.f32.vlgmr.msra.gmra.mxu1 %vm381_vm1, %v14092_v18  ;;  %v18414_v32 = vadd.f32 %v19112_v36, %v14079_v37 }
0x1b67   : > { %14191 = vmatpush3.msra.mxu1 %v19098_v34  ;;  %v10074_v31 = vpop.f32.mrf.mxu0 }
0x1b68   : > { %v14095_v28 = vpop.f32.mrf.mxu1  ;;  %14192 = vmatprep.subr.mxu1 %v19113_v4  ;;  %v18419_v45 = vadd.f32 %v19112_v36, %v10074_v31  ;;  %11149 = vrot.lane.b32.xlu1 %v18414_v32, %s14905_s10 }
0x1b69   : > { %14193 = vmatpush3.msra.mxu1 %v19113_v4  ;;  %v14082_v47 = vpop.f32.mrf.mxu0 }
0x1b6a   : > { %v10181_v46 = vpop.f32.mrf.mxu1  ;;  %14194 = vmatprep.subr.mxu1 %v19114_v20  ;;  %v18426_v50 = vadd.f32 %v19112_v36, %v14082_v47  ;;  %11147 = vrot.lane.b32.xlu0 %v18419_v45, %s14905_s10 }
0x1b6b   : > { %14178 = vmatprep.mubr.msk.f32.mxu0 %vm381_vm1, %v10181_v46  ;;  %v10084_v57 = vpop.f32.mrf.mxu0  ;;  %14195 = vmatpush3.msra.mxu1 %v19114_v20 }
0x1b6c   : > { %v14098_v22 = vpop.f32.mrf.mxu1  ;;  %14179 = vmatmul.mubr.msk.f32.vlgmr.msra.gmra.mxu0 %vm381_vm1, %v14095_v28  ;;  %v18434_v58 = vadd.f32 %v19112_v36, %v10084_v57  ;;  %11153 = vrot.lane.b32.xlu1 %v18426_v50, %s14905_s10 }
0x1b6d   : > { %14211 = vmatpush3.msra.mxu0 %v19109_v0  ;;  %v14085_v55 = vpop.f32.mrf.mxu0  ;;  %14196 = vmatprep.subr.mxu1 %v19116_v15 }
0x1b6e   : > { %v10191_v6 = vpop.f32.mrf.mxu1  ;;  %14212 = vmatprep.subr.mxu0 %v19115_v19  ;;  %v18442_v17 = vadd.f32 %v19112_v36, %v14085_v55  ;;  %11151 = vrot.lane.b32.xlu0 %v18434_v58, %s14905_s10 }
0x1b6f   : > { %14213 = vmatpush3.msra.mxu0 %v19115_v19  ;;  %v10094_v29 = vpop.f32.mrf.mxu0  ;;  %14197 = vmatpush3.msra.mxu1 %v19116_v15 }
0x1b70   : > { %v14101_v1 = vpop.f32.mrf.mxu1  ;;  %14214 = vmatprep.subr.mxu0 %v19117_v13  ;;  %v18450_v40 = vadd.f32 %v19112_v36, %v10094_v29  ;;  %11157 = vrot.lane.b32.xlu1 %v18442_v17, %s14905_s10 }
0x1b71   : > { %14215 = vmatpush3.msra.mxu0 %v19117_v13  ;;  %v14108_v2 = vpop.f32.mrf.mxu0 }
0x1b72   : > { %v10201_v41 = vpop.f32.mrf.mxu1  ;;  %14216 = vmatprep.subr.mxu0 %v19118_v42  ;;  %11155 = vrot.lane.b32.xlu0 %v18450_v40, %s14905_s10 }
0x1b73   : > { %14217 = vmatpush3.msra.mxu0 %v19118_v42  ;;  %v10278_v51 = vpop.f32.mrf.mxu0 }
0x1b74   : > { %v14124_v35 = vpop.f32.mrf.mxu1  ;;  %14161 = vmatprep.mubr.msk.f32.mxu1 %vm381_vm1, %v10278_v51 }
0x1b75   : > { %v14111_v5 = vpop.f32.mrf.mxu0  ;;  %14162 = vmatmul.mubr.msk.f32.gmra.mxu1 %vm381_vm1, %v14108_v2 }
0x1b76   : > { %v10385_v3 = vpop.f32.mrf.mxu1 }
0x1b77   : > { %14164 = vmatprep.mubr.msk.f32.mxu1 %vm381_vm1, %v10385_v3  ;;  %v10288_v44 = vpop.f32.mrf.mxu0 }
0x1b78   : > { %v14127_v39 = vpop.f32.mrf.mxu1  ;;  %14181 = vmatprep.mubr.msk.f32.mxu0 %vm381_vm1, %v10288_v44 }
0x1b79   : > { %14182 = vmatmul.mubr.msk.f32.gmra.mxu0 %vm381_vm1, %v14111_v5  ;;  %14165 = vmatmul.mubr.msk.f32.gmra.mxu1 %vm381_vm1, %v14124_v35 }
0x1b7a   : > { %v14114_v34 = vpop.f32.mrf.mxu0  ;;  %v10395_v26 = vpop.f32.mrf.mxu1 }
0x1b7b   : > { %14184 = vmatprep.mubr.msk.f32.mxu0 %vm381_vm1, %v10395_v26 }
0x1b7c   : > { %v10298_v52 = vpop.f32.mrf.mxu0  ;;  %v14130_v10 = vpop.f32.mrf.mxu1 }
0x1b7d   : > { %14185 = vmatmul.mubr.msk.f32.gmra.mxu0 %vm381_vm1, %v14127_v39 }
0x1b7e   : > { %v14117_v61 = vpop.f32.mrf.mxu0  ;;  %v10405_v8 = vpop.f32.mrf.mxu1 }
0x1b80   : > { %v10308_v9 = vpop.f32.mrf.mxu0  ;;  %v14133_v14 = vpop.f32.mrf.mxu1 }
0x1b82   : > { %v14140_v27 = vpop.f32.mrf.mxu0  ;;  %v10415_v49 = vpop.f32.mrf.mxu1 }
0x1b84   : > { %v10492_v11 = vpop.f32.mrf.mxu0 }
0x1b85   : > { %14167 = vmatprep.mubr.msk.f32.mxu1 %vm381_vm1, %v10492_v11 }
0x1b86   : > { %v14143_v56 = vpop.f32.mrf.mxu0  ;;  %14168 = vmatmul.mubr.msk.f32.gmra.mxu1 %vm381_vm1, %v14140_v27  ;;  %v19121_v27 = vld [vmem:[#allocation29_spill] sm:$0xff] }
0x1b87   : > { %14198 = vmatprep.mubr.msk.f32.mxu1 %vm381_vm1, %v10191_v6  ;;  %v19119_v6 = vld [vmem:[#allocation19_spill] sm:$0xff] }
0x1b88   : > { %v10502_v16 = vpop.f32.mrf.mxu0 }
0x1b89   : > { %14187 = vmatprep.mubr.msk.f32.mxu0 %vm381_vm1, %v10502_v16 }
0x1b8a   : > { %14188 = vmatmul.mubr.msk.f32.gmra.mxu0 %vm381_vm1, %v14143_v56  ;;  %14199 = vmatmul.mubr.msk.f32.vlgmr.msra.gmra.mxu1 %vm381_vm1, %v14098_v22  ;;  %v14146_v0 = vpop.f32.mrf.mxu0 }
0x1b8b   : > { %14201 = vmatprep.mubr.msk.f32.mxu1 %vm381_vm1, %v10298_v52  ;;  %14218 = vmatprep.mubr.msk.f32.mxu0 %vm381_vm1, %v10201_v41 }
0x1b8c   : > { %v10512_v53 = vpop.f32.mrf.mxu0 }
0x1b8e   : > { %14202 = vmatmul.mubr.msk.f32.gmra.mxu1 %vm381_vm1, %v14114_v34  ;;  %14219 = vmatmul.mubr.msk.f32.vlgmr.msra.gmra.mxu0 %vm381_vm1, %v14101_v1  ;;  %v14149_v36 = vpop.f32.mrf.mxu0  ;;  %v19120_v1 = vld [vmem:[#allocation20_spill] sm:$0xff] }
0x1b8f   : > { %14221 = vmatprep.mubr.msk.f32.mxu0 %vm381_vm1, %v10308_v9  ;;  %14204 = vmatprep.mubr.msk.f32.mxu1 %vm381_vm1, %v10405_v8 }
0x1b90   : > { %v10522_v18 = vpop.f32.mrf.mxu0 }
0x1b92   : > { %14205 = vmatmul.mubr.msk.f32.gmra.mxu1 %vm381_vm1, %v14130_v10  ;;  %14222 = vmatmul.mubr.msk.f32.gmra.mxu0 %vm381_vm1, %v14117_v61  ;;  %v19122_v10 = vld [vmem:[#allocation30_spill] sm:$0xff] }
0x1b93   : > { %14207 = vmatprep.mubr.msk.f32.mxu1 %vm381_vm1, %v10512_v53  ;;  %14224 = vmatprep.mubr.msk.f32.mxu0 %vm381_vm1, %v10415_v49 }
0x1b96   : > { %14208 = vmatmul.mubr.msk.f32.gmra.mxu1 %vm381_vm1, %v14146_v0  ;;  %14225 = vmatmul.mubr.msk.f32.gmra.mxu0 %vm381_vm1, %v14133_v14 }
0x1b97   : > { %14227 = vmatprep.mubr.msk.f32.mxu0 %vm381_vm1, %v10522_v18 }
0x1b9a   : > { %14228 = vmatmul.mubr.msk.f32.gmra.mxu0 %vm381_vm1, %v14149_v36 }
0x1c26   : > { %v14160_v12 = vpop.f32.mrf.mxu1 }
0x1c27   : > { %v10661_v19 = vadd.f32 %v19119_v6, %v14160_v12 }
0x1c28   : > { %v10621_v37 = vpop.f32.mrf.mxu1 }
0x1c29   : > { %v10660_v13 = vadd.f32 %v19120_v1, %v10621_v37 }
0x1c2c   : > { %v14180_v33 = vpop.f32.mrf.mxu0 }
0x1c2d   : > { %v10798_v42 = vadd.f32 %v14180_v33, %v10661_v19 }
0x1c2e   : > { %v10758_v31 = vpop.f32.mrf.mxu0 }
0x1c2f   : > { %v10797_v5 = vadd.f32 %v10758_v31, %v10660_v13 }
0x1c35   : > { %v14163_v28 = vpop.f32.mrf.mxu1 }
0x1c36   : > { %v10663_v3 = vadd.f32 %v18153_v25, %v14163_v28 }
0x1c37   : > { %v10631_v47 = vpop.f32.mrf.mxu1 }
0x1c38   : > { %v10662_v11 = vadd.f32 %v19121_v27, %v10631_v47 }
0x1c39   : > { %v14183_v4 = vpop.f32.mrf.mxu0  ;;  %v14166_v20 = vpop.f32.mrf.mxu1 }
0x1c3a   : > { %v10800_v26 = vadd.f32 %v14183_v4, %v10663_v3  ;;  %v10665_v52 = vadd.f32 %v18157_v60, %v14166_v20 }
0x1c3b   : > { %v10768_v46 = vpop.f32.mrf.mxu0  ;;  %v10641_v57 = vpop.f32.mrf.mxu1 }
0x1c3c   : > { %v10664_v56 = vadd.f32 %v19122_v10, %v10641_v57  ;;  %v10799_v53 = vadd.f32 %v10768_v46, %v10662_v11 }
0x1c3d   : > { %v14186_v22 = vpop.f32.mrf.mxu0 }
0x1c3e   : > { %v10802_v18 = vadd.f32 %v14186_v22, %v10665_v52 }
0x1c3f   : > { %v10778_v15 = vpop.f32.mrf.mxu0 }
0x1c40   : > { %v10801_v37 = vadd.f32 %v10778_v15, %v10664_v56 }
0x1c46   : > { %v14169_v55 = vpop.f32.mrf.mxu1 }
0x1c47   : > { %v10667_v31 = vadd.f32 %v18179_v30, %v14169_v55 }
0x1c48   : > { %v10651_v29 = vpop.f32.mrf.mxu1 }
0x1c49   : > { %v10666_v57 = vadd.f32 %v18185_v23, %v10651_v29 }
0x1c4a   : > { %v14189_v2 = vpop.f32.mrf.mxu0  ;;  %v14200_v41 = vpop.f32.mrf.mxu1 }
0x1c4b   : > { %v10935_v44 = vadd.f32 %v14200_v41, %v10798_v42  ;;  %v10804_v22 = vadd.f32 %v14189_v2, %v10667_v31 }
0x1c4c   : > { %v10788_v51 = vpop.f32.mrf.mxu0  ;;  %v10895_v35 = vpop.f32.mrf.mxu1 }
0x1c4d   : > { %v10934_v61 = vadd.f32 %v10895_v35, %v10797_v5  ;;  %v10803_v55 = vadd.f32 %v10788_v51, %v10666_v57 }
0x1c4e   : > { %v14203_v39 = vpop.f32.mrf.mxu1  ;;  %v14220_v34 = vpop.f32.mrf.mxu0 }
0x1c4f   : > { %v18491_v9 = vadd.f32 %v14220_v34, %v10935_v44  ;;  %v10937_v0 = vadd.f32 %v14203_v39, %v10800_v26 }
0x1c50   : > { %v10905_v16 = vpop.f32.mrf.mxu1  ;;  %v11032_v8 = vpop.f32.mrf.mxu0 }
0x1c51   : > { %v11080_v14 = vadd.f32 %v18491_v9, %v18402_v59  ;;  %v18497_v25 = vadd.f32 %v11032_v8, %v10934_v61  ;;  %v10936_v28 = vadd.f32 %v10905_v16, %v10799_v53 }
0x1c52   : > { %v14206_v49 = vpop.f32.mrf.mxu1  ;;  %v14223_v36 = vpop.f32.mrf.mxu0 }
0x1c53   : > { %v12100_v60 = vmul.f32 -1.442695, %v11080_v14  ;;  %v11079_v12 = vadd.f32 %v18497_v25, %v18405_v63  ;;  %v18501_v33 = vadd.f32 %v14223_v36, %v10937_v0  ;;  %v10939_v20 = vadd.f32 %v14206_v49, %v10802_v18  ;;  %v11146_v49 = vpop.permute.xlu1 %11145  ;;  %v11144_v18 = vpop.permute.xlu0 %11143 }
0x1c54   : > { %v10915_v4 = vpop.f32.mrf.mxu1  ;;  %v11042_v47 = vpop.f32.mrf.mxu0 }
0x1c55   : > { %14610 = vpow2.f32 %v12100_v60  ;;  %v12099_v59 = vmul.f32 -1.442695, %v11079_v12  ;;  %v11082_v46 = vadd.f32 %v18501_v33, %v18414_v32  ;;  %v18507_v6 = vadd.f32 %v11042_v47, %v10936_v28 }
0x1c56   : > { %v14209_v63 = vpop.f32.mrf.mxu1  ;;  %v14226_v19 = vpop.f32.mrf.mxu0  ;;  %v10938_v1 = vadd.f32 %v10915_v4, %v10801_v37 }
0x1c57   : > { %14612 = vpow2.f32 %v12099_v59  ;;  %v12102_v15 = vmul.f32 -1.442695, %v11082_v46  ;;  %v18509_v30 = vadd.f32 %v14226_v19, %v10939_v20  ;;  %v11081_v13 = vadd.f32 %v18507_v6, %v18419_v45  ;;  %v11150_v28 = vpop.permute.xlu1 %11149  ;;  %v11148_v59 = vpop.permute.xlu0 %11147 }
0x1c58   : > { %v10925_v41 = vpop.f32.mrf.mxu1  ;;  %v11052_v42 = vpop.f32.mrf.mxu0  ;;  %v10941_v32 = vadd.f32 %v14209_v63, %v10804_v22 }
0x1c59   : > { %14614 = vpow2.f32 %v12102_v15  ;;  %v11084_v23 = vadd.f32 %v18509_v30, %v18426_v50  ;;  %v18515_v29 = vadd.f32 %v11052_v42, %v10938_v1  ;;  %v12101_v2 = vmul.f32 -1.442695, %v11081_v13 }
0x1c5a   : > { %v14229_v35 = vpop.f32.mrf.mxu0  ;;  %v10940_v3 = vadd.f32 %v10925_v41, %v10803_v55 }
0x1c5b   : > { %v12104_v5 = vmul.f32 -1.442695, %v11084_v23  ;;  %v11083_v44 = vadd.f32 %v18515_v29, %v18434_v58  ;;  %v18519_v51 = vadd.f32 %v14229_v35, %v10941_v32  ;;  %14616 = vpow2.f32 %v12101_v2  ;;  %v11154_v22 = vpop.permute.xlu1 %11153  ;;  %v11152_v15 = vpop.permute.xlu0 %11151 }
0x1c5c   : > { %v11062_v45 = vpop.f32.mrf.mxu0 }
0x1c5d   : > { %14618 = vpow2.f32 %v12104_v5  ;;  %v12103_v39 = vmul.f32 -1.442695, %v11083_v44  ;;  %v11086_v34 = vadd.f32 %v18519_v51, %v18442_v17  ;;  %v18523_v26 = vadd.f32 %v11062_v45, %v10940_v3 }
0x1c5f   : > { %14620 = vpow2.f32 %v12103_v39  ;;  %v12106_v50 = vmul.f32 -1.442695, %v11086_v34  ;;  %v11085_v52 = vadd.f32 %v18523_v26, %v18450_v40  ;;  %v11158_v32 = vpop.permute.xlu1 %11157  ;;  %v11156_v35 = vpop.permute.xlu0 %11155 }
0x1c61   : > { %14622 = vpow2.f32 %v12106_v50  ;;  %v12105_v61 = vmul.f32 -1.442695, %v11085_v52 }
0x1c62   : > { %v14611_v27 = vpop.eup %14610 }
0x1c63   : > { %v11112_v58 = vadd.f32 1.0, %v14611_v27  ;;  %14624 = vpow2.f32 %v12105_v61 }
0x1c64   : > { %v14613_v11 = vpop.eup %14612 }
0x1c65   : > { %14626 = vrcp.f32 %v11112_v58  ;;  %v11111_v10 = vadd.f32 1.0, %v14613_v11 }
0x1c66   : > { %v14615_v56 = vpop.eup %14614 }
0x1c67   : > { %14628 = vrcp.f32 %v11111_v10  ;;  %v11114_v16 = vadd.f32 1.0, %v14615_v56 }
0x1c68   : > { %v14617_v8 = vpop.eup %14616 }
0x1c69   : > { %14630 = vrcp.f32 %v11114_v16  ;;  %v11113_v0 = vadd.f32 1.0, %v14617_v8 }
0x1c6a   : > { %v14619_v17 = vpop.eup %14618 }
0x1c6b   : > { %v11116_v14 = vadd.f32 1.0, %v14619_v17  ;;  %14632 = vrcp.f32 %v11113_v0 }
0x1c6c   : > { %v14621_v53 = vpop.eup %14620 }
0x1c6d   : > { %14634 = vrcp.f32 %v11116_v14  ;;  %v11115_v40 = vadd.f32 1.0, %v14621_v53 }
0x1c6e   : > { %v14623_v36 = vpop.eup %14622 }
0x1c6f   : > { %14636 = vrcp.f32 %v11115_v40  ;;  %v11118_v60 = vadd.f32 1.0, %v14623_v36 }
0x1c70   : > { %v14625_v12 = vpop.eup %14624 }
0x1c71   : > { %14638 = vrcp.f32 %v11118_v60  ;;  %v11117_v37 = vadd.f32 1.0, %v14625_v12 }
0x1c72   : > { %v18527_v31 = vpop.eup %14626 }
0x1c73   : > { %14640 = vrcp.f32 %v11117_v37  ;;  %v11168_v4 = vmul.f32 %v18527_v31, %v11146_v49 }
0x1c74   : > { %v18530_v47 = vpop.eup %14628 }
0x1c75   : > { %11185 = vrot.lane.b32.xlu1 %v11168_v4, %s14905_s10  ;;  %v11167_v20 = vmul.f32 %v18530_v47, %v11144_v18 }
0x1c76   : > { %v18534_v46 = vpop.eup %14630 }
0x1c77   : > { %11183 = vrot.lane.b32.xlu0 %v11167_v20, %s14905_s10  ;;  %v11170_v57 = vmul.f32 %v18534_v46, %v11150_v28 }
0x1c78   : > { %v18538_v63 = vpop.eup %14632 }
0x1c79   : > { %11189 = vrot.lane.b32.xlu1 %v11170_v57, %s14905_s10  ;;  %v11169_v1 = vmul.f32 %v18538_v63, %v11148_v59 }
0x1c7a   : > { %v18541_v19 = vpop.eup %14634 }
0x1c7b   : > { %v11172_v55 = vmul.f32 %v18541_v19, %v11154_v22  ;;  %11187 = vrot.lane.b32.xlu0 %v11169_v1, %s14905_s10 }
0x1c7c   : > { %v18545_v13 = vpop.eup %14636 }
0x1c7d   : > { %11193 = vrot.lane.b32.xlu1 %v11172_v55, %s14905_s10  ;;  %v11171_v41 = vmul.f32 %v18545_v13, %v11152_v15 }
0x1c7e   : > { %v18550_v42 = vpop.eup %14638 }
0x1c7f   : > { %v11174_v23 = vmul.f32 %v18550_v42, %v11158_v32  ;;  %11191 = vrot.lane.b32.xlu0 %v11171_v41, %s14905_s10 }
0x1c80   : > { %v18553_v2 = vpop.eup %14640 }
0x1c81   : > { %11197 = vrot.lane.b32.xlu1 %v11174_v23, %s14905_s10  ;;  %v11173_v5 = vmul.f32 %v18553_v2, %v11156_v35 }
0x1c83   : > { %11195 = vrot.lane.b32.xlu0 %v11173_v5, %s14905_s10 }
0x1ce7   : > { %v11186_v3 = vpop.permute.xlu1 %11185 }
0x1ce8   : > { %v11208_v44 = vadd.f32 %v11186_v3, %v18491_v9 }
0x1ce9   : > { %v11184_v45 = vpop.permute.xlu0 %11183 }
0x1cea   : > { %14642 = vtanh.f32 %v11208_v44  ;;  %v11207_v39 = vadd.f32 %v11184_v45, %v18497_v25 }
0x1ceb   : > { %v11190_v34 = vpop.permute.xlu1 %11189 }
0x1cec   : > { %14644 = vtanh.f32 %v11207_v39  ;;  %v11210_v50 = vadd.f32 %v11190_v34, %v18501_v33 }
0x1ced   : > { %v11188_v52 = vpop.permute.xlu0 %11187 }
0x1cee   : > { %14646 = vtanh.f32 %v11210_v50  ;;  %v11209_v61 = vadd.f32 %v11188_v52, %v18507_v6 }
0x1cef   : > { %v11194_v27 = vpop.permute.xlu1 %11193 }
0x1cf0   : > { %v11212_v58 = vadd.f32 %v11194_v27, %v18509_v30  ;;  %14648 = vtanh.f32 %v11209_v61 }
0x1cf1   : > { %v11192_v11 = vpop.permute.xlu0 %11191 }
0x1cf2   : > { %14650 = vtanh.f32 %v11212_v58  ;;  %v11211_v9 = vadd.f32 %v11192_v11, %v18515_v29 }
0x1cf3   : > { %v11198_v10 = vpop.permute.xlu1 %11197 }
0x1cf4   : > { %v11214_v56 = vadd.f32 %v11198_v10, %v18519_v51  ;;  %14652 = vtanh.f32 %v11211_v9 }
0x1cf5   : > { %v11196_v25 = vpop.permute.xlu0 %11195 }
0x1cf6   : > { %14654 = vtanh.f32 %v11214_v56  ;;  %v11213_v33 = vadd.f32 %v11196_v25, %v18523_v26 }
0x1cf7   : > { %v14643_v16 = vpop.eup %14642 }
0x1cf8   : > { %v11224_v8 = vsub.f32 %v18280_v7, %v14643_v16  ;;  %14656 = vtanh.f32 %v11213_v33 }
0x1cf9   : > { %v14645_v6 = vpop.eup %14644 }
0x1cfa   : > { %11241 = vrot.lane.b32.xlu1 %v11224_v8, %s14907_s13  ;;  %v11223_v30 = vsub.f32 %v18282_v62, %v14645_v6 }
0x1cfb   : > { %v14647_v17 = vpop.eup %14646 }
0x1cfc   : > { %11239 = vrot.lane.b32.xlu0 %v11223_v30, %s14907_s13  ;;  %v11226_v29 = vsub.f32 %v18286_v54, %v14647_v17 }
0x1cfd   : > { %v14649_v51 = vpop.eup %14648 }
0x1cfe   : > { %11245 = vrot.lane.b32.xlu1 %v11226_v29, %s14907_s13  ;;  %v11225_v14 = vsub.f32 %v18292_v21, %v14649_v51 }
0x1cff   : > { %v14651_v0 = vpop.eup %14650 }
0x1d00   : > { %v11228_v26 = vsub.f32 %v18294_v24, %v14651_v0  ;;  %11243 = vrot.lane.b32.xlu0 %v11225_v14, %s14907_s13 }
0x1d01   : > { %v14653_v7 = vpop.eup %14652 }
0x1d02   : > { %11249 = vrot.lane.b32.xlu1 %v11228_v26, %s14907_s13  ;;  %v11227_v62 = vsub.f32 %v18300_v48, %v14653_v7 }
0x1d03   : > { %v14655_v53 = vpop.eup %14654 }
0x1d04   : > { %v11230_v49 = vsub.f32 %v18302_v38, %v14655_v53  ;;  %11247 = vrot.lane.b32.xlu0 %v11227_v62, %s14907_s13 }
0x1d05   : > { %v14657_v54 = vpop.eup %14656 }
0x1d06   : > { %11253 = vrot.lane.b32.xlu1 %v11230_v49, %s14907_s13  ;;  %v11229_v40 = vsub.f32 %v18308_v43, %v14657_v54 }
0x1d08   : > { %11251 = vrot.lane.b32.xlu0 %v11229_v40, %s14907_s13 }
0x1d6c   : > { %v11242_v21 = vpop.permute.xlu1 %11241 }
0x1d6d   : > { %v11264_v24 = vmul.f32 %v18527_v31, %v11242_v21 }
0x1d6e   : > { %v11240_v36 = vpop.permute.xlu0 %11239 }
0x1d6f   : > { %v11263_v18 = vmul.f32 %v18530_v47, %v11240_v36  ;;  %11281 = vrot.lane.b32.xlu1 %v11264_v24, %s14906_s9 }
0x1d70   : > { %v11246_v48 = vpop.permute.xlu1 %11245 }
0x1d71   : > { %v11266_v38 = vmul.f32 %v18534_v46, %v11246_v48  ;;  %11279 = vrot.lane.b32.xlu0 %v11263_v18, %s14906_s9 }
0x1d72   : > { %v11244_v60 = vpop.permute.xlu0 %11243 }
0x1d73   : > { %11285 = vrot.lane.b32.xlu1 %v11266_v38, %s14906_s9  ;;  %v11265_v43 = vmul.f32 %v18538_v63, %v11244_v60 }
0x1d74   : > { %v11250_v12 = vpop.permute.xlu1 %11249 }
0x1d75   : > { %v11268_v37 = vmul.f32 %v18541_v19, %v11250_v12  ;;  %11283 = vrot.lane.b32.xlu0 %v11265_v43, %s14906_s9 }
0x1d76   : > { %v11248_v31 = vpop.permute.xlu0 %11247 }
0x1d77   : > { %11289 = vrot.lane.b32.xlu1 %v11268_v37, %s14906_s9  ;;  %v11267_v28 = vmul.f32 %v18545_v13, %v11248_v31 }
0x1d78   : > { %v11254_v4 = vpop.permute.xlu1 %11253 }
0x1d79   : > { %v11270_v47 = vmul.f32 %v18550_v42, %v11254_v4  ;;  %11287 = vrot.lane.b32.xlu0 %v11267_v28, %s14906_s9 }
0x1d7a   : > { %v11252_v59 = vpop.permute.xlu0 %11251 }
0x1d7b   : > { %11293 = vrot.lane.b32.xlu1 %v11270_v47, %s14906_s9  ;;  %v11269_v20 = vmul.f32 %v18553_v2, %v11252_v59 }
0x1d7d   : > { %11291 = vrot.lane.b32.xlu0 %v11269_v20, %s14906_s9  ;;  %s11456_s9 = sshll.u32 %s281_s28, 6 }
0x1d7e   : > { %s283_s13 = scalar_lea.vmem [#allocation2], %s11456_s9 }
0x1d7f   : > { %s11366_s29 = sshll.u32 %s283_s13, 4  ;;  %s18621_s29 = int_to_ptr.vmem [resolvable:$true] %s11366_s29 }
0x1d80   : > { %s14843_s15 = scalar_lea.vmem %s18621_s29, 1024  ;;  %p14850_p0 = scmp.lt.s32.totalorder %s18621_s29, %s14848_s17 }
0x1d81   : > { %p14844_p11 = scmp.ne.s32.totalorder %s18621_s29, %s14843_s15  ;;  %p14851_p1 = scmp.lt.s32.totalorder %s14849_s18, %s14843_s15 }
0x1d83   : > { %p14845_p12 = pnand %p14844_p11, %p14984_p5  ;;  %p14852_p2 = por %p14851_p1, %p14850_p0 }
0x1d85   : > { %p14846_p13 = pneg %p14845_p12 }
0x1d87   : > { %p14853_p3 = pnand %p14852_p2, %p14846_p13 }
0x1de1   : > { %v11282_v46 = vpop.permute.xlu1 %11281 }
0x1de2   : > { %v11304_v57 = vadd.f32 %v14643_v16, %v11282_v46 }
0x1de3   : > { %v11280_v22 = vpop.permute.xlu0 %11279 }
0x1de4   : > { %v11303_v63 = vadd.f32 %v14645_v6, %v11280_v22  ;;  %11321 = vrot.lane.b32.xlu1 %v11304_v57, %s14905_s10 }
0x1de5   : > { %v11286_v19 = vpop.permute.xlu1 %11285 }
0x1de6   : > { %v11306_v15 = vadd.f32 %v14647_v17, %v11286_v19  ;;  %11319 = vrot.lane.b32.xlu0 %v11303_v63, %s14905_s10 }
0x1de7   : > { %v11284_v1 = vpop.permute.xlu0 %11283 }
0x1de8   : > { %11325 = vrot.lane.b32.xlu1 %v11306_v15, %s14905_s10  ;;  %v11305_v55 = vadd.f32 %v14649_v51, %v11284_v1 }
0x1de9   : > { %v11290_v13 = vpop.permute.xlu1 %11289 }
0x1dea   : > { %v11308_v41 = vadd.f32 %v14651_v0, %v11290_v13  ;;  %11323 = vrot.lane.b32.xlu0 %v11305_v55, %s14905_s10 }
0x1deb   : > { %v11288_v42 = vpop.permute.xlu0 %11287 }
0x1dec   : > { %11329 = vrot.lane.b32.xlu1 %v11308_v41, %s14905_s10  ;;  %v11307_v32 = vadd.f32 %v14653_v7, %v11288_v42 }
0x1ded   : > { %v11294_v23 = vpop.permute.xlu1 %11293 }
0x1dee   : > { %v11310_v2 = vadd.f32 %v14655_v53, %v11294_v23  ;;  %11327 = vrot.lane.b32.xlu0 %v11307_v32, %s14905_s10 }
0x1def   : > { %v11292_v35 = vpop.permute.xlu0 %11291 }
0x1df0   : > { %11333 = vrot.lane.b32.xlu1 %v11310_v2, %s14905_s10  ;;  %v11309_v5 = vadd.f32 %v14657_v54, %v11292_v35 }
0x1df2   : > { %11331 = vrot.lane.b32.xlu0 %v11309_v5, %s14905_s10  ;;  %s12117_s10 = sshll.u32 %s14967_s25, 10  ;;  %s18624_s25 = scalar_lea.sflag [#allocation3], %s281_s28 }
0x1df3   : > { %s18619_s19 = scalar_lea.hbm %s18670_s6, %s12117_s10 }
0x1e56   : > { %v11322_v3 = vpop.permute.xlu1 %11321 }
0x1e57   : > { %11344 = vst.msk [vmem:[%s283_s13 + $0x8] sm:$0xff] %vm381_vm1, %v11322_v3 }
0x1e58   : > { %v11320_v44 = vpop.permute.xlu0 %11319 }
0x1e59   : > { %11343 = vst.msk [vmem:[%s283_s13] sm:$0xff] %vm381_vm1, %v11320_v44 }
0x1e5a   : > { %v11326_v45 = vpop.permute.xlu1 %11325 }
0x1e5b   : > { %11346 = vst.msk [vmem:[%s283_s13 + $0x18] sm:$0xff] %vm381_vm1, %v11326_v45 }
0x1e5c   : > { %v11324_v39 = vpop.permute.xlu0 %11323 }
0x1e5d   : > { %11345 = vst.msk [vmem:[%s283_s13 + $0x10] sm:$0xff] %vm381_vm1, %v11324_v39 }
0x1e5e   : > { %v11330_v34 = vpop.permute.xlu1 %11329 }
0x1e5f   : > { %11348 = vst.msk [vmem:[%s283_s13 + $0x28] sm:$0xff] %vm381_vm1, %v11330_v34 }
0x1e60   : > { %v11328_v50 = vpop.permute.xlu0 %11327 }
0x1e61   : > { %11347 = vst.msk [vmem:[%s283_s13 + $0x20] sm:$0xff] %vm381_vm1, %v11328_v50 }
0x1e62   : > { %v11334_v52 = vpop.permute.xlu1 %11333 }
0x1e63   : > { %11350 = vst.msk [vmem:[%s283_s13 + $0x38] sm:$0xff] %vm381_vm1, %v11334_v52 }
0x1e64   : > { %v11332_v61 = vpop.permute.xlu0 %11331 }
0x1e65   : > { %11349 = vst.msk [vmem:[%s283_s13 + $0x30] sm:$0xff] %vm381_vm1, %v11332_v61 }
0x1e66   : > { %14856 = shalt.err (!%p14853_p3)
}
0x1e67   : > { %s14857_s20 = scalar_lea.hbm %s18619_s19, 1024  ;;  %s14861_s28 = scalar_lea.hbm %s18670_s6, 2048 }
0x1e68   : > { %p14858_p4 = scmp.ne.s32.totalorder %s18619_s19, %s14857_s20  ;;  %p14862_p9 = scmp.lt.s32.totalorder %s18619_s19, %s18670_s6 }
0x1e69   : > { %p14863_p10 = scmp.lt.s32.totalorder %s14861_s28, %s14857_s20 }
0x1e6a   : > { %p14859_p7 = pnand %p14858_p4, %p14984_p5 }
0x1e6b   : > { %p14864_p11 = por %p14863_p10, %p14862_p9 }
0x1e6c   : > { %p14860_p8 = pneg %p14859_p7 }
0x1e6e   : > { %p14865_p12 = pnand %p14864_p11, %p14860_p8 }
0x1e70   : > { %14868 = shalt.err (!%p14865_p12)
}
0x1e71   : > { %s14909_s10 = smov 128   ;;  %s14910_s11 = smov 8  }
0x1e72   : > { %14230 = dma.vmem_to_hbm [thread:$0]  (%p14984_p5), %s18621_s29, 1024, %s18619_s19, %s18624_s25, %s14909_s10, %s14909_s10, %s14910_s11  }
0x1e73 PF: > { %p14236_p13 = scmp.ge.s32.totalorder %s14903_s24, 2  ;;  %s11381_s12 = sand.u32 1, %s14891_s21  }
0x1e74   : > { %s11382_s15 = scalar_lea.sflag [#allocation3], %s11381_s12 }
0x1e75   : > { %p14233_p0 = pnand %p14236_p13, %p14988_p6 }
0x1e77   : > { %p14234_p1 = pneg %p14233_p0 }
0x1e79   : > { %14886 = dma.done.wait (%p14234_p1), %s11382_s15, 1024  }
0x1e7a   : > { %14888 = vsyncadd (%p14234_p1), %s11382_s15, 4294966272  ;;  %p16_p2 = scmp.ge.s32.totalorder %s14971_s27, 4   ;;  %s19123_s21 = smov %s14895_s22 }
0x1e7b   : > { %s19124_s22 = smov %s14899_s23  ;;  %s19125_s23 = smov %s14982_s30 }
0x1e7c   : > { %s19126_s24 = smov %s14971_s27  ;;  %18 = sbr.rel (!%p16_p2) target bundleno = 3 (0x3), region = 85 }
0x1e81   :  { %11387 = vsyncpa [#allocation3], 1 }
0x1e82   :  { %11389 = vsyncpa [#allocation3 + $0x1], 1 }

</bundles_post_ra>
